<compile_context>
chip_gen: v6e
topology: v6e:2x2x1
jax: 0.10.0
libtpu: 0.0.40
codegen_flags: <defaults>
</compile_context>

<pallas_src>
import functools

import jax
import jax.numpy as jnp
from jax import lax
from jax.experimental import pallas as pl
from jax.experimental.pallas import tpu as pltpu

BN_EPS = 1e-5


# ----------------------------------------------------------------------------
# In-kernel helpers (selection / shift matrices built from iota — all compute
# then runs on the MXU, no unaligned slicing or in-kernel concat/reshape).
# ----------------------------------------------------------------------------
def _iota2(shape):
    r = lax.broadcasted_iota(jnp.int32, shape, 0)
    c = lax.broadcasted_iota(jnp.int32, shape, 1)
    return r, c


def _shift_mats(L):
    # (down @ y)[l] = y[l-1] (row 0 -> 0);  (up @ y)[l] = y[l+1] (row L-1 -> 0)
    r, c = _iota2((L, L))
    return ((c == r - 1).astype(jnp.float32),
            (c == r + 1).astype(jnp.float32))


def _pool_mats(L):
    Lh = L // 2
    r, c = _iota2((Lh, L))
    return ((c == 2 * r).astype(jnp.float32),
            (c == 2 * r + 1).astype(jnp.float32))


def _interleave_mats(L):
    r, c = _iota2((2 * L, L))
    return ((r == 2 * c).astype(jnp.float32),
            (r == 2 * c + 1).astype(jnp.float32))


# ----------------------------------------------------------------------------
# The fused kernel: the whole forward pass for ONE batch sample per grid step.
# ----------------------------------------------------------------------------
def _resunet_kernel(*refs, treedef, n_params, L):
    x_ref = refs[0]
    param_refs = refs[1:1 + n_params]
    o_ref = refs[1 + n_params]
    P = jax.tree_util.tree_unflatten(treedef, list(param_refs))

    def mm(a, b):
        return jnp.dot(a, b, preferred_element_type=jnp.float32)

    # Selection matrices, built once per resolution level and reused.
    shift = {}
    lc = L
    for _ in range(5):
        shift[lc] = _shift_mats(lc)
        lc //= 2
    pools = {l: _pool_mats(l) for l in (L, L // 2, L // 4, L // 8)}
    ilv = {l: _interleave_mats(l) for l in (L // 16, L // 8, L // 4, L // 2)}

    def conv3(xs, w_refs, b_ref, lcur, relu):
        # Conv1d(k=3, pad=1) + folded BN (+ ReLU). Multiple input streams
        # (decoder "concat") are summed into the same f32 accumulators.
        down, up = shift[lcur]
        y0 = y1 = y2 = None
        for xv, wr in zip(xs, w_refs):
            t0, t1, t2 = mm(xv, wr[0]), mm(xv, wr[1]), mm(xv, wr[2])
            y0 = t0 if y0 is None else y0 + t0
            y1 = t1 if y1 is None else y1 + t1
            y2 = t2 if y2 is None else y2 + t2
        y = mm(down, y0) + y1 + mm(up, y2) + b_ref[...]
        return jnp.maximum(y, 0.0) if relu else y

    def resblock(xs, p, lcur):
        # 1x1 shortcut conv + BN
        idn = None
        for xv, wr in zip(xs, p['ws']):
            t = mm(xv, wr[...])
            idn = t if idn is None else idn + t
        idn = idn + p['bs'][...]
        h = conv3(xs, p['w1'], p['b1'], lcur, relu=True)
        h = conv3([h], p['w2'], p['b2'], lcur, relu=False)
        return jnp.maximum(h + idn, 0.0)

    def maxpool(x, lcur):
        p0, p1 = pools[lcur]
        return jnp.maximum(mm(p0, x), mm(p1, x))

    def upconv(x, p, lcur):
        # ConvTranspose1d(k=2, s=2): even/odd taps interleaved on the MXU.
        w_ref, b_ref = p
        e0, e1 = ilv[lcur]
        return mm(e0, mm(x, w_ref[0])) + mm(e1, mm(x, w_ref[1])) + b_ref[...]

    x = x_ref[0].astype(jnp.float32)                      # (L, Cin)

    enc1 = resblock([x], P['enc1'], L)
    enc2 = resblock([maxpool(enc1, L)], P['enc2'], L // 2)
    enc3 = resblock([maxpool(enc2, L // 2)], P['enc3'], L // 4)
    enc4 = resblock([maxpool(enc3, L // 4)], P['enc4'], L // 8)
    bott = resblock([maxpool(enc4, L // 8)], P['bott'], L // 16)

    d4 = upconv(bott, P['up4'], L // 16)
    d4 = resblock([d4, enc4], P['dec4'], L // 8)
    d3 = upconv(d4, P['up3'], L // 8)
    d3 = resblock([d3, enc3], P['dec3'], L // 4)
    d2 = upconv(d3, P['up2'], L // 4)
    d2 = resblock([d2, enc2], P['dec2'], L // 2)
    d1 = upconv(d2, P['up1'], L // 2)
    d1 = resblock([d1, enc1], P['dec1'], L)

    wf, bf = P['final']
    y = mm(d1, wf[...]) + bf[...]                          # final 1x1 conv
    o_ref[0] = y.astype(o_ref.dtype)


# ----------------------------------------------------------------------------
# Wrapper
# ----------------------------------------------------------------------------
def resunet1d_forward(x, P):
    N, L, Cin = x.shape
    assert L % 16 == 0, "fused kernel requires L divisible by 16"
    leaves, treedef = jax.tree_util.tree_flatten(P)
    n_params = len(leaves)
    cout = P['final'][0].shape[-1]

    in_specs = [pl.BlockSpec((1, L, Cin), lambda n: (n, 0, 0))]
    for arr in leaves:
        nd = arr.ndim
        in_specs.append(
            pl.BlockSpec(tuple(arr.shape), lambda n, _nd=nd: (0,) * _nd))

    kernel = functools.partial(_resunet_kernel, treedef=treedef,
                               n_params=n_params, L=L)
    return pl.pallas_call(
        kernel,
        out_shape=jax.ShapeDtypeStruct((N, L, cout), jnp.float32),
        grid=(N,),
        in_specs=in_specs,
        out_specs=pl.BlockSpec((1, L, cout), lambda n: (n, 0, 0)),
        compiler_params=pltpu.CompilerParams(
            dimension_semantics=("parallel",)),   # 1 sample / TensorCore on v7x
    )(x, *leaves)


# ----------------------------------------------------------------------------
# Parameters (deterministic init) — BN scale folded into conv weights.
# ----------------------------------------------------------------------------
def _init_conv(key, k, cin, cout):
    kw, kb = jax.random.split(key)
    bound = 1.0 / ((k * cin) ** 0.5)
    w = jax.random.uniform(kw, (k, cin, cout), jnp.float32, -bound, bound)
    b = jax.random.uniform(kb, (cout,), jnp.float32, -bound, bound)
    return w, b


def _init_convT(key, cin, cout, k=2):
    # PyTorch ConvTranspose1d fan_in = out_channels * k
    kw, kb = jax.random.split(key)
    bound = 1.0 / ((k * cout) ** 0.5)
    w = jax.random.uniform(kw, (k, cin, cout), jnp.float32, -bound, bound)
    b = jax.random.uniform(kb, (1, cout), jnp.float32, -bound, bound)
    return w, b


def _init_resblock(key, cin, cout, split=None):
    k1, k2, ks = jax.random.split(key, 3)
    w1, b1 = _init_conv(k1, 3, cin, cout)
    w2, b2 = _init_conv(k2, 3, cout, cout)
    ws, bs = _init_conv(ks, 1, cin, cout)
    # Fold fresh eval-mode BatchNorm (gamma=1, beta=0, mean=0, var=1).
    s = (1.0 + BN_EPS) ** -0.5
    w1, b1 = w1 * s, (b1 * s).reshape(1, cout)
    w2, b2 = w2 * s, (b2 * s).reshape(1, cout)
    ws, bs = ws[0] * s, (bs * s).reshape(1, cout)
    if split is None:
        return dict(w1=(w1,), b1=b1, w2=(w2,), b2=b2, ws=(ws,), bs=bs)
    c = split  # decoder: split concat-weights into (upsampled, skip) halves
    return dict(w1=(w1[:, :c, :], w1[:, c:, :]), b1=b1,
                w2=(w2,), b2=b2,
                ws=(ws[:c, :], ws[c:, :]), bs=bs)


def init_model(key, in_channels=1, out_channels=1, features=8):
    keys = jax.random.split(key, 14)
    f = features
    P = {}
    P['enc1'] = _init_resblock(keys[0], in_channels, f)
    P['enc2'] = _init_resblock(keys[1], f, f * 2)
    P['enc3'] = _init_resblock(keys[2], f * 2, f * 4)
    P['enc4'] = _init_resblock(keys[3], f * 4, f * 8)
    P['bott'] = _init_resblock(keys[4], f * 8, f * 16)
    P['up4'] = _init_convT(keys[5], f * 16, f * 8)
    P['dec4'] = _init_resblock(keys[6], f * 16, f * 8, split=f * 8)
    P['up3'] = _init_convT(keys[7], f * 8, f * 4)
    P['dec3'] = _init_resblock(keys[8], f * 8, f * 4, split=f * 4)
    P['up2'] = _init_convT(keys[9], f * 4, f * 2)
    P['dec2'] = _init_resblock(keys[10], f * 4, f * 2, split=f * 2)
    P['up1'] = _init_convT(keys[11], f * 2, f)
    P['dec1'] = _init_resblock(keys[12], f * 2, f, split=f)
    wf, bf = _init_conv(keys[13], 1, f, out_channels)
    P['final'] = (wf[0], bf.reshape(1, out_channels))
    return P


if __name__ == "__main__":
    key = jax.random.PRNGKey(0)
    kx, kp = jax.random.split(key)

    N, Cin, L = 2, 1, 64                                   # PyTorch input: (2, 1, 64) NCL
    x_ncl = jax.random.normal(kx, (N, Cin, L), jnp.float32)
    x = jnp.transpose(x_ncl, (0, 2, 1))                    # -> (N, L, C) layout

    P = init_model(kp, in_channels=Cin, out_channels=1, features=8)

    fwd = jax.jit(resunet1d_forward)
    y = jax.block_until_ready(fwd(x, P))

    y_ncl = jnp.transpose(y, (0, 2, 1))                    # back to PyTorch NCL
    assert y_ncl.shape == (N, 1, L), y_ncl.shape
    assert bool(jnp.all(jnp.isfinite(y_ncl)))
    print("KERNEL_OK")
</pallas_src>

<mosaic_0001>
module attributes {stable_mosaic.version = 11 : i64} {
  func.func @_resunet_kernel(%arg0: i32, %arg1: memref<1x64x1xf32, #tpu.memory_space<vmem>>, %arg2: memref<1x128xf32, #tpu.memory_space<vmem>>, %arg3: memref<1x128xf32, #tpu.memory_space<vmem>>, %arg4: memref<1x128xf32, #tpu.memory_space<vmem>>, %arg5: memref<3x64x128xf32, #tpu.memory_space<vmem>>, %arg6: memref<3x128x128xf32, #tpu.memory_space<vmem>>, %arg7: memref<64x128xf32, #tpu.memory_space<vmem>>, %arg8: memref<1x8xf32, #tpu.memory_space<vmem>>, %arg9: memref<1x8xf32, #tpu.memory_space<vmem>>, %arg10: memref<1x8xf32, #tpu.memory_space<vmem>>, %arg11: memref<3x8x8xf32, #tpu.memory_space<vmem>>, %arg12: memref<3x8x8xf32, #tpu.memory_space<vmem>>, %arg13: memref<3x8x8xf32, #tpu.memory_space<vmem>>, %arg14: memref<8x8xf32, #tpu.memory_space<vmem>>, %arg15: memref<8x8xf32, #tpu.memory_space<vmem>>, %arg16: memref<1x16xf32, #tpu.memory_space<vmem>>, %arg17: memref<1x16xf32, #tpu.memory_space<vmem>>, %arg18: memref<1x16xf32, #tpu.memory_space<vmem>>, %arg19: memref<3x16x16xf32, #tpu.memory_space<vmem>>, %arg20: memref<3x16x16xf32, #tpu.memory_space<vmem>>, %arg21: memref<3x16x16xf32, #tpu.memory_space<vmem>>, %arg22: memref<16x16xf32, #tpu.memory_space<vmem>>, %arg23: memref<16x16xf32, #tpu.memory_space<vmem>>, %arg24: memref<1x32xf32, #tpu.memory_space<vmem>>, %arg25: memref<1x32xf32, #tpu.memory_space<vmem>>, %arg26: memref<1x32xf32, #tpu.memory_space<vmem>>, %arg27: memref<3x32x32xf32, #tpu.memory_space<vmem>>, %arg28: memref<3x32x32xf32, #tpu.memory_space<vmem>>, %arg29: memref<3x32x32xf32, #tpu.memory_space<vmem>>, %arg30: memref<32x32xf32, #tpu.memory_space<vmem>>, %arg31: memref<32x32xf32, #tpu.memory_space<vmem>>, %arg32: memref<1x64xf32, #tpu.memory_space<vmem>>, %arg33: memref<1x64xf32, #tpu.memory_space<vmem>>, %arg34: memref<1x64xf32, #tpu.memory_space<vmem>>, %arg35: memref<3x64x64xf32, #tpu.memory_space<vmem>>, %arg36: memref<3x64x64xf32, #tpu.memory_space<vmem>>, %arg37: memref<3x64x64xf32, #tpu.memory_space<vmem>>, %arg38: memref<64x64xf32, #tpu.memory_space<vmem>>, %arg39: memref<64x64xf32, #tpu.memory_space<vmem>>, %arg40: memref<1x8xf32, #tpu.memory_space<vmem>>, %arg41: memref<1x8xf32, #tpu.memory_space<vmem>>, %arg42: memref<1x8xf32, #tpu.memory_space<vmem>>, %arg43: memref<3x1x8xf32, #tpu.memory_space<vmem>>, %arg44: memref<3x8x8xf32, #tpu.memory_space<vmem>>, %arg45: memref<1x8xf32, #tpu.memory_space<vmem>>, %arg46: memref<1x16xf32, #tpu.memory_space<vmem>>, %arg47: memref<1x16xf32, #tpu.memory_space<vmem>>, %arg48: memref<1x16xf32, #tpu.memory_space<vmem>>, %arg49: memref<3x8x16xf32, #tpu.memory_space<vmem>>, %arg50: memref<3x16x16xf32, #tpu.memory_space<vmem>>, %arg51: memref<8x16xf32, #tpu.memory_space<vmem>>, %arg52: memref<1x32xf32, #tpu.memory_space<vmem>>, %arg53: memref<1x32xf32, #tpu.memory_space<vmem>>, %arg54: memref<1x32xf32, #tpu.memory_space<vmem>>, %arg55: memref<3x16x32xf32, #tpu.memory_space<vmem>>, %arg56: memref<3x32x32xf32, #tpu.memory_space<vmem>>, %arg57: memref<16x32xf32, #tpu.memory_space<vmem>>, %arg58: memref<1x64xf32, #tpu.memory_space<vmem>>, %arg59: memref<1x64xf32, #tpu.memory_space<vmem>>, %arg60: memref<1x64xf32, #tpu.memory_space<vmem>>, %arg61: memref<3x32x64xf32, #tpu.memory_space<vmem>>, %arg62: memref<3x64x64xf32, #tpu.memory_space<vmem>>, %arg63: memref<32x64xf32, #tpu.memory_space<vmem>>, %arg64: memref<8x1xf32, #tpu.memory_space<vmem>>, %arg65: memref<1x1xf32, #tpu.memory_space<vmem>>, %arg66: memref<2x16x8xf32, #tpu.memory_space<vmem>>, %arg67: memref<1x8xf32, #tpu.memory_space<vmem>>, %arg68: memref<2x32x16xf32, #tpu.memory_space<vmem>>, %arg69: memref<1x16xf32, #tpu.memory_space<vmem>>, %arg70: memref<2x64x32xf32, #tpu.memory_space<vmem>>, %arg71: memref<1x32xf32, #tpu.memory_space<vmem>>, %arg72: memref<2x128x64xf32, #tpu.memory_space<vmem>>, %arg73: memref<1x64xf32, #tpu.memory_space<vmem>>, %arg74: memref<1x64x1xf32, #tpu.memory_space<vmem>>) attributes {dimension_semantics = [#tpu.dimension_semantics<parallel>], iteration_bounds = array<i64: 2>, scalar_prefetch = 0 : i64, scratch_operands = 0 : i64, tpu.core_type = #tpu.core_type<tc>, window_params = [{transform_indices = @transform_0, window_bounds = array<i64: 1, 64, 1>}, {pipeline_mode = #tpu.pipeline_mode<synchronous>, transform_indices = @transform_1, window_bounds = array<i64: 1, 128>}, {pipeline_mode = #tpu.pipeline_mode<synchronous>, transform_indices = @transform_2, window_bounds = array<i64: 1, 128>}, {pipeline_mode = #tpu.pipeline_mode<synchronous>, transform_indices = @transform_3, window_bounds = array<i64: 1, 128>}, {pipeline_mode = #tpu.pipeline_mode<synchronous>, transform_indices = @transform_4, window_bounds = array<i64: 3, 64, 128>}, {pipeline_mode = #tpu.pipeline_mode<synchronous>, transform_indices = @transform_5, window_bounds = array<i64: 3, 128, 128>}, {pipeline_mode = #tpu.pipeline_mode<synchronous>, transform_indices = @transform_6, window_bounds = array<i64: 64, 128>}, {pipeline_mode = #tpu.pipeline_mode<synchronous>, transform_indices = @transform_7, window_bounds = array<i64: 1, 8>}, {pipeline_mode = #tpu.pipeline_mode<synchronous>, transform_indices = @transform_8, window_bounds = array<i64: 1, 8>}, {pipeline_mode = #tpu.pipeline_mode<synchronous>, transform_indices = @transform_9, window_bounds = array<i64: 1, 8>}, {pipeline_mode = #tpu.pipeline_mode<synchronous>, transform_indices = @transform_10, window_bounds = array<i64: 3, 8, 8>}, {pipeline_mode = #tpu.pipeline_mode<synchronous>, transform_indices = @transform_11, window_bounds = array<i64: 3, 8, 8>}, {pipeline_mode = #tpu.pipeline_mode<synchronous>, transform_indices = @transform_12, window_bounds = array<i64: 3, 8, 8>}, {pipeline_mode = #tpu.pipeline_mode<synchronous>, transform_indices = @transform_13, window_bounds = array<i64: 8, 8>}, {pipeline_mode = #tpu.pipeline_mode<synchronous>, transform_indices = @transform_14, window_bounds = array<i64: 8, 8>}, {pipeline_mode = #tpu.pipeline_mode<synchronous>, transform_indices = @transform_15, window_bounds = array<i64: 1, 16>}, {pipeline_mode = #tpu.pipeline_mode<synchronous>, transform_indices = @transform_16, window_bounds = array<i64: 1, 16>}, {pipeline_mode = #tpu.pipeline_mode<synchronous>, transform_indices = @transform_17, window_bounds = array<i64: 1, 16>}, {pipeline_mode = #tpu.pipeline_mode<synchronous>, transform_indices = @transform_18, window_bounds = array<i64: 3, 16, 16>}, {pipeline_mode = #tpu.pipeline_mode<synchronous>, transform_indices = @transform_19, window_bounds = array<i64: 3, 16, 16>}, {pipeline_mode = #tpu.pipeline_mode<synchronous>, transform_indices = @transform_20, window_bounds = array<i64: 3, 16, 16>}, {pipeline_mode = #tpu.pipeline_mode<synchronous>, transform_indices = @transform_21, window_bounds = array<i64: 16, 16>}, {pipeline_mode = #tpu.pipeline_mode<synchronous>, transform_indices = @transform_22, window_bounds = array<i64: 16, 16>}, {pipeline_mode = #tpu.pipeline_mode<synchronous>, transform_indices = @transform_23, window_bounds = array<i64: 1, 32>}, {pipeline_mode = #tpu.pipeline_mode<synchronous>, transform_indices = @transform_24, window_bounds = array<i64: 1, 32>}, {pipeline_mode = #tpu.pipeline_mode<synchronous>, transform_indices = @transform_25, window_bounds = array<i64: 1, 32>}, {pipeline_mode = #tpu.pipeline_mode<synchronous>, transform_indices = @transform_26, window_bounds = array<i64: 3, 32, 32>}, {pipeline_mode = #tpu.pipeline_mode<synchronous>, transform_indices = @transform_27, window_bounds = array<i64: 3, 32, 32>}, {pipeline_mode = #tpu.pipeline_mode<synchronous>, transform_indices = @transform_28, window_bounds = array<i64: 3, 32, 32>}, {pipeline_mode = #tpu.pipeline_mode<synchronous>, transform_indices = @transform_29, window_bounds = array<i64: 32, 32>}, {pipeline_mode = #tpu.pipeline_mode<synchronous>, transform_indices = @transform_30, window_bounds = array<i64: 32, 32>}, {pipeline_mode = #tpu.pipeline_mode<synchronous>, transform_indices = @transform_31, window_bounds = array<i64: 1, 64>}, {pipeline_mode = #tpu.pipeline_mode<synchronous>, transform_indices = @transform_32, window_bounds = array<i64: 1, 64>}, {pipeline_mode = #tpu.pipeline_mode<synchronous>, transform_indices = @transform_33, window_bounds = array<i64: 1, 64>}, {pipeline_mode = #tpu.pipeline_mode<synchronous>, transform_indices = @transform_34, window_bounds = array<i64: 3, 64, 64>}, {pipeline_mode = #tpu.pipeline_mode<synchronous>, transform_indices = @transform_35, window_bounds = array<i64: 3, 64, 64>}, {pipeline_mode = #tpu.pipeline_mode<synchronous>, transform_indices = @transform_36, window_bounds = array<i64: 3, 64, 64>}, {pipeline_mode = #tpu.pipeline_mode<synchronous>, transform_indices = @transform_37, window_bounds = array<i64: 64, 64>}, {pipeline_mode = #tpu.pipeline_mode<synchronous>, transform_indices = @transform_38, window_bounds = array<i64: 64, 64>}, {pipeline_mode = #tpu.pipeline_mode<synchronous>, transform_indices = @transform_39, window_bounds = array<i64: 1, 8>}, {pipeline_mode = #tpu.pipeline_mode<synchronous>, transform_indices = @transform_40, window_bounds = array<i64: 1, 8>}, {pipeline_mode = #tpu.pipeline_mode<synchronous>, transform_indices = @transform_41, window_bounds = array<i64: 1, 8>}, {pipeline_mode = #tpu.pipeline_mode<synchronous>, transform_indices = @transform_42, window_bounds = array<i64: 3, 1, 8>}, {pipeline_mode = #tpu.pipeline_mode<synchronous>, transform_indices = @transform_43, window_bounds = array<i64: 3, 8, 8>}, {pipeline_mode = #tpu.pipeline_mode<synchronous>, transform_indices = @transform_44, window_bounds = array<i64: 1, 8>}, {pipeline_mode = #tpu.pipeline_mode<synchronous>, transform_indices = @transform_45, window_bounds = array<i64: 1, 16>}, {pipeline_mode = #tpu.pipeline_mode<synchronous>, transform_indices = @transform_46, window_bounds = array<i64: 1, 16>}, {pipeline_mode = #tpu.pipeline_mode<synchronous>, transform_indices = @transform_47, window_bounds = array<i64: 1, 16>}, {pipeline_mode = #tpu.pipeline_mode<synchronous>, transform_indices = @transform_48, window_bounds = array<i64: 3, 8, 16>}, {pipeline_mode = #tpu.pipeline_mode<synchronous>, transform_indices = @transform_49, window_bounds = array<i64: 3, 16, 16>}, {pipeline_mode = #tpu.pipeline_mode<synchronous>, transform_indices = @transform_50, window_bounds = array<i64: 8, 16>}, {pipeline_mode = #tpu.pipeline_mode<synchronous>, transform_indices = @transform_51, window_bounds = array<i64: 1, 32>}, {pipeline_mode = #tpu.pipeline_mode<synchronous>, transform_indices = @transform_52, window_bounds = array<i64: 1, 32>}, {pipeline_mode = #tpu.pipeline_mode<synchronous>, transform_indices = @transform_53, window_bounds = array<i64: 1, 32>}, {pipeline_mode = #tpu.pipeline_mode<synchronous>, transform_indices = @transform_54, window_bounds = array<i64: 3, 16, 32>}, {pipeline_mode = #tpu.pipeline_mode<synchronous>, transform_indices = @transform_55, window_bounds = array<i64: 3, 32, 32>}, {pipeline_mode = #tpu.pipeline_mode<synchronous>, transform_indices = @transform_56, window_bounds = array<i64: 16, 32>}, {pipeline_mode = #tpu.pipeline_mode<synchronous>, transform_indices = @transform_57, window_bounds = array<i64: 1, 64>}, {pipeline_mode = #tpu.pipeline_mode<synchronous>, transform_indices = @transform_58, window_bounds = array<i64: 1, 64>}, {pipeline_mode = #tpu.pipeline_mode<synchronous>, transform_indices = @transform_59, window_bounds = array<i64: 1, 64>}, {pipeline_mode = #tpu.pipeline_mode<synchronous>, transform_indices = @transform_60, window_bounds = array<i64: 3, 32, 64>}, {pipeline_mode = #tpu.pipeline_mode<synchronous>, transform_indices = @transform_61, window_bounds = array<i64: 3, 64, 64>}, {pipeline_mode = #tpu.pipeline_mode<synchronous>, transform_indices = @transform_62, window_bounds = array<i64: 32, 64>}, {pipeline_mode = #tpu.pipeline_mode<synchronous>, transform_indices = @transform_63, window_bounds = array<i64: 8, 1>}, {pipeline_mode = #tpu.pipeline_mode<synchronous>, transform_indices = @transform_64, window_bounds = array<i64: 1, 1>}, {pipeline_mode = #tpu.pipeline_mode<synchronous>, transform_indices = @transform_65, window_bounds = array<i64: 2, 16, 8>}, {pipeline_mode = #tpu.pipeline_mode<synchronous>, transform_indices = @transform_66, window_bounds = array<i64: 1, 8>}, {pipeline_mode = #tpu.pipeline_mode<synchronous>, transform_indices = @transform_67, window_bounds = array<i64: 2, 32, 16>}, {pipeline_mode = #tpu.pipeline_mode<synchronous>, transform_indices = @transform_68, window_bounds = array<i64: 1, 16>}, {pipeline_mode = #tpu.pipeline_mode<synchronous>, transform_indices = @transform_69, window_bounds = array<i64: 2, 64, 32>}, {pipeline_mode = #tpu.pipeline_mode<synchronous>, transform_indices = @transform_70, window_bounds = array<i64: 1, 32>}, {pipeline_mode = #tpu.pipeline_mode<synchronous>, transform_indices = @transform_71, window_bounds = array<i64: 2, 128, 64>}, {pipeline_mode = #tpu.pipeline_mode<synchronous>, transform_indices = @transform_72, window_bounds = array<i64: 1, 64>}, {transform_indices = @transform_73, window_bounds = array<i64: 1, 64, 1>}]} {
    %0 = tpu.iota {dimensions = array<i32: 0>} : vector<64x64xi32>
    %1 = tpu.iota {dimensions = array<i32: 1>} : vector<64x64xi32>
    %c1_i32 = arith.constant 1 : i32
    %2 = vector.broadcast %c1_i32 : i32 to vector<64x64xi32>
    %3 = arith.subi %0, %2 : vector<64x64xi32>
    %4 = arith.cmpi eq, %1, %3 : vector<64x64xi32>
    %5 = arith.extui %4 : vector<64x64xi1> to vector<64x64xi32>
    %6 = arith.sitofp %5 : vector<64x64xi32> to vector<64x64xf32>
    %c1_i32_0 = arith.constant 1 : i32
    %7 = vector.broadcast %c1_i32_0 : i32 to vector<64x64xi32>
    %8 = arith.addi %0, %7 : vector<64x64xi32>
    %9 = arith.cmpi eq, %1, %8 : vector<64x64xi32>
    %10 = arith.extui %9 : vector<64x64xi1> to vector<64x64xi32>
    %11 = arith.sitofp %10 : vector<64x64xi32> to vector<64x64xf32>
    %12 = tpu.iota {dimensions = array<i32: 0>} : vector<32x32xi32>
    %13 = tpu.iota {dimensions = array<i32: 1>} : vector<32x32xi32>
    %c1_i32_1 = arith.constant 1 : i32
    %14 = vector.broadcast %c1_i32_1 : i32 to vector<32x32xi32>
    %15 = arith.subi %12, %14 : vector<32x32xi32>
    %16 = arith.cmpi eq, %13, %15 : vector<32x32xi32>
    %17 = arith.extui %16 : vector<32x32xi1> to vector<32x32xi32>
    %18 = arith.sitofp %17 : vector<32x32xi32> to vector<32x32xf32>
    %c1_i32_2 = arith.constant 1 : i32
    %19 = vector.broadcast %c1_i32_2 : i32 to vector<32x32xi32>
    %20 = arith.addi %12, %19 : vector<32x32xi32>
    %21 = arith.cmpi eq, %13, %20 : vector<32x32xi32>
    %22 = arith.extui %21 : vector<32x32xi1> to vector<32x32xi32>
    %23 = arith.sitofp %22 : vector<32x32xi32> to vector<32x32xf32>
    %24 = tpu.iota {dimensions = array<i32: 0>} : vector<16x16xi32>
    %25 = tpu.iota {dimensions = array<i32: 1>} : vector<16x16xi32>
    %c1_i32_3 = arith.constant 1 : i32
    %26 = vector.broadcast %c1_i32_3 : i32 to vector<16x16xi32>
    %27 = arith.subi %24, %26 : vector<16x16xi32>
    %28 = arith.cmpi eq, %25, %27 : vector<16x16xi32>
    %29 = arith.extui %28 : vector<16x16xi1> to vector<16x16xi32>
    %30 = arith.sitofp %29 : vector<16x16xi32> to vector<16x16xf32>
    %c1_i32_4 = arith.constant 1 : i32
    %31 = vector.broadcast %c1_i32_4 : i32 to vector<16x16xi32>
    %32 = arith.addi %24, %31 : vector<16x16xi32>
    %33 = arith.cmpi eq, %25, %32 : vector<16x16xi32>
    %34 = arith.extui %33 : vector<16x16xi1> to vector<16x16xi32>
    %35 = arith.sitofp %34 : vector<16x16xi32> to vector<16x16xf32>
    %36 = tpu.iota {dimensions = array<i32: 0>} : vector<8x8xi32>
    %37 = tpu.iota {dimensions = array<i32: 1>} : vector<8x8xi32>
    %c1_i32_5 = arith.constant 1 : i32
    %38 = vector.broadcast %c1_i32_5 : i32 to vector<8x8xi32>
    %39 = arith.subi %36, %38 : vector<8x8xi32>
    %40 = arith.cmpi eq, %37, %39 : vector<8x8xi32>
    %41 = arith.extui %40 : vector<8x8xi1> to vector<8x8xi32>
    %42 = arith.sitofp %41 : vector<8x8xi32> to vector<8x8xf32>
    %c1_i32_6 = arith.constant 1 : i32
    %43 = vector.broadcast %c1_i32_6 : i32 to vector<8x8xi32>
    %44 = arith.addi %36, %43 : vector<8x8xi32>
    %45 = arith.cmpi eq, %37, %44 : vector<8x8xi32>
    %46 = arith.extui %45 : vector<8x8xi1> to vector<8x8xi32>
    %47 = arith.sitofp %46 : vector<8x8xi32> to vector<8x8xf32>
    %48 = tpu.iota {dimensions = array<i32: 0>} : vector<4x4xi32>
    %49 = tpu.iota {dimensions = array<i32: 1>} : vector<4x4xi32>
    %c1_i32_7 = arith.constant 1 : i32
    %50 = vector.broadcast %c1_i32_7 : i32 to vector<4x4xi32>
    %51 = arith.subi %48, %50 : vector<4x4xi32>
    %52 = arith.cmpi eq, %49, %51 : vector<4x4xi32>
    %53 = arith.extui %52 : vector<4x4xi1> to vector<4x4xi32>
    %54 = arith.sitofp %53 : vector<4x4xi32> to vector<4x4xf32>
    %c1_i32_8 = arith.constant 1 : i32
    %55 = vector.broadcast %c1_i32_8 : i32 to vector<4x4xi32>
    %56 = arith.addi %48, %55 : vector<4x4xi32>
    %57 = arith.cmpi eq, %49, %56 : vector<4x4xi32>
    %58 = arith.extui %57 : vector<4x4xi1> to vector<4x4xi32>
    %59 = arith.sitofp %58 : vector<4x4xi32> to vector<4x4xf32>
    %60 = tpu.iota {dimensions = array<i32: 0>} : vector<32x64xi32>
    %61 = tpu.iota {dimensions = array<i32: 1>} : vector<32x64xi32>
    %c2_i32 = arith.constant 2 : i32
    %62 = vector.broadcast %c2_i32 : i32 to vector<32x64xi32>
    %63 = arith.muli %62, %60 : vector<32x64xi32>
    %64 = arith.cmpi eq, %61, %63 : vector<32x64xi32>
    %65 = arith.extui %64 : vector<32x64xi1> to vector<32x64xi32>
    %66 = arith.sitofp %65 : vector<32x64xi32> to vector<32x64xf32>
    %c2_i32_9 = arith.constant 2 : i32
    %67 = vector.broadcast %c2_i32_9 : i32 to vector<32x64xi32>
    %68 = arith.muli %67, %60 : vector<32x64xi32>
    %c1_i32_10 = arith.constant 1 : i32
    %69 = vector.broadcast %c1_i32_10 : i32 to vector<32x64xi32>
    %70 = arith.addi %68, %69 : vector<32x64xi32>
    %71 = arith.cmpi eq, %61, %70 : vector<32x64xi32>
    %72 = arith.extui %71 : vector<32x64xi1> to vector<32x64xi32>
    %73 = arith.sitofp %72 : vector<32x64xi32> to vector<32x64xf32>
    %74 = tpu.iota {dimensions = array<i32: 0>} : vector<16x32xi32>
    %75 = tpu.iota {dimensions = array<i32: 1>} : vector<16x32xi32>
    %c2_i32_11 = arith.constant 2 : i32
    %76 = vector.broadcast %c2_i32_11 : i32 to vector<16x32xi32>
    %77 = arith.muli %76, %74 : vector<16x32xi32>
    %78 = arith.cmpi eq, %75, %77 : vector<16x32xi32>
    %79 = arith.extui %78 : vector<16x32xi1> to vector<16x32xi32>
    %80 = arith.sitofp %79 : vector<16x32xi32> to vector<16x32xf32>
    %c2_i32_12 = arith.constant 2 : i32
    %81 = vector.broadcast %c2_i32_12 : i32 to vector<16x32xi32>
    %82 = arith.muli %81, %74 : vector<16x32xi32>
    %c1_i32_13 = arith.constant 1 : i32
    %83 = vector.broadcast %c1_i32_13 : i32 to vector<16x32xi32>
    %84 = arith.addi %82, %83 : vector<16x32xi32>
    %85 = arith.cmpi eq, %75, %84 : vector<16x32xi32>
    %86 = arith.extui %85 : vector<16x32xi1> to vector<16x32xi32>
    %87 = arith.sitofp %86 : vector<16x32xi32> to vector<16x32xf32>
    %88 = tpu.iota {dimensions = array<i32: 0>} : vector<8x16xi32>
    %89 = tpu.iota {dimensions = array<i32: 1>} : vector<8x16xi32>
    %c2_i32_14 = arith.constant 2 : i32
    %90 = vector.broadcast %c2_i32_14 : i32 to vector<8x16xi32>
    %91 = arith.muli %90, %88 : vector<8x16xi32>
    %92 = arith.cmpi eq, %89, %91 : vector<8x16xi32>
    %93 = arith.extui %92 : vector<8x16xi1> to vector<8x16xi32>
    %94 = arith.sitofp %93 : vector<8x16xi32> to vector<8x16xf32>
    %c2_i32_15 = arith.constant 2 : i32
    %95 = vector.broadcast %c2_i32_15 : i32 to vector<8x16xi32>
    %96 = arith.muli %95, %88 : vector<8x16xi32>
    %c1_i32_16 = arith.constant 1 : i32
    %97 = vector.broadcast %c1_i32_16 : i32 to vector<8x16xi32>
    %98 = arith.addi %96, %97 : vector<8x16xi32>
    %99 = arith.cmpi eq, %89, %98 : vector<8x16xi32>
    %100 = arith.extui %99 : vector<8x16xi1> to vector<8x16xi32>
    %101 = arith.sitofp %100 : vector<8x16xi32> to vector<8x16xf32>
    %102 = tpu.iota {dimensions = array<i32: 0>} : vector<4x8xi32>
    %103 = tpu.iota {dimensions = array<i32: 1>} : vector<4x8xi32>
    %c2_i32_17 = arith.constant 2 : i32
    %104 = vector.broadcast %c2_i32_17 : i32 to vector<4x8xi32>
    %105 = arith.muli %104, %102 : vector<4x8xi32>
    %106 = arith.cmpi eq, %103, %105 : vector<4x8xi32>
    %107 = arith.extui %106 : vector<4x8xi1> to vector<4x8xi32>
    %108 = arith.sitofp %107 : vector<4x8xi32> to vector<4x8xf32>
    %c2_i32_18 = arith.constant 2 : i32
    %109 = vector.broadcast %c2_i32_18 : i32 to vector<4x8xi32>
    %110 = arith.muli %109, %102 : vector<4x8xi32>
    %c1_i32_19 = arith.constant 1 : i32
    %111 = vector.broadcast %c1_i32_19 : i32 to vector<4x8xi32>
    %112 = arith.addi %110, %111 : vector<4x8xi32>
    %113 = arith.cmpi eq, %103, %112 : vector<4x8xi32>
    %114 = arith.extui %113 : vector<4x8xi1> to vector<4x8xi32>
    %115 = arith.sitofp %114 : vector<4x8xi32> to vector<4x8xf32>
    %116 = tpu.iota {dimensions = array<i32: 0>} : vector<8x4xi32>
    %117 = tpu.iota {dimensions = array<i32: 1>} : vector<8x4xi32>
    %c2_i32_20 = arith.constant 2 : i32
    %118 = vector.broadcast %c2_i32_20 : i32 to vector<8x4xi32>
    %119 = arith.muli %118, %117 : vector<8x4xi32>
    %120 = arith.cmpi eq, %116, %119 : vector<8x4xi32>
    %121 = arith.extui %120 : vector<8x4xi1> to vector<8x4xi32>
    %122 = arith.sitofp %121 : vector<8x4xi32> to vector<8x4xf32>
    %c2_i32_21 = arith.constant 2 : i32
    %123 = vector.broadcast %c2_i32_21 : i32 to vector<8x4xi32>
    %124 = arith.muli %123, %117 : vector<8x4xi32>
    %c1_i32_22 = arith.constant 1 : i32
    %125 = vector.broadcast %c1_i32_22 : i32 to vector<8x4xi32>
    %126 = arith.addi %124, %125 : vector<8x4xi32>
    %127 = arith.cmpi eq, %116, %126 : vector<8x4xi32>
    %128 = arith.extui %127 : vector<8x4xi1> to vector<8x4xi32>
    %129 = arith.sitofp %128 : vector<8x4xi32> to vector<8x4xf32>
    %130 = tpu.iota {dimensions = array<i32: 0>} : vector<16x8xi32>
    %131 = tpu.iota {dimensions = array<i32: 1>} : vector<16x8xi32>
    %c2_i32_23 = arith.constant 2 : i32
    %132 = vector.broadcast %c2_i32_23 : i32 to vector<16x8xi32>
    %133 = arith.muli %132, %131 : vector<16x8xi32>
    %134 = arith.cmpi eq, %130, %133 : vector<16x8xi32>
    %135 = arith.extui %134 : vector<16x8xi1> to vector<16x8xi32>
    %136 = arith.sitofp %135 : vector<16x8xi32> to vector<16x8xf32>
    %c2_i32_24 = arith.constant 2 : i32
    %137 = vector.broadcast %c2_i32_24 : i32 to vector<16x8xi32>
    %138 = arith.muli %137, %131 : vector<16x8xi32>
    %c1_i32_25 = arith.constant 1 : i32
    %139 = vector.broadcast %c1_i32_25 : i32 to vector<16x8xi32>
    %140 = arith.addi %138, %139 : vector<16x8xi32>
    %141 = arith.cmpi eq, %130, %140 : vector<16x8xi32>
    %142 = arith.extui %141 : vector<16x8xi1> to vector<16x8xi32>
    %143 = arith.sitofp %142 : vector<16x8xi32> to vector<16x8xf32>
    %144 = tpu.iota {dimensions = array<i32: 0>} : vector<32x16xi32>
    %145 = tpu.iota {dimensions = array<i32: 1>} : vector<32x16xi32>
    %c2_i32_26 = arith.constant 2 : i32
    %146 = vector.broadcast %c2_i32_26 : i32 to vector<32x16xi32>
    %147 = arith.muli %146, %145 : vector<32x16xi32>
    %148 = arith.cmpi eq, %144, %147 : vector<32x16xi32>
    %149 = arith.extui %148 : vector<32x16xi1> to vector<32x16xi32>
    %150 = arith.sitofp %149 : vector<32x16xi32> to vector<32x16xf32>
    %c2_i32_27 = arith.constant 2 : i32
    %151 = vector.broadcast %c2_i32_27 : i32 to vector<32x16xi32>
    %152 = arith.muli %151, %145 : vector<32x16xi32>
    %c1_i32_28 = arith.constant 1 : i32
    %153 = vector.broadcast %c1_i32_28 : i32 to vector<32x16xi32>
    %154 = arith.addi %152, %153 : vector<32x16xi32>
    %155 = arith.cmpi eq, %144, %154 : vector<32x16xi32>
    %156 = arith.extui %155 : vector<32x16xi1> to vector<32x16xi32>
    %157 = arith.sitofp %156 : vector<32x16xi32> to vector<32x16xf32>
    %158 = tpu.iota {dimensions = array<i32: 0>} : vector<64x32xi32>
    %159 = tpu.iota {dimensions = array<i32: 1>} : vector<64x32xi32>
    %c2_i32_29 = arith.constant 2 : i32
    %160 = vector.broadcast %c2_i32_29 : i32 to vector<64x32xi32>
    %161 = arith.muli %160, %159 : vector<64x32xi32>
    %162 = arith.cmpi eq, %158, %161 : vector<64x32xi32>
    %163 = arith.extui %162 : vector<64x32xi1> to vector<64x32xi32>
    %164 = arith.sitofp %163 : vector<64x32xi32> to vector<64x32xf32>
    %c2_i32_30 = arith.constant 2 : i32
    %165 = vector.broadcast %c2_i32_30 : i32 to vector<64x32xi32>
    %166 = arith.muli %165, %159 : vector<64x32xi32>
    %c1_i32_31 = arith.constant 1 : i32
    %167 = vector.broadcast %c1_i32_31 : i32 to vector<64x32xi32>
    %168 = arith.addi %166, %167 : vector<64x32xi32>
    %169 = arith.cmpi eq, %158, %168 : vector<64x32xi32>
    %170 = arith.extui %169 : vector<64x32xi1> to vector<64x32xi32>
    %171 = arith.sitofp %170 : vector<64x32xi32> to vector<64x32xf32>
    %c0 = arith.constant 0 : index
    %c0_32 = arith.constant 0 : index
    %c0_33 = arith.constant 0 : index
    %172 = vector.load %arg1[%c0, %c0_32, %c0_33] : memref<1x64x1xf32, #tpu.memory_space<vmem>>, vector<1x64x1xf32>
    %173 = vector.shape_cast %172 : vector<1x64x1xf32> to vector<64x1xf32>
    %c0_34 = arith.constant 0 : index
    %c0_35 = arith.constant 0 : index
    %174 = vector.load %arg45[%c0_34, %c0_35] : memref<1x8xf32, #tpu.memory_space<vmem>>, vector<1x8xf32>
    %cst = arith.constant dense<0.000000e+00> : vector<64x8xf32>
    %175 = tpu.matmul %173, %174, %cst {dimension_numbers = #tpu.dot_dimension_numbers<[1], [0], [0], [1], [0, 0, 1, 1], [], []>} : vector<64x1xf32>, vector<1x8xf32>, vector<64x8xf32> -> vector<64x8xf32>
    %c0_36 = arith.constant 0 : index
    %c0_37 = arith.constant 0 : index
    %176 = vector.load %arg42[%c0_36, %c0_37] : memref<1x8xf32, #tpu.memory_space<vmem>>, vector<1x8xf32>
    %177 = vector.broadcast %176 : vector<1x8xf32> to vector<64x8xf32>
    %178 = arith.addf %175, %177 : vector<64x8xf32>
    %c0_38 = arith.constant 0 : index
    %c0_39 = arith.constant 0 : index
    %c0_40 = arith.constant 0 : index
    %179 = vector.load %arg43[%c0_38, %c0_39, %c0_40] : memref<3x1x8xf32, #tpu.memory_space<vmem>>, vector<1x1x8xf32>
    %180 = vector.shape_cast %179 : vector<1x1x8xf32> to vector<1x8xf32>
    %cst_41 = arith.constant dense<0.000000e+00> : vector<64x8xf32>
    %181 = tpu.matmul %173, %180, %cst_41 {dimension_numbers = #tpu.dot_dimension_numbers<[1], [0], [0], [1], [0, 0, 1, 1], [], []>} : vector<64x1xf32>, vector<1x8xf32>, vector<64x8xf32> -> vector<64x8xf32>
    %c1 = arith.constant 1 : index
    %c0_42 = arith.constant 0 : index
    %c0_43 = arith.constant 0 : index
    %182 = vector.load %arg43[%c1, %c0_42, %c0_43] : memref<3x1x8xf32, #tpu.memory_space<vmem>>, vector<1x1x8xf32>
    %183 = vector.shape_cast %182 : vector<1x1x8xf32> to vector<1x8xf32>
    %cst_44 = arith.constant dense<0.000000e+00> : vector<64x8xf32>
    %184 = tpu.matmul %173, %183, %cst_44 {dimension_numbers = #tpu.dot_dimension_numbers<[1], [0], [0], [1], [0, 0, 1, 1], [], []>} : vector<64x1xf32>, vector<1x8xf32>, vector<64x8xf32> -> vector<64x8xf32>
    %c2 = arith.constant 2 : index
    %c0_45 = arith.constant 0 : index
    %c0_46 = arith.constant 0 : index
    %185 = vector.load %arg43[%c2, %c0_45, %c0_46] : memref<3x1x8xf32, #tpu.memory_space<vmem>>, vector<1x1x8xf32>
    %186 = vector.shape_cast %185 : vector<1x1x8xf32> to vector<1x8xf32>
    %cst_47 = arith.constant dense<0.000000e+00> : vector<64x8xf32>
    %187 = tpu.matmul %173, %186, %cst_47 {dimension_numbers = #tpu.dot_dimension_numbers<[1], [0], [0], [1], [0, 0, 1, 1], [], []>} : vector<64x1xf32>, vector<1x8xf32>, vector<64x8xf32> -> vector<64x8xf32>
    %cst_48 = arith.constant dense<0.000000e+00> : vector<64x8xf32>
    %188 = tpu.matmul %6, %181, %cst_48 {dimension_numbers = #tpu.dot_dimension_numbers<[1], [0], [0], [1], [0, 0, 1, 1], [], []>} : vector<64x64xf32>, vector<64x8xf32>, vector<64x8xf32> -> vector<64x8xf32>
    %189 = arith.addf %188, %184 : vector<64x8xf32>
    %cst_49 = arith.constant dense<0.000000e+00> : vector<64x8xf32>
    %190 = tpu.matmul %11, %187, %cst_49 {dimension_numbers = #tpu.dot_dimension_numbers<[1], [0], [0], [1], [0, 0, 1, 1], [], []>} : vector<64x64xf32>, vector<64x8xf32>, vector<64x8xf32> -> vector<64x8xf32>
    %191 = arith.addf %189, %190 : vector<64x8xf32>
    %c0_50 = arith.constant 0 : index
    %c0_51 = arith.constant 0 : index
    %192 = vector.load %arg40[%c0_50, %c0_51] : memref<1x8xf32, #tpu.memory_space<vmem>>, vector<1x8xf32>
    %193 = vector.broadcast %192 : vector<1x8xf32> to vector<64x8xf32>
    %194 = arith.addf %191, %193 : vector<64x8xf32>
    %cst_52 = arith.constant 0.000000e+00 : f32
    %195 = vector.broadcast %cst_52 : f32 to vector<64x8xf32>
    %196 = arith.maximumf %194, %195 : vector<64x8xf32>
    %c0_53 = arith.constant 0 : index
    %c0_54 = arith.constant 0 : index
    %c0_55 = arith.constant 0 : index
    %197 = vector.load %arg44[%c0_53, %c0_54, %c0_55] : memref<3x8x8xf32, #tpu.memory_space<vmem>>, vector<1x8x8xf32>
    %198 = vector.shape_cast %197 : vector<1x8x8xf32> to vector<8x8xf32>
    %cst_56 = arith.constant dense<0.000000e+00> : vector<64x8xf32>
    %199 = tpu.matmul %196, %198, %cst_56 {dimension_numbers = #tpu.dot_dimension_numbers<[1], [0], [0], [1], [0, 0, 1, 1], [], []>} : vector<64x8xf32>, vector<8x8xf32>, vector<64x8xf32> -> vector<64x8xf32>
    %c1_57 = arith.constant 1 : index
    %c0_58 = arith.constant 0 : index
    %c0_59 = arith.constant 0 : index
    %200 = vector.load %arg44[%c1_57, %c0_58, %c0_59] : memref<3x8x8xf32, #tpu.memory_space<vmem>>, vector<1x8x8xf32>
    %201 = vector.shape_cast %200 : vector<1x8x8xf32> to vector<8x8xf32>
    %cst_60 = arith.constant dense<0.000000e+00> : vector<64x8xf32>
    %202 = tpu.matmul %196, %201, %cst_60 {dimension_numbers = #tpu.dot_dimension_numbers<[1], [0], [0], [1], [0, 0, 1, 1], [], []>} : vector<64x8xf32>, vector<8x8xf32>, vector<64x8xf32> -> vector<64x8xf32>
    %c2_61 = arith.constant 2 : index
    %c0_62 = arith.constant 0 : index
    %c0_63 = arith.constant 0 : index
    %203 = vector.load %arg44[%c2_61, %c0_62, %c0_63] : memref<3x8x8xf32, #tpu.memory_space<vmem>>, vector<1x8x8xf32>
    %204 = vector.shape_cast %203 : vector<1x8x8xf32> to vector<8x8xf32>
    %cst_64 = arith.constant dense<0.000000e+00> : vector<64x8xf32>
    %205 = tpu.matmul %196, %204, %cst_64 {dimension_numbers = #tpu.dot_dimension_numbers<[1], [0], [0], [1], [0, 0, 1, 1], [], []>} : vector<64x8xf32>, vector<8x8xf32>, vector<64x8xf32> -> vector<64x8xf32>
    %cst_65 = arith.constant dense<0.000000e+00> : vector<64x8xf32>
    %206 = tpu.matmul %6, %199, %cst_65 {dimension_numbers = #tpu.dot_dimension_numbers<[1], [0], [0], [1], [0, 0, 1, 1], [], []>} : vector<64x64xf32>, vector<64x8xf32>, vector<64x8xf32> -> vector<64x8xf32>
    %207 = arith.addf %206, %202 : vector<64x8xf32>
    %cst_66 = arith.constant dense<0.000000e+00> : vector<64x8xf32>
    %208 = tpu.matmul %11, %205, %cst_66 {dimension_numbers = #tpu.dot_dimension_numbers<[1], [0], [0], [1], [0, 0, 1, 1], [], []>} : vector<64x64xf32>, vector<64x8xf32>, vector<64x8xf32> -> vector<64x8xf32>
    %209 = arith.addf %207, %208 : vector<64x8xf32>
    %c0_67 = arith.constant 0 : index
    %c0_68 = arith.constant 0 : index
    %210 = vector.load %arg41[%c0_67, %c0_68] : memref<1x8xf32, #tpu.memory_space<vmem>>, vector<1x8xf32>
    %211 = vector.broadcast %210 : vector<1x8xf32> to vector<64x8xf32>
    %212 = arith.addf %209, %211 : vector<64x8xf32>
    %213 = arith.addf %212, %178 : vector<64x8xf32>
    %cst_69 = arith.constant 0.000000e+00 : f32
    %214 = vector.broadcast %cst_69 : f32 to vector<64x8xf32>
    %215 = arith.maximumf %213, %214 : vector<64x8xf32>
    %cst_70 = arith.constant dense<0.000000e+00> : vector<32x8xf32>
    %216 = tpu.matmul %66, %215, %cst_70 {dimension_numbers = #tpu.dot_dimension_numbers<[1], [0], [0], [1], [0, 0, 1, 1], [], []>} : vector<32x64xf32>, vector<64x8xf32>, vector<32x8xf32> -> vector<32x8xf32>
    %cst_71 = arith.constant dense<0.000000e+00> : vector<32x8xf32>
    %217 = tpu.matmul %73, %215, %cst_71 {dimension_numbers = #tpu.dot_dimension_numbers<[1], [0], [0], [1], [0, 0, 1, 1], [], []>} : vector<32x64xf32>, vector<64x8xf32>, vector<32x8xf32> -> vector<32x8xf32>
    %218 = arith.maximumf %216, %217 : vector<32x8xf32>
    %c0_72 = arith.constant 0 : index
    %c0_73 = arith.constant 0 : index
    %219 = vector.load %arg51[%c0_72, %c0_73] : memref<8x16xf32, #tpu.memory_space<vmem>>, vector<8x16xf32>
    %cst_74 = arith.constant dense<0.000000e+00> : vector<32x16xf32>
    %220 = tpu.matmul %218, %219, %cst_74 {dimension_numbers = #tpu.dot_dimension_numbers<[1], [0], [0], [1], [0, 0, 1, 1], [], []>} : vector<32x8xf32>, vector<8x16xf32>, vector<32x16xf32> -> vector<32x16xf32>
    %c0_75 = arith.constant 0 : index
    %c0_76 = arith.constant 0 : index
    %221 = vector.load %arg48[%c0_75, %c0_76] : memref<1x16xf32, #tpu.memory_space<vmem>>, vector<1x16xf32>
    %222 = vector.broadcast %221 : vector<1x16xf32> to vector<32x16xf32>
    %223 = arith.addf %220, %222 : vector<32x16xf32>
    %c0_77 = arith.constant 0 : index
    %c0_78 = arith.constant 0 : index
    %c0_79 = arith.constant 0 : index
    %224 = vector.load %arg49[%c0_77, %c0_78, %c0_79] : memref<3x8x16xf32, #tpu.memory_space<vmem>>, vector<1x8x16xf32>
    %225 = vector.shape_cast %224 : vector<1x8x16xf32> to vector<8x16xf32>
    %cst_80 = arith.constant dense<0.000000e+00> : vector<32x16xf32>
    %226 = tpu.matmul %218, %225, %cst_80 {dimension_numbers = #tpu.dot_dimension_numbers<[1], [0], [0], [1], [0, 0, 1, 1], [], []>} : vector<32x8xf32>, vector<8x16xf32>, vector<32x16xf32> -> vector<32x16xf32>
    %c1_81 = arith.constant 1 : index
    %c0_82 = arith.constant 0 : index
    %c0_83 = arith.constant 0 : index
    %227 = vector.load %arg49[%c1_81, %c0_82, %c0_83] : memref<3x8x16xf32, #tpu.memory_space<vmem>>, vector<1x8x16xf32>
    %228 = vector.shape_cast %227 : vector<1x8x16xf32> to vector<8x16xf32>
    %cst_84 = arith.constant dense<0.000000e+00> : vector<32x16xf32>
    %229 = tpu.matmul %218, %228, %cst_84 {dimension_numbers = #tpu.dot_dimension_numbers<[1], [0], [0], [1], [0, 0, 1, 1], [], []>} : vector<32x8xf32>, vector<8x16xf32>, vector<32x16xf32> -> vector<32x16xf32>
    %c2_85 = arith.constant 2 : index
    %c0_86 = arith.constant 0 : index
    %c0_87 = arith.constant 0 : index
    %230 = vector.load %arg49[%c2_85, %c0_86, %c0_87] : memref<3x8x16xf32, #tpu.memory_space<vmem>>, vector<1x8x16xf32>
    %231 = vector.shape_cast %230 : vector<1x8x16xf32> to vector<8x16xf32>
    %cst_88 = arith.constant dense<0.000000e+00> : vector<32x16xf32>
    %232 = tpu.matmul %218, %231, %cst_88 {dimension_numbers = #tpu.dot_dimension_numbers<[1], [0], [0], [1], [0, 0, 1, 1], [], []>} : vector<32x8xf32>, vector<8x16xf32>, vector<32x16xf32> -> vector<32x16xf32>
    %cst_89 = arith.constant dense<0.000000e+00> : vector<32x16xf32>
    %233 = tpu.matmul %18, %226, %cst_89 {dimension_numbers = #tpu.dot_dimension_numbers<[1], [0], [0], [1], [0, 0, 1, 1], [], []>} : vector<32x32xf32>, vector<32x16xf32>, vector<32x16xf32> -> vector<32x16xf32>
    %234 = arith.addf %233, %229 : vector<32x16xf32>
    %cst_90 = arith.constant dense<0.000000e+00> : vector<32x16xf32>
    %235 = tpu.matmul %23, %232, %cst_90 {dimension_numbers = #tpu.dot_dimension_numbers<[1], [0], [0], [1], [0, 0, 1, 1], [], []>} : vector<32x32xf32>, vector<32x16xf32>, vector<32x16xf32> -> vector<32x16xf32>
    %236 = arith.addf %234, %235 : vector<32x16xf32>
    %c0_91 = arith.constant 0 : index
    %c0_92 = arith.constant 0 : index
    %237 = vector.load %arg46[%c0_91, %c0_92] : memref<1x16xf32, #tpu.memory_space<vmem>>, vector<1x16xf32>
    %238 = vector.broadcast %237 : vector<1x16xf32> to vector<32x16xf32>
    %239 = arith.addf %236, %238 : vector<32x16xf32>
    %cst_93 = arith.constant 0.000000e+00 : f32
    %240 = vector.broadcast %cst_93 : f32 to vector<32x16xf32>
    %241 = arith.maximumf %239, %240 : vector<32x16xf32>
    %c0_94 = arith.constant 0 : index
    %c0_95 = arith.constant 0 : index
    %c0_96 = arith.constant 0 : index
    %242 = vector.load %arg50[%c0_94, %c0_95, %c0_96] : memref<3x16x16xf32, #tpu.memory_space<vmem>>, vector<1x16x16xf32>
    %243 = vector.shape_cast %242 : vector<1x16x16xf32> to vector<16x16xf32>
    %cst_97 = arith.constant dense<0.000000e+00> : vector<32x16xf32>
    %244 = tpu.matmul %241, %243, %cst_97 {dimension_numbers = #tpu.dot_dimension_numbers<[1], [0], [0], [1], [0, 0, 1, 1], [], []>} : vector<32x16xf32>, vector<16x16xf32>, vector<32x16xf32> -> vector<32x16xf32>
    %c1_98 = arith.constant 1 : index
    %c0_99 = arith.constant 0 : index
    %c0_100 = arith.constant 0 : index
    %245 = vector.load %arg50[%c1_98, %c0_99, %c0_100] : memref<3x16x16xf32, #tpu.memory_space<vmem>>, vector<1x16x16xf32>
    %246 = vector.shape_cast %245 : vector<1x16x16xf32> to vector<16x16xf32>
    %cst_101 = arith.constant dense<0.000000e+00> : vector<32x16xf32>
    %247 = tpu.matmul %241, %246, %cst_101 {dimension_numbers = #tpu.dot_dimension_numbers<[1], [0], [0], [1], [0, 0, 1, 1], [], []>} : vector<32x16xf32>, vector<16x16xf32>, vector<32x16xf32> -> vector<32x16xf32>
    %c2_102 = arith.constant 2 : index
    %c0_103 = arith.constant 0 : index
    %c0_104 = arith.constant 0 : index
    %248 = vector.load %arg50[%c2_102, %c0_103, %c0_104] : memref<3x16x16xf32, #tpu.memory_space<vmem>>, vector<1x16x16xf32>
    %249 = vector.shape_cast %248 : vector<1x16x16xf32> to vector<16x16xf32>
    %cst_105 = arith.constant dense<0.000000e+00> : vector<32x16xf32>
    %250 = tpu.matmul %241, %249, %cst_105 {dimension_numbers = #tpu.dot_dimension_numbers<[1], [0], [0], [1], [0, 0, 1, 1], [], []>} : vector<32x16xf32>, vector<16x16xf32>, vector<32x16xf32> -> vector<32x16xf32>
    %cst_106 = arith.constant dense<0.000000e+00> : vector<32x16xf32>
    %251 = tpu.matmul %18, %244, %cst_106 {dimension_numbers = #tpu.dot_dimension_numbers<[1], [0], [0], [1], [0, 0, 1, 1], [], []>} : vector<32x32xf32>, vector<32x16xf32>, vector<32x16xf32> -> vector<32x16xf32>
    %252 = arith.addf %251, %247 : vector<32x16xf32>
    %cst_107 = arith.constant dense<0.000000e+00> : vector<32x16xf32>
    %253 = tpu.matmul %23, %250, %cst_107 {dimension_numbers = #tpu.dot_dimension_numbers<[1], [0], [0], [1], [0, 0, 1, 1], [], []>} : vector<32x32xf32>, vector<32x16xf32>, vector<32x16xf32> -> vector<32x16xf32>
    %254 = arith.addf %252, %253 : vector<32x16xf32>
    %c0_108 = arith.constant 0 : index
    %c0_109 = arith.constant 0 : index
    %255 = vector.load %arg47[%c0_108, %c0_109] : memref<1x16xf32, #tpu.memory_space<vmem>>, vector<1x16xf32>
    %256 = vector.broadcast %255 : vector<1x16xf32> to vector<32x16xf32>
    %257 = arith.addf %254, %256 : vector<32x16xf32>
    %258 = arith.addf %257, %223 : vector<32x16xf32>
    %cst_110 = arith.constant 0.000000e+00 : f32
    %259 = vector.broadcast %cst_110 : f32 to vector<32x16xf32>
    %260 = arith.maximumf %258, %259 : vector<32x16xf32>
    %cst_111 = arith.constant dense<0.000000e+00> : vector<16x16xf32>
    %261 = tpu.matmul %80, %260, %cst_111 {dimension_numbers = #tpu.dot_dimension_numbers<[1], [0], [0], [1], [0, 0, 1, 1], [], []>} : vector<16x32xf32>, vector<32x16xf32>, vector<16x16xf32> -> vector<16x16xf32>
    %cst_112 = arith.constant dense<0.000000e+00> : vector<16x16xf32>
    %262 = tpu.matmul %87, %260, %cst_112 {dimension_numbers = #tpu.dot_dimension_numbers<[1], [0], [0], [1], [0, 0, 1, 1], [], []>} : vector<16x32xf32>, vector<32x16xf32>, vector<16x16xf32> -> vector<16x16xf32>
    %263 = arith.maximumf %261, %262 : vector<16x16xf32>
    %c0_113 = arith.constant 0 : index
    %c0_114 = arith.constant 0 : index
    %264 = vector.load %arg57[%c0_113, %c0_114] : memref<16x32xf32, #tpu.memory_space<vmem>>, vector<16x32xf32>
    %cst_115 = arith.constant dense<0.000000e+00> : vector<16x32xf32>
    %265 = tpu.matmul %263, %264, %cst_115 {dimension_numbers = #tpu.dot_dimension_numbers<[1], [0], [0], [1], [0, 0, 1, 1], [], []>} : vector<16x16xf32>, vector<16x32xf32>, vector<16x32xf32> -> vector<16x32xf32>
    %c0_116 = arith.constant 0 : index
    %c0_117 = arith.constant 0 : index
    %266 = vector.load %arg54[%c0_116, %c0_117] : memref<1x32xf32, #tpu.memory_space<vmem>>, vector<1x32xf32>
    %267 = vector.broadcast %266 : vector<1x32xf32> to vector<16x32xf32>
    %268 = arith.addf %265, %267 : vector<16x32xf32>
    %c0_118 = arith.constant 0 : index
    %c0_119 = arith.constant 0 : index
    %c0_120 = arith.constant 0 : index
    %269 = vector.load %arg55[%c0_118, %c0_119, %c0_120] : memref<3x16x32xf32, #tpu.memory_space<vmem>>, vector<1x16x32xf32>
    %270 = vector.shape_cast %269 : vector<1x16x32xf32> to vector<16x32xf32>
    %cst_121 = arith.constant dense<0.000000e+00> : vector<16x32xf32>
    %271 = tpu.matmul %263, %270, %cst_121 {dimension_numbers = #tpu.dot_dimension_numbers<[1], [0], [0], [1], [0, 0, 1, 1], [], []>} : vector<16x16xf32>, vector<16x32xf32>, vector<16x32xf32> -> vector<16x32xf32>
    %c1_122 = arith.constant 1 : index
    %c0_123 = arith.constant 0 : index
    %c0_124 = arith.constant 0 : index
    %272 = vector.load %arg55[%c1_122, %c0_123, %c0_124] : memref<3x16x32xf32, #tpu.memory_space<vmem>>, vector<1x16x32xf32>
    %273 = vector.shape_cast %272 : vector<1x16x32xf32> to vector<16x32xf32>
    %cst_125 = arith.constant dense<0.000000e+00> : vector<16x32xf32>
    %274 = tpu.matmul %263, %273, %cst_125 {dimension_numbers = #tpu.dot_dimension_numbers<[1], [0], [0], [1], [0, 0, 1, 1], [], []>} : vector<16x16xf32>, vector<16x32xf32>, vector<16x32xf32> -> vector<16x32xf32>
    %c2_126 = arith.constant 2 : index
    %c0_127 = arith.constant 0 : index
    %c0_128 = arith.constant 0 : index
    %275 = vector.load %arg55[%c2_126, %c0_127, %c0_128] : memref<3x16x32xf32, #tpu.memory_space<vmem>>, vector<1x16x32xf32>
    %276 = vector.shape_cast %275 : vector<1x16x32xf32> to vector<16x32xf32>
    %cst_129 = arith.constant dense<0.000000e+00> : vector<16x32xf32>
    %277 = tpu.matmul %263, %276, %cst_129 {dimension_numbers = #tpu.dot_dimension_numbers<[1], [0], [0], [1], [0, 0, 1, 1], [], []>} : vector<16x16xf32>, vector<16x32xf32>, vector<16x32xf32> -> vector<16x32xf32>
    %cst_130 = arith.constant dense<0.000000e+00> : vector<16x32xf32>
    %278 = tpu.matmul %30, %271, %cst_130 {dimension_numbers = #tpu.dot_dimension_numbers<[1], [0], [0], [1], [0, 0, 1, 1], [], []>} : vector<16x16xf32>, vector<16x32xf32>, vector<16x32xf32> -> vector<16x32xf32>
    %279 = arith.addf %278, %274 : vector<16x32xf32>
    %cst_131 = arith.constant dense<0.000000e+00> : vector<16x32xf32>
    %280 = tpu.matmul %35, %277, %cst_131 {dimension_numbers = #tpu.dot_dimension_numbers<[1], [0], [0], [1], [0, 0, 1, 1], [], []>} : vector<16x16xf32>, vector<16x32xf32>, vector<16x32xf32> -> vector<16x32xf32>
    %281 = arith.addf %279, %280 : vector<16x32xf32>
    %c0_132 = arith.constant 0 : index
    %c0_133 = arith.constant 0 : index
    %282 = vector.load %arg52[%c0_132, %c0_133] : memref<1x32xf32, #tpu.memory_space<vmem>>, vector<1x32xf32>
    %283 = vector.broadcast %282 : vector<1x32xf32> to vector<16x32xf32>
    %284 = arith.addf %281, %283 : vector<16x32xf32>
    %cst_134 = arith.constant 0.000000e+00 : f32
    %285 = vector.broadcast %cst_134 : f32 to vector<16x32xf32>
    %286 = arith.maximumf %284, %285 : vector<16x32xf32>
    %c0_135 = arith.constant 0 : index
    %c0_136 = arith.constant 0 : index
    %c0_137 = arith.constant 0 : index
    %287 = vector.load %arg56[%c0_135, %c0_136, %c0_137] : memref<3x32x32xf32, #tpu.memory_space<vmem>>, vector<1x32x32xf32>
    %288 = vector.shape_cast %287 : vector<1x32x32xf32> to vector<32x32xf32>
    %cst_138 = arith.constant dense<0.000000e+00> : vector<16x32xf32>
    %289 = tpu.matmul %286, %288, %cst_138 {dimension_numbers = #tpu.dot_dimension_numbers<[1], [0], [0], [1], [0, 0, 1, 1], [], []>} : vector<16x32xf32>, vector<32x32xf32>, vector<16x32xf32> -> vector<16x32xf32>
    %c1_139 = arith.constant 1 : index
    %c0_140 = arith.constant 0 : index
    %c0_141 = arith.constant 0 : index
    %290 = vector.load %arg56[%c1_139, %c0_140, %c0_141] : memref<3x32x32xf32, #tpu.memory_space<vmem>>, vector<1x32x32xf32>
    %291 = vector.shape_cast %290 : vector<1x32x32xf32> to vector<32x32xf32>
    %cst_142 = arith.constant dense<0.000000e+00> : vector<16x32xf32>
    %292 = tpu.matmul %286, %291, %cst_142 {dimension_numbers = #tpu.dot_dimension_numbers<[1], [0], [0], [1], [0, 0, 1, 1], [], []>} : vector<16x32xf32>, vector<32x32xf32>, vector<16x32xf32> -> vector<16x32xf32>
    %c2_143 = arith.constant 2 : index
    %c0_144 = arith.constant 0 : index
    %c0_145 = arith.constant 0 : index
    %293 = vector.load %arg56[%c2_143, %c0_144, %c0_145] : memref<3x32x32xf32, #tpu.memory_space<vmem>>, vector<1x32x32xf32>
    %294 = vector.shape_cast %293 : vector<1x32x32xf32> to vector<32x32xf32>
    %cst_146 = arith.constant dense<0.000000e+00> : vector<16x32xf32>
    %295 = tpu.matmul %286, %294, %cst_146 {dimension_numbers = #tpu.dot_dimension_numbers<[1], [0], [0], [1], [0, 0, 1, 1], [], []>} : vector<16x32xf32>, vector<32x32xf32>, vector<16x32xf32> -> vector<16x32xf32>
    %cst_147 = arith.constant dense<0.000000e+00> : vector<16x32xf32>
    %296 = tpu.matmul %30, %289, %cst_147 {dimension_numbers = #tpu.dot_dimension_numbers<[1], [0], [0], [1], [0, 0, 1, 1], [], []>} : vector<16x16xf32>, vector<16x32xf32>, vector<16x32xf32> -> vector<16x32xf32>
    %297 = arith.addf %296, %292 : vector<16x32xf32>
    %cst_148 = arith.constant dense<0.000000e+00> : vector<16x32xf32>
    %298 = tpu.matmul %35, %295, %cst_148 {dimension_numbers = #tpu.dot_dimension_numbers<[1], [0], [0], [1], [0, 0, 1, 1], [], []>} : vector<16x16xf32>, vector<16x32xf32>, vector<16x32xf32> -> vector<16x32xf32>
    %299 = arith.addf %297, %298 : vector<16x32xf32>
    %c0_149 = arith.constant 0 : index
    %c0_150 = arith.constant 0 : index
    %300 = vector.load %arg53[%c0_149, %c0_150] : memref<1x32xf32, #tpu.memory_space<vmem>>, vector<1x32xf32>
    %301 = vector.broadcast %300 : vector<1x32xf32> to vector<16x32xf32>
    %302 = arith.addf %299, %301 : vector<16x32xf32>
    %303 = arith.addf %302, %268 : vector<16x32xf32>
    %cst_151 = arith.constant 0.000000e+00 : f32
    %304 = vector.broadcast %cst_151 : f32 to vector<16x32xf32>
    %305 = arith.maximumf %303, %304 : vector<16x32xf32>
    %cst_152 = arith.constant dense<0.000000e+00> : vector<8x32xf32>
    %306 = tpu.matmul %94, %305, %cst_152 {dimension_numbers = #tpu.dot_dimension_numbers<[1], [0], [0], [1], [0, 0, 1, 1], [], []>} : vector<8x16xf32>, vector<16x32xf32>, vector<8x32xf32> -> vector<8x32xf32>
    %cst_153 = arith.constant dense<0.000000e+00> : vector<8x32xf32>
    %307 = tpu.matmul %101, %305, %cst_153 {dimension_numbers = #tpu.dot_dimension_numbers<[1], [0], [0], [1], [0, 0, 1, 1], [], []>} : vector<8x16xf32>, vector<16x32xf32>, vector<8x32xf32> -> vector<8x32xf32>
    %308 = arith.maximumf %306, %307 : vector<8x32xf32>
    %c0_154 = arith.constant 0 : index
    %c0_155 = arith.constant 0 : index
    %309 = vector.load %arg63[%c0_154, %c0_155] : memref<32x64xf32, #tpu.memory_space<vmem>>, vector<32x64xf32>
    %cst_156 = arith.constant dense<0.000000e+00> : vector<8x64xf32>
    %310 = tpu.matmul %308, %309, %cst_156 {dimension_numbers = #tpu.dot_dimension_numbers<[1], [0], [0], [1], [0, 0, 1, 1], [], []>} : vector<8x32xf32>, vector<32x64xf32>, vector<8x64xf32> -> vector<8x64xf32>
    %c0_157 = arith.constant 0 : index
    %c0_158 = arith.constant 0 : index
    %311 = vector.load %arg60[%c0_157, %c0_158] : memref<1x64xf32, #tpu.memory_space<vmem>>, vector<1x64xf32>
    %312 = vector.broadcast %311 : vector<1x64xf32> to vector<8x64xf32>
    %313 = arith.addf %310, %312 : vector<8x64xf32>
    %c0_159 = arith.constant 0 : index
    %c0_160 = arith.constant 0 : index
    %c0_161 = arith.constant 0 : index
    %314 = vector.load %arg61[%c0_159, %c0_160, %c0_161] : memref<3x32x64xf32, #tpu.memory_space<vmem>>, vector<1x32x64xf32>
    %315 = vector.shape_cast %314 : vector<1x32x64xf32> to vector<32x64xf32>
    %cst_162 = arith.constant dense<0.000000e+00> : vector<8x64xf32>
    %316 = tpu.matmul %308, %315, %cst_162 {dimension_numbers = #tpu.dot_dimension_numbers<[1], [0], [0], [1], [0, 0, 1, 1], [], []>} : vector<8x32xf32>, vector<32x64xf32>, vector<8x64xf32> -> vector<8x64xf32>
    %c1_163 = arith.constant 1 : index
    %c0_164 = arith.constant 0 : index
    %c0_165 = arith.constant 0 : index
    %317 = vector.load %arg61[%c1_163, %c0_164, %c0_165] : memref<3x32x64xf32, #tpu.memory_space<vmem>>, vector<1x32x64xf32>
    %318 = vector.shape_cast %317 : vector<1x32x64xf32> to vector<32x64xf32>
    %cst_166 = arith.constant dense<0.000000e+00> : vector<8x64xf32>
    %319 = tpu.matmul %308, %318, %cst_166 {dimension_numbers = #tpu.dot_dimension_numbers<[1], [0], [0], [1], [0, 0, 1, 1], [], []>} : vector<8x32xf32>, vector<32x64xf32>, vector<8x64xf32> -> vector<8x64xf32>
    %c2_167 = arith.constant 2 : index
    %c0_168 = arith.constant 0 : index
    %c0_169 = arith.constant 0 : index
    %320 = vector.load %arg61[%c2_167, %c0_168, %c0_169] : memref<3x32x64xf32, #tpu.memory_space<vmem>>, vector<1x32x64xf32>
    %321 = vector.shape_cast %320 : vector<1x32x64xf32> to vector<32x64xf32>
    %cst_170 = arith.constant dense<0.000000e+00> : vector<8x64xf32>
    %322 = tpu.matmul %308, %321, %cst_170 {dimension_numbers = #tpu.dot_dimension_numbers<[1], [0], [0], [1], [0, 0, 1, 1], [], []>} : vector<8x32xf32>, vector<32x64xf32>, vector<8x64xf32> -> vector<8x64xf32>
    %cst_171 = arith.constant dense<0.000000e+00> : vector<8x64xf32>
    %323 = tpu.matmul %42, %316, %cst_171 {dimension_numbers = #tpu.dot_dimension_numbers<[1], [0], [0], [1], [0, 0, 1, 1], [], []>} : vector<8x8xf32>, vector<8x64xf32>, vector<8x64xf32> -> vector<8x64xf32>
    %324 = arith.addf %323, %319 : vector<8x64xf32>
    %cst_172 = arith.constant dense<0.000000e+00> : vector<8x64xf32>
    %325 = tpu.matmul %47, %322, %cst_172 {dimension_numbers = #tpu.dot_dimension_numbers<[1], [0], [0], [1], [0, 0, 1, 1], [], []>} : vector<8x8xf32>, vector<8x64xf32>, vector<8x64xf32> -> vector<8x64xf32>
    %326 = arith.addf %324, %325 : vector<8x64xf32>
    %c0_173 = arith.constant 0 : index
    %c0_174 = arith.constant 0 : index
    %327 = vector.load %arg58[%c0_173, %c0_174] : memref<1x64xf32, #tpu.memory_space<vmem>>, vector<1x64xf32>
    %328 = vector.broadcast %327 : vector<1x64xf32> to vector<8x64xf32>
    %329 = arith.addf %326, %328 : vector<8x64xf32>
    %cst_175 = arith.constant 0.000000e+00 : f32
    %330 = vector.broadcast %cst_175 : f32 to vector<8x64xf32>
    %331 = arith.maximumf %329, %330 : vector<8x64xf32>
    %c0_176 = arith.constant 0 : index
    %c0_177 = arith.constant 0 : index
    %c0_178 = arith.constant 0 : index
    %332 = vector.load %arg62[%c0_176, %c0_177, %c0_178] : memref<3x64x64xf32, #tpu.memory_space<vmem>>, vector<1x64x64xf32>
    %333 = vector.shape_cast %332 : vector<1x64x64xf32> to vector<64x64xf32>
    %cst_179 = arith.constant dense<0.000000e+00> : vector<8x64xf32>
    %334 = tpu.matmul %331, %333, %cst_179 {dimension_numbers = #tpu.dot_dimension_numbers<[1], [0], [0], [1], [0, 0, 1, 1], [], []>} : vector<8x64xf32>, vector<64x64xf32>, vector<8x64xf32> -> vector<8x64xf32>
    %c1_180 = arith.constant 1 : index
    %c0_181 = arith.constant 0 : index
    %c0_182 = arith.constant 0 : index
    %335 = vector.load %arg62[%c1_180, %c0_181, %c0_182] : memref<3x64x64xf32, #tpu.memory_space<vmem>>, vector<1x64x64xf32>
    %336 = vector.shape_cast %335 : vector<1x64x64xf32> to vector<64x64xf32>
    %cst_183 = arith.constant dense<0.000000e+00> : vector<8x64xf32>
    %337 = tpu.matmul %331, %336, %cst_183 {dimension_numbers = #tpu.dot_dimension_numbers<[1], [0], [0], [1], [0, 0, 1, 1], [], []>} : vector<8x64xf32>, vector<64x64xf32>, vector<8x64xf32> -> vector<8x64xf32>
    %c2_184 = arith.constant 2 : index
    %c0_185 = arith.constant 0 : index
    %c0_186 = arith.constant 0 : index
    %338 = vector.load %arg62[%c2_184, %c0_185, %c0_186] : memref<3x64x64xf32, #tpu.memory_space<vmem>>, vector<1x64x64xf32>
    %339 = vector.shape_cast %338 : vector<1x64x64xf32> to vector<64x64xf32>
    %cst_187 = arith.constant dense<0.000000e+00> : vector<8x64xf32>
    %340 = tpu.matmul %331, %339, %cst_187 {dimension_numbers = #tpu.dot_dimension_numbers<[1], [0], [0], [1], [0, 0, 1, 1], [], []>} : vector<8x64xf32>, vector<64x64xf32>, vector<8x64xf32> -> vector<8x64xf32>
    %cst_188 = arith.constant dense<0.000000e+00> : vector<8x64xf32>
    %341 = tpu.matmul %42, %334, %cst_188 {dimension_numbers = #tpu.dot_dimension_numbers<[1], [0], [0], [1], [0, 0, 1, 1], [], []>} : vector<8x8xf32>, vector<8x64xf32>, vector<8x64xf32> -> vector<8x64xf32>
    %342 = arith.addf %341, %337 : vector<8x64xf32>
    %cst_189 = arith.constant dense<0.000000e+00> : vector<8x64xf32>
    %343 = tpu.matmul %47, %340, %cst_189 {dimension_numbers = #tpu.dot_dimension_numbers<[1], [0], [0], [1], [0, 0, 1, 1], [], []>} : vector<8x8xf32>, vector<8x64xf32>, vector<8x64xf32> -> vector<8x64xf32>
    %344 = arith.addf %342, %343 : vector<8x64xf32>
    %c0_190 = arith.constant 0 : index
    %c0_191 = arith.constant 0 : index
    %345 = vector.load %arg59[%c0_190, %c0_191] : memref<1x64xf32, #tpu.memory_space<vmem>>, vector<1x64xf32>
    %346 = vector.broadcast %345 : vector<1x64xf32> to vector<8x64xf32>
    %347 = arith.addf %344, %346 : vector<8x64xf32>
    %348 = arith.addf %347, %313 : vector<8x64xf32>
    %cst_192 = arith.constant 0.000000e+00 : f32
    %349 = vector.broadcast %cst_192 : f32 to vector<8x64xf32>
    %350 = arith.maximumf %348, %349 : vector<8x64xf32>
    %cst_193 = arith.constant dense<0.000000e+00> : vector<4x64xf32>
    %351 = tpu.matmul %108, %350, %cst_193 {dimension_numbers = #tpu.dot_dimension_numbers<[1], [0], [0], [1], [0, 0, 1, 1], [], []>} : vector<4x8xf32>, vector<8x64xf32>, vector<4x64xf32> -> vector<4x64xf32>
    %cst_194 = arith.constant dense<0.000000e+00> : vector<4x64xf32>
    %352 = tpu.matmul %115, %350, %cst_194 {dimension_numbers = #tpu.dot_dimension_numbers<[1], [0], [0], [1], [0, 0, 1, 1], [], []>} : vector<4x8xf32>, vector<8x64xf32>, vector<4x64xf32> -> vector<4x64xf32>
    %353 = arith.maximumf %351, %352 : vector<4x64xf32>
    %c0_195 = arith.constant 0 : index
    %c0_196 = arith.constant 0 : index
    %354 = vector.load %arg7[%c0_195, %c0_196] : memref<64x128xf32, #tpu.memory_space<vmem>>, vector<64x128xf32>
    %cst_197 = arith.constant dense<0.000000e+00> : vector<4x128xf32>
    %355 = tpu.matmul %353, %354, %cst_197 {dimension_numbers = #tpu.dot_dimension_numbers<[1], [0], [0], [1], [0, 0, 1, 1], [], []>} : vector<4x64xf32>, vector<64x128xf32>, vector<4x128xf32> -> vector<4x128xf32>
    %c0_198 = arith.constant 0 : index
    %c0_199 = arith.constant 0 : index
    %356 = vector.load %arg4[%c0_198, %c0_199] : memref<1x128xf32, #tpu.memory_space<vmem>>, vector<1x128xf32>
    %357 = vector.broadcast %356 : vector<1x128xf32> to vector<4x128xf32>
    %358 = arith.addf %355, %357 : vector<4x128xf32>
    %c0_200 = arith.constant 0 : index
    %c0_201 = arith.constant 0 : index
    %c0_202 = arith.constant 0 : index
    %359 = vector.load %arg5[%c0_200, %c0_201, %c0_202] : memref<3x64x128xf32, #tpu.memory_space<vmem>>, vector<1x64x128xf32>
    %360 = vector.shape_cast %359 : vector<1x64x128xf32> to vector<64x128xf32>
    %cst_203 = arith.constant dense<0.000000e+00> : vector<4x128xf32>
    %361 = tpu.matmul %353, %360, %cst_203 {dimension_numbers = #tpu.dot_dimension_numbers<[1], [0], [0], [1], [0, 0, 1, 1], [], []>} : vector<4x64xf32>, vector<64x128xf32>, vector<4x128xf32> -> vector<4x128xf32>
    %c1_204 = arith.constant 1 : index
    %c0_205 = arith.constant 0 : index
    %c0_206 = arith.constant 0 : index
    %362 = vector.load %arg5[%c1_204, %c0_205, %c0_206] : memref<3x64x128xf32, #tpu.memory_space<vmem>>, vector<1x64x128xf32>
    %363 = vector.shape_cast %362 : vector<1x64x128xf32> to vector<64x128xf32>
    %cst_207 = arith.constant dense<0.000000e+00> : vector<4x128xf32>
    %364 = tpu.matmul %353, %363, %cst_207 {dimension_numbers = #tpu.dot_dimension_numbers<[1], [0], [0], [1], [0, 0, 1, 1], [], []>} : vector<4x64xf32>, vector<64x128xf32>, vector<4x128xf32> -> vector<4x128xf32>
    %c2_208 = arith.constant 2 : index
    %c0_209 = arith.constant 0 : index
    %c0_210 = arith.constant 0 : index
    %365 = vector.load %arg5[%c2_208, %c0_209, %c0_210] : memref<3x64x128xf32, #tpu.memory_space<vmem>>, vector<1x64x128xf32>
    %366 = vector.shape_cast %365 : vector<1x64x128xf32> to vector<64x128xf32>
    %cst_211 = arith.constant dense<0.000000e+00> : vector<4x128xf32>
    %367 = tpu.matmul %353, %366, %cst_211 {dimension_numbers = #tpu.dot_dimension_numbers<[1], [0], [0], [1], [0, 0, 1, 1], [], []>} : vector<4x64xf32>, vector<64x128xf32>, vector<4x128xf32> -> vector<4x128xf32>
    %cst_212 = arith.constant dense<0.000000e+00> : vector<4x128xf32>
    %368 = tpu.matmul %54, %361, %cst_212 {dimension_numbers = #tpu.dot_dimension_numbers<[1], [0], [0], [1], [0, 0, 1, 1], [], []>} : vector<4x4xf32>, vector<4x128xf32>, vector<4x128xf32> -> vector<4x128xf32>
    %369 = arith.addf %368, %364 : vector<4x128xf32>
    %cst_213 = arith.constant dense<0.000000e+00> : vector<4x128xf32>
    %370 = tpu.matmul %59, %367, %cst_213 {dimension_numbers = #tpu.dot_dimension_numbers<[1], [0], [0], [1], [0, 0, 1, 1], [], []>} : vector<4x4xf32>, vector<4x128xf32>, vector<4x128xf32> -> vector<4x128xf32>
    %371 = arith.addf %369, %370 : vector<4x128xf32>
    %c0_214 = arith.constant 0 : index
    %c0_215 = arith.constant 0 : index
    %372 = vector.load %arg2[%c0_214, %c0_215] : memref<1x128xf32, #tpu.memory_space<vmem>>, vector<1x128xf32>
    %373 = vector.broadcast %372 : vector<1x128xf32> to vector<4x128xf32>
    %374 = arith.addf %371, %373 : vector<4x128xf32>
    %cst_216 = arith.constant 0.000000e+00 : f32
    %375 = vector.broadcast %cst_216 : f32 to vector<4x128xf32>
    %376 = arith.maximumf %374, %375 : vector<4x128xf32>
    %c0_217 = arith.constant 0 : index
    %c0_218 = arith.constant 0 : index
    %c0_219 = arith.constant 0 : index
    %377 = vector.load %arg6[%c0_217, %c0_218, %c0_219] : memref<3x128x128xf32, #tpu.memory_space<vmem>>, vector<1x128x128xf32>
    %378 = vector.shape_cast %377 : vector<1x128x128xf32> to vector<128x128xf32>
    %cst_220 = arith.constant dense<0.000000e+00> : vector<4x128xf32>
    %379 = tpu.matmul %376, %378, %cst_220 {dimension_numbers = #tpu.dot_dimension_numbers<[1], [0], [0], [1], [0, 0, 1, 1], [], []>} : vector<4x128xf32>, vector<128x128xf32>, vector<4x128xf32> -> vector<4x128xf32>
    %c1_221 = arith.constant 1 : index
    %c0_222 = arith.constant 0 : index
    %c0_223 = arith.constant 0 : index
    %380 = vector.load %arg6[%c1_221, %c0_222, %c0_223] : memref<3x128x128xf32, #tpu.memory_space<vmem>>, vector<1x128x128xf32>
    %381 = vector.shape_cast %380 : vector<1x128x128xf32> to vector<128x128xf32>
    %cst_224 = arith.constant dense<0.000000e+00> : vector<4x128xf32>
    %382 = tpu.matmul %376, %381, %cst_224 {dimension_numbers = #tpu.dot_dimension_numbers<[1], [0], [0], [1], [0, 0, 1, 1], [], []>} : vector<4x128xf32>, vector<128x128xf32>, vector<4x128xf32> -> vector<4x128xf32>
    %c2_225 = arith.constant 2 : index
    %c0_226 = arith.constant 0 : index
    %c0_227 = arith.constant 0 : index
    %383 = vector.load %arg6[%c2_225, %c0_226, %c0_227] : memref<3x128x128xf32, #tpu.memory_space<vmem>>, vector<1x128x128xf32>
    %384 = vector.shape_cast %383 : vector<1x128x128xf32> to vector<128x128xf32>
    %cst_228 = arith.constant dense<0.000000e+00> : vector<4x128xf32>
    %385 = tpu.matmul %376, %384, %cst_228 {dimension_numbers = #tpu.dot_dimension_numbers<[1], [0], [0], [1], [0, 0, 1, 1], [], []>} : vector<4x128xf32>, vector<128x128xf32>, vector<4x128xf32> -> vector<4x128xf32>
    %cst_229 = arith.constant dense<0.000000e+00> : vector<4x128xf32>
    %386 = tpu.matmul %54, %379, %cst_229 {dimension_numbers = #tpu.dot_dimension_numbers<[1], [0], [0], [1], [0, 0, 1, 1], [], []>} : vector<4x4xf32>, vector<4x128xf32>, vector<4x128xf32> -> vector<4x128xf32>
    %387 = arith.addf %386, %382 : vector<4x128xf32>
    %cst_230 = arith.constant dense<0.000000e+00> : vector<4x128xf32>
    %388 = tpu.matmul %59, %385, %cst_230 {dimension_numbers = #tpu.dot_dimension_numbers<[1], [0], [0], [1], [0, 0, 1, 1], [], []>} : vector<4x4xf32>, vector<4x128xf32>, vector<4x128xf32> -> vector<4x128xf32>
    %389 = arith.addf %387, %388 : vector<4x128xf32>
    %c0_231 = arith.constant 0 : index
    %c0_232 = arith.constant 0 : index
    %390 = vector.load %arg3[%c0_231, %c0_232] : memref<1x128xf32, #tpu.memory_space<vmem>>, vector<1x128xf32>
    %391 = vector.broadcast %390 : vector<1x128xf32> to vector<4x128xf32>
    %392 = arith.addf %389, %391 : vector<4x128xf32>
    %393 = arith.addf %392, %358 : vector<4x128xf32>
    %cst_233 = arith.constant 0.000000e+00 : f32
    %394 = vector.broadcast %cst_233 : f32 to vector<4x128xf32>
    %395 = arith.maximumf %393, %394 : vector<4x128xf32>
    %c0_234 = arith.constant 0 : index
    %c0_235 = arith.constant 0 : index
    %c0_236 = arith.constant 0 : index
    %396 = vector.load %arg72[%c0_234, %c0_235, %c0_236] : memref<2x128x64xf32, #tpu.memory_space<vmem>>, vector<1x128x64xf32>
    %397 = vector.shape_cast %396 : vector<1x128x64xf32> to vector<128x64xf32>
    %cst_237 = arith.constant dense<0.000000e+00> : vector<4x64xf32>
    %398 = tpu.matmul %395, %397, %cst_237 {dimension_numbers = #tpu.dot_dimension_numbers<[1], [0], [0], [1], [0, 0, 1, 1], [], []>} : vector<4x128xf32>, vector<128x64xf32>, vector<4x64xf32> -> vector<4x64xf32>
    %cst_238 = arith.constant dense<0.000000e+00> : vector<8x64xf32>
    %399 = tpu.matmul %122, %398, %cst_238 {dimension_numbers = #tpu.dot_dimension_numbers<[1], [0], [0], [1], [0, 0, 1, 1], [], []>} : vector<8x4xf32>, vector<4x64xf32>, vector<8x64xf32> -> vector<8x64xf32>
    %c1_239 = arith.constant 1 : index
    %c0_240 = arith.constant 0 : index
    %c0_241 = arith.constant 0 : index
    %400 = vector.load %arg72[%c1_239, %c0_240, %c0_241] : memref<2x128x64xf32, #tpu.memory_space<vmem>>, vector<1x128x64xf32>
    %401 = vector.shape_cast %400 : vector<1x128x64xf32> to vector<128x64xf32>
    %cst_242 = arith.constant dense<0.000000e+00> : vector<4x64xf32>
    %402 = tpu.matmul %395, %401, %cst_242 {dimension_numbers = #tpu.dot_dimension_numbers<[1], [0], [0], [1], [0, 0, 1, 1], [], []>} : vector<4x128xf32>, vector<128x64xf32>, vector<4x64xf32> -> vector<4x64xf32>
    %cst_243 = arith.constant dense<0.000000e+00> : vector<8x64xf32>
    %403 = tpu.matmul %129, %402, %cst_243 {dimension_numbers = #tpu.dot_dimension_numbers<[1], [0], [0], [1], [0, 0, 1, 1], [], []>} : vector<8x4xf32>, vector<4x64xf32>, vector<8x64xf32> -> vector<8x64xf32>
    %404 = arith.addf %399, %403 : vector<8x64xf32>
    %c0_244 = arith.constant 0 : index
    %c0_245 = arith.constant 0 : index
    %405 = vector.load %arg73[%c0_244, %c0_245] : memref<1x64xf32, #tpu.memory_space<vmem>>, vector<1x64xf32>
    %406 = vector.broadcast %405 : vector<1x64xf32> to vector<8x64xf32>
    %407 = arith.addf %404, %406 : vector<8x64xf32>
    %c0_246 = arith.constant 0 : index
    %c0_247 = arith.constant 0 : index
    %408 = vector.load %arg38[%c0_246, %c0_247] : memref<64x64xf32, #tpu.memory_space<vmem>>, vector<64x64xf32>
    %cst_248 = arith.constant dense<0.000000e+00> : vector<8x64xf32>
    %409 = tpu.matmul %407, %408, %cst_248 {dimension_numbers = #tpu.dot_dimension_numbers<[1], [0], [0], [1], [0, 0, 1, 1], [], []>} : vector<8x64xf32>, vector<64x64xf32>, vector<8x64xf32> -> vector<8x64xf32>
    %c0_249 = arith.constant 0 : index
    %c0_250 = arith.constant 0 : index
    %410 = vector.load %arg39[%c0_249, %c0_250] : memref<64x64xf32, #tpu.memory_space<vmem>>, vector<64x64xf32>
    %cst_251 = arith.constant dense<0.000000e+00> : vector<8x64xf32>
    %411 = tpu.matmul %350, %410, %cst_251 {dimension_numbers = #tpu.dot_dimension_numbers<[1], [0], [0], [1], [0, 0, 1, 1], [], []>} : vector<8x64xf32>, vector<64x64xf32>, vector<8x64xf32> -> vector<8x64xf32>
    %412 = arith.addf %409, %411 : vector<8x64xf32>
    %c0_252 = arith.constant 0 : index
    %c0_253 = arith.constant 0 : index
    %413 = vector.load %arg34[%c0_252, %c0_253] : memref<1x64xf32, #tpu.memory_space<vmem>>, vector<1x64xf32>
    %414 = vector.broadcast %413 : vector<1x64xf32> to vector<8x64xf32>
    %415 = arith.addf %412, %414 : vector<8x64xf32>
    %c0_254 = arith.constant 0 : index
    %c0_255 = arith.constant 0 : index
    %c0_256 = arith.constant 0 : index
    %416 = vector.load %arg35[%c0_254, %c0_255, %c0_256] : memref<3x64x64xf32, #tpu.memory_space<vmem>>, vector<1x64x64xf32>
    %417 = vector.shape_cast %416 : vector<1x64x64xf32> to vector<64x64xf32>
    %cst_257 = arith.constant dense<0.000000e+00> : vector<8x64xf32>
    %418 = tpu.matmul %407, %417, %cst_257 {dimension_numbers = #tpu.dot_dimension_numbers<[1], [0], [0], [1], [0, 0, 1, 1], [], []>} : vector<8x64xf32>, vector<64x64xf32>, vector<8x64xf32> -> vector<8x64xf32>
    %c1_258 = arith.constant 1 : index
    %c0_259 = arith.constant 0 : index
    %c0_260 = arith.constant 0 : index
    %419 = vector.load %arg35[%c1_258, %c0_259, %c0_260] : memref<3x64x64xf32, #tpu.memory_space<vmem>>, vector<1x64x64xf32>
    %420 = vector.shape_cast %419 : vector<1x64x64xf32> to vector<64x64xf32>
    %cst_261 = arith.constant dense<0.000000e+00> : vector<8x64xf32>
    %421 = tpu.matmul %407, %420, %cst_261 {dimension_numbers = #tpu.dot_dimension_numbers<[1], [0], [0], [1], [0, 0, 1, 1], [], []>} : vector<8x64xf32>, vector<64x64xf32>, vector<8x64xf32> -> vector<8x64xf32>
    %c2_262 = arith.constant 2 : index
    %c0_263 = arith.constant 0 : index
    %c0_264 = arith.constant 0 : index
    %422 = vector.load %arg35[%c2_262, %c0_263, %c0_264] : memref<3x64x64xf32, #tpu.memory_space<vmem>>, vector<1x64x64xf32>
    %423 = vector.shape_cast %422 : vector<1x64x64xf32> to vector<64x64xf32>
    %cst_265 = arith.constant dense<0.000000e+00> : vector<8x64xf32>
    %424 = tpu.matmul %407, %423, %cst_265 {dimension_numbers = #tpu.dot_dimension_numbers<[1], [0], [0], [1], [0, 0, 1, 1], [], []>} : vector<8x64xf32>, vector<64x64xf32>, vector<8x64xf32> -> vector<8x64xf32>
    %c0_266 = arith.constant 0 : index
    %c0_267 = arith.constant 0 : index
    %c0_268 = arith.constant 0 : index
    %425 = vector.load %arg36[%c0_266, %c0_267, %c0_268] : memref<3x64x64xf32, #tpu.memory_space<vmem>>, vector<1x64x64xf32>
    %426 = vector.shape_cast %425 : vector<1x64x64xf32> to vector<64x64xf32>
    %cst_269 = arith.constant dense<0.000000e+00> : vector<8x64xf32>
    %427 = tpu.matmul %350, %426, %cst_269 {dimension_numbers = #tpu.dot_dimension_numbers<[1], [0], [0], [1], [0, 0, 1, 1], [], []>} : vector<8x64xf32>, vector<64x64xf32>, vector<8x64xf32> -> vector<8x64xf32>
    %c1_270 = arith.constant 1 : index
    %c0_271 = arith.constant 0 : index
    %c0_272 = arith.constant 0 : index
    %428 = vector.load %arg36[%c1_270, %c0_271, %c0_272] : memref<3x64x64xf32, #tpu.memory_space<vmem>>, vector<1x64x64xf32>
    %429 = vector.shape_cast %428 : vector<1x64x64xf32> to vector<64x64xf32>
    %cst_273 = arith.constant dense<0.000000e+00> : vector<8x64xf32>
    %430 = tpu.matmul %350, %429, %cst_273 {dimension_numbers = #tpu.dot_dimension_numbers<[1], [0], [0], [1], [0, 0, 1, 1], [], []>} : vector<8x64xf32>, vector<64x64xf32>, vector<8x64xf32> -> vector<8x64xf32>
    %c2_274 = arith.constant 2 : index
    %c0_275 = arith.constant 0 : index
    %c0_276 = arith.constant 0 : index
    %431 = vector.load %arg36[%c2_274, %c0_275, %c0_276] : memref<3x64x64xf32, #tpu.memory_space<vmem>>, vector<1x64x64xf32>
    %432 = vector.shape_cast %431 : vector<1x64x64xf32> to vector<64x64xf32>
    %cst_277 = arith.constant dense<0.000000e+00> : vector<8x64xf32>
    %433 = tpu.matmul %350, %432, %cst_277 {dimension_numbers = #tpu.dot_dimension_numbers<[1], [0], [0], [1], [0, 0, 1, 1], [], []>} : vector<8x64xf32>, vector<64x64xf32>, vector<8x64xf32> -> vector<8x64xf32>
    %434 = arith.addf %418, %427 : vector<8x64xf32>
    %435 = arith.addf %421, %430 : vector<8x64xf32>
    %436 = arith.addf %424, %433 : vector<8x64xf32>
    %cst_278 = arith.constant dense<0.000000e+00> : vector<8x64xf32>
    %437 = tpu.matmul %42, %434, %cst_278 {dimension_numbers = #tpu.dot_dimension_numbers<[1], [0], [0], [1], [0, 0, 1, 1], [], []>} : vector<8x8xf32>, vector<8x64xf32>, vector<8x64xf32> -> vector<8x64xf32>
    %438 = arith.addf %437, %435 : vector<8x64xf32>
    %cst_279 = arith.constant dense<0.000000e+00> : vector<8x64xf32>
    %439 = tpu.matmul %47, %436, %cst_279 {dimension_numbers = #tpu.dot_dimension_numbers<[1], [0], [0], [1], [0, 0, 1, 1], [], []>} : vector<8x8xf32>, vector<8x64xf32>, vector<8x64xf32> -> vector<8x64xf32>
    %440 = arith.addf %438, %439 : vector<8x64xf32>
    %c0_280 = arith.constant 0 : index
    %c0_281 = arith.constant 0 : index
    %441 = vector.load %arg32[%c0_280, %c0_281] : memref<1x64xf32, #tpu.memory_space<vmem>>, vector<1x64xf32>
    %442 = vector.broadcast %441 : vector<1x64xf32> to vector<8x64xf32>
    %443 = arith.addf %440, %442 : vector<8x64xf32>
    %cst_282 = arith.constant 0.000000e+00 : f32
    %444 = vector.broadcast %cst_282 : f32 to vector<8x64xf32>
    %445 = arith.maximumf %443, %444 : vector<8x64xf32>
    %c0_283 = arith.constant 0 : index
    %c0_284 = arith.constant 0 : index
    %c0_285 = arith.constant 0 : index
    %446 = vector.load %arg37[%c0_283, %c0_284, %c0_285] : memref<3x64x64xf32, #tpu.memory_space<vmem>>, vector<1x64x64xf32>
    %447 = vector.shape_cast %446 : vector<1x64x64xf32> to vector<64x64xf32>
    %cst_286 = arith.constant dense<0.000000e+00> : vector<8x64xf32>
    %448 = tpu.matmul %445, %447, %cst_286 {dimension_numbers = #tpu.dot_dimension_numbers<[1], [0], [0], [1], [0, 0, 1, 1], [], []>} : vector<8x64xf32>, vector<64x64xf32>, vector<8x64xf32> -> vector<8x64xf32>
    %c1_287 = arith.constant 1 : index
    %c0_288 = arith.constant 0 : index
    %c0_289 = arith.constant 0 : index
    %449 = vector.load %arg37[%c1_287, %c0_288, %c0_289] : memref<3x64x64xf32, #tpu.memory_space<vmem>>, vector<1x64x64xf32>
    %450 = vector.shape_cast %449 : vector<1x64x64xf32> to vector<64x64xf32>
    %cst_290 = arith.constant dense<0.000000e+00> : vector<8x64xf32>
    %451 = tpu.matmul %445, %450, %cst_290 {dimension_numbers = #tpu.dot_dimension_numbers<[1], [0], [0], [1], [0, 0, 1, 1], [], []>} : vector<8x64xf32>, vector<64x64xf32>, vector<8x64xf32> -> vector<8x64xf32>
    %c2_291 = arith.constant 2 : index
    %c0_292 = arith.constant 0 : index
    %c0_293 = arith.constant 0 : index
    %452 = vector.load %arg37[%c2_291, %c0_292, %c0_293] : memref<3x64x64xf32, #tpu.memory_space<vmem>>, vector<1x64x64xf32>
    %453 = vector.shape_cast %452 : vector<1x64x64xf32> to vector<64x64xf32>
    %cst_294 = arith.constant dense<0.000000e+00> : vector<8x64xf32>
    %454 = tpu.matmul %445, %453, %cst_294 {dimension_numbers = #tpu.dot_dimension_numbers<[1], [0], [0], [1], [0, 0, 1, 1], [], []>} : vector<8x64xf32>, vector<64x64xf32>, vector<8x64xf32> -> vector<8x64xf32>
    %cst_295 = arith.constant dense<0.000000e+00> : vector<8x64xf32>
    %455 = tpu.matmul %42, %448, %cst_295 {dimension_numbers = #tpu.dot_dimension_numbers<[1], [0], [0], [1], [0, 0, 1, 1], [], []>} : vector<8x8xf32>, vector<8x64xf32>, vector<8x64xf32> -> vector<8x64xf32>
    %456 = arith.addf %455, %451 : vector<8x64xf32>
    %cst_296 = arith.constant dense<0.000000e+00> : vector<8x64xf32>
    %457 = tpu.matmul %47, %454, %cst_296 {dimension_numbers = #tpu.dot_dimension_numbers<[1], [0], [0], [1], [0, 0, 1, 1], [], []>} : vector<8x8xf32>, vector<8x64xf32>, vector<8x64xf32> -> vector<8x64xf32>
    %458 = arith.addf %456, %457 : vector<8x64xf32>
    %c0_297 = arith.constant 0 : index
    %c0_298 = arith.constant 0 : index
    %459 = vector.load %arg33[%c0_297, %c0_298] : memref<1x64xf32, #tpu.memory_space<vmem>>, vector<1x64xf32>
    %460 = vector.broadcast %459 : vector<1x64xf32> to vector<8x64xf32>
    %461 = arith.addf %458, %460 : vector<8x64xf32>
    %462 = arith.addf %461, %415 : vector<8x64xf32>
    %cst_299 = arith.constant 0.000000e+00 : f32
    %463 = vector.broadcast %cst_299 : f32 to vector<8x64xf32>
    %464 = arith.maximumf %462, %463 : vector<8x64xf32>
    %c0_300 = arith.constant 0 : index
    %c0_301 = arith.constant 0 : index
    %c0_302 = arith.constant 0 : index
    %465 = vector.load %arg70[%c0_300, %c0_301, %c0_302] : memref<2x64x32xf32, #tpu.memory_space<vmem>>, vector<1x64x32xf32>
    %466 = vector.shape_cast %465 : vector<1x64x32xf32> to vector<64x32xf32>
    %cst_303 = arith.constant dense<0.000000e+00> : vector<8x32xf32>
    %467 = tpu.matmul %464, %466, %cst_303 {dimension_numbers = #tpu.dot_dimension_numbers<[1], [0], [0], [1], [0, 0, 1, 1], [], []>} : vector<8x64xf32>, vector<64x32xf32>, vector<8x32xf32> -> vector<8x32xf32>
    %cst_304 = arith.constant dense<0.000000e+00> : vector<16x32xf32>
    %468 = tpu.matmul %136, %467, %cst_304 {dimension_numbers = #tpu.dot_dimension_numbers<[1], [0], [0], [1], [0, 0, 1, 1], [], []>} : vector<16x8xf32>, vector<8x32xf32>, vector<16x32xf32> -> vector<16x32xf32>
    %c1_305 = arith.constant 1 : index
    %c0_306 = arith.constant 0 : index
    %c0_307 = arith.constant 0 : index
    %469 = vector.load %arg70[%c1_305, %c0_306, %c0_307] : memref<2x64x32xf32, #tpu.memory_space<vmem>>, vector<1x64x32xf32>
    %470 = vector.shape_cast %469 : vector<1x64x32xf32> to vector<64x32xf32>
    %cst_308 = arith.constant dense<0.000000e+00> : vector<8x32xf32>
    %471 = tpu.matmul %464, %470, %cst_308 {dimension_numbers = #tpu.dot_dimension_numbers<[1], [0], [0], [1], [0, 0, 1, 1], [], []>} : vector<8x64xf32>, vector<64x32xf32>, vector<8x32xf32> -> vector<8x32xf32>
    %cst_309 = arith.constant dense<0.000000e+00> : vector<16x32xf32>
    %472 = tpu.matmul %143, %471, %cst_309 {dimension_numbers = #tpu.dot_dimension_numbers<[1], [0], [0], [1], [0, 0, 1, 1], [], []>} : vector<16x8xf32>, vector<8x32xf32>, vector<16x32xf32> -> vector<16x32xf32>
    %473 = arith.addf %468, %472 : vector<16x32xf32>
    %c0_310 = arith.constant 0 : index
    %c0_311 = arith.constant 0 : index
    %474 = vector.load %arg71[%c0_310, %c0_311] : memref<1x32xf32, #tpu.memory_space<vmem>>, vector<1x32xf32>
    %475 = vector.broadcast %474 : vector<1x32xf32> to vector<16x32xf32>
    %476 = arith.addf %473, %475 : vector<16x32xf32>
    %c0_312 = arith.constant 0 : index
    %c0_313 = arith.constant 0 : index
    %477 = vector.load %arg30[%c0_312, %c0_313] : memref<32x32xf32, #tpu.memory_space<vmem>>, vector<32x32xf32>
    %cst_314 = arith.constant dense<0.000000e+00> : vector<16x32xf32>
    %478 = tpu.matmul %476, %477, %cst_314 {dimension_numbers = #tpu.dot_dimension_numbers<[1], [0], [0], [1], [0, 0, 1, 1], [], []>} : vector<16x32xf32>, vector<32x32xf32>, vector<16x32xf32> -> vector<16x32xf32>
    %c0_315 = arith.constant 0 : index
    %c0_316 = arith.constant 0 : index
    %479 = vector.load %arg31[%c0_315, %c0_316] : memref<32x32xf32, #tpu.memory_space<vmem>>, vector<32x32xf32>
    %cst_317 = arith.constant dense<0.000000e+00> : vector<16x32xf32>
    %480 = tpu.matmul %305, %479, %cst_317 {dimension_numbers = #tpu.dot_dimension_numbers<[1], [0], [0], [1], [0, 0, 1, 1], [], []>} : vector<16x32xf32>, vector<32x32xf32>, vector<16x32xf32> -> vector<16x32xf32>
    %481 = arith.addf %478, %480 : vector<16x32xf32>
    %c0_318 = arith.constant 0 : index
    %c0_319 = arith.constant 0 : index
    %482 = vector.load %arg26[%c0_318, %c0_319] : memref<1x32xf32, #tpu.memory_space<vmem>>, vector<1x32xf32>
    %483 = vector.broadcast %482 : vector<1x32xf32> to vector<16x32xf32>
    %484 = arith.addf %481, %483 : vector<16x32xf32>
    %c0_320 = arith.constant 0 : index
    %c0_321 = arith.constant 0 : index
    %c0_322 = arith.constant 0 : index
    %485 = vector.load %arg27[%c0_320, %c0_321, %c0_322] : memref<3x32x32xf32, #tpu.memory_space<vmem>>, vector<1x32x32xf32>
    %486 = vector.shape_cast %485 : vector<1x32x32xf32> to vector<32x32xf32>
    %cst_323 = arith.constant dense<0.000000e+00> : vector<16x32xf32>
    %487 = tpu.matmul %476, %486, %cst_323 {dimension_numbers = #tpu.dot_dimension_numbers<[1], [0], [0], [1], [0, 0, 1, 1], [], []>} : vector<16x32xf32>, vector<32x32xf32>, vector<16x32xf32> -> vector<16x32xf32>
    %c1_324 = arith.constant 1 : index
    %c0_325 = arith.constant 0 : index
    %c0_326 = arith.constant 0 : index
    %488 = vector.load %arg27[%c1_324, %c0_325, %c0_326] : memref<3x32x32xf32, #tpu.memory_space<vmem>>, vector<1x32x32xf32>
    %489 = vector.shape_cast %488 : vector<1x32x32xf32> to vector<32x32xf32>
    %cst_327 = arith.constant dense<0.000000e+00> : vector<16x32xf32>
    %490 = tpu.matmul %476, %489, %cst_327 {dimension_numbers = #tpu.dot_dimension_numbers<[1], [0], [0], [1], [0, 0, 1, 1], [], []>} : vector<16x32xf32>, vector<32x32xf32>, vector<16x32xf32> -> vector<16x32xf32>
    %c2_328 = arith.constant 2 : index
    %c0_329 = arith.constant 0 : index
    %c0_330 = arith.constant 0 : index
    %491 = vector.load %arg27[%c2_328, %c0_329, %c0_330] : memref<3x32x32xf32, #tpu.memory_space<vmem>>, vector<1x32x32xf32>
    %492 = vector.shape_cast %491 : vector<1x32x32xf32> to vector<32x32xf32>
    %cst_331 = arith.constant dense<0.000000e+00> : vector<16x32xf32>
    %493 = tpu.matmul %476, %492, %cst_331 {dimension_numbers = #tpu.dot_dimension_numbers<[1], [0], [0], [1], [0, 0, 1, 1], [], []>} : vector<16x32xf32>, vector<32x32xf32>, vector<16x32xf32> -> vector<16x32xf32>
    %c0_332 = arith.constant 0 : index
    %c0_333 = arith.constant 0 : index
    %c0_334 = arith.constant 0 : index
    %494 = vector.load %arg28[%c0_332, %c0_333, %c0_334] : memref<3x32x32xf32, #tpu.memory_space<vmem>>, vector<1x32x32xf32>
    %495 = vector.shape_cast %494 : vector<1x32x32xf32> to vector<32x32xf32>
    %cst_335 = arith.constant dense<0.000000e+00> : vector<16x32xf32>
    %496 = tpu.matmul %305, %495, %cst_335 {dimension_numbers = #tpu.dot_dimension_numbers<[1], [0], [0], [1], [0, 0, 1, 1], [], []>} : vector<16x32xf32>, vector<32x32xf32>, vector<16x32xf32> -> vector<16x32xf32>
    %c1_336 = arith.constant 1 : index
    %c0_337 = arith.constant 0 : index
    %c0_338 = arith.constant 0 : index
    %497 = vector.load %arg28[%c1_336, %c0_337, %c0_338] : memref<3x32x32xf32, #tpu.memory_space<vmem>>, vector<1x32x32xf32>
    %498 = vector.shape_cast %497 : vector<1x32x32xf32> to vector<32x32xf32>
    %cst_339 = arith.constant dense<0.000000e+00> : vector<16x32xf32>
    %499 = tpu.matmul %305, %498, %cst_339 {dimension_numbers = #tpu.dot_dimension_numbers<[1], [0], [0], [1], [0, 0, 1, 1], [], []>} : vector<16x32xf32>, vector<32x32xf32>, vector<16x32xf32> -> vector<16x32xf32>
    %c2_340 = arith.constant 2 : index
    %c0_341 = arith.constant 0 : index
    %c0_342 = arith.constant 0 : index
    %500 = vector.load %arg28[%c2_340, %c0_341, %c0_342] : memref<3x32x32xf32, #tpu.memory_space<vmem>>, vector<1x32x32xf32>
    %501 = vector.shape_cast %500 : vector<1x32x32xf32> to vector<32x32xf32>
    %cst_343 = arith.constant dense<0.000000e+00> : vector<16x32xf32>
    %502 = tpu.matmul %305, %501, %cst_343 {dimension_numbers = #tpu.dot_dimension_numbers<[1], [0], [0], [1], [0, 0, 1, 1], [], []>} : vector<16x32xf32>, vector<32x32xf32>, vector<16x32xf32> -> vector<16x32xf32>
    %503 = arith.addf %487, %496 : vector<16x32xf32>
    %504 = arith.addf %490, %499 : vector<16x32xf32>
    %505 = arith.addf %493, %502 : vector<16x32xf32>
    %cst_344 = arith.constant dense<0.000000e+00> : vector<16x32xf32>
    %506 = tpu.matmul %30, %503, %cst_344 {dimension_numbers = #tpu.dot_dimension_numbers<[1], [0], [0], [1], [0, 0, 1, 1], [], []>} : vector<16x16xf32>, vector<16x32xf32>, vector<16x32xf32> -> vector<16x32xf32>
    %507 = arith.addf %506, %504 : vector<16x32xf32>
    %cst_345 = arith.constant dense<0.000000e+00> : vector<16x32xf32>
    %508 = tpu.matmul %35, %505, %cst_345 {dimension_numbers = #tpu.dot_dimension_numbers<[1], [0], [0], [1], [0, 0, 1, 1], [], []>} : vector<16x16xf32>, vector<16x32xf32>, vector<16x32xf32> -> vector<16x32xf32>
    %509 = arith.addf %507, %508 : vector<16x32xf32>
    %c0_346 = arith.constant 0 : index
    %c0_347 = arith.constant 0 : index
    %510 = vector.load %arg24[%c0_346, %c0_347] : memref<1x32xf32, #tpu.memory_space<vmem>>, vector<1x32xf32>
    %511 = vector.broadcast %510 : vector<1x32xf32> to vector<16x32xf32>
    %512 = arith.addf %509, %511 : vector<16x32xf32>
    %cst_348 = arith.constant 0.000000e+00 : f32
    %513 = vector.broadcast %cst_348 : f32 to vector<16x32xf32>
    %514 = arith.maximumf %512, %513 : vector<16x32xf32>
    %c0_349 = arith.constant 0 : index
    %c0_350 = arith.constant 0 : index
    %c0_351 = arith.constant 0 : index
    %515 = vector.load %arg29[%c0_349, %c0_350, %c0_351] : memref<3x32x32xf32, #tpu.memory_space<vmem>>, vector<1x32x32xf32>
    %516 = vector.shape_cast %515 : vector<1x32x32xf32> to vector<32x32xf32>
    %cst_352 = arith.constant dense<0.000000e+00> : vector<16x32xf32>
    %517 = tpu.matmul %514, %516, %cst_352 {dimension_numbers = #tpu.dot_dimension_numbers<[1], [0], [0], [1], [0, 0, 1, 1], [], []>} : vector<16x32xf32>, vector<32x32xf32>, vector<16x32xf32> -> vector<16x32xf32>
    %c1_353 = arith.constant 1 : index
    %c0_354 = arith.constant 0 : index
    %c0_355 = arith.constant 0 : index
    %518 = vector.load %arg29[%c1_353, %c0_354, %c0_355] : memref<3x32x32xf32, #tpu.memory_space<vmem>>, vector<1x32x32xf32>
    %519 = vector.shape_cast %518 : vector<1x32x32xf32> to vector<32x32xf32>
    %cst_356 = arith.constant dense<0.000000e+00> : vector<16x32xf32>
    %520 = tpu.matmul %514, %519, %cst_356 {dimension_numbers = #tpu.dot_dimension_numbers<[1], [0], [0], [1], [0, 0, 1, 1], [], []>} : vector<16x32xf32>, vector<32x32xf32>, vector<16x32xf32> -> vector<16x32xf32>
    %c2_357 = arith.constant 2 : index
    %c0_358 = arith.constant 0 : index
    %c0_359 = arith.constant 0 : index
    %521 = vector.load %arg29[%c2_357, %c0_358, %c0_359] : memref<3x32x32xf32, #tpu.memory_space<vmem>>, vector<1x32x32xf32>
    %522 = vector.shape_cast %521 : vector<1x32x32xf32> to vector<32x32xf32>
    %cst_360 = arith.constant dense<0.000000e+00> : vector<16x32xf32>
    %523 = tpu.matmul %514, %522, %cst_360 {dimension_numbers = #tpu.dot_dimension_numbers<[1], [0], [0], [1], [0, 0, 1, 1], [], []>} : vector<16x32xf32>, vector<32x32xf32>, vector<16x32xf32> -> vector<16x32xf32>
    %cst_361 = arith.constant dense<0.000000e+00> : vector<16x32xf32>
    %524 = tpu.matmul %30, %517, %cst_361 {dimension_numbers = #tpu.dot_dimension_numbers<[1], [0], [0], [1], [0, 0, 1, 1], [], []>} : vector<16x16xf32>, vector<16x32xf32>, vector<16x32xf32> -> vector<16x32xf32>
    %525 = arith.addf %524, %520 : vector<16x32xf32>
    %cst_362 = arith.constant dense<0.000000e+00> : vector<16x32xf32>
    %526 = tpu.matmul %35, %523, %cst_362 {dimension_numbers = #tpu.dot_dimension_numbers<[1], [0], [0], [1], [0, 0, 1, 1], [], []>} : vector<16x16xf32>, vector<16x32xf32>, vector<16x32xf32> -> vector<16x32xf32>
    %527 = arith.addf %525, %526 : vector<16x32xf32>
    %c0_363 = arith.constant 0 : index
    %c0_364 = arith.constant 0 : index
    %528 = vector.load %arg25[%c0_363, %c0_364] : memref<1x32xf32, #tpu.memory_space<vmem>>, vector<1x32xf32>
    %529 = vector.broadcast %528 : vector<1x32xf32> to vector<16x32xf32>
    %530 = arith.addf %527, %529 : vector<16x32xf32>
    %531 = arith.addf %530, %484 : vector<16x32xf32>
    %cst_365 = arith.constant 0.000000e+00 : f32
    %532 = vector.broadcast %cst_365 : f32 to vector<16x32xf32>
    %533 = arith.maximumf %531, %532 : vector<16x32xf32>
    %c0_366 = arith.constant 0 : index
    %c0_367 = arith.constant 0 : index
    %c0_368 = arith.constant 0 : index
    %534 = vector.load %arg68[%c0_366, %c0_367, %c0_368] : memref<2x32x16xf32, #tpu.memory_space<vmem>>, vector<1x32x16xf32>
    %535 = vector.shape_cast %534 : vector<1x32x16xf32> to vector<32x16xf32>
    %cst_369 = arith.constant dense<0.000000e+00> : vector<16x16xf32>
    %536 = tpu.matmul %533, %535, %cst_369 {dimension_numbers = #tpu.dot_dimension_numbers<[1], [0], [0], [1], [0, 0, 1, 1], [], []>} : vector<16x32xf32>, vector<32x16xf32>, vector<16x16xf32> -> vector<16x16xf32>
    %cst_370 = arith.constant dense<0.000000e+00> : vector<32x16xf32>
    %537 = tpu.matmul %150, %536, %cst_370 {dimension_numbers = #tpu.dot_dimension_numbers<[1], [0], [0], [1], [0, 0, 1, 1], [], []>} : vector<32x16xf32>, vector<16x16xf32>, vector<32x16xf32> -> vector<32x16xf32>
    %c1_371 = arith.constant 1 : index
    %c0_372 = arith.constant 0 : index
    %c0_373 = arith.constant 0 : index
    %538 = vector.load %arg68[%c1_371, %c0_372, %c0_373] : memref<2x32x16xf32, #tpu.memory_space<vmem>>, vector<1x32x16xf32>
    %539 = vector.shape_cast %538 : vector<1x32x16xf32> to vector<32x16xf32>
    %cst_374 = arith.constant dense<0.000000e+00> : vector<16x16xf32>
    %540 = tpu.matmul %533, %539, %cst_374 {dimension_numbers = #tpu.dot_dimension_numbers<[1], [0], [0], [1], [0, 0, 1, 1], [], []>} : vector<16x32xf32>, vector<32x16xf32>, vector<16x16xf32> -> vector<16x16xf32>
    %cst_375 = arith.constant dense<0.000000e+00> : vector<32x16xf32>
    %541 = tpu.matmul %157, %540, %cst_375 {dimension_numbers = #tpu.dot_dimension_numbers<[1], [0], [0], [1], [0, 0, 1, 1], [], []>} : vector<32x16xf32>, vector<16x16xf32>, vector<32x16xf32> -> vector<32x16xf32>
    %542 = arith.addf %537, %541 : vector<32x16xf32>
    %c0_376 = arith.constant 0 : index
    %c0_377 = arith.constant 0 : index
    %543 = vector.load %arg69[%c0_376, %c0_377] : memref<1x16xf32, #tpu.memory_space<vmem>>, vector<1x16xf32>
    %544 = vector.broadcast %543 : vector<1x16xf32> to vector<32x16xf32>
    %545 = arith.addf %542, %544 : vector<32x16xf32>
    %c0_378 = arith.constant 0 : index
    %c0_379 = arith.constant 0 : index
    %546 = vector.load %arg22[%c0_378, %c0_379] : memref<16x16xf32, #tpu.memory_space<vmem>>, vector<16x16xf32>
    %cst_380 = arith.constant dense<0.000000e+00> : vector<32x16xf32>
    %547 = tpu.matmul %545, %546, %cst_380 {dimension_numbers = #tpu.dot_dimension_numbers<[1], [0], [0], [1], [0, 0, 1, 1], [], []>} : vector<32x16xf32>, vector<16x16xf32>, vector<32x16xf32> -> vector<32x16xf32>
    %c0_381 = arith.constant 0 : index
    %c0_382 = arith.constant 0 : index
    %548 = vector.load %arg23[%c0_381, %c0_382] : memref<16x16xf32, #tpu.memory_space<vmem>>, vector<16x16xf32>
    %cst_383 = arith.constant dense<0.000000e+00> : vector<32x16xf32>
    %549 = tpu.matmul %260, %548, %cst_383 {dimension_numbers = #tpu.dot_dimension_numbers<[1], [0], [0], [1], [0, 0, 1, 1], [], []>} : vector<32x16xf32>, vector<16x16xf32>, vector<32x16xf32> -> vector<32x16xf32>
    %550 = arith.addf %547, %549 : vector<32x16xf32>
    %c0_384 = arith.constant 0 : index
    %c0_385 = arith.constant 0 : index
    %551 = vector.load %arg18[%c0_384, %c0_385] : memref<1x16xf32, #tpu.memory_space<vmem>>, vector<1x16xf32>
    %552 = vector.broadcast %551 : vector<1x16xf32> to vector<32x16xf32>
    %553 = arith.addf %550, %552 : vector<32x16xf32>
    %c0_386 = arith.constant 0 : index
    %c0_387 = arith.constant 0 : index
    %c0_388 = arith.constant 0 : index
    %554 = vector.load %arg19[%c0_386, %c0_387, %c0_388] : memref<3x16x16xf32, #tpu.memory_space<vmem>>, vector<1x16x16xf32>
    %555 = vector.shape_cast %554 : vector<1x16x16xf32> to vector<16x16xf32>
    %cst_389 = arith.constant dense<0.000000e+00> : vector<32x16xf32>
    %556 = tpu.matmul %545, %555, %cst_389 {dimension_numbers = #tpu.dot_dimension_numbers<[1], [0], [0], [1], [0, 0, 1, 1], [], []>} : vector<32x16xf32>, vector<16x16xf32>, vector<32x16xf32> -> vector<32x16xf32>
    %c1_390 = arith.constant 1 : index
    %c0_391 = arith.constant 0 : index
    %c0_392 = arith.constant 0 : index
    %557 = vector.load %arg19[%c1_390, %c0_391, %c0_392] : memref<3x16x16xf32, #tpu.memory_space<vmem>>, vector<1x16x16xf32>
    %558 = vector.shape_cast %557 : vector<1x16x16xf32> to vector<16x16xf32>
    %cst_393 = arith.constant dense<0.000000e+00> : vector<32x16xf32>
    %559 = tpu.matmul %545, %558, %cst_393 {dimension_numbers = #tpu.dot_dimension_numbers<[1], [0], [0], [1], [0, 0, 1, 1], [], []>} : vector<32x16xf32>, vector<16x16xf32>, vector<32x16xf32> -> vector<32x16xf32>
    %c2_394 = arith.constant 2 : index
    %c0_395 = arith.constant 0 : index
    %c0_396 = arith.constant 0 : index
    %560 = vector.load %arg19[%c2_394, %c0_395, %c0_396] : memref<3x16x16xf32, #tpu.memory_space<vmem>>, vector<1x16x16xf32>
    %561 = vector.shape_cast %560 : vector<1x16x16xf32> to vector<16x16xf32>
    %cst_397 = arith.constant dense<0.000000e+00> : vector<32x16xf32>
    %562 = tpu.matmul %545, %561, %cst_397 {dimension_numbers = #tpu.dot_dimension_numbers<[1], [0], [0], [1], [0, 0, 1, 1], [], []>} : vector<32x16xf32>, vector<16x16xf32>, vector<32x16xf32> -> vector<32x16xf32>
    %c0_398 = arith.constant 0 : index
    %c0_399 = arith.constant 0 : index
    %c0_400 = arith.constant 0 : index
    %563 = vector.load %arg20[%c0_398, %c0_399, %c0_400] : memref<3x16x16xf32, #tpu.memory_space<vmem>>, vector<1x16x16xf32>
    %564 = vector.shape_cast %563 : vector<1x16x16xf32> to vector<16x16xf32>
    %cst_401 = arith.constant dense<0.000000e+00> : vector<32x16xf32>
    %565 = tpu.matmul %260, %564, %cst_401 {dimension_numbers = #tpu.dot_dimension_numbers<[1], [0], [0], [1], [0, 0, 1, 1], [], []>} : vector<32x16xf32>, vector<16x16xf32>, vector<32x16xf32> -> vector<32x16xf32>
    %c1_402 = arith.constant 1 : index
    %c0_403 = arith.constant 0 : index
    %c0_404 = arith.constant 0 : index
    %566 = vector.load %arg20[%c1_402, %c0_403, %c0_404] : memref<3x16x16xf32, #tpu.memory_space<vmem>>, vector<1x16x16xf32>
    %567 = vector.shape_cast %566 : vector<1x16x16xf32> to vector<16x16xf32>
    %cst_405 = arith.constant dense<0.000000e+00> : vector<32x16xf32>
    %568 = tpu.matmul %260, %567, %cst_405 {dimension_numbers = #tpu.dot_dimension_numbers<[1], [0], [0], [1], [0, 0, 1, 1], [], []>} : vector<32x16xf32>, vector<16x16xf32>, vector<32x16xf32> -> vector<32x16xf32>
    %c2_406 = arith.constant 2 : index
    %c0_407 = arith.constant 0 : index
    %c0_408 = arith.constant 0 : index
    %569 = vector.load %arg20[%c2_406, %c0_407, %c0_408] : memref<3x16x16xf32, #tpu.memory_space<vmem>>, vector<1x16x16xf32>
    %570 = vector.shape_cast %569 : vector<1x16x16xf32> to vector<16x16xf32>
    %cst_409 = arith.constant dense<0.000000e+00> : vector<32x16xf32>
    %571 = tpu.matmul %260, %570, %cst_409 {dimension_numbers = #tpu.dot_dimension_numbers<[1], [0], [0], [1], [0, 0, 1, 1], [], []>} : vector<32x16xf32>, vector<16x16xf32>, vector<32x16xf32> -> vector<32x16xf32>
    %572 = arith.addf %556, %565 : vector<32x16xf32>
    %573 = arith.addf %559, %568 : vector<32x16xf32>
    %574 = arith.addf %562, %571 : vector<32x16xf32>
    %cst_410 = arith.constant dense<0.000000e+00> : vector<32x16xf32>
    %575 = tpu.matmul %18, %572, %cst_410 {dimension_numbers = #tpu.dot_dimension_numbers<[1], [0], [0], [1], [0, 0, 1, 1], [], []>} : vector<32x32xf32>, vector<32x16xf32>, vector<32x16xf32> -> vector<32x16xf32>
    %576 = arith.addf %575, %573 : vector<32x16xf32>
    %cst_411 = arith.constant dense<0.000000e+00> : vector<32x16xf32>
    %577 = tpu.matmul %23, %574, %cst_411 {dimension_numbers = #tpu.dot_dimension_numbers<[1], [0], [0], [1], [0, 0, 1, 1], [], []>} : vector<32x32xf32>, vector<32x16xf32>, vector<32x16xf32> -> vector<32x16xf32>
    %578 = arith.addf %576, %577 : vector<32x16xf32>
    %c0_412 = arith.constant 0 : index
    %c0_413 = arith.constant 0 : index
    %579 = vector.load %arg16[%c0_412, %c0_413] : memref<1x16xf32, #tpu.memory_space<vmem>>, vector<1x16xf32>
    %580 = vector.broadcast %579 : vector<1x16xf32> to vector<32x16xf32>
    %581 = arith.addf %578, %580 : vector<32x16xf32>
    %cst_414 = arith.constant 0.000000e+00 : f32
    %582 = vector.broadcast %cst_414 : f32 to vector<32x16xf32>
    %583 = arith.maximumf %581, %582 : vector<32x16xf32>
    %c0_415 = arith.constant 0 : index
    %c0_416 = arith.constant 0 : index
    %c0_417 = arith.constant 0 : index
    %584 = vector.load %arg21[%c0_415, %c0_416, %c0_417] : memref<3x16x16xf32, #tpu.memory_space<vmem>>, vector<1x16x16xf32>
    %585 = vector.shape_cast %584 : vector<1x16x16xf32> to vector<16x16xf32>
    %cst_418 = arith.constant dense<0.000000e+00> : vector<32x16xf32>
    %586 = tpu.matmul %583, %585, %cst_418 {dimension_numbers = #tpu.dot_dimension_numbers<[1], [0], [0], [1], [0, 0, 1, 1], [], []>} : vector<32x16xf32>, vector<16x16xf32>, vector<32x16xf32> -> vector<32x16xf32>
    %c1_419 = arith.constant 1 : index
    %c0_420 = arith.constant 0 : index
    %c0_421 = arith.constant 0 : index
    %587 = vector.load %arg21[%c1_419, %c0_420, %c0_421] : memref<3x16x16xf32, #tpu.memory_space<vmem>>, vector<1x16x16xf32>
    %588 = vector.shape_cast %587 : vector<1x16x16xf32> to vector<16x16xf32>
    %cst_422 = arith.constant dense<0.000000e+00> : vector<32x16xf32>
    %589 = tpu.matmul %583, %588, %cst_422 {dimension_numbers = #tpu.dot_dimension_numbers<[1], [0], [0], [1], [0, 0, 1, 1], [], []>} : vector<32x16xf32>, vector<16x16xf32>, vector<32x16xf32> -> vector<32x16xf32>
    %c2_423 = arith.constant 2 : index
    %c0_424 = arith.constant 0 : index
    %c0_425 = arith.constant 0 : index
    %590 = vector.load %arg21[%c2_423, %c0_424, %c0_425] : memref<3x16x16xf32, #tpu.memory_space<vmem>>, vector<1x16x16xf32>
    %591 = vector.shape_cast %590 : vector<1x16x16xf32> to vector<16x16xf32>
    %cst_426 = arith.constant dense<0.000000e+00> : vector<32x16xf32>
    %592 = tpu.matmul %583, %591, %cst_426 {dimension_numbers = #tpu.dot_dimension_numbers<[1], [0], [0], [1], [0, 0, 1, 1], [], []>} : vector<32x16xf32>, vector<16x16xf32>, vector<32x16xf32> -> vector<32x16xf32>
    %cst_427 = arith.constant dense<0.000000e+00> : vector<32x16xf32>
    %593 = tpu.matmul %18, %586, %cst_427 {dimension_numbers = #tpu.dot_dimension_numbers<[1], [0], [0], [1], [0, 0, 1, 1], [], []>} : vector<32x32xf32>, vector<32x16xf32>, vector<32x16xf32> -> vector<32x16xf32>
    %594 = arith.addf %593, %589 : vector<32x16xf32>
    %cst_428 = arith.constant dense<0.000000e+00> : vector<32x16xf32>
    %595 = tpu.matmul %23, %592, %cst_428 {dimension_numbers = #tpu.dot_dimension_numbers<[1], [0], [0], [1], [0, 0, 1, 1], [], []>} : vector<32x32xf32>, vector<32x16xf32>, vector<32x16xf32> -> vector<32x16xf32>
    %596 = arith.addf %594, %595 : vector<32x16xf32>
    %c0_429 = arith.constant 0 : index
    %c0_430 = arith.constant 0 : index
    %597 = vector.load %arg17[%c0_429, %c0_430] : memref<1x16xf32, #tpu.memory_space<vmem>>, vector<1x16xf32>
    %598 = vector.broadcast %597 : vector<1x16xf32> to vector<32x16xf32>
    %599 = arith.addf %596, %598 : vector<32x16xf32>
    %600 = arith.addf %599, %553 : vector<32x16xf32>
    %cst_431 = arith.constant 0.000000e+00 : f32
    %601 = vector.broadcast %cst_431 : f32 to vector<32x16xf32>
    %602 = arith.maximumf %600, %601 : vector<32x16xf32>
    %c0_432 = arith.constant 0 : index
    %c0_433 = arith.constant 0 : index
    %c0_434 = arith.constant 0 : index
    %603 = vector.load %arg66[%c0_432, %c0_433, %c0_434] : memref<2x16x8xf32, #tpu.memory_space<vmem>>, vector<1x16x8xf32>
    %604 = vector.shape_cast %603 : vector<1x16x8xf32> to vector<16x8xf32>
    %cst_435 = arith.constant dense<0.000000e+00> : vector<32x8xf32>
    %605 = tpu.matmul %602, %604, %cst_435 {dimension_numbers = #tpu.dot_dimension_numbers<[1], [0], [0], [1], [0, 0, 1, 1], [], []>} : vector<32x16xf32>, vector<16x8xf32>, vector<32x8xf32> -> vector<32x8xf32>
    %cst_436 = arith.constant dense<0.000000e+00> : vector<64x8xf32>
    %606 = tpu.matmul %164, %605, %cst_436 {dimension_numbers = #tpu.dot_dimension_numbers<[1], [0], [0], [1], [0, 0, 1, 1], [], []>} : vector<64x32xf32>, vector<32x8xf32>, vector<64x8xf32> -> vector<64x8xf32>
    %c1_437 = arith.constant 1 : index
    %c0_438 = arith.constant 0 : index
    %c0_439 = arith.constant 0 : index
    %607 = vector.load %arg66[%c1_437, %c0_438, %c0_439] : memref<2x16x8xf32, #tpu.memory_space<vmem>>, vector<1x16x8xf32>
    %608 = vector.shape_cast %607 : vector<1x16x8xf32> to vector<16x8xf32>
    %cst_440 = arith.constant dense<0.000000e+00> : vector<32x8xf32>
    %609 = tpu.matmul %602, %608, %cst_440 {dimension_numbers = #tpu.dot_dimension_numbers<[1], [0], [0], [1], [0, 0, 1, 1], [], []>} : vector<32x16xf32>, vector<16x8xf32>, vector<32x8xf32> -> vector<32x8xf32>
    %cst_441 = arith.constant dense<0.000000e+00> : vector<64x8xf32>
    %610 = tpu.matmul %171, %609, %cst_441 {dimension_numbers = #tpu.dot_dimension_numbers<[1], [0], [0], [1], [0, 0, 1, 1], [], []>} : vector<64x32xf32>, vector<32x8xf32>, vector<64x8xf32> -> vector<64x8xf32>
    %611 = arith.addf %606, %610 : vector<64x8xf32>
    %c0_442 = arith.constant 0 : index
    %c0_443 = arith.constant 0 : index
    %612 = vector.load %arg67[%c0_442, %c0_443] : memref<1x8xf32, #tpu.memory_space<vmem>>, vector<1x8xf32>
    %613 = vector.broadcast %612 : vector<1x8xf32> to vector<64x8xf32>
    %614 = arith.addf %611, %613 : vector<64x8xf32>
    %c0_444 = arith.constant 0 : index
    %c0_445 = arith.constant 0 : index
    %615 = vector.load %arg14[%c0_444, %c0_445] : memref<8x8xf32, #tpu.memory_space<vmem>>, vector<8x8xf32>
    %cst_446 = arith.constant dense<0.000000e+00> : vector<64x8xf32>
    %616 = tpu.matmul %614, %615, %cst_446 {dimension_numbers = #tpu.dot_dimension_numbers<[1], [0], [0], [1], [0, 0, 1, 1], [], []>} : vector<64x8xf32>, vector<8x8xf32>, vector<64x8xf32> -> vector<64x8xf32>
    %c0_447 = arith.constant 0 : index
    %c0_448 = arith.constant 0 : index
    %617 = vector.load %arg15[%c0_447, %c0_448] : memref<8x8xf32, #tpu.memory_space<vmem>>, vector<8x8xf32>
    %cst_449 = arith.constant dense<0.000000e+00> : vector<64x8xf32>
    %618 = tpu.matmul %215, %617, %cst_449 {dimension_numbers = #tpu.dot_dimension_numbers<[1], [0], [0], [1], [0, 0, 1, 1], [], []>} : vector<64x8xf32>, vector<8x8xf32>, vector<64x8xf32> -> vector<64x8xf32>
    %619 = arith.addf %616, %618 : vector<64x8xf32>
    %c0_450 = arith.constant 0 : index
    %c0_451 = arith.constant 0 : index
    %620 = vector.load %arg10[%c0_450, %c0_451] : memref<1x8xf32, #tpu.memory_space<vmem>>, vector<1x8xf32>
    %621 = vector.broadcast %620 : vector<1x8xf32> to vector<64x8xf32>
    %622 = arith.addf %619, %621 : vector<64x8xf32>
    %c0_452 = arith.constant 0 : index
    %c0_453 = arith.constant 0 : index
    %c0_454 = arith.constant 0 : index
    %623 = vector.load %arg11[%c0_452, %c0_453, %c0_454] : memref<3x8x8xf32, #tpu.memory_space<vmem>>, vector<1x8x8xf32>
    %624 = vector.shape_cast %623 : vector<1x8x8xf32> to vector<8x8xf32>
    %cst_455 = arith.constant dense<0.000000e+00> : vector<64x8xf32>
    %625 = tpu.matmul %614, %624, %cst_455 {dimension_numbers = #tpu.dot_dimension_numbers<[1], [0], [0], [1], [0, 0, 1, 1], [], []>} : vector<64x8xf32>, vector<8x8xf32>, vector<64x8xf32> -> vector<64x8xf32>
    %c1_456 = arith.constant 1 : index
    %c0_457 = arith.constant 0 : index
    %c0_458 = arith.constant 0 : index
    %626 = vector.load %arg11[%c1_456, %c0_457, %c0_458] : memref<3x8x8xf32, #tpu.memory_space<vmem>>, vector<1x8x8xf32>
    %627 = vector.shape_cast %626 : vector<1x8x8xf32> to vector<8x8xf32>
    %cst_459 = arith.constant dense<0.000000e+00> : vector<64x8xf32>
    %628 = tpu.matmul %614, %627, %cst_459 {dimension_numbers = #tpu.dot_dimension_numbers<[1], [0], [0], [1], [0, 0, 1, 1], [], []>} : vector<64x8xf32>, vector<8x8xf32>, vector<64x8xf32> -> vector<64x8xf32>
    %c2_460 = arith.constant 2 : index
    %c0_461 = arith.constant 0 : index
    %c0_462 = arith.constant 0 : index
    %629 = vector.load %arg11[%c2_460, %c0_461, %c0_462] : memref<3x8x8xf32, #tpu.memory_space<vmem>>, vector<1x8x8xf32>
    %630 = vector.shape_cast %629 : vector<1x8x8xf32> to vector<8x8xf32>
    %cst_463 = arith.constant dense<0.000000e+00> : vector<64x8xf32>
    %631 = tpu.matmul %614, %630, %cst_463 {dimension_numbers = #tpu.dot_dimension_numbers<[1], [0], [0], [1], [0, 0, 1, 1], [], []>} : vector<64x8xf32>, vector<8x8xf32>, vector<64x8xf32> -> vector<64x8xf32>
    %c0_464 = arith.constant 0 : index
    %c0_465 = arith.constant 0 : index
    %c0_466 = arith.constant 0 : index
    %632 = vector.load %arg12[%c0_464, %c0_465, %c0_466] : memref<3x8x8xf32, #tpu.memory_space<vmem>>, vector<1x8x8xf32>
    %633 = vector.shape_cast %632 : vector<1x8x8xf32> to vector<8x8xf32>
    %cst_467 = arith.constant dense<0.000000e+00> : vector<64x8xf32>
    %634 = tpu.matmul %215, %633, %cst_467 {dimension_numbers = #tpu.dot_dimension_numbers<[1], [0], [0], [1], [0, 0, 1, 1], [], []>} : vector<64x8xf32>, vector<8x8xf32>, vector<64x8xf32> -> vector<64x8xf32>
    %c1_468 = arith.constant 1 : index
    %c0_469 = arith.constant 0 : index
    %c0_470 = arith.constant 0 : index
    %635 = vector.load %arg12[%c1_468, %c0_469, %c0_470] : memref<3x8x8xf32, #tpu.memory_space<vmem>>, vector<1x8x8xf32>
    %636 = vector.shape_cast %635 : vector<1x8x8xf32> to vector<8x8xf32>
    %cst_471 = arith.constant dense<0.000000e+00> : vector<64x8xf32>
    %637 = tpu.matmul %215, %636, %cst_471 {dimension_numbers = #tpu.dot_dimension_numbers<[1], [0], [0], [1], [0, 0, 1, 1], [], []>} : vector<64x8xf32>, vector<8x8xf32>, vector<64x8xf32> -> vector<64x8xf32>
    %c2_472 = arith.constant 2 : index
    %c0_473 = arith.constant 0 : index
    %c0_474 = arith.constant 0 : index
    %638 = vector.load %arg12[%c2_472, %c0_473, %c0_474] : memref<3x8x8xf32, #tpu.memory_space<vmem>>, vector<1x8x8xf32>
    %639 = vector.shape_cast %638 : vector<1x8x8xf32> to vector<8x8xf32>
    %cst_475 = arith.constant dense<0.000000e+00> : vector<64x8xf32>
    %640 = tpu.matmul %215, %639, %cst_475 {dimension_numbers = #tpu.dot_dimension_numbers<[1], [0], [0], [1], [0, 0, 1, 1], [], []>} : vector<64x8xf32>, vector<8x8xf32>, vector<64x8xf32> -> vector<64x8xf32>
    %641 = arith.addf %625, %634 : vector<64x8xf32>
    %642 = arith.addf %628, %637 : vector<64x8xf32>
    %643 = arith.addf %631, %640 : vector<64x8xf32>
    %cst_476 = arith.constant dense<0.000000e+00> : vector<64x8xf32>
    %644 = tpu.matmul %6, %641, %cst_476 {dimension_numbers = #tpu.dot_dimension_numbers<[1], [0], [0], [1], [0, 0, 1, 1], [], []>} : vector<64x64xf32>, vector<64x8xf32>, vector<64x8xf32> -> vector<64x8xf32>
    %645 = arith.addf %644, %642 : vector<64x8xf32>
    %cst_477 = arith.constant dense<0.000000e+00> : vector<64x8xf32>
    %646 = tpu.matmul %11, %643, %cst_477 {dimension_numbers = #tpu.dot_dimension_numbers<[1], [0], [0], [1], [0, 0, 1, 1], [], []>} : vector<64x64xf32>, vector<64x8xf32>, vector<64x8xf32> -> vector<64x8xf32>
    %647 = arith.addf %645, %646 : vector<64x8xf32>
    %c0_478 = arith.constant 0 : index
    %c0_479 = arith.constant 0 : index
    %648 = vector.load %arg8[%c0_478, %c0_479] : memref<1x8xf32, #tpu.memory_space<vmem>>, vector<1x8xf32>
    %649 = vector.broadcast %648 : vector<1x8xf32> to vector<64x8xf32>
    %650 = arith.addf %647, %649 : vector<64x8xf32>
    %cst_480 = arith.constant 0.000000e+00 : f32
    %651 = vector.broadcast %cst_480 : f32 to vector<64x8xf32>
    %652 = arith.maximumf %650, %651 : vector<64x8xf32>
    %c0_481 = arith.constant 0 : index
    %c0_482 = arith.constant 0 : index
    %c0_483 = arith.constant 0 : index
    %653 = vector.load %arg13[%c0_481, %c0_482, %c0_483] : memref<3x8x8xf32, #tpu.memory_space<vmem>>, vector<1x8x8xf32>
    %654 = vector.shape_cast %653 : vector<1x8x8xf32> to vector<8x8xf32>
    %cst_484 = arith.constant dense<0.000000e+00> : vector<64x8xf32>
    %655 = tpu.matmul %652, %654, %cst_484 {dimension_numbers = #tpu.dot_dimension_numbers<[1], [0], [0], [1], [0, 0, 1, 1], [], []>} : vector<64x8xf32>, vector<8x8xf32>, vector<64x8xf32> -> vector<64x8xf32>
    %c1_485 = arith.constant 1 : index
    %c0_486 = arith.constant 0 : index
    %c0_487 = arith.constant 0 : index
    %656 = vector.load %arg13[%c1_485, %c0_486, %c0_487] : memref<3x8x8xf32, #tpu.memory_space<vmem>>, vector<1x8x8xf32>
    %657 = vector.shape_cast %656 : vector<1x8x8xf32> to vector<8x8xf32>
    %cst_488 = arith.constant dense<0.000000e+00> : vector<64x8xf32>
    %658 = tpu.matmul %652, %657, %cst_488 {dimension_numbers = #tpu.dot_dimension_numbers<[1], [0], [0], [1], [0, 0, 1, 1], [], []>} : vector<64x8xf32>, vector<8x8xf32>, vector<64x8xf32> -> vector<64x8xf32>
    %c2_489 = arith.constant 2 : index
    %c0_490 = arith.constant 0 : index
    %c0_491 = arith.constant 0 : index
    %659 = vector.load %arg13[%c2_489, %c0_490, %c0_491] : memref<3x8x8xf32, #tpu.memory_space<vmem>>, vector<1x8x8xf32>
    %660 = vector.shape_cast %659 : vector<1x8x8xf32> to vector<8x8xf32>
    %cst_492 = arith.constant dense<0.000000e+00> : vector<64x8xf32>
    %661 = tpu.matmul %652, %660, %cst_492 {dimension_numbers = #tpu.dot_dimension_numbers<[1], [0], [0], [1], [0, 0, 1, 1], [], []>} : vector<64x8xf32>, vector<8x8xf32>, vector<64x8xf32> -> vector<64x8xf32>
    %cst_493 = arith.constant dense<0.000000e+00> : vector<64x8xf32>
    %662 = tpu.matmul %6, %655, %cst_493 {dimension_numbers = #tpu.dot_dimension_numbers<[1], [0], [0], [1], [0, 0, 1, 1], [], []>} : vector<64x64xf32>, vector<64x8xf32>, vector<64x8xf32> -> vector<64x8xf32>
    %663 = arith.addf %662, %658 : vector<64x8xf32>
    %cst_494 = arith.constant dense<0.000000e+00> : vector<64x8xf32>
    %664 = tpu.matmul %11, %661, %cst_494 {dimension_numbers = #tpu.dot_dimension_numbers<[1], [0], [0], [1], [0, 0, 1, 1], [], []>} : vector<64x64xf32>, vector<64x8xf32>, vector<64x8xf32> -> vector<64x8xf32>
    %665 = arith.addf %663, %664 : vector<64x8xf32>
    %c0_495 = arith.constant 0 : index
    %c0_496 = arith.constant 0 : index
    %666 = vector.load %arg9[%c0_495, %c0_496] : memref<1x8xf32, #tpu.memory_space<vmem>>, vector<1x8xf32>
    %667 = vector.broadcast %666 : vector<1x8xf32> to vector<64x8xf32>
    %668 = arith.addf %665, %667 : vector<64x8xf32>
    %669 = arith.addf %668, %622 : vector<64x8xf32>
    %cst_497 = arith.constant 0.000000e+00 : f32
    %670 = vector.broadcast %cst_497 : f32 to vector<64x8xf32>
    %671 = arith.maximumf %669, %670 : vector<64x8xf32>
    %c0_498 = arith.constant 0 : index
    %c0_499 = arith.constant 0 : index
    %672 = vector.load %arg64[%c0_498, %c0_499] : memref<8x1xf32, #tpu.memory_space<vmem>>, vector<8x1xf32>
    %cst_500 = arith.constant dense<0.000000e+00> : vector<64x1xf32>
    %673 = tpu.matmul %671, %672, %cst_500 {dimension_numbers = #tpu.dot_dimension_numbers<[1], [0], [0], [1], [0, 0, 1, 1], [], []>} : vector<64x8xf32>, vector<8x1xf32>, vector<64x1xf32> -> vector<64x1xf32>
    %c0_501 = arith.constant 0 : index
    %c0_502 = arith.constant 0 : index
    %674 = vector.load %arg65[%c0_501, %c0_502] : memref<1x1xf32, #tpu.memory_space<vmem>>, vector<1x1xf32>
    %675 = vector.broadcast %674 : vector<1x1xf32> to vector<64x1xf32>
    %676 = arith.addf %673, %675 : vector<64x1xf32>
    %c0_503 = arith.constant 0 : index
    %c0_504 = arith.constant 0 : index
    %c0_505 = arith.constant 0 : index
    %677 = vector.load %arg74[%c0_503, %c0_504, %c0_505] : memref<1x64x1xf32, #tpu.memory_space<vmem>>, vector<1x64x1xf32>
    %678 = vector.shape_cast %677 : vector<1x64x1xf32> to vector<64x1xf32>
    %679 = vector.shape_cast %676 : vector<64x1xf32> to vector<1x64x1xf32>
    tpu.vector_store %arg74[%c0_503, %c0_504, %c0_505], %679 {strides = array<i32>} : memref<1x64x1xf32, #tpu.memory_space<vmem>>, vector<1x64x1xf32>,
    return
  }
  func.func @transform_0(%arg0: i32) -> (i32, i32, i32) {
    %c0_i32 = arith.constant 0 : i32
    %c0_i32_0 = arith.constant 0 : i32
    %c0_i32_1 = arith.constant 0 : i32
    return %arg0, %c0_i32, %c0_i32_0 : i32, i32, i32
  }
  func.func @transform_1(%arg0: i32) -> (i32, i32) {
    %c0_i32 = arith.constant 0 : i32
    %c0_i32_0 = arith.constant 0 : i32
    %c0_i32_1 = arith.constant 0 : i32
    return %c0_i32, %c0_i32_0 : i32, i32
  }
  func.func @transform_2(%arg0: i32) -> (i32, i32) {
    %c0_i32 = arith.constant 0 : i32
    %c0_i32_0 = arith.constant 0 : i32
    %c0_i32_1 = arith.constant 0 : i32
    return %c0_i32, %c0_i32_0 : i32, i32
  }
  func.func @transform_3(%arg0: i32) -> (i32, i32) {
    %c0_i32 = arith.constant 0 : i32
    %c0_i32_0 = arith.constant 0 : i32
    %c0_i32_1 = arith.constant 0 : i32
    return %c0_i32, %c0_i32_0 : i32, i32
  }
  func.func @transform_4(%arg0: i32) -> (i32, i32, i32) {
    %c0_i32 = arith.constant 0 : i32
    %c0_i32_0 = arith.constant 0 : i32
    %c0_i32_1 = arith.constant 0 : i32
    %c0_i32_2 = arith.constant 0 : i32
    return %c0_i32, %c0_i32_0, %c0_i32_1 : i32, i32, i32
  }
  func.func @transform_5(%arg0: i32) -> (i32, i32, i32) {
    %c0_i32 = arith.constant 0 : i32
    %c0_i32_0 = arith.constant 0 : i32
    %c0_i32_1 = arith.constant 0 : i32
    %c0_i32_2 = arith.constant 0 : i32
    return %c0_i32, %c0_i32_0, %c0_i32_1 : i32, i32, i32
  }
  func.func @transform_6(%arg0: i32) -> (i32, i32) {
    %c0_i32 = arith.constant 0 : i32
    %c0_i32_0 = arith.constant 0 : i32
    %c0_i32_1 = arith.constant 0 : i32
    return %c0_i32, %c0_i32_0 : i32, i32
  }
  func.func @transform_7(%arg0: i32) -> (i32, i32) {
    %c0_i32 = arith.constant 0 : i32
    %c0_i32_0 = arith.constant 0 : i32
    %c0_i32_1 = arith.constant 0 : i32
    return %c0_i32, %c0_i32_0 : i32, i32
  }
  func.func @transform_8(%arg0: i32) -> (i32, i32) {
    %c0_i32 = arith.constant 0 : i32
    %c0_i32_0 = arith.constant 0 : i32
    %c0_i32_1 = arith.constant 0 : i32
    return %c0_i32, %c0_i32_0 : i32, i32
  }
  func.func @transform_9(%arg0: i32) -> (i32, i32) {
    %c0_i32 = arith.constant 0 : i32
    %c0_i32_0 = arith.constant 0 : i32
    %c0_i32_1 = arith.constant 0 : i32
    return %c0_i32, %c0_i32_0 : i32, i32
  }
  func.func @transform_10(%arg0: i32) -> (i32, i32, i32) {
    %c0_i32 = arith.constant 0 : i32
    %c0_i32_0 = arith.constant 0 : i32
    %c0_i32_1 = arith.constant 0 : i32
    %c0_i32_2 = arith.constant 0 : i32
    return %c0_i32, %c0_i32_0, %c0_i32_1 : i32, i32, i32
  }
  func.func @transform_11(%arg0: i32) -> (i32, i32, i32) {
    %c0_i32 = arith.constant 0 : i32
    %c0_i32_0 = arith.constant 0 : i32
    %c0_i32_1 = arith.constant 0 : i32
    %c0_i32_2 = arith.constant 0 : i32
    return %c0_i32, %c0_i32_0, %c0_i32_1 : i32, i32, i32
  }
  func.func @transform_12(%arg0: i32) -> (i32, i32, i32) {
    %c0_i32 = arith.constant 0 : i32
    %c0_i32_0 = arith.constant 0 : i32
    %c0_i32_1 = arith.constant 0 : i32
    %c0_i32_2 = arith.constant 0 : i32
    return %c0_i32, %c0_i32_0, %c0_i32_1 : i32, i32, i32
  }
  func.func @transform_13(%arg0: i32) -> (i32, i32) {
    %c0_i32 = arith.constant 0 : i32
    %c0_i32_0 = arith.constant 0 : i32
    %c0_i32_1 = arith.constant 0 : i32
    return %c0_i32, %c0_i32_0 : i32, i32
  }
  func.func @transform_14(%arg0: i32) -> (i32, i32) {
    %c0_i32 = arith.constant 0 : i32
    %c0_i32_0 = arith.constant 0 : i32
    %c0_i32_1 = arith.constant 0 : i32
    return %c0_i32, %c0_i32_0 : i32, i32
  }
  func.func @transform_15(%arg0: i32) -> (i32, i32) {
    %c0_i32 = arith.constant 0 : i32
    %c0_i32_0 = arith.constant 0 : i32
    %c0_i32_1 = arith.constant 0 : i32
    return %c0_i32, %c0_i32_0 : i32, i32
  }
  func.func @transform_16(%arg0: i32) -> (i32, i32) {
    %c0_i32 = arith.constant 0 : i32
    %c0_i32_0 = arith.constant 0 : i32
    %c0_i32_1 = arith.constant 0 : i32
    return %c0_i32, %c0_i32_0 : i32, i32
  }
  func.func @transform_17(%arg0: i32) -> (i32, i32) {
    %c0_i32 = arith.constant 0 : i32
    %c0_i32_0 = arith.constant 0 : i32
    %c0_i32_1 = arith.constant 0 : i32
    return %c0_i32, %c0_i32_0 : i32, i32
  }
  func.func @transform_18(%arg0: i32) -> (i32, i32, i32) {
    %c0_i32 = arith.constant 0 : i32
    %c0_i32_0 = arith.constant 0 : i32
    %c0_i32_1 = arith.constant 0 : i32
    %c0_i32_2 = arith.constant 0 : i32
    return %c0_i32, %c0_i32_0, %c0_i32_1 : i32, i32, i32
  }
  func.func @transform_19(%arg0: i32) -> (i32, i32, i32) {
    %c0_i32 = arith.constant 0 : i32
    %c0_i32_0 = arith.constant 0 : i32
    %c0_i32_1 = arith.constant 0 : i32
    %c0_i32_2 = arith.constant 0 : i32
    return %c0_i32, %c0_i32_0, %c0_i32_1 : i32, i32, i32
  }
  func.func @transform_20(%arg0: i32) -> (i32, i32, i32) {
    %c0_i32 = arith.constant 0 : i32
    %c0_i32_0 = arith.constant 0 : i32
    %c0_i32_1 = arith.constant 0 : i32
    %c0_i32_2 = arith.constant 0 : i32
    return %c0_i32, %c0_i32_0, %c0_i32_1 : i32, i32, i32
  }
  func.func @transform_21(%arg0: i32) -> (i32, i32) {
    %c0_i32 = arith.constant 0 : i32
    %c0_i32_0 = arith.constant 0 : i32
    %c0_i32_1 = arith.constant 0 : i32
    return %c0_i32, %c0_i32_0 : i32, i32
  }
  func.func @transform_22(%arg0: i32) -> (i32, i32) {
    %c0_i32 = arith.constant 0 : i32
    %c0_i32_0 = arith.constant 0 : i32
    %c0_i32_1 = arith.constant 0 : i32
    return %c0_i32, %c0_i32_0 : i32, i32
  }
  func.func @transform_23(%arg0: i32) -> (i32, i32) {
    %c0_i32 = arith.constant 0 : i32
    %c0_i32_0 = arith.constant 0 : i32
    %c0_i32_1 = arith.constant 0 : i32
    return %c0_i32, %c0_i32_0 : i32, i32
  }
  func.func @transform_24(%arg0: i32) -> (i32, i32) {
    %c0_i32 = arith.constant 0 : i32
    %c0_i32_0 = arith.constant 0 : i32
    %c0_i32_1 = arith.constant 0 : i32
    return %c0_i32, %c0_i32_0 : i32, i32
  }
  func.func @transform_25(%arg0: i32) -> (i32, i32) {
    %c0_i32 = arith.constant 0 : i32
    %c0_i32_0 = arith.constant 0 : i32
    %c0_i32_1 = arith.constant 0 : i32
    return %c0_i32, %c0_i32_0 : i32, i32
  }
  func.func @transform_26(%arg0: i32) -> (i32, i32, i32) {
    %c0_i32 = arith.constant 0 : i32
    %c0_i32_0 = arith.constant 0 : i32
    %c0_i32_1 = arith.constant 0 : i32
    %c0_i32_2 = arith.constant 0 : i32
    return %c0_i32, %c0_i32_0, %c0_i32_1 : i32, i32, i32
  }
  func.func @transform_27(%arg0: i32) -> (i32, i32, i32) {
    %c0_i32 = arith.constant 0 : i32
    %c0_i32_0 = arith.constant 0 : i32
    %c0_i32_1 = arith.constant 0 : i32
    %c0_i32_2 = arith.constant 0 : i32
    return %c0_i32, %c0_i32_0, %c0_i32_1 : i32, i32, i32
  }
  func.func @transform_28(%arg0: i32) -> (i32, i32, i32) {
    %c0_i32 = arith.constant 0 : i32
    %c0_i32_0 = arith.constant 0 : i32
    %c0_i32_1 = arith.constant 0 : i32
    %c0_i32_2 = arith.constant 0 : i32
    return %c0_i32, %c0_i32_0, %c0_i32_1 : i32, i32, i32
  }
  func.func @transform_29(%arg0: i32) -> (i32, i32) {
    %c0_i32 = arith.constant 0 : i32
    %c0_i32_0 = arith.constant 0 : i32
    %c0_i32_1 = arith.constant 0 : i32
    return %c0_i32, %c0_i32_0 : i32, i32
  }
  func.func @transform_30(%arg0: i32) -> (i32, i32) {
    %c0_i32 = arith.constant 0 : i32
    %c0_i32_0 = arith.constant 0 : i32
    %c0_i32_1 = arith.constant 0 : i32
    return %c0_i32, %c0_i32_0 : i32, i32
  }
  func.func @transform_31(%arg0: i32) -> (i32, i32) {
    %c0_i32 = arith.constant 0 : i32
    %c0_i32_0 = arith.constant 0 : i32
    %c0_i32_1 = arith.constant 0 : i32
    return %c0_i32, %c0_i32_0 : i32, i32
  }
  func.func @transform_32(%arg0: i32) -> (i32, i32) {
    %c0_i32 = arith.constant 0 : i32
    %c0_i32_0 = arith.constant 0 : i32
    %c0_i32_1 = arith.constant 0 : i32
    return %c0_i32, %c0_i32_0 : i32, i32
  }
  func.func @transform_33(%arg0: i32) -> (i32, i32) {
    %c0_i32 = arith.constant 0 : i32
    %c0_i32_0 = arith.constant 0 : i32
    %c0_i32_1 = arith.constant 0 : i32
    return %c0_i32, %c0_i32_0 : i32, i32
  }
  func.func @transform_34(%arg0: i32) -> (i32, i32, i32) {
    %c0_i32 = arith.constant 0 : i32
    %c0_i32_0 = arith.constant 0 : i32
    %c0_i32_1 = arith.constant 0 : i32
    %c0_i32_2 = arith.constant 0 : i32
    return %c0_i32, %c0_i32_0, %c0_i32_1 : i32, i32, i32
  }
  func.func @transform_35(%arg0: i32) -> (i32, i32, i32) {
    %c0_i32 = arith.constant 0 : i32
    %c0_i32_0 = arith.constant 0 : i32
    %c0_i32_1 = arith.constant 0 : i32
    %c0_i32_2 = arith.constant 0 : i32
    return %c0_i32, %c0_i32_0, %c0_i32_1 : i32, i32, i32
  }
  func.func @transform_36(%arg0: i32) -> (i32, i32, i32) {
    %c0_i32 = arith.constant 0 : i32
    %c0_i32_0 = arith.constant 0 : i32
    %c0_i32_1 = arith.constant 0 : i32
    %c0_i32_2 = arith.constant 0 : i32
    return %c0_i32, %c0_i32_0, %c0_i32_1 : i32, i32, i32
  }
  func.func @transform_37(%arg0: i32) -> (i32, i32) {
    %c0_i32 = arith.constant 0 : i32
    %c0_i32_0 = arith.constant 0 : i32
    %c0_i32_1 = arith.constant 0 : i32
    return %c0_i32, %c0_i32_0 : i32, i32
  }
  func.func @transform_38(%arg0: i32) -> (i32, i32) {
    %c0_i32 = arith.constant 0 : i32
    %c0_i32_0 = arith.constant 0 : i32
    %c0_i32_1 = arith.constant 0 : i32
    return %c0_i32, %c0_i32_0 : i32, i32
  }
  func.func @transform_39(%arg0: i32) -> (i32, i32) {
    %c0_i32 = arith.constant 0 : i32
    %c0_i32_0 = arith.constant 0 : i32
    %c0_i32_1 = arith.constant 0 : i32
    return %c0_i32, %c0_i32_0 : i32, i32
  }
  func.func @transform_40(%arg0: i32) -> (i32, i32) {
    %c0_i32 = arith.constant 0 : i32
    %c0_i32_0 = arith.constant 0 : i32
    %c0_i32_1 = arith.constant 0 : i32
    return %c0_i32, %c0_i32_0 : i32, i32
  }
  func.func @transform_41(%arg0: i32) -> (i32, i32) {
    %c0_i32 = arith.constant 0 : i32
    %c0_i32_0 = arith.constant 0 : i32
    %c0_i32_1 = arith.constant 0 : i32
    return %c0_i32, %c0_i32_0 : i32, i32
  }
  func.func @transform_42(%arg0: i32) -> (i32, i32, i32) {
    %c0_i32 = arith.constant 0 : i32
    %c0_i32_0 = arith.constant 0 : i32
    %c0_i32_1 = arith.constant 0 : i32
    %c0_i32_2 = arith.constant 0 : i32
    return %c0_i32, %c0_i32_0, %c0_i32_1 : i32, i32, i32
  }
  func.func @transform_43(%arg0: i32) -> (i32, i32, i32) {
    %c0_i32 = arith.constant 0 : i32
    %c0_i32_0 = arith.constant 0 : i32
    %c0_i32_1 = arith.constant 0 : i32
    %c0_i32_2 = arith.constant 0 : i32
    return %c0_i32, %c0_i32_0, %c0_i32_1 : i32, i32, i32
  }
  func.func @transform_44(%arg0: i32) -> (i32, i32) {
    %c0_i32 = arith.constant 0 : i32
    %c0_i32_0 = arith.constant 0 : i32
    %c0_i32_1 = arith.constant 0 : i32
    return %c0_i32, %c0_i32_0 : i32, i32
  }
  func.func @transform_45(%arg0: i32) -> (i32, i32) {
    %c0_i32 = arith.constant 0 : i32
    %c0_i32_0 = arith.constant 0 : i32
    %c0_i32_1 = arith.constant 0 : i32
    return %c0_i32, %c0_i32_0 : i32, i32
  }
  func.func @transform_46(%arg0: i32) -> (i32, i32) {
    %c0_i32 = arith.constant 0 : i32
    %c0_i32_0 = arith.constant 0 : i32
    %c0_i32_1 = arith.constant 0 : i32
    return %c0_i32, %c0_i32_0 : i32, i32
  }
  func.func @transform_47(%arg0: i32) -> (i32, i32) {
    %c0_i32 = arith.constant 0 : i32
    %c0_i32_0 = arith.constant 0 : i32
    %c0_i32_1 = arith.constant 0 : i32
    return %c0_i32, %c0_i32_0 : i32, i32
  }
  func.func @transform_48(%arg0: i32) -> (i32, i32, i32) {
    %c0_i32 = arith.constant 0 : i32
    %c0_i32_0 = arith.constant 0 : i32
    %c0_i32_1 = arith.constant 0 : i32
    %c0_i32_2 = arith.constant 0 : i32
    return %c0_i32, %c0_i32_0, %c0_i32_1 : i32, i32, i32
  }
  func.func @transform_49(%arg0: i32) -> (i32, i32, i32) {
    %c0_i32 = arith.constant 0 : i32
    %c0_i32_0 = arith.constant 0 : i32
    %c0_i32_1 = arith.constant 0 : i32
    %c0_i32_2 = arith.constant 0 : i32
    return %c0_i32, %c0_i32_0, %c0_i32_1 : i32, i32, i32
  }
  func.func @transform_50(%arg0: i32) -> (i32, i32) {
    %c0_i32 = arith.constant 0 : i32
    %c0_i32_0 = arith.constant 0 : i32
    %c0_i32_1 = arith.constant 0 : i32
    return %c0_i32, %c0_i32_0 : i32, i32
  }
  func.func @transform_51(%arg0: i32) -> (i32, i32) {
    %c0_i32 = arith.constant 0 : i32
    %c0_i32_0 = arith.constant 0 : i32
    %c0_i32_1 = arith.constant 0 : i32
    return %c0_i32, %c0_i32_0 : i32, i32
  }
  func.func @transform_52(%arg0: i32) -> (i32, i32) {
    %c0_i32 = arith.constant 0 : i32
    %c0_i32_0 = arith.constant 0 : i32
    %c0_i32_1 = arith.constant 0 : i32
    return %c0_i32, %c0_i32_0 : i32, i32
  }
  func.func @transform_53(%arg0: i32) -> (i32, i32) {
    %c0_i32 = arith.constant 0 : i32
    %c0_i32_0 = arith.constant 0 : i32
    %c0_i32_1 = arith.constant 0 : i32
    return %c0_i32, %c0_i32_0 : i32, i32
  }
  func.func @transform_54(%arg0: i32) -> (i32, i32, i32) {
    %c0_i32 = arith.constant 0 : i32
    %c0_i32_0 = arith.constant 0 : i32
    %c0_i32_1 = arith.constant 0 : i32
    %c0_i32_2 = arith.constant 0 : i32
    return %c0_i32, %c0_i32_0, %c0_i32_1 : i32, i32, i32
  }
  func.func @transform_55(%arg0: i32) -> (i32, i32, i32) {
    %c0_i32 = arith.constant 0 : i32
    %c0_i32_0 = arith.constant 0 : i32
    %c0_i32_1 = arith.constant 0 : i32
    %c0_i32_2 = arith.constant 0 : i32
    return %c0_i32, %c0_i32_0, %c0_i32_1 : i32, i32, i32
  }
  func.func @transform_56(%arg0: i32) -> (i32, i32) {
    %c0_i32 = arith.constant 0 : i32
    %c0_i32_0 = arith.constant 0 : i32
    %c0_i32_1 = arith.constant 0 : i32
    return %c0_i32, %c0_i32_0 : i32, i32
  }
  func.func @transform_57(%arg0: i32) -> (i32, i32) {
    %c0_i32 = arith.constant 0 : i32
    %c0_i32_0 = arith.constant 0 : i32
    %c0_i32_1 = arith.constant 0 : i32
    return %c0_i32, %c0_i32_0 : i32, i32
  }
  func.func @transform_58(%arg0: i32) -> (i32, i32) {
    %c0_i32 = arith.constant 0 : i32
    %c0_i32_0 = arith.constant 0 : i32
    %c0_i32_1 = arith.constant 0 : i32
    return %c0_i32, %c0_i32_0 : i32, i32
  }
  func.func @transform_59(%arg0: i32) -> (i32, i32) {
    %c0_i32 = arith.constant 0 : i32
    %c0_i32_0 = arith.constant 0 : i32
    %c0_i32_1 = arith.constant 0 : i32
    return %c0_i32, %c0_i32_0 : i32, i32
  }
  func.func @transform_60(%arg0: i32) -> (i32, i32, i32) {
    %c0_i32 = arith.constant 0 : i32
    %c0_i32_0 = arith.constant 0 : i32
    %c0_i32_1 = arith.constant 0 : i32
    %c0_i32_2 = arith.constant 0 : i32
    return %c0_i32, %c0_i32_0, %c0_i32_1 : i32, i32, i32
  }
  func.func @transform_61(%arg0: i32) -> (i32, i32, i32) {
    %c0_i32 = arith.constant 0 : i32
    %c0_i32_0 = arith.constant 0 : i32
    %c0_i32_1 = arith.constant 0 : i32
    %c0_i32_2 = arith.constant 0 : i32
    return %c0_i32, %c0_i32_0, %c0_i32_1 : i32, i32, i32
  }
  func.func @transform_62(%arg0: i32) -> (i32, i32) {
    %c0_i32 = arith.constant 0 : i32
    %c0_i32_0 = arith.constant 0 : i32
    %c0_i32_1 = arith.constant 0 : i32
    return %c0_i32, %c0_i32_0 : i32, i32
  }
  func.func @transform_63(%arg0: i32) -> (i32, i32) {
    %c0_i32 = arith.constant 0 : i32
    %c0_i32_0 = arith.constant 0 : i32
    %c0_i32_1 = arith.constant 0 : i32
    return %c0_i32, %c0_i32_0 : i32, i32
  }
  func.func @transform_64(%arg0: i32) -> (i32, i32) {
    %c0_i32 = arith.constant 0 : i32
    %c0_i32_0 = arith.constant 0 : i32
    %c0_i32_1 = arith.constant 0 : i32
    return %c0_i32, %c0_i32_0 : i32, i32
  }
  func.func @transform_65(%arg0: i32) -> (i32, i32, i32) {
    %c0_i32 = arith.constant 0 : i32
    %c0_i32_0 = arith.constant 0 : i32
    %c0_i32_1 = arith.constant 0 : i32
    %c0_i32_2 = arith.constant 0 : i32
    return %c0_i32, %c0_i32_0, %c0_i32_1 : i32, i32, i32
  }
  func.func @transform_66(%arg0: i32) -> (i32, i32) {
    %c0_i32 = arith.constant 0 : i32
    %c0_i32_0 = arith.constant 0 : i32
    %c0_i32_1 = arith.constant 0 : i32
    return %c0_i32, %c0_i32_0 : i32, i32
  }
  func.func @transform_67(%arg0: i32) -> (i32, i32, i32) {
    %c0_i32 = arith.constant 0 : i32
    %c0_i32_0 = arith.constant 0 : i32
    %c0_i32_1 = arith.constant 0 : i32
    %c0_i32_2 = arith.constant 0 : i32
    return %c0_i32, %c0_i32_0, %c0_i32_1 : i32, i32, i32
  }
  func.func @transform_68(%arg0: i32) -> (i32, i32) {
    %c0_i32 = arith.constant 0 : i32
    %c0_i32_0 = arith.constant 0 : i32
    %c0_i32_1 = arith.constant 0 : i32
    return %c0_i32, %c0_i32_0 : i32, i32
  }
  func.func @transform_69(%arg0: i32) -> (i32, i32, i32) {
    %c0_i32 = arith.constant 0 : i32
    %c0_i32_0 = arith.constant 0 : i32
    %c0_i32_1 = arith.constant 0 : i32
    %c0_i32_2 = arith.constant 0 : i32
    return %c0_i32, %c0_i32_0, %c0_i32_1 : i32, i32, i32
  }
  func.func @transform_70(%arg0: i32) -> (i32, i32) {
    %c0_i32 = arith.constant 0 : i32
    %c0_i32_0 = arith.constant 0 : i32
    %c0_i32_1 = arith.constant 0 : i32
    return %c0_i32, %c0_i32_0 : i32, i32
  }
  func.func @transform_71(%arg0: i32) -> (i32, i32, i32) {
    %c0_i32 = arith.constant 0 : i32
    %c0_i32_0 = arith.constant 0 : i32
    %c0_i32_1 = arith.constant 0 : i32
    %c0_i32_2 = arith.constant 0 : i32
    return %c0_i32, %c0_i32_0, %c0_i32_1 : i32, i32, i32
  }
  func.func @transform_72(%arg0: i32) -> (i32, i32) {
    %c0_i32 = arith.constant 0 : i32
    %c0_i32_0 = arith.constant 0 : i32
    %c0_i32_1 = arith.constant 0 : i32
    return %c0_i32, %c0_i32_0 : i32, i32
  }
  func.func @transform_73(%arg0: i32) -> (i32, i32, i32) {
    %c0_i32 = arith.constant 0 : i32
    %c0_i32_0 = arith.constant 0 : i32
    %c0_i32_1 = arith.constant 0 : i32
    return %arg0, %c0_i32, %c0_i32_0 : i32, i32, i32
  }
}

</mosaic_0001>

<bundles_post_ra>
// kernel: resunet1d_forward.1
= control target key start
LH: loop header
LB: loop body
LE: loop exit
PB: predicated region body
PF: predicated region fallthrough
CT: control target
= control target key end

     0   :  { %s22415_s6 = smov 1   ;;  %s22416_s10 = smov 2   ;;  %s25237_s0 = inlined_call_operand.smem [shape: u32[74], index: -1, kind: input, shape index: {}] }
   0x1   :  { %s22561_s5 = sld [smem:[%s25237_s0]]   ;;  %s22417_s14 = smov 3  }
   0x2   :  { %s22566_s9 = sld [smem:[%s25237_s0 + %s22415_s6]]   ;;  %s22418_s18 = smov 4  }
   0x3   :  { %s22571_s13 = sld [smem:[%s25237_s0 + %s22416_s10]]   ;;  %s22419_s22 = smov 5  }
   0x4   :  { %s22576_s17 = sld [smem:[%s25237_s0 + %s22417_s14]]   ;;  %s22420_s26 = smov 6  }
   0x5   :  { %s22581_s21 = sld [smem:[%s25237_s0 + %s22418_s18]]   ;;  %s22421_s30 = smov 7  }
   0x6   :  { %s22586_s25 = sld [smem:[%s25237_s0 + %s22419_s22]]   ;;  %s22422_s4 = smov 8  }
   0x7   :  { %25274 = sst [smem:[#allocation122_spill]] %s22561_s5  ;;  %s22423_s10 = smov 9  }
   0x8   :  { %25275 = sst [smem:[#allocation123_spill]] %s22566_s9  ;;  %s22424_s15 = smov 10  }
   0x9   :  { %s22591_s29 = sld [smem:[%s25237_s0 + %s22420_s26]]   ;;  %s22425_s20 = smov 11  }
   0xa   :  { %25276 = sst [smem:[#allocation124_spill]] %s22576_s17  ;;  %s22426_s26 = smov 12  }
   0xb   :  { %25277 = sst [smem:[#allocation125_spill]] %s22581_s21  ;;  %s22427_s1 = smov 13  }
   0xc   :  { %25278 = sst [smem:[#allocation126_spill]] %s22586_s25  ;;  %s22428_s7 = smov 14  }
   0xd   :  { %s22596_s3 = sld [smem:[%s25237_s0 + %s22421_s30]]   ;;  %s22430_s22 = smov 16  }
   0xe   :  { %s22601_s8 = sld [smem:[%s25237_s0 + %s22422_s4]]   ;;  %s22431_s28 = smov 17  }
   0xf   :  { %s22606_s14 = sld [smem:[%s25237_s0 + %s22423_s10]]   ;;  %s22480_s10 = smov 66  }
  0x10   :  { %s22611_s19 = sld [smem:[%s25237_s0 + %s22424_s15]]   ;;  %s22429_s15 = smov 15  }
  0x11   :  { %s22616_s24 = sld [smem:[%s25237_s0 + %s22425_s20]]   ;;  %s22481_s16 = smov 67  }
  0x12   :  { %s22621_s30 = sld [smem:[%s25237_s0 + %s22426_s26]]   ;;  %s22482_s23 = smov 68  }
  0x13   :  { %25279 = sst [smem:[#allocation127_spill]] %s22596_s3 }
  0x14   :  { %25280 = sst [smem:[#allocation128_spill]] %s22601_s8 }
  0x15   :  { %25281 = sst [smem:[#allocation129_spill]] %s22606_s14 }
  0x16   :  { %s22626_s6 = sld [smem:[%s25237_s0 + %s22427_s1]]   ;;  %s22479_s1 = smov 65  }
  0x17   :  { %25282 = sst [smem:[#allocation130_spill]] %s22616_s24 }
  0x18   :  { %s22631_s12 = sld [smem:[%s25237_s0 + %s22428_s7]]   ;;  %s22432_s7 = smov 18  }
  0x19   :  { %s22636_s20 = sld [smem:[%s25237_s0 + %s22429_s15]]   ;;  %s22433_s15 = smov 19  }
  0x1a   :  { %s22641_s27 = sld [smem:[%s25237_s0 + %s22430_s22]]   ;;  %s22434_s22 = smov 20  }
  0x1b   :  { %s22646_s4 = sld [smem:[%s25237_s0 + %s22431_s28]]   ;;  %s22435_s28 = smov 21  }
  0x1c   :  { %25283 = sst [smem:[#allocation131_spill]] %s22626_s6 }
  0x1d   :  { %s22651_s25 = sld [smem:[%s25237_s0 + %s22432_s7]]   ;;  %s22436_s7 = smov 22  }
  0x1e   :  { %s22656_s21 = sld [smem:[%s25237_s0 + %s22433_s15]]   ;;  %s22437_s15 = smov 23  }
  0x1f   :  { %25284 = sst [smem:[#allocation132_spill]] %s22636_s20 }
  0x20   :  { %s22661_s5 = sld [smem:[%s25237_s0 + %s22434_s22]]   ;;  %s22438_s22 = smov 24  }
  0x21   :  { %25285 = sst [smem:[#allocation133_spill]] %s22646_s4 }
  0x22   :  { %s22666_s4 = sld [smem:[%s25237_s0 + %s22435_s28]]   ;;  %s22439_s28 = smov 25  }
  0x23   :  { %s22671_s20 = sld [smem:[%s25237_s0 + %s22436_s7]]   ;;  %s22440_s7 = smov 26  }
  0x24   :  { %25286 = sst [smem:[#allocation134_spill]] %s22656_s21 }
  0x25   :  { %s22676_s21 = sld [smem:[%s25237_s0 + %s22437_s15]]   ;;  %s22441_s15 = smov 27  }
  0x26   :  { %25287 = sst [smem:[#allocation135_spill]] %s22661_s5 }
  0x27   :  { %s22681_s6 = sld [smem:[%s25237_s0 + %s22438_s22]]   ;;  %s22442_s22 = smov 28  }
  0x28   :  { %25288 = sst [smem:[#allocation136_spill]] %s22666_s4 }
  0x29   :  { %s22686_s4 = sld [smem:[%s25237_s0 + %s22439_s28]]   ;;  %s22443_s28 = smov 29  }
  0x2a   :  { %s22691_s24 = sld [smem:[%s25237_s0 + %s22440_s7]]   ;;  %s22444_s7 = smov 30  }
  0x2b   :  { %25289 = sst [smem:[#allocation137_spill]] %s22676_s21 }
  0x2c   :  { %s22696_s21 = sld [smem:[%s25237_s0 + %s22441_s15]]   ;;  %s22445_s15 = smov 31  }
  0x2d   :  { %25290 = sst [smem:[#allocation138_spill]] %s22681_s6 }
  0x2e   :  { %s22701_s14 = sld [smem:[%s25237_s0 + %s22442_s22]]   ;;  %s22446_s22 = smov 32  }
  0x2f   :  { %25291 = sst [smem:[#allocation139_spill]] %s22686_s4 }
  0x30   :  { %s22706_s4 = sld [smem:[%s25237_s0 + %s22443_s28]]   ;;  %s22447_s28 = smov 33  }
  0x31   :  { %s22711_s3 = sld [smem:[%s25237_s0 + %s22444_s7]]   ;;  %s22448_s7 = smov 34  }
  0x32   :  { %25292 = sst [smem:[#allocation140_spill]] %s22696_s21 }
  0x33   :  { %s22716_s21 = sld [smem:[%s25237_s0 + %s22445_s15]]   ;;  %s22449_s15 = smov 35  }
  0x34   :  { %s22721_s17 = sld [smem:[%s25237_s0 + %s22446_s22]]   ;;  %s22450_s22 = smov 36  }
  0x35   :  { %s22731_s9 = sld [smem:[%s25237_s0 + %s22448_s7]]   ;;  %s22452_s7 = smov 38  }
  0x36   :  { %25293 = sst [smem:[#allocation141_spill]] %s22706_s4 }
  0x37   :  { %25294 = sst [smem:[#allocation142_spill]] %s22711_s3 }
  0x38   :  { %s22726_s4 = sld [smem:[%s25237_s0 + %s22447_s28]]   ;;  %s22451_s28 = smov 37  }
  0x39   :  { %25295 = sst [smem:[#allocation143_spill]] %s22716_s21 }
  0x3a   :  { %25296 = sst [smem:[#allocation144_spill]] %s22721_s17 }
  0x3b   :  { %25298 = sst [smem:[#allocation146_spill]] %s22731_s9 }
  0x3c   :  { %s22736_s21 = sld [smem:[%s25237_s0 + %s22449_s15]]   ;;  %s22453_s15 = smov 39  }
  0x3d   :  { %s22741_s17 = sld [smem:[%s25237_s0 + %s22450_s22]]   ;;  %s22454_s22 = smov 40  }
  0x3e   :  { %25297 = sst [smem:[#allocation145_spill]] %s22726_s4 }
  0x3f   :  { %s22746_s4 = sld [smem:[%s25237_s0 + %s22451_s28]]   ;;  %s22455_s28 = smov 41  }
  0x40   :  { %s22751_s9 = sld [smem:[%s25237_s0 + %s22452_s7]]   ;;  %s22456_s7 = smov 42  }
  0x41   :  { %s22899_s3 = sld [smem:[%s25237_s0 + %s22482_s23]]   ;;  %s22486_s23 = smov 72  }
  0x42   :  { %25299 = sst [smem:[#allocation147_spill]] %s22736_s21 }
  0x43   :  { %25300 = sst [smem:[#allocation148_spill]] %s22741_s17 }
  0x44   :  { %s22756_s21 = sld [smem:[%s25237_s0 + %s22453_s15]]   ;;  %s22457_s15 = smov 43  }
  0x45   :  { %25301 = sst [smem:[#allocation149_spill]] %s22746_s4 }
  0x46   :  { %25302 = sst [smem:[#allocation150_spill]] %s22751_s9 }
  0x47   :  { %s22761_s17 = sld [smem:[%s25237_s0 + %s22454_s22]]   ;;  %s22458_s22 = smov 44  }
  0x48   :  { %s22766_s4 = sld [smem:[%s25237_s0 + %s22455_s28]]   ;;  %s22459_s28 = smov 45  }
  0x49   :  { %s22771_s9 = sld [smem:[%s25237_s0 + %s22456_s7]]   ;;  %s22460_s7 = smov 46  }
  0x4a   :  { %25303 = sst [smem:[#allocation151_spill]] %s22756_s21 }
  0x4b   :  { %s22776_s21 = sld [smem:[%s25237_s0 + %s22457_s15]]   ;;  %s22461_s15 = smov 47  }
  0x4c   :  { %25331 = sst [smem:[#allocation179_spill]] %s22899_s3 }
  0x4d   :  { %25304 = sst [smem:[#allocation152_spill]] %s22761_s17 }
  0x4e   :  { %25305 = sst [smem:[#allocation153_spill]] %s22766_s4 }
  0x4f   :  { %25306 = sst [smem:[#allocation154_spill]] %s22771_s9 }
  0x50   :  { %s22781_s17 = sld [smem:[%s25237_s0 + %s22458_s22]]   ;;  %s22462_s22 = smov 48  }
  0x51   :  { %25307 = sst [smem:[#allocation155_spill]] %s22776_s21 }
  0x52   :  { %s22786_s4 = sld [smem:[%s25237_s0 + %s22459_s28]]   ;;  %s22463_s28 = smov 49  }
  0x53   :  { %s22791_s9 = sld [smem:[%s25237_s0 + %s22460_s7]]   ;;  %s22464_s7 = smov 50  }
  0x54   :  { %s22796_s21 = sld [smem:[%s25237_s0 + %s22461_s15]]   ;;  %s22465_s15 = smov 51  }
  0x56   :  { %25308 = sst [smem:[#allocation156_spill]] %s22781_s17 }
  0x57   :  { %s22801_s17 = sld [smem:[%s25237_s0 + %s22462_s22]]   ;;  %s22466_s22 = smov 52  }
  0x58   :  { %25309 = sst [smem:[#allocation157_spill]] %s22786_s4 }
  0x59   :  { %25310 = sst [smem:[#allocation158_spill]] %s22791_s9 }
  0x5a   :  { %25311 = sst [smem:[#allocation159_spill]] %s22796_s21 }
  0x5b   :  { %s22806_s4 = sld [smem:[%s25237_s0 + %s22463_s28]]   ;;  %s22467_s28 = smov 53  }
  0x5c   :  { %s22811_s9 = sld [smem:[%s25237_s0 + %s22464_s7]]   ;;  %s22468_s7 = smov 54  }
  0x5d   :  { %25312 = sst [smem:[#allocation160_spill]] %s22801_s17 }
  0x5e   :  { %s22816_s21 = sld [smem:[%s25237_s0 + %s22465_s15]]   ;;  %s22469_s15 = smov 55  }
  0x5f   :  { %s22821_s17 = sld [smem:[%s25237_s0 + %s22466_s22]]   ;;  %s22470_s22 = smov 56  }
  0x61   :  { %25313 = sst [smem:[#allocation161_spill]] %s22806_s4 }
  0x62   :  { %25314 = sst [smem:[#allocation162_spill]] %s22811_s9 }
  0x63   :  { %s22826_s4 = sld [smem:[%s25237_s0 + %s22467_s28]]   ;;  %s22471_s28 = smov 57  }
  0x64   :  { %25315 = sst [smem:[#allocation163_spill]] %s22816_s21 }
  0x65   :  { %25316 = sst [smem:[#allocation164_spill]] %s22821_s17 }
  0x66   :  { %s22831_s9 = sld [smem:[%s25237_s0 + %s22468_s7]]   ;;  %s22472_s7 = smov 58  }
  0x67   :  { %s22836_s21 = sld [smem:[%s25237_s0 + %s22469_s15]]   ;;  %s22473_s15 = smov 59  }
  0x68   :  { %s22841_s17 = sld [smem:[%s25237_s0 + %s22470_s22]]   ;;  %s22474_s22 = smov 60  }
  0x69   :  { %25317 = sst [smem:[#allocation165_spill]] %s22826_s4 }
  0x6a   :  { %s22846_s4 = sld [smem:[%s25237_s0 + %s22471_s28]]   ;;  %s22475_s28 = smov 61  }
  0x6c   :  { %25318 = sst [smem:[#allocation166_spill]] %s22831_s9 }
  0x6d   :  { %25319 = sst [smem:[#allocation167_spill]] %s22836_s21 }
  0x6e   :  { %25320 = sst [smem:[#allocation168_spill]] %s22841_s17 }
  0x6f   :  { %s22851_s9 = sld [smem:[%s25237_s0 + %s22472_s7]]   ;;  %s22476_s7 = smov 62  }
  0x70   :  { %25321 = sst [smem:[#allocation169_spill]] %s22846_s4 }
  0x71   :  { %s22856_s21 = sld [smem:[%s25237_s0 + %s22473_s15]]   ;;  %s22477_s15 = smov 63  }
  0x72   :  { %s22861_s17 = sld [smem:[%s25237_s0 + %s22474_s22]]   ;;  %s22478_s22 = smov 64  }
  0x73   :  { %s22866_s4 = sld [smem:[%s25237_s0 + %s22475_s28]]   ;;  %s22487_s28 = smov 73  }
  0x75   :  { %25322 = sst [smem:[#allocation170_spill]] %s22851_s9 }
  0x76   :  { %s22871_s9 = sld [smem:[%s25237_s0 + %s22476_s7]]  }
  0x77   :  { %25323 = sst [smem:[#allocation171_spill]] %s22856_s21 }
  0x78   :  { %25324 = sst [smem:[#allocation172_spill]] %s22861_s17 }
  0x79   :  { %25325 = sst [smem:[#allocation173_spill]] %s22866_s4 }
  0x7a   :  { %s22876_s21 = sld [smem:[%s25237_s0 + %s22477_s15]]  }
  0x7b   :  { %s16655_s17 = sld [smem:[%s25237_s0 + %s22478_s22]]  }
  0x7c   :  { %25326 = sst [smem:[#allocation174_spill]] %s22871_s9 }
  0x7d   :  { %s22884_s4 = sld [smem:[%s25237_s0 + %s22479_s1]]   ;;  %s22483_s1 = smov 69  }
  0x7e   :  { %s22889_s9 = sld [smem:[%s25237_s0 + %s22480_s10]]   ;;  %s22484_s10 = smov 70  }
  0x80   :  { %25327 = sst [smem:[#allocation175_spill]] %s22876_s21 }
  0x81   :  { %s22894_s21 = sld [smem:[%s25237_s0 + %s22481_s16]]   ;;  %v152_v0 = vstv %s16655_s17  ;;  %s22485_s16 = smov 71  }
  0x82   :  { %s22914_s22 = sld [smem:[%s25237_s0 + %s22485_s16]]   ;;  %153 = vst [vmem:[#allocation2] sm:$0x1] %v152_v0 }
  0x83   :  { %25328 = sst [smem:[#allocation176_spill]] %s22884_s4 }
  0x84   :  { %25329 = sst [smem:[#allocation177_spill]] %s22889_s9 }
  0x85   :  { %s22904_s4 = sld [smem:[%s25237_s0 + %s22483_s1]]  }
  0x86   :  { %s22909_s9 = sld [smem:[%s25237_s0 + %s22484_s10]]  }
  0x87   :  { %25330 = sst [smem:[#allocation178_spill]] %s22894_s21 }
  0x88   :  { %s22919_s1 = sld [smem:[%s25237_s0 + %s22486_s23]]  }
  0x89   :  { %s22924_s10 = sld [smem:[%s25237_s0 + %s22487_s28]]  }
  0x8a   :  { %154 = vsyncpa [#allocation4], 0 }
  0x8b   :  { %155 = vsyncpa [#allocation6], 0 }
  0x8c   :  { %156 = vsyncpa [#allocation9], 0 }
  0x8d   :  { %157 = vsyncpa [#allocation12], 0 }
  0x8e   :  { %158 = vsyncpa [#allocation15], 0 }
  0x8f   :  { %159 = vsyncpa [#allocation18], 0 }
  0x90   :  { %160 = vsyncpa [#allocation21], 0 }
  0x91   :  { %161 = vsyncpa [#allocation24], 0 }
  0x92   :  { %162 = vsyncpa [#allocation27], 0 }
  0x93   :  { %163 = vsyncpa [#allocation30], 0 }
  0x94   :  { %164 = vsyncpa [#allocation33], 0 }
  0x95   :  { %165 = vsyncpa [#allocation36], 0 }
  0x96   :  { %166 = vsyncpa [#allocation39], 0 }
  0x97   :  { %167 = vsyncpa [#allocation42], 0 }
  0x98   :  { %168 = vsyncpa [#allocation45], 0 }
  0x99   :  { %169 = vsyncpa [#allocation48], 0 }
  0x9a   :  { %170 = vsyncpa [#allocation51], 0 }
  0x9b   :  { %171 = vsyncpa [#allocation54], 0 }
  0x9c   :  { %172 = vsyncpa [#allocation57], 0 }
  0x9d   :  { %173 = vsyncpa [#allocation60], 0 }
  0x9e   :  { %174 = vsyncpa [#allocation63], 0 }
  0x9f   :  { %175 = vsyncpa [#allocation66], 0 }
  0xa0   :  { %176 = vsyncpa [#allocation69], 0 }
  0xa1   :  { %177 = vsyncpa [#allocation72], 0 }
  0xa2   :  { %178 = vsyncpa [#allocation75], 0 }
  0xa3   :  { %179 = vsyncpa [#allocation78], 0 }
  0xa4   :  { %180 = vsyncpa [#allocation81], 0 }
  0xa5   :  { %181 = vsyncpa [#allocation84], 0 }
  0xa6   :  { %182 = vsyncpa [#allocation87], 0 }
  0xa7   :  { %183 = vsyncpa [#allocation90], 0  ;;  %s22926_s0 = smov 0  }
  0xa8 LB: > { %s22932_s17 = sadd.s32 4294967295, %s22413_s0   ;;  %p16667_p0 = scmp.ge.s32.totalorder %s22413_s0, 1  ;;  %s22413_s0 = sphi %s22926_s0, %s189_s0  }
  0xa9   : > { %p1758_p1 = scmp.lt.s32.totalorder %s22413_s0, 3 }
  0xab   : > { %p22936_p2 = pnand %p16667_p0, %p1758_p1 }
  0xac   : > { %p20607_p3 = scmp.eq.s32.totalorder (!%p22936_p2), %s22932_s17, 0  ;;  %s22488_s3 = smov (!%p22936_p2), [#allocation5]  }
  0xad   : > { %1762 = sbr.rel (%p22936_p2) target bundleno = 846 (0x34e), region = 12  ;;  %s1782_s7 = sshll.u32 (!%p22936_p2), %s22488_s3, 4  ;;  %s1783_s7 = int_to_ptr.vmem [resolvable:$true] %s1782_s7 }
  0xae   : > { %s22489_s11 = smov (!%p22936_p2), [#allocation8]   ;;  %s20881_s15 = scalar_lea.vmem (!%p22936_p2), %s1783_s7, 16 }
  0xaf   : > { %s1809_s16 = sshll.u32 (!%p22936_p2), %s22489_s11, 4  ;;  %p20882_p4 = scmp.ne.s32.totalorder (!%p22936_p2), %s1783_s7, %s20881_s15  ;;  %s1810_s16 = int_to_ptr.vmem [resolvable:$true] %s1809_s16 }
  0xb0   : > { %s20887_s18 = scalar_lea.vmem (!%p22936_p2), %s1783_s7, 32  ;;  %p20888_p7 = scmp.lt.s32.totalorder (!%p22936_p2), %s1783_s7, %s1783_s7 }
  0xb1   : > { %p20883_p5 = pnand (!%p22936_p2), %p20882_p4, %p20607_p3  ;;  %p20889_p8 = scmp.lt.s32.totalorder (!%p22936_p2), %s20887_s18, %s20881_s15 }
  0xb3   : > { %p20884_p6 = pneg %p20883_p5  ;;  %p20890_p9 = por %p20889_p8, %p20888_p7 }
  0xb5   : > { %p20891_p10 = pnand %p20890_p9, %p20884_p6 }
  0xb7   : > { %20894 = shalt.err (!%p20891_p10)
}
  0xb8   : > { %20374 = dma.hbm_to_vmem [thread:$0]  (%p20607_p3), %s22571_s13, 16, %s1783_s7, [#allocation6]  }
  0xb9   : > { %s20905_s23 = scalar_lea.vmem %s1810_s16, 1024  ;;  %p20912_p0 = scmp.lt.s32.totalorder %s1810_s16, %s1810_s16 }
  0xba   : > { %p20906_p11 = scmp.ne.s32.totalorder %s1810_s16, %s20905_s23  ;;  %p20913_p1 = scmp.lt.s32.totalorder %s20905_s23, %s20905_s23 }
  0xbc   : > { %p20907_p12 = pnand %p20906_p11, %p20607_p3  ;;  %p20914_p4 = por %p20913_p1, %p20912_p0 }
  0xbe   : > { %p20908_p13 = pneg %p20907_p12 }
  0xc0   : > { %p20915_p5 = pnand %p20914_p4, %p20908_p13 }
  0xc2   : > { %20918 = shalt.err (!%p20915_p5)
}
  0xc3   : > { %s25244_s26 = smov 128   ;;  %s25246_s28 = smov 8  }
  0xc4   : > { %20378 = dma.hbm_to_vmem [thread:$0]  (%p20607_p3), %s22591_s29, 1024, %s1810_s16, [#allocation9], %s25244_s26, %s25244_s26, %s25246_s28  }
  0xc5   : > { %s22492_s2 = smov [#allocation11]   ;;  %s22493_s7 = smov [#allocation14]  }
  0xc6   : > { %s1834_s3 = sshll.u32 %s22492_s2, 4  ;;  %s1855_s11 = sshll.u32 %s22493_s7, 4  ;;  %s1835_s3 = int_to_ptr.vmem [resolvable:$true] %s1834_s3  ;;  %s1856_s11 = int_to_ptr.vmem [resolvable:$true] %s1855_s11 }
  0xc7   : > { %s20929_s15 = scalar_lea.vmem %s1835_s3, 16  ;;  %s20935_s18 = scalar_lea.vmem %s1835_s3, 32 }
  0xc8   : > { %p20930_p6 = scmp.ne.s32.totalorder %s1835_s3, %s20929_s15  ;;  %p20936_p9 = scmp.lt.s32.totalorder %s1835_s3, %s1835_s3 }
  0xc9   : > { %p20937_p10 = scmp.lt.s32.totalorder %s20935_s18, %s20929_s15 }
  0xca   : > { %p20931_p7 = pnand %p20930_p6, %p20607_p3 }
  0xcb   : > { %p20938_p11 = por %p20937_p10, %p20936_p9 }
  0xcc   : > { %p20932_p8 = pneg %p20931_p7 }
  0xce   : > { %p20939_p12 = pnand %p20938_p11, %p20932_p8 }
  0xd0   : > { %20942 = shalt.err (!%p20939_p12)
}
  0xd1   : > { %s25333_s8 = sld [smem:[#allocation128_spill]]  ;;  %s20953_s16 = scalar_lea.vmem %s1856_s11, 384 }
  0xd2   : > { %p20954_p13 = scmp.ne.s32.totalorder %s1856_s11, %s20953_s16  ;;  %p20960_p4 = scmp.lt.s32.totalorder %s1856_s11, %s1856_s11 }
  0xd3   : > { %p20961_p5 = scmp.lt.s32.totalorder %s20953_s16, %s20953_s16 }
  0xd4   : > { %p20955_p0 = pnand %p20954_p13, %p20607_p3 }
  0xd5   : > { %p20962_p6 = por %p20961_p5, %p20960_p4 }
  0xd6   : > { %p20956_p1 = pneg %p20955_p0 }
  0xd7   : > { %20382 = dma.hbm_to_vmem [thread:$0]  (%p20607_p3), %s25333_s8, 16, %s1835_s3, [#allocation12]  }
  0xd8   : > { %p20963_p7 = pnand %p20962_p6, %p20956_p1 }
  0xda   : > { %20966 = shalt.err (!%p20963_p7)
}
  0xdb   : > { %20386 = dma.hbm_to_vmem [thread:$0]  (%p20607_p3), %s22611_s19, 384, %s1856_s11, [#allocation15], %s25244_s26, %s25244_s26, %s25246_s28  }
  0xdc   : > { %s22494_s23 = smov [#allocation17]   ;;  %s22495_s3 = smov [#allocation20]  }
  0xdd   : > { %s1881_s2 = sshll.u32 %s22494_s23, 4  ;;  %s1906_s7 = sshll.u32 %s22495_s3, 4  ;;  %s1882_s2 = int_to_ptr.vmem [resolvable:$true] %s1881_s2  ;;  %s1907_s7 = int_to_ptr.vmem [resolvable:$true] %s1906_s7 }
  0xde   : > { %s20977_s15 = scalar_lea.vmem %s1882_s2, 384  ;;  %p20984_p11 = scmp.lt.s32.totalorder %s1882_s2, %s1882_s2 }
  0xdf   : > { %p20978_p8 = scmp.ne.s32.totalorder %s1882_s2, %s20977_s15  ;;  %p20985_p12 = scmp.lt.s32.totalorder %s20977_s15, %s20977_s15 }
  0xe1   : > { %p20979_p9 = pnand %p20978_p8, %p20607_p3  ;;  %p20986_p13 = por %p20985_p12, %p20984_p11 }
  0xe3   : > { %p20980_p10 = pneg %p20979_p9 }
  0xe5   : > { %p20987_p0 = pnand %p20986_p13, %p20980_p10 }
  0xe7   : > { %20990 = shalt.err (!%p20987_p0)
}
  0xe8   : > { %20390 = dma.hbm_to_vmem [thread:$0]  (%p20607_p3), %s22621_s30, 384, %s1882_s2, [#allocation18], %s25244_s26, %s25244_s26, %s25246_s28  }
  0xe9   : > { %s21001_s11 = scalar_lea.vmem %s1907_s7, 128  ;;  %p21008_p6 = scmp.lt.s32.totalorder %s1907_s7, %s1907_s7 }
  0xea   : > { %p21002_p1 = scmp.ne.s32.totalorder %s1907_s7, %s21001_s11  ;;  %p21009_p7 = scmp.lt.s32.totalorder %s21001_s11, %s21001_s11 }
  0xec   : > { %p21003_p4 = pnand %p21002_p1, %p20607_p3  ;;  %p21010_p8 = por %p21009_p7, %p21008_p6 }
  0xee   : > { %p21004_p5 = pneg %p21003_p4 }
  0xf0   : > { %p21011_p9 = pnand %p21010_p8, %p21004_p5 }
  0xf2   : > { %21014 = shalt.err (!%p21011_p9)
}
  0xf3   : > { %20394 = dma.hbm_to_vmem [thread:$0]  (%p20607_p3), %s22631_s12, 128, %s1907_s7, [#allocation21]  }
  0xf4   : > { %s22496_s18 = smov [#allocation23]   ;;  %s22497_s23 = smov [#allocation26]  }
  0xf5   : > { %s1928_s16 = sshll.u32 %s22496_s18, 4  ;;  %s1949_s2 = sshll.u32 %s22497_s23, 4  ;;  %s1929_s16 = int_to_ptr.vmem [resolvable:$true] %s1928_s16  ;;  %s1950_s2 = int_to_ptr.vmem [resolvable:$true] %s1949_s2 }
  0xf6   : > { %s21025_s3 = scalar_lea.vmem %s1929_s16, 16  ;;  %s21031_s15 = scalar_lea.vmem %s1929_s16, 32 }
  0xf7   : > { %p21026_p10 = scmp.ne.s32.totalorder %s1929_s16, %s21025_s3  ;;  %p21032_p13 = scmp.lt.s32.totalorder %s1929_s16, %s1929_s16 }
  0xf8   : > { %p21033_p0 = scmp.lt.s32.totalorder %s21031_s15, %s21025_s3 }
  0xf9   : > { %p21027_p11 = pnand %p21026_p10, %p20607_p3 }
  0xfa   : > { %p21034_p1 = por %p21033_p0, %p21032_p13 }
  0xfb   : > { %p21028_p12 = pneg %p21027_p11 }
  0xfd   : > { %p21035_p4 = pnand %p21034_p1, %p21028_p12 }
  0xff   : > { %21038 = shalt.err (!%p21035_p4)
}
 0x100   : > { %20398 = dma.hbm_to_vmem [thread:$0]  (%p20607_p3), %s22641_s27, 16, %s1929_s16, [#allocation24]  }
 0x101   : > { %s21049_s7 = scalar_lea.vmem %s1950_s2, 768  ;;  %p21056_p8 = scmp.lt.s32.totalorder %s1950_s2, %s1950_s2 }
 0x102   : > { %p21050_p5 = scmp.ne.s32.totalorder %s1950_s2, %s21049_s7  ;;  %p21057_p9 = scmp.lt.s32.totalorder %s21049_s7, %s21049_s7 }
 0x104   : > { %p21051_p6 = pnand %p21050_p5, %p20607_p3  ;;  %p21058_p10 = por %p21057_p9, %p21056_p8 }
 0x106   : > { %p21052_p7 = pneg %p21051_p6 }
 0x108   : > { %p21059_p11 = pnand %p21058_p10, %p21052_p7 }
 0x10a   : > { %21062 = shalt.err (!%p21059_p11)
}
 0x10b   : > { %20402 = dma.hbm_to_vmem [thread:$0]  (%p20607_p3), %s22651_s25, 768, %s1950_s2, [#allocation27], %s25244_s26, %s25244_s26, %s25246_s28  }
 0x10c   : > { %s22498_s11 = smov [#allocation29]   ;;  %s22499_s16 = smov [#allocation32]  }
 0x10d   : > { %s1975_s18 = sshll.u32 %s22498_s11, 4  ;;  %s2001_s23 = sshll.u32 %s22499_s16, 4  ;;  %s1976_s18 = int_to_ptr.vmem [resolvable:$true] %s1975_s18  ;;  %s2002_s23 = int_to_ptr.vmem [resolvable:$true] %s2001_s23 }
 0x10e   : > { %s21073_s3 = scalar_lea.vmem %s1976_s18, 768  ;;  %p21080_p1 = scmp.lt.s32.totalorder %s1976_s18, %s1976_s18 }
 0x10f   : > { %p21074_p12 = scmp.ne.s32.totalorder %s1976_s18, %s21073_s3  ;;  %p21081_p4 = scmp.lt.s32.totalorder %s21073_s3, %s21073_s3 }
 0x111   : > { %p21075_p13 = pnand %p21074_p12, %p20607_p3  ;;  %p21082_p5 = por %p21081_p4, %p21080_p1 }
 0x113   : > { %p21076_p0 = pneg %p21075_p13 }
 0x115   : > { %p21083_p6 = pnand %p21082_p5, %p21076_p0 }
 0x117   : > { %21086 = shalt.err (!%p21083_p6)
}
 0x118   : > { %s25334_s5 = sld [smem:[#allocation135_spill]]  ;;  %s21097_s2 = scalar_lea.vmem %s2002_s23, 256 }
 0x119   : > { %p21098_p7 = scmp.ne.s32.totalorder %s2002_s23, %s21097_s2  ;;  %p21104_p10 = scmp.lt.s32.totalorder %s2002_s23, %s2002_s23 }
 0x11a   : > { %p21105_p11 = scmp.lt.s32.totalorder %s21097_s2, %s21097_s2 }
 0x11b   : > { %p21099_p8 = pnand %p21098_p7, %p20607_p3 }
 0x11c   : > { %p21106_p12 = por %p21105_p11, %p21104_p10 }
 0x11d   : > { %p21100_p9 = pneg %p21099_p8 }
 0x11e   : > { %20406 = dma.hbm_to_vmem [thread:$0]  (%p20607_p3), %s25334_s5, 768, %s1976_s18, [#allocation30], %s25244_s26, %s25244_s26, %s25246_s28  }
 0x11f   : > { %p21107_p13 = pnand %p21106_p12, %p21100_p9 }
 0x121   : > { %21110 = shalt.err (!%p21107_p13)
}
 0x122   : > { %20410 = dma.hbm_to_vmem [thread:$0]  (%p20607_p3), %s22671_s20, 256, %s2002_s23, [#allocation33], %s25244_s26, %s25244_s26, %s25246_s28  }
 0x123   : > { %s22500_s15 = smov [#allocation35]   ;;  %s22501_s11 = smov [#allocation38]  }
 0x124   : > { %s2026_s7 = sshll.u32 %s22500_s15, 4  ;;  %s2047_s18 = sshll.u32 %s22501_s11, 4  ;;  %s2027_s7 = int_to_ptr.vmem [resolvable:$true] %s2026_s7  ;;  %s2048_s18 = int_to_ptr.vmem [resolvable:$true] %s2047_s18 }
 0x125   : > { %s21121_s16 = scalar_lea.vmem %s2027_s7, 16  ;;  %s21127_s3 = scalar_lea.vmem %s2027_s7, 32 }
 0x126   : > { %p21122_p0 = scmp.ne.s32.totalorder %s2027_s7, %s21121_s16  ;;  %p21128_p5 = scmp.lt.s32.totalorder %s2027_s7, %s2027_s7 }
 0x127   : > { %p21129_p6 = scmp.lt.s32.totalorder %s21127_s3, %s21121_s16 }
 0x128   : > { %p21123_p1 = pnand %p21122_p0, %p20607_p3 }
 0x129   : > { %p21130_p7 = por %p21129_p6, %p21128_p5 }
 0x12a   : > { %p21124_p4 = pneg %p21123_p1 }
 0x12c   : > { %p21131_p8 = pnand %p21130_p7, %p21124_p4 }
 0x12e   : > { %21134 = shalt.err (!%p21131_p8)
}
 0x12f   : > { %s25335_s6 = sld [smem:[#allocation138_spill]]  ;;  %s21145_s23 = scalar_lea.vmem %s2048_s18, 1536 }
 0x130   : > { %p21146_p9 = scmp.ne.s32.totalorder %s2048_s18, %s21145_s23  ;;  %p21152_p12 = scmp.lt.s32.totalorder %s2048_s18, %s2048_s18 }
 0x131   : > { %p21153_p13 = scmp.lt.s32.totalorder %s21145_s23, %s21145_s23 }
 0x132   : > { %p21147_p10 = pnand %p21146_p9, %p20607_p3 }
 0x133   : > { %p21154_p0 = por %p21153_p13, %p21152_p12 }
 0x134   : > { %p21148_p11 = pneg %p21147_p10 }
 0x135   : > { %20414 = dma.hbm_to_vmem [thread:$0]  (%p20607_p3), %s25335_s6, 16, %s2027_s7, [#allocation36]  }
 0x136   : > { %p21155_p1 = pnand %p21154_p0, %p21148_p11 }
 0x138   : > { %21158 = shalt.err (!%p21155_p1)
}
 0x139   : > { %20418 = dma.hbm_to_vmem [thread:$0]  (%p20607_p3), %s22691_s24, 1536, %s2048_s18, [#allocation39], %s25244_s26, %s25244_s26, %s25246_s28  }
 0x13a   : > { %s22502_s2 = smov [#allocation41]   ;;  %s22503_s7 = smov [#allocation44]  }
 0x13b   : > { %s2073_s15 = sshll.u32 %s22502_s2, 4  ;;  %s2099_s11 = sshll.u32 %s22503_s7, 4  ;;  %s2074_s15 = int_to_ptr.vmem [resolvable:$true] %s2073_s15  ;;  %s2100_s11 = int_to_ptr.vmem [resolvable:$true] %s2099_s11 }
 0x13c   : > { %s21169_s16 = scalar_lea.vmem %s2074_s15, 1536  ;;  %p21176_p7 = scmp.lt.s32.totalorder %s2074_s15, %s2074_s15 }
 0x13d   : > { %p21170_p4 = scmp.ne.s32.totalorder %s2074_s15, %s21169_s16  ;;  %p21177_p8 = scmp.lt.s32.totalorder %s21169_s16, %s21169_s16 }
 0x13f   : > { %p21171_p5 = pnand %p21170_p4, %p20607_p3  ;;  %p21178_p9 = por %p21177_p8, %p21176_p7 }
 0x141   : > { %p21172_p6 = pneg %p21171_p5 }
 0x143   : > { %p21179_p10 = pnand %p21178_p9, %p21172_p6 }
 0x145   : > { %21182 = shalt.err (!%p21179_p10)
}
 0x146   : > { %20422 = dma.hbm_to_vmem [thread:$0]  (%p20607_p3), %s22701_s14, 1536, %s2074_s15, [#allocation42], %s25244_s26, %s25244_s26, %s25246_s28  }
 0x147   : > { %s21193_s18 = scalar_lea.vmem %s2100_s11, 512  ;;  %p21200_p0 = scmp.lt.s32.totalorder %s2100_s11, %s2100_s11 }
 0x148   : > { %p21194_p11 = scmp.ne.s32.totalorder %s2100_s11, %s21193_s18  ;;  %p21201_p1 = scmp.lt.s32.totalorder %s21193_s18, %s21193_s18 }
 0x14a   : > { %p21195_p12 = pnand %p21194_p11, %p20607_p3  ;;  %p21202_p4 = por %p21201_p1, %p21200_p0 }
 0x14c   : > { %p21196_p13 = pneg %p21195_p12 }
 0x14e   : > { %p21203_p5 = pnand %p21202_p4, %p21196_p13 }
 0x150   : > { %21206 = shalt.err (!%p21203_p5)
}
 0x151   : > { %s25336_s3 = sld [smem:[#allocation142_spill]]  ;;  %s22504_s23 = smov [#allocation47]  }
 0x152   : > { %s2124_s2 = sshll.u32 %s22504_s23, 4  ;;  %s22505_s15 = smov [#allocation50]   ;;  %s2125_s2 = int_to_ptr.vmem [resolvable:$true] %s2124_s2 }
 0x153   : > { %s2148_s7 = sshll.u32 %s22505_s15, 4  ;;  %s21217_s16 = scalar_lea.vmem %s2125_s2, 16  ;;  %s2149_s7 = int_to_ptr.vmem [resolvable:$true] %s2148_s7 }
 0x154   : > { %p21218_p6 = scmp.ne.s32.totalorder %s2125_s2, %s21217_s16  ;;  %s21223_s18 = scalar_lea.vmem %s2125_s2, 32 }
 0x155   : > { %p21224_p9 = scmp.lt.s32.totalorder %s2125_s2, %s2125_s2  ;;  %p21225_p10 = scmp.lt.s32.totalorder %s21223_s18, %s21217_s16 }
 0x156   : > { %p21219_p7 = pnand %p21218_p6, %p20607_p3 }
 0x157   : > { %20426 = dma.hbm_to_vmem [thread:$0]  (%p20607_p3), %s25336_s3, 512, %s2100_s11, [#allocation45], %s25244_s26, %s25244_s26, %s25246_s28  }
 0x158   : > { %p21220_p8 = pneg %p21219_p7  ;;  %p21226_p11 = por %p21225_p10, %p21224_p9 }
 0x15a   : > { %p21227_p12 = pnand %p21226_p11, %p21220_p8 }
 0x15c   : > { %21230 = shalt.err (!%p21227_p12)
}
 0x15d   : > { %s25337_s5 = sld [smem:[#allocation144_spill]]  ;;  %s21241_s11 = scalar_lea.vmem %s2149_s7, 3072 }
 0x15e   : > { %p21242_p13 = scmp.ne.s32.totalorder %s2149_s7, %s21241_s11  ;;  %p21248_p4 = scmp.lt.s32.totalorder %s2149_s7, %s2149_s7 }
 0x15f   : > { %p21249_p5 = scmp.lt.s32.totalorder %s21241_s11, %s21241_s11 }
 0x160   : > { %p21243_p0 = pnand %p21242_p13, %p20607_p3 }
 0x161   : > { %p21250_p6 = por %p21249_p5, %p21248_p4 }
 0x162   : > { %p21244_p1 = pneg %p21243_p0 }
 0x163   : > { %20430 = dma.hbm_to_vmem [thread:$0]  (%p20607_p3), %s25337_s5, 16, %s2125_s2, [#allocation48]  }
 0x164   : > { %p21251_p7 = pnand %p21250_p6, %p21244_p1 }
 0x166   : > { %21254 = shalt.err (!%p21251_p7)
}
 0x167   : > { %s25338_s3 = sld [smem:[#allocation147_spill]]  ;;  %s22506_s5 = smov [#allocation53]  }
 0x168   : > { %s2174_s23 = sshll.u32 %s22506_s5, 4  ;;  %s22507_s2 = smov [#allocation56]   ;;  %s2175_s23 = int_to_ptr.vmem [resolvable:$true] %s2174_s23 }
 0x169   : > { %s2201_s15 = sshll.u32 %s22507_s2, 4  ;;  %s21265_s16 = scalar_lea.vmem %s2175_s23, 1024  ;;  %s2202_s15 = int_to_ptr.vmem [resolvable:$true] %s2201_s15 }
 0x16a   : > { %p21266_p8 = scmp.ne.s32.totalorder %s2175_s23, %s21265_s16  ;;  %p21272_p11 = scmp.lt.s32.totalorder %s2175_s23, %s2175_s23 }
 0x16b   : > { %p21273_p12 = scmp.lt.s32.totalorder %s21265_s16, %s21265_s16 }
 0x16c   : > { %p21267_p9 = pnand %p21266_p8, %p20607_p3 }
 0x16d   : > { %20434 = dma.hbm_to_vmem [thread:$0]  (%p20607_p3), %s25338_s3, 3072, %s2149_s7, [#allocation51], %s25244_s26, %s25244_s26, %s25246_s28  }
 0x16e   : > { %p21268_p10 = pneg %p21267_p9  ;;  %p21274_p13 = por %p21273_p12, %p21272_p11 }
 0x170   : > { %p21275_p0 = pnand %p21274_p13, %p21268_p10 }
 0x172   : > { %21278 = shalt.err (!%p21275_p0)
}
 0x173   : > { %s25339_s7 = sld [smem:[#allocation149_spill]]  ;;  %s21289_s18 = scalar_lea.vmem %s2202_s15, 16 }
 0x174   : > { %p21290_p1 = scmp.ne.s32.totalorder %s2202_s15, %s21289_s18  ;;  %s21295_s11 = scalar_lea.vmem %s2202_s15, 32 }
 0x175   : > { %p21296_p6 = scmp.lt.s32.totalorder %s2202_s15, %s2202_s15  ;;  %p21297_p7 = scmp.lt.s32.totalorder %s21295_s11, %s21289_s18 }
 0x176   : > { %p21291_p4 = pnand %p21290_p1, %p20607_p3 }
 0x177   : > { %p21298_p8 = por %p21297_p7, %p21296_p6 }
 0x178   : > { %p21292_p5 = pneg %p21291_p4 }
 0x179   : > { %20438 = dma.hbm_to_vmem [thread:$0]  (%p20607_p3), %s25339_s7, 1024, %s2175_s23, [#allocation54], %s25244_s26, %s25244_s26, %s25246_s28  }
 0x17a   : > { %p21299_p9 = pnand %p21298_p8, %p21292_p5 }
 0x17c   : > { %21302 = shalt.err (!%p21299_p9)
}
 0x17d   : > { %s25340_s3 = sld [smem:[#allocation151_spill]]  ;;  %s22508_s5 = smov [#allocation59]  }
 0x17e   : > { %s2223_s2 = sshll.u32 %s22508_s5, 4  ;;  %s22509_s23 = smov [#allocation62]   ;;  %s2224_s2 = int_to_ptr.vmem [resolvable:$true] %s2223_s2 }
 0x17f   : > { %s2246_s16 = sshll.u32 %s22509_s23, 4  ;;  %s21313_s7 = scalar_lea.vmem %s2224_s2, 16  ;;  %s2247_s16 = int_to_ptr.vmem [resolvable:$true] %s2246_s16 }
 0x180   : > { %p21314_p10 = scmp.ne.s32.totalorder %s2224_s2, %s21313_s7  ;;  %s21319_s26 = scalar_lea.vmem %s2224_s2, 32 }
 0x181   : > { %p21320_p13 = scmp.lt.s32.totalorder %s2224_s2, %s2224_s2  ;;  %p21321_p0 = scmp.lt.s32.totalorder %s21319_s26, %s21313_s7 }
 0x182   : > { %p21315_p11 = pnand %p21314_p10, %p20607_p3 }
 0x183   : > { %20442 = dma.hbm_to_vmem [thread:$0]  (%p20607_p3), %s25340_s3, 16, %s2202_s15, [#allocation57]  }
 0x184   : > { %p21316_p12 = pneg %p21315_p11  ;;  %p21322_p1 = por %p21321_p0, %p21320_p13 }
 0x186   : > { %p21323_p4 = pnand %p21322_p1, %p21316_p12 }
 0x188   : > { %21326 = shalt.err (!%p21323_p4)
}
 0x189   : > { %s25341_s18 = sld [smem:[#allocation153_spill]]  ;;  %s21337_s15 = scalar_lea.vmem %s2247_s16, 384 }
 0x18a   : > { %p21338_p5 = scmp.ne.s32.totalorder %s2247_s16, %s21337_s15  ;;  %p21344_p8 = scmp.lt.s32.totalorder %s2247_s16, %s2247_s16 }
 0x18b   : > { %p21345_p9 = scmp.lt.s32.totalorder %s21337_s15, %s21337_s15 }
 0x18c   : > { %p21339_p6 = pnand %p21338_p5, %p20607_p3 }
 0x18d   : > { %p21346_p10 = por %p21345_p9, %p21344_p8 }
 0x18e   : > { %p21340_p7 = pneg %p21339_p6 }
 0x18f   : > { %20446 = dma.hbm_to_vmem [thread:$0]  (%p20607_p3), %s25341_s18, 16, %s2224_s2, [#allocation60]  }
 0x190   : > { %p21347_p11 = pnand %p21346_p10, %p21340_p7 }
 0x192   : > { %21350 = shalt.err (!%p21347_p11)
}
 0x193   : > { %s25342_s26 = smov 128   ;;  %s25343_s11 = sld [smem:[#allocation155_spill]] }
 0x194   : > { %s22510_s3 = smov [#allocation65]   ;;  %s22511_s2 = smov [#allocation68]  }
 0x195   : > { %s2271_s5 = sshll.u32 %s22510_s3, 4  ;;  %s2293_s23 = sshll.u32 %s22511_s2, 4  ;;  %s2272_s5 = int_to_ptr.vmem [resolvable:$true] %s2271_s5  ;;  %s2294_s23 = int_to_ptr.vmem [resolvable:$true] %s2293_s23 }
 0x196   : > { %s21361_s7 = scalar_lea.vmem %s2272_s5, 16  ;;  %s21367_s18 = scalar_lea.vmem %s2272_s5, 32 }
 0x197   : > { %p21362_p12 = scmp.ne.s32.totalorder %s2272_s5, %s21361_s7  ;;  %p21368_p1 = scmp.lt.s32.totalorder %s2272_s5, %s2272_s5 }
 0x198   : > { %p21369_p4 = scmp.lt.s32.totalorder %s21367_s18, %s21361_s7 }
 0x199   : > { %20450 = dma.hbm_to_vmem [thread:$0]  (%p20607_p3), %s25343_s11, 384, %s2247_s16, [#allocation63], %s25342_s26, %s25342_s26, %s25246_s28  }
 0x19a   : > { %p21363_p13 = pnand %p21362_p12, %p20607_p3  ;;  %p21370_p5 = por %p21369_p4, %p21368_p1 }
 0x19c   : > { %p21364_p0 = pneg %p21363_p13 }
 0x19e   : > { %p21371_p6 = pnand %p21370_p5, %p21364_p0 }
 0x1a0   : > { %21374 = shalt.err (!%p21371_p6)
}
 0x1a1   : > { %s25344_s15 = sld [smem:[#allocation157_spill]]  ;;  %s21385_s16 = scalar_lea.vmem %s2294_s23, 16 }
 0x1a2   : > { %p21386_p7 = scmp.ne.s32.totalorder %s2294_s23, %s21385_s16  ;;  %s21391_s11 = scalar_lea.vmem %s2294_s23, 32 }
 0x1a3   : > { %p21392_p10 = scmp.lt.s32.totalorder %s2294_s23, %s2294_s23  ;;  %p21393_p11 = scmp.lt.s32.totalorder %s21391_s11, %s21385_s16 }
 0x1a4   : > { %p21387_p8 = pnand %p21386_p7, %p20607_p3 }
 0x1a5   : > { %p21394_p12 = por %p21393_p11, %p21392_p10 }
 0x1a6   : > { %p21388_p9 = pneg %p21387_p8 }
 0x1a7   : > { %20454 = dma.hbm_to_vmem [thread:$0]  (%p20607_p3), %s25344_s15, 16, %s2272_s5, [#allocation66]  }
 0x1a8   : > { %p21395_p13 = pnand %p21394_p12, %p21388_p9 }
 0x1aa   : > { %21398 = shalt.err (!%p21395_p13)
}
 0x1ab   : > { %s25345_s3 = sld [smem:[#allocation159_spill]]  ;;  %s22512_s2 = smov [#allocation71]  }
 0x1ac   : > { %s2316_s7 = sshll.u32 %s22512_s2, 4  ;;  %s22513_s5 = smov [#allocation74]   ;;  %s2317_s7 = int_to_ptr.vmem [resolvable:$true] %s2316_s7 }
 0x1ad   : > { %s2341_s18 = sshll.u32 %s22513_s5, 4  ;;  %s21409_s15 = scalar_lea.vmem %s2317_s7, 768  ;;  %s2342_s18 = int_to_ptr.vmem [resolvable:$true] %s2341_s18 }
 0x1ae   : > { %p21410_p0 = scmp.ne.s32.totalorder %s2317_s7, %s21409_s15  ;;  %p21416_p5 = scmp.lt.s32.totalorder %s2317_s7, %s2317_s7 }
 0x1af   : > { %p21417_p6 = scmp.lt.s32.totalorder %s21409_s15, %s21409_s15 }
 0x1b0   : > { %p21411_p1 = pnand %p21410_p0, %p20607_p3 }
 0x1b1   : > { %20458 = dma.hbm_to_vmem [thread:$0]  (%p20607_p3), %s25345_s3, 16, %s2294_s23, [#allocation69]  }
 0x1b2   : > { %p21412_p4 = pneg %p21411_p1  ;;  %p21418_p7 = por %p21417_p6, %p21416_p5 }
 0x1b4   : > { %p21419_p8 = pnand %p21418_p7, %p21412_p4 }
 0x1b6   : > { %21422 = shalt.err (!%p21419_p8)
}
 0x1b7   : > { %s25346_s23 = sld [smem:[#allocation161_spill]]  ;;  %s21433_s16 = scalar_lea.vmem %s2342_s18, 16 }
 0x1b8   : > { %p21434_p9 = scmp.ne.s32.totalorder %s2342_s18, %s21433_s16  ;;  %s21439_s11 = scalar_lea.vmem %s2342_s18, 32 }
 0x1b9   : > { %p21440_p12 = scmp.lt.s32.totalorder %s2342_s18, %s2342_s18  ;;  %p21441_p13 = scmp.lt.s32.totalorder %s21439_s11, %s21433_s16 }
 0x1ba   : > { %p21435_p10 = pnand %p21434_p9, %p20607_p3 }
 0x1bb   : > { %p21442_p0 = por %p21441_p13, %p21440_p12 }
 0x1bc   : > { %p21436_p11 = pneg %p21435_p10 }
 0x1bd   : > { %20462 = dma.hbm_to_vmem [thread:$0]  (%p20607_p3), %s25346_s23, 768, %s2317_s7, [#allocation72], %s25342_s26, %s25342_s26, %s25246_s28  }
 0x1be   : > { %p21443_p1 = pnand %p21442_p0, %p21436_p11 }
 0x1c0   : > { %21446 = shalt.err (!%p21443_p1)
}
 0x1c1   : > { %s25347_s3 = sld [smem:[#allocation163_spill]]  ;;  %s22514_s2 = smov [#allocation77]  }
 0x1c2   : > { %s2363_s5 = sshll.u32 %s22514_s2, 4  ;;  %s22515_s7 = smov [#allocation80]   ;;  %s2364_s5 = int_to_ptr.vmem [resolvable:$true] %s2363_s5 }
 0x1c3   : > { %s2386_s15 = sshll.u32 %s22515_s7, 4  ;;  %s21457_s23 = scalar_lea.vmem %s2364_s5, 16  ;;  %s2387_s15 = int_to_ptr.vmem [resolvable:$true] %s2386_s15 }
 0x1c4   : > { %p21458_p4 = scmp.ne.s32.totalorder %s2364_s5, %s21457_s23  ;;  %s21463_s28 = scalar_lea.vmem %s2364_s5, 32 }
 0x1c5   : > { %p21464_p7 = scmp.lt.s32.totalorder %s2364_s5, %s2364_s5  ;;  %p21465_p8 = scmp.lt.s32.totalorder %s21463_s28, %s21457_s23 }
 0x1c6   : > { %p21459_p5 = pnand %p21458_p4, %p20607_p3 }
 0x1c7   : > { %20466 = dma.hbm_to_vmem [thread:$0]  (%p20607_p3), %s25347_s3, 16, %s2342_s18, [#allocation75]  }
 0x1c8   : > { %p21460_p6 = pneg %p21459_p5  ;;  %p21466_p9 = por %p21465_p8, %p21464_p7 }
 0x1ca   : > { %p21467_p10 = pnand %p21466_p9, %p21460_p6 }
 0x1cc   : > { %21470 = shalt.err (!%p21467_p10)
}
 0x1cd   : > { %s25348_s16 = sld [smem:[#allocation165_spill]]  ;;  %s21481_s18 = scalar_lea.vmem %s2387_s15, 1536 }
 0x1ce   : > { %p21482_p11 = scmp.ne.s32.totalorder %s2387_s15, %s21481_s18  ;;  %p21488_p0 = scmp.lt.s32.totalorder %s2387_s15, %s2387_s15 }
 0x1cf   : > { %p21489_p1 = scmp.lt.s32.totalorder %s21481_s18, %s21481_s18 }
 0x1d0   : > { %p21483_p12 = pnand %p21482_p11, %p20607_p3 }
 0x1d1   : > { %p21490_p4 = por %p21489_p1, %p21488_p0 }
 0x1d2   : > { %p21484_p13 = pneg %p21483_p12 }
 0x1d3   : > { %20470 = dma.hbm_to_vmem [thread:$0]  (%p20607_p3), %s25348_s16, 16, %s2364_s5, [#allocation78]  }
 0x1d4   : > { %p21491_p5 = pnand %p21490_p4, %p21484_p13 }
 0x1d6   : > { %21494 = shalt.err (!%p21491_p5)
}
 0x1d7   : > { %s25349_s28 = smov 8   ;;  %s25350_s11 = sld [smem:[#allocation167_spill]] }
 0x1d8   : > { %s22516_s3 = smov [#allocation83]   ;;  %s22517_s5 = smov [#allocation86]  }
 0x1d9   : > { %s2413_s2 = sshll.u32 %s22516_s3, 4  ;;  %s2435_s7 = sshll.u32 %s22517_s5, 4  ;;  %s2414_s2 = int_to_ptr.vmem [resolvable:$true] %s2413_s2  ;;  %s2436_s7 = int_to_ptr.vmem [resolvable:$true] %s2435_s7 }
 0x1da   : > { %s21505_s23 = scalar_lea.vmem %s2414_s2, 16  ;;  %s21511_s16 = scalar_lea.vmem %s2414_s2, 32 }
 0x1db   : > { %p21506_p6 = scmp.ne.s32.totalorder %s2414_s2, %s21505_s23  ;;  %p21512_p9 = scmp.lt.s32.totalorder %s2414_s2, %s2414_s2 }
 0x1dc   : > { %p21513_p10 = scmp.lt.s32.totalorder %s21511_s16, %s21505_s23 }
 0x1dd   : > { %20474 = dma.hbm_to_vmem [thread:$0]  (%p20607_p3), %s25350_s11, 1536, %s2387_s15, [#allocation81], %s25342_s26, %s25342_s26, %s25349_s28  }
 0x1de   : > { %p21507_p7 = pnand %p21506_p6, %p20607_p3  ;;  %p21514_p11 = por %p21513_p10, %p21512_p9 }
 0x1e0   : > { %p21508_p8 = pneg %p21507_p7 }
 0x1e2   : > { %p21515_p12 = pnand %p21514_p11, %p21508_p8 }
 0x1e4   : > { %21518 = shalt.err (!%p21515_p12)
}
 0x1e5   : > { %s25351_s18 = sld [smem:[#allocation169_spill]]  ;;  %s21529_s15 = scalar_lea.vmem %s2436_s7, 16 }
 0x1e6   : > { %p21530_p13 = scmp.ne.s32.totalorder %s2436_s7, %s21529_s15  ;;  %s21535_s11 = scalar_lea.vmem %s2436_s7, 32 }
 0x1e7   : > { %p21536_p4 = scmp.lt.s32.totalorder %s2436_s7, %s2436_s7  ;;  %p21537_p5 = scmp.lt.s32.totalorder %s21535_s11, %s21529_s15 }
 0x1e8   : > { %p21531_p0 = pnand %p21530_p13, %p20607_p3 }
 0x1e9   : > { %p21538_p6 = por %p21537_p5, %p21536_p4 }
 0x1ea   : > { %p21532_p1 = pneg %p21531_p0 }
 0x1eb   : > { %20478 = dma.hbm_to_vmem [thread:$0]  (%p20607_p3), %s25351_s18, 16, %s2414_s2, [#allocation84]  }
 0x1ec   : > { %p21539_p7 = pnand %p21538_p6, %p21532_p1 }
 0x1ee   : > { %21542 = shalt.err (!%p21539_p7)
}
 0x1ef   : > { %s25352_s3 = sld [smem:[#allocation171_spill]]  ;;  %s22518_s5 = smov [#allocation89]  }
 0x1f0   : > { %s2461_s23 = sshll.u32 %s22518_s5, 4  ;;  %s2462_s23 = int_to_ptr.vmem [resolvable:$true] %s2461_s23 }
 0x1f1   : > { %s21553_s2 = scalar_lea.vmem %s2462_s23, 512  ;;  %p21560_p11 = scmp.lt.s32.totalorder %s2462_s23, %s2462_s23 }
 0x1f2   : > { %p21554_p8 = scmp.ne.s32.totalorder %s2462_s23, %s21553_s2  ;;  %p21561_p12 = scmp.lt.s32.totalorder %s21553_s2, %s21553_s2 }
 0x1f4   : > { %p21555_p9 = pnand %p21554_p8, %p20607_p3  ;;  %p21562_p13 = por %p21561_p12, %p21560_p11 }
 0x1f5   : > { %20482 = dma.hbm_to_vmem [thread:$0]  (%p20607_p3), %s25352_s3, 16, %s2436_s7, [#allocation87]  }
 0x1f6   : > { %p21556_p10 = pneg %p21555_p9 }
 0x1f8   : > { %p21563_p0 = pnand %p21562_p13, %p21556_p10 }
 0x1fa   : > { %21566 = shalt.err (!%p21563_p0)
}
 0x1fb   : > { %s25353_s16 = sld [smem:[#allocation174_spill]]  ;;  %s22519_s7 = smov [#allocation3]  }
 0x1fc   : > { %s1771_s18 = sshll.u32 %s22519_s7, 4  ;;  %s22520_s15 = smov [#allocation7]   ;;  %s1772_s18 = int_to_ptr.vmem [resolvable:$true] %s1771_s18 }
 0x1fd   : > { %s1793_s11 = sshll.u32 %s22520_s15, 4  ;;  %s21577_s3 = scalar_lea.vmem %s1772_s18, 16  ;;  %s1794_s11 = int_to_ptr.vmem [resolvable:$true] %s1793_s11 }
 0x1fe   : > { %p21578_p1 = scmp.ne.s32.totalorder %s1772_s18, %s21577_s3  ;;  %s21583_s5 = scalar_lea.vmem %s1772_s18, 32 }
 0x1ff   : > { %p21584_p6 = scmp.lt.s32.totalorder %s1772_s18, %s1772_s18  ;;  %p21585_p7 = scmp.lt.s32.totalorder %s21583_s5, %s21577_s3 }
 0x200   : > { %p21579_p4 = pnand %p21578_p1, %p20607_p3 }
 0x201   : > { %20486 = dma.hbm_to_vmem [thread:$0]  (%p20607_p3), %s25353_s16, 512, %s2462_s23, [#allocation90], %s25342_s26, %s25342_s26, %s25349_s28  }
 0x202   : > { %p21580_p5 = pneg %p21579_p4  ;;  %p21586_p8 = por %p21585_p7, %p21584_p6 }
 0x204   : > { %p21587_p9 = pnand %p21586_p8, %p21580_p5 }
 0x206   : > { %21590 = shalt.err (!%p21587_p9)
}
 0x207   : > { %s25354_s2 = sld [smem:[#allocation123_spill]]  ;;  %s21601_s23 = scalar_lea.vmem %s1794_s11, 16 }
 0x208   : > { %p21602_p10 = scmp.ne.s32.totalorder %s1794_s11, %s21601_s23  ;;  %s21607_s16 = scalar_lea.vmem %s1794_s11, 32 }
 0x209   : > { %p21608_p13 = scmp.lt.s32.totalorder %s1794_s11, %s1794_s11  ;;  %p21609_p0 = scmp.lt.s32.totalorder %s21607_s16, %s21601_s23 }
 0x20a   : > { %p21603_p11 = pnand %p21602_p10, %p20607_p3 }
 0x20b   : > { %p21610_p1 = por %p21609_p0, %p21608_p13 }
 0x20c   : > { %p21604_p12 = pneg %p21603_p11 }
 0x20d   : > { %20372 = dma.hbm_to_vmem [thread:$0]  (%p20607_p3), %s25354_s2, 16, %s1772_s18, [#allocation4]  }
 0x20e   : > { %p21611_p4 = pnand %p21610_p1, %p21604_p12 }
 0x210   : > { %21614 = shalt.err (!%p21611_p4)
}
 0x211   : > { %s25355_s7 = sld [smem:[#allocation124_spill]]  ;;  %s22521_s15 = smov [#allocation10]  }
 0x212   : > { %s1823_s3 = sshll.u32 %s22521_s15, 4  ;;  %s22522_s18 = smov [#allocation13]   ;;  %s1824_s3 = int_to_ptr.vmem [resolvable:$true] %s1823_s3 }
 0x213   : > { %s1845_s5 = sshll.u32 %s22522_s18, 4  ;;  %s21625_s2 = scalar_lea.vmem %s1824_s3, 16  ;;  %s1846_s5 = int_to_ptr.vmem [resolvable:$true] %s1845_s5 }
 0x214   : > { %p21626_p5 = scmp.ne.s32.totalorder %s1824_s3, %s21625_s2  ;;  %s21631_s6 = scalar_lea.vmem %s1824_s3, 32 }
 0x215   : > { %p21632_p8 = scmp.lt.s32.totalorder %s1824_s3, %s1824_s3  ;;  %p21633_p9 = scmp.lt.s32.totalorder %s21631_s6, %s21625_s2 }
 0x216   : > { %p21627_p6 = pnand %p21626_p5, %p20607_p3 }
 0x217   : > { %20376 = dma.hbm_to_vmem [thread:$0]  (%p20607_p3), %s25355_s7, 16, %s1794_s11, [#allocation6]  }
 0x218   : > { %p21628_p7 = pneg %p21627_p6  ;;  %p21634_p10 = por %p21633_p9, %p21632_p8 }
 0x21a   : > { %p21635_p11 = pnand %p21634_p10, %p21628_p7 }
 0x21c   : > { %21638 = shalt.err (!%p21635_p11)
}
 0x21d   : > { %s25356_s23 = sld [smem:[#allocation127_spill]]  ;;  %s21649_s11 = scalar_lea.vmem %s1846_s5, 16 }
 0x21e   : > { %p21650_p12 = scmp.ne.s32.totalorder %s1846_s5, %s21649_s11  ;;  %s21655_s16 = scalar_lea.vmem %s1846_s5, 32 }
 0x21f   : > { %p21656_p1 = scmp.lt.s32.totalorder %s1846_s5, %s1846_s5  ;;  %p21657_p4 = scmp.lt.s32.totalorder %s21655_s16, %s21649_s11 }
 0x220   : > { %p21651_p13 = pnand %p21650_p12, %p20607_p3 }
 0x221   : > { %p21658_p5 = por %p21657_p4, %p21656_p1 }
 0x222   : > { %p21652_p0 = pneg %p21651_p13 }
 0x223   : > { %20380 = dma.hbm_to_vmem [thread:$0]  (%p20607_p3), %s25356_s23, 16, %s1824_s3, [#allocation9]  }
 0x224   : > { %p21659_p6 = pnand %p21658_p5, %p21652_p0 }
 0x226   : > { %21662 = shalt.err (!%p21659_p6)
}
 0x227   : > { %s25357_s6 = sld [smem:[#allocation129_spill]]  ;;  %s22523_s7 = smov [#allocation16]  }
 0x228   : > { %s1868_s15 = sshll.u32 %s22523_s7, 4  ;;  %s22524_s3 = smov [#allocation19]   ;;  %s1869_s15 = int_to_ptr.vmem [resolvable:$true] %s1868_s15 }
 0x229   : > { %s1895_s18 = sshll.u32 %s22524_s3, 4  ;;  %s21673_s2 = scalar_lea.vmem %s1869_s15, 384  ;;  %s1896_s18 = int_to_ptr.vmem [resolvable:$true] %s1895_s18 }
 0x22a   : > { %p21674_p7 = scmp.ne.s32.totalorder %s1869_s15, %s21673_s2  ;;  %p21680_p10 = scmp.lt.s32.totalorder %s1869_s15, %s1869_s15 }
 0x22b   : > { %p21681_p11 = scmp.lt.s32.totalorder %s21673_s2, %s21673_s2 }
 0x22c   : > { %p21675_p8 = pnand %p21674_p7, %p20607_p3 }
 0x22d   : > { %20384 = dma.hbm_to_vmem [thread:$0]  (%p20607_p3), %s25357_s6, 16, %s1846_s5, [#allocation12]  }
 0x22e   : > { %p21676_p9 = pneg %p21675_p8  ;;  %p21682_p12 = por %p21681_p11, %p21680_p10 }
 0x230   : > { %p21683_p13 = pnand %p21682_p12, %p21676_p9 }
 0x232   : > { %21686 = shalt.err (!%p21683_p13)
}
 0x233   : > { %s25358_s5 = sld [smem:[#allocation130_spill]]  ;;  %s21697_s23 = scalar_lea.vmem %s1896_s18, 128 }
 0x234   : > { %p21698_p0 = scmp.ne.s32.totalorder %s1896_s18, %s21697_s23  ;;  %p21704_p5 = scmp.lt.s32.totalorder %s1896_s18, %s1896_s18 }
 0x235   : > { %p21705_p6 = scmp.lt.s32.totalorder %s21697_s23, %s21697_s23 }
 0x236   : > { %p21699_p1 = pnand %p21698_p0, %p20607_p3 }
 0x237   : > { %p21706_p7 = por %p21705_p6, %p21704_p5 }
 0x238   : > { %p21700_p4 = pneg %p21699_p1 }
 0x239   : > { %20388 = dma.hbm_to_vmem [thread:$0]  (%p20607_p3), %s25358_s5, 384, %s1869_s15, [#allocation15], %s25342_s26, %s25342_s26, %s25349_s28  }
 0x23a   : > { %p21707_p8 = pnand %p21706_p7, %p21700_p4 }
 0x23c   : > { %21710 = shalt.err (!%p21707_p8)
}
 0x23d   : > { %s25359_s11 = sld [smem:[#allocation131_spill]]  ;;  %s22525_s16 = smov [#allocation22]  }
 0x23e   : > { %s1917_s6 = sshll.u32 %s22525_s16, 4  ;;  %s22526_s7 = smov [#allocation25]   ;;  %s1918_s6 = int_to_ptr.vmem [resolvable:$true] %s1917_s6 }
 0x23f   : > { %s1939_s15 = sshll.u32 %s22526_s7, 4  ;;  %s21721_s3 = scalar_lea.vmem %s1918_s6, 16  ;;  %s1940_s15 = int_to_ptr.vmem [resolvable:$true] %s1939_s15 }
 0x240   : > { %p21722_p9 = scmp.ne.s32.totalorder %s1918_s6, %s21721_s3  ;;  %s21727_s2 = scalar_lea.vmem %s1918_s6, 32 }
 0x241   : > { %p21728_p12 = scmp.lt.s32.totalorder %s1918_s6, %s1918_s6  ;;  %p21729_p13 = scmp.lt.s32.totalorder %s21727_s2, %s21721_s3 }
 0x242   : > { %p21723_p10 = pnand %p21722_p9, %p20607_p3 }
 0x243   : > { %20392 = dma.hbm_to_vmem [thread:$0]  (%p20607_p3), %s25359_s11, 128, %s1896_s18, [#allocation18]  }
 0x244   : > { %p21724_p11 = pneg %p21723_p10  ;;  %p21730_p0 = por %p21729_p13, %p21728_p12 }
 0x246   : > { %p21731_p1 = pnand %p21730_p0, %p21724_p11 }
 0x248   : > { %21734 = shalt.err (!%p21731_p1)
}
 0x249   : > { %s25360_s5 = sld [smem:[#allocation132_spill]]  ;;  %s21745_s18 = scalar_lea.vmem %s1940_s15, 16 }
 0x24a   : > { %p21746_p4 = scmp.ne.s32.totalorder %s1940_s15, %s21745_s18  ;;  %s21751_s23 = scalar_lea.vmem %s1940_s15, 32 }
 0x24b   : > { %p21752_p7 = scmp.lt.s32.totalorder %s1940_s15, %s1940_s15  ;;  %p21753_p8 = scmp.lt.s32.totalorder %s21751_s23, %s21745_s18 }
 0x24c   : > { %p21747_p5 = pnand %p21746_p4, %p20607_p3 }
 0x24d   : > { %p21754_p9 = por %p21753_p8, %p21752_p7 }
 0x24e   : > { %p21748_p6 = pneg %p21747_p5 }
 0x24f   : > { %20396 = dma.hbm_to_vmem [thread:$0]  (%p20607_p3), %s25360_s5, 16, %s1918_s6, [#allocation21]  }
 0x250   : > { %p21755_p10 = pnand %p21754_p9, %p21748_p6 }
 0x252   : > { %21758 = shalt.err (!%p21755_p10)
}
 0x253   : > { %s25361_s11 = sld [smem:[#allocation133_spill]]  ;;  %s22527_s16 = smov [#allocation28]  }
 0x254   : > { %s1962_s7 = sshll.u32 %s22527_s16, 4  ;;  %s22528_s6 = smov [#allocation31]   ;;  %s1963_s7 = int_to_ptr.vmem [resolvable:$true] %s1962_s7 }
 0x255   : > { %s1988_s3 = sshll.u32 %s22528_s6, 4  ;;  %s21769_s2 = scalar_lea.vmem %s1963_s7, 768  ;;  %s1989_s3 = int_to_ptr.vmem [resolvable:$true] %s1988_s3 }
 0x256   : > { %p21770_p11 = scmp.ne.s32.totalorder %s1963_s7, %s21769_s2  ;;  %p21776_p0 = scmp.lt.s32.totalorder %s1963_s7, %s1963_s7 }
 0x257   : > { %p21777_p1 = scmp.lt.s32.totalorder %s21769_s2, %s21769_s2 }
 0x258   : > { %p21771_p12 = pnand %p21770_p11, %p20607_p3 }
 0x259   : > { %20400 = dma.hbm_to_vmem [thread:$0]  (%p20607_p3), %s25361_s11, 16, %s1940_s15, [#allocation24]  }
 0x25a   : > { %p21772_p13 = pneg %p21771_p12  ;;  %p21778_p4 = por %p21777_p1, %p21776_p0 }
 0x25c   : > { %p21779_p5 = pnand %p21778_p4, %p21772_p13 }
 0x25e   : > { %21782 = shalt.err (!%p21779_p5)
}
 0x25f   : > { %s25362_s15 = sld [smem:[#allocation134_spill]]  ;;  %s21793_s5 = scalar_lea.vmem %s1989_s3, 256 }
 0x260   : > { %p21794_p6 = scmp.ne.s32.totalorder %s1989_s3, %s21793_s5  ;;  %p21800_p9 = scmp.lt.s32.totalorder %s1989_s3, %s1989_s3 }
 0x261   : > { %p21801_p10 = scmp.lt.s32.totalorder %s21793_s5, %s21793_s5 }
 0x262   : > { %p21795_p7 = pnand %p21794_p6, %p20607_p3 }
 0x263   : > { %p21802_p11 = por %p21801_p10, %p21800_p9 }
 0x264   : > { %p21796_p8 = pneg %p21795_p7 }
 0x265   : > { %20404 = dma.hbm_to_vmem [thread:$0]  (%p20607_p3), %s25362_s15, 768, %s1963_s7, [#allocation27], %s25342_s26, %s25342_s26, %s25349_s28  }
 0x266   : > { %p21803_p12 = pnand %p21802_p11, %p21796_p8 }
 0x268   : > { %21806 = shalt.err (!%p21803_p12)
}
 0x269   : > { %s25363_s18 = sld [smem:[#allocation136_spill]]  ;;  %s22529_s23 = smov [#allocation34]  }
 0x26a   : > { %s2015_s11 = sshll.u32 %s22529_s23, 4  ;;  %s22530_s16 = smov [#allocation37]   ;;  %s2016_s11 = int_to_ptr.vmem [resolvable:$true] %s2015_s11 }
 0x26b   : > { %s2037_s7 = sshll.u32 %s22530_s16, 4  ;;  %s21817_s6 = scalar_lea.vmem %s2016_s11, 16  ;;  %s2038_s7 = int_to_ptr.vmem [resolvable:$true] %s2037_s7 }
 0x26c   : > { %p21818_p13 = scmp.ne.s32.totalorder %s2016_s11, %s21817_s6  ;;  %s21823_s2 = scalar_lea.vmem %s2016_s11, 32 }
 0x26d   : > { %p21824_p4 = scmp.lt.s32.totalorder %s2016_s11, %s2016_s11  ;;  %p21825_p5 = scmp.lt.s32.totalorder %s21823_s2, %s21817_s6 }
 0x26e   : > { %p21819_p0 = pnand %p21818_p13, %p20607_p3 }
 0x26f   : > { %20408 = dma.hbm_to_vmem [thread:$0]  (%p20607_p3), %s25363_s18, 256, %s1989_s3, [#allocation30], %s25342_s26, %s25342_s26, %s25349_s28  }
 0x270   : > { %p21820_p1 = pneg %p21819_p0  ;;  %p21826_p6 = por %p21825_p5, %p21824_p4 }
 0x272   : > { %p21827_p7 = pnand %p21826_p6, %p21820_p1 }
 0x274   : > { %21830 = shalt.err (!%p21827_p7)
}
 0x275   : > { %s25364_s15 = sld [smem:[#allocation137_spill]]  ;;  %s21841_s3 = scalar_lea.vmem %s2038_s7, 16 }
 0x276   : > { %p21842_p8 = scmp.ne.s32.totalorder %s2038_s7, %s21841_s3  ;;  %s21847_s5 = scalar_lea.vmem %s2038_s7, 32 }
 0x277   : > { %p21848_p11 = scmp.lt.s32.totalorder %s2038_s7, %s2038_s7  ;;  %p21849_p12 = scmp.lt.s32.totalorder %s21847_s5, %s21841_s3 }
 0x278   : > { %p21843_p9 = pnand %p21842_p8, %p20607_p3 }
 0x279   : > { %p21850_p13 = por %p21849_p12, %p21848_p11 }
 0x27a   : > { %p21844_p10 = pneg %p21843_p9 }
 0x27b   : > { %20412 = dma.hbm_to_vmem [thread:$0]  (%p20607_p3), %s25364_s15, 16, %s2016_s11, [#allocation33]  }
 0x27c   : > { %p21851_p0 = pnand %p21850_p13, %p21844_p10 }
 0x27e   : > { %21854 = shalt.err (!%p21851_p0)
}
 0x27f   : > { %s25365_s18 = sld [smem:[#allocation139_spill]]  ;;  %s22531_s23 = smov [#allocation40]  }
 0x280   : > { %s2060_s16 = sshll.u32 %s22531_s23, 4  ;;  %s22532_s11 = smov [#allocation43]   ;;  %s2061_s16 = int_to_ptr.vmem [resolvable:$true] %s2060_s16 }
 0x281   : > { %s2086_s6 = sshll.u32 %s22532_s11, 4  ;;  %s21865_s2 = scalar_lea.vmem %s2061_s16, 1536  ;;  %s2087_s6 = int_to_ptr.vmem [resolvable:$true] %s2086_s6 }
 0x282   : > { %p21866_p1 = scmp.ne.s32.totalorder %s2061_s16, %s21865_s2  ;;  %p21872_p6 = scmp.lt.s32.totalorder %s2061_s16, %s2061_s16 }
 0x283   : > { %p21873_p7 = scmp.lt.s32.totalorder %s21865_s2, %s21865_s2 }
 0x284   : > { %p21867_p4 = pnand %p21866_p1, %p20607_p3 }
 0x285   : > { %20416 = dma.hbm_to_vmem [thread:$0]  (%p20607_p3), %s25365_s18, 16, %s2038_s7, [#allocation36]  }
 0x286   : > { %p21868_p5 = pneg %p21867_p4  ;;  %p21874_p8 = por %p21873_p7, %p21872_p6 }
 0x288   : > { %p21875_p9 = pnand %p21874_p8, %p21868_p5 }
 0x28a   : > { %21878 = shalt.err (!%p21875_p9)
}
 0x28b   : > { %s25366_s7 = sld [smem:[#allocation140_spill]]  ;;  %s21889_s15 = scalar_lea.vmem %s2087_s6, 512 }
 0x28c   : > { %p21890_p10 = scmp.ne.s32.totalorder %s2087_s6, %s21889_s15  ;;  %p21896_p13 = scmp.lt.s32.totalorder %s2087_s6, %s2087_s6 }
 0x28d   : > { %p21897_p0 = scmp.lt.s32.totalorder %s21889_s15, %s21889_s15 }
 0x28e   : > { %p21891_p11 = pnand %p21890_p10, %p20607_p3 }
 0x28f   : > { %p21898_p1 = por %p21897_p0, %p21896_p13 }
 0x290   : > { %p21892_p12 = pneg %p21891_p11 }
 0x291   : > { %20420 = dma.hbm_to_vmem [thread:$0]  (%p20607_p3), %s25366_s7, 1536, %s2061_s16, [#allocation39], %s25342_s26, %s25342_s26, %s25349_s28  }
 0x292   : > { %p21899_p4 = pnand %p21898_p1, %p21892_p12 }
 0x294   : > { %21902 = shalt.err (!%p21899_p4)
}
 0x295   : > { %s25367_s3 = sld [smem:[#allocation141_spill]]  ;;  %s22533_s5 = smov [#allocation46]  }
 0x296   : > { %s2113_s18 = sshll.u32 %s22533_s5, 4  ;;  %s22534_s23 = smov [#allocation49]   ;;  %s2114_s18 = int_to_ptr.vmem [resolvable:$true] %s2113_s18 }
 0x297   : > { %s2135_s16 = sshll.u32 %s22534_s23, 4  ;;  %s21913_s11 = scalar_lea.vmem %s2114_s18, 16  ;;  %s2136_s16 = int_to_ptr.vmem [resolvable:$true] %s2135_s16 }
 0x298   : > { %p21914_p5 = scmp.ne.s32.totalorder %s2114_s18, %s21913_s11  ;;  %s21919_s2 = scalar_lea.vmem %s2114_s18, 32 }
 0x299   : > { %p21920_p8 = scmp.lt.s32.totalorder %s2114_s18, %s2114_s18  ;;  %p21921_p9 = scmp.lt.s32.totalorder %s21919_s2, %s21913_s11 }
 0x29a   : > { %p21915_p6 = pnand %p21914_p5, %p20607_p3 }
 0x29b   : > { %20424 = dma.hbm_to_vmem [thread:$0]  (%p20607_p3), %s25367_s3, 512, %s2087_s6, [#allocation42], %s25342_s26, %s25342_s26, %s25349_s28  }
 0x29c   : > { %p21916_p7 = pneg %p21915_p6  ;;  %p21922_p10 = por %p21921_p9, %p21920_p8 }
 0x29e   : > { %p21923_p11 = pnand %p21922_p10, %p21916_p7 }
 0x2a0   : > { %21926 = shalt.err (!%p21923_p11)
}
 0x2a1   : > { %s25368_s7 = sld [smem:[#allocation143_spill]]  ;;  %s21937_s6 = scalar_lea.vmem %s2136_s16, 16 }
 0x2a2   : > { %p21938_p12 = scmp.ne.s32.totalorder %s2136_s16, %s21937_s6  ;;  %s21943_s15 = scalar_lea.vmem %s2136_s16, 32 }
 0x2a3   : > { %p21944_p1 = scmp.lt.s32.totalorder %s2136_s16, %s2136_s16  ;;  %p21945_p4 = scmp.lt.s32.totalorder %s21943_s15, %s21937_s6 }
 0x2a4   : > { %p21939_p13 = pnand %p21938_p12, %p20607_p3 }
 0x2a5   : > { %p21946_p5 = por %p21945_p4, %p21944_p1 }
 0x2a6   : > { %p21940_p0 = pneg %p21939_p13 }
 0x2a7   : > { %20428 = dma.hbm_to_vmem [thread:$0]  (%p20607_p3), %s25368_s7, 16, %s2114_s18, [#allocation45]  }
 0x2a8   : > { %p21947_p6 = pnand %p21946_p5, %p21940_p0 }
 0x2aa   : > { %21950 = shalt.err (!%p21947_p6)
}
 0x2ab   : > { %s25369_s3 = sld [smem:[#allocation145_spill]]  ;;  %s22535_s5 = smov [#allocation52]  }
 0x2ac   : > { %s2161_s23 = sshll.u32 %s22535_s5, 4  ;;  %s22536_s18 = smov [#allocation55]   ;;  %s2162_s23 = int_to_ptr.vmem [resolvable:$true] %s2161_s23 }
 0x2ad   : > { %s2187_s11 = sshll.u32 %s22536_s18, 4  ;;  %s21961_s2 = scalar_lea.vmem %s2162_s23, 3072  ;;  %s2188_s11 = int_to_ptr.vmem [resolvable:$true] %s2187_s11 }
 0x2ae   : > { %p21962_p7 = scmp.ne.s32.totalorder %s2162_s23, %s21961_s2  ;;  %p21968_p10 = scmp.lt.s32.totalorder %s2162_s23, %s2162_s23 }
 0x2af   : > { %p21969_p11 = scmp.lt.s32.totalorder %s21961_s2, %s21961_s2 }
 0x2b0   : > { %p21963_p8 = pnand %p21962_p7, %p20607_p3 }
 0x2b1   : > { %20432 = dma.hbm_to_vmem [thread:$0]  (%p20607_p3), %s25369_s3, 16, %s2136_s16, [#allocation48]  }
 0x2b2   : > { %p21964_p9 = pneg %p21963_p8  ;;  %p21970_p12 = por %p21969_p11, %p21968_p10 }
 0x2b4   : > { %p21971_p13 = pnand %p21970_p12, %p21964_p9 }
 0x2b6   : > { %21974 = shalt.err (!%p21971_p13)
}
 0x2b7   : > { %s25370_s16 = sld [smem:[#allocation148_spill]]  ;;  %s21985_s7 = scalar_lea.vmem %s2188_s11, 1024 }
 0x2b8   : > { %p21986_p0 = scmp.ne.s32.totalorder %s2188_s11, %s21985_s7  ;;  %p21992_p5 = scmp.lt.s32.totalorder %s2188_s11, %s2188_s11 }
 0x2b9   : > { %p21993_p6 = scmp.lt.s32.totalorder %s21985_s7, %s21985_s7 }
 0x2ba   : > { %p21987_p1 = pnand %p21986_p0, %p20607_p3 }
 0x2bb   : > { %p21994_p7 = por %p21993_p6, %p21992_p5 }
 0x2bc   : > { %p21988_p4 = pneg %p21987_p1 }
 0x2bd   : > { %20436 = dma.hbm_to_vmem [thread:$0]  (%p20607_p3), %s25370_s16, 3072, %s2162_s23, [#allocation51], %s25342_s26, %s25342_s26, %s25349_s28  }
 0x2be   : > { %p21995_p8 = pnand %p21994_p7, %p21988_p4 }
 0x2c0   : > { %21998 = shalt.err (!%p21995_p8)
}
 0x2c1   : > { %s25371_s6 = sld [smem:[#allocation150_spill]]  ;;  %s22537_s15 = smov [#allocation58]  }
 0x2c2   : > { %s2212_s3 = sshll.u32 %s22537_s15, 4  ;;  %s22538_s5 = smov [#allocation61]   ;;  %s2213_s3 = int_to_ptr.vmem [resolvable:$true] %s2212_s3 }
 0x2c3   : > { %s2233_s23 = sshll.u32 %s22538_s5, 4  ;;  %s22009_s18 = scalar_lea.vmem %s2213_s3, 16  ;;  %s2234_s23 = int_to_ptr.vmem [resolvable:$true] %s2233_s23 }
 0x2c4   : > { %p22010_p9 = scmp.ne.s32.totalorder %s2213_s3, %s22009_s18  ;;  %s22015_s2 = scalar_lea.vmem %s2213_s3, 32 }
 0x2c5   : > { %p22016_p12 = scmp.lt.s32.totalorder %s2213_s3, %s2213_s3  ;;  %p22017_p13 = scmp.lt.s32.totalorder %s22015_s2, %s22009_s18 }
 0x2c6   : > { %p22011_p10 = pnand %p22010_p9, %p20607_p3 }
 0x2c7   : > { %20440 = dma.hbm_to_vmem [thread:$0]  (%p20607_p3), %s25371_s6, 1024, %s2188_s11, [#allocation54], %s25342_s26, %s25342_s26, %s25349_s28  }
 0x2c8   : > { %p22012_p11 = pneg %p22011_p10  ;;  %p22018_p0 = por %p22017_p13, %p22016_p12 }
 0x2ca   : > { %p22019_p1 = pnand %p22018_p0, %p22012_p11 }
 0x2cc   : > { %22022 = shalt.err (!%p22019_p1)
}
 0x2cd   : > { %s25372_s16 = sld [smem:[#allocation152_spill]]  ;;  %s22033_s11 = scalar_lea.vmem %s2234_s23, 48 }
 0x2ce   : > { %p22034_p4 = scmp.ne.s32.totalorder %s2234_s23, %s22033_s11  ;;  %s22039_s7 = scalar_lea.vmem %s2234_s23, 64 }
 0x2cf   : > { %p22040_p7 = scmp.lt.s32.totalorder %s2234_s23, %s2234_s23  ;;  %p22041_p8 = scmp.lt.s32.totalorder %s22039_s7, %s22033_s11 }
 0x2d0   : > { %p22035_p5 = pnand %p22034_p4, %p20607_p3 }
 0x2d1   : > { %p22042_p9 = por %p22041_p8, %p22040_p7 }
 0x2d2   : > { %p22036_p6 = pneg %p22035_p5 }
 0x2d3   : > { %20444 = dma.hbm_to_vmem [thread:$0]  (%p20607_p3), %s25372_s16, 16, %s2213_s3, [#allocation57]  }
 0x2d4   : > { %p22043_p10 = pnand %p22042_p9, %p22036_p6 }
 0x2d6   : > { %22046 = shalt.err (!%p22043_p10)
}
 0x2d7   : > { %s22539_s6 = smov 16   ;;  %s25373_s15 = sld [smem:[#allocation154_spill]] }
 0x2d8   : > { %s22540_s5 = smov 1   ;;  %s22541_s3 = smov [#allocation64]  }
 0x2d9   : > { %s2260_s18 = sshll.u32 %s22541_s3, 4  ;;  %s22542_s2 = smov [#allocation67]   ;;  %s2261_s18 = int_to_ptr.vmem [resolvable:$true] %s2260_s18 }
 0x2da   : > { %s2282_s16 = sshll.u32 %s22542_s2, 4  ;;  %s22057_s8 = scalar_lea.vmem %s2261_s18, 16  ;;  %s2283_s16 = int_to_ptr.vmem [resolvable:$true] %s2282_s16 }
 0x2db   : > { %p22058_p11 = scmp.ne.s32.totalorder %s2261_s18, %s22057_s8  ;;  %s22063_s11 = scalar_lea.vmem %s2261_s18, 32 }
 0x2dc   : > { %p22064_p0 = scmp.lt.s32.totalorder %s2261_s18, %s2261_s18  ;;  %p22065_p1 = scmp.lt.s32.totalorder %s22063_s11, %s22057_s8 }
 0x2dd   : > { %20448 = dma.hbm_to_vmem [thread:$0]  (%p20607_p3), %s25373_s15, 48, %s2234_s23, [#allocation60], %s22539_s6, %s22539_s6, %s22540_s5  }
 0x2de   : > { %p22059_p12 = pnand %p22058_p11, %p20607_p3  ;;  %p22066_p4 = por %p22065_p1, %p22064_p0 }
 0x2e0   : > { %p22060_p13 = pneg %p22059_p12 }
 0x2e2   : > { %p22067_p5 = pnand %p22066_p4, %p22060_p13 }
 0x2e4   : > { %22070 = shalt.err (!%p22067_p5)
}
 0x2e5   : > { %s25374_s7 = sld [smem:[#allocation156_spill]]  ;;  %s22081_s23 = scalar_lea.vmem %s2283_s16, 16 }
 0x2e6   : > { %p22082_p6 = scmp.ne.s32.totalorder %s2283_s16, %s22081_s23  ;;  %s22087_s6 = scalar_lea.vmem %s2283_s16, 32 }
 0x2e7   : > { %p22088_p9 = scmp.lt.s32.totalorder %s2283_s16, %s2283_s16  ;;  %p22089_p10 = scmp.lt.s32.totalorder %s22087_s6, %s22081_s23 }
 0x2e8   : > { %p22083_p7 = pnand %p22082_p6, %p20607_p3 }
 0x2e9   : > { %p22090_p11 = por %p22089_p10, %p22088_p9 }
 0x2ea   : > { %p22084_p8 = pneg %p22083_p7 }
 0x2eb   : > { %20452 = dma.hbm_to_vmem [thread:$0]  (%p20607_p3), %s25374_s7, 16, %s2261_s18, [#allocation63]  }
 0x2ec   : > { %p22091_p12 = pnand %p22090_p11, %p22084_p8 }
 0x2ee   : > { %22094 = shalt.err (!%p22091_p12)
}
 0x2ef   : > { %s25375_s8 = sld [smem:[#allocation158_spill]]  ;;  %s22543_s15 = smov [#allocation70]  }
 0x2f0   : > { %s2303_s5 = sshll.u32 %s22543_s15, 4  ;;  %s22544_s3 = smov [#allocation73]   ;;  %s2304_s5 = int_to_ptr.vmem [resolvable:$true] %s2303_s5 }
 0x2f1   : > { %s2330_s18 = sshll.u32 %s22544_s3, 4  ;;  %s22105_s2 = scalar_lea.vmem %s2304_s5, 384  ;;  %s2331_s18 = int_to_ptr.vmem [resolvable:$true] %s2330_s18 }
 0x2f2   : > { %p22106_p13 = scmp.ne.s32.totalorder %s2304_s5, %s22105_s2  ;;  %p22112_p4 = scmp.lt.s32.totalorder %s2304_s5, %s2304_s5 }
 0x2f3   : > { %p22113_p5 = scmp.lt.s32.totalorder %s22105_s2, %s22105_s2 }
 0x2f4   : > { %p22107_p0 = pnand %p22106_p13, %p20607_p3 }
 0x2f5   : > { %20456 = dma.hbm_to_vmem [thread:$0]  (%p20607_p3), %s25375_s8, 16, %s2283_s16, [#allocation66]  }
 0x2f6   : > { %p22108_p1 = pneg %p22107_p0  ;;  %p22114_p6 = por %p22113_p5, %p22112_p4 }
 0x2f8   : > { %p22115_p7 = pnand %p22114_p6, %p22108_p1 }
 0x2fa   : > { %22118 = shalt.err (!%p22115_p7)
}
 0x2fb   : > { %s25376_s16 = sld [smem:[#allocation160_spill]]  ;;  %s22129_s11 = scalar_lea.vmem %s2331_s18, 128 }
 0x2fc   : > { %p22130_p8 = scmp.ne.s32.totalorder %s2331_s18, %s22129_s11  ;;  %p22136_p11 = scmp.lt.s32.totalorder %s2331_s18, %s2331_s18 }
 0x2fd   : > { %p22137_p12 = scmp.lt.s32.totalorder %s22129_s11, %s22129_s11 }
 0x2fe   : > { %p22131_p9 = pnand %p22130_p8, %p20607_p3 }
 0x2ff   : > { %p22138_p13 = por %p22137_p12, %p22136_p11 }
 0x300   : > { %p22132_p10 = pneg %p22131_p9 }
 0x301   : > { %20460 = dma.hbm_to_vmem [thread:$0]  (%p20607_p3), %s25376_s16, 384, %s2304_s5, [#allocation69], %s25342_s26, %s25342_s26, %s25349_s28  }
 0x302   : > { %p22139_p0 = pnand %p22138_p13, %p22132_p10 }
 0x304   : > { %22142 = shalt.err (!%p22139_p0)
}
 0x305   : > { %s25377_s7 = sld [smem:[#allocation162_spill]]  ;;  %s22545_s23 = smov [#allocation76]  }
 0x306   : > { %s2352_s6 = sshll.u32 %s22545_s23, 4  ;;  %s22546_s8 = smov [#allocation79]   ;;  %s2353_s6 = int_to_ptr.vmem [resolvable:$true] %s2352_s6 }
 0x307   : > { %s2373_s15 = sshll.u32 %s22546_s8, 4  ;;  %s22153_s5 = scalar_lea.vmem %s2353_s6, 16  ;;  %s2374_s15 = int_to_ptr.vmem [resolvable:$true] %s2373_s15 }
 0x308   : > { %p22154_p1 = scmp.ne.s32.totalorder %s2353_s6, %s22153_s5  ;;  %s22159_s3 = scalar_lea.vmem %s2353_s6, 32 }
 0x309   : > { %p22160_p6 = scmp.lt.s32.totalorder %s2353_s6, %s2353_s6  ;;  %p22161_p7 = scmp.lt.s32.totalorder %s22159_s3, %s22153_s5 }
 0x30a   : > { %p22155_p4 = pnand %p22154_p1, %p20607_p3 }
 0x30b   : > { %20464 = dma.hbm_to_vmem [thread:$0]  (%p20607_p3), %s25377_s7, 128, %s2331_s18, [#allocation72]  }
 0x30c   : > { %p22156_p5 = pneg %p22155_p4  ;;  %p22162_p8 = por %p22161_p7, %p22160_p6 }
 0x30e   : > { %p22163_p9 = pnand %p22162_p8, %p22156_p5 }
 0x310   : > { %22166 = shalt.err (!%p22163_p9)
}
 0x311   : > { %s25378_s2 = sld [smem:[#allocation164_spill]]  ;;  %s22177_s18 = scalar_lea.vmem %s2374_s15, 768 }
 0x312   : > { %p22178_p10 = scmp.ne.s32.totalorder %s2374_s15, %s22177_s18  ;;  %p22184_p13 = scmp.lt.s32.totalorder %s2374_s15, %s2374_s15 }
 0x313   : > { %p22185_p0 = scmp.lt.s32.totalorder %s22177_s18, %s22177_s18 }
 0x314   : > { %p22179_p11 = pnand %p22178_p10, %p20607_p3 }
 0x315   : > { %p22186_p1 = por %p22185_p0, %p22184_p13 }
 0x316   : > { %p22180_p12 = pneg %p22179_p11 }
 0x317   : > { %20468 = dma.hbm_to_vmem [thread:$0]  (%p20607_p3), %s25378_s2, 16, %s2353_s6, [#allocation75]  }
 0x318   : > { %p22187_p4 = pnand %p22186_p1, %p22180_p12 }
 0x31a   : > { %22190 = shalt.err (!%p22187_p4)
}
 0x31b   : > { %s25379_s16 = sld [smem:[#allocation166_spill]]  ;;  %s22547_s11 = smov [#allocation82]  }
 0x31c   : > { %s2399_s7 = sshll.u32 %s22547_s11, 4  ;;  %s22548_s23 = smov [#allocation85]   ;;  %s2400_s7 = int_to_ptr.vmem [resolvable:$true] %s2399_s7 }
 0x31d   : > { %s2424_s6 = sshll.u32 %s22548_s23, 4  ;;  %s22201_s8 = scalar_lea.vmem %s2400_s7, 256  ;;  %s2425_s6 = int_to_ptr.vmem [resolvable:$true] %s2424_s6 }
 0x31e   : > { %p22202_p5 = scmp.ne.s32.totalorder %s2400_s7, %s22201_s8  ;;  %p22208_p8 = scmp.lt.s32.totalorder %s2400_s7, %s2400_s7 }
 0x31f   : > { %p22209_p9 = scmp.lt.s32.totalorder %s22201_s8, %s22201_s8 }
 0x320   : > { %p22203_p6 = pnand %p22202_p5, %p20607_p3 }
 0x321   : > { %20472 = dma.hbm_to_vmem [thread:$0]  (%p20607_p3), %s25379_s16, 768, %s2374_s15, [#allocation78], %s25342_s26, %s25342_s26, %s25349_s28  }
 0x322   : > { %p22204_p7 = pneg %p22203_p6  ;;  %p22210_p10 = por %p22209_p9, %p22208_p8 }
 0x324   : > { %p22211_p11 = pnand %p22210_p10, %p22204_p7 }
 0x326   : > { %22214 = shalt.err (!%p22211_p11)
}
 0x327   : > { %s25380_s15 = sld [smem:[#allocation168_spill]]  ;;  %s22225_s5 = scalar_lea.vmem %s2425_s6, 16 }
 0x328   : > { %p22226_p12 = scmp.ne.s32.totalorder %s2425_s6, %s22225_s5  ;;  %s22231_s3 = scalar_lea.vmem %s2425_s6, 32 }
 0x329   : > { %p22232_p1 = scmp.lt.s32.totalorder %s2425_s6, %s2425_s6  ;;  %p22233_p4 = scmp.lt.s32.totalorder %s22231_s3, %s22225_s5 }
 0x32a   : > { %p22227_p13 = pnand %p22226_p12, %p20607_p3 }
 0x32b   : > { %p22234_p5 = por %p22233_p4, %p22232_p1 }
 0x32c   : > { %p22228_p0 = pneg %p22227_p13 }
 0x32d   : > { %20476 = dma.hbm_to_vmem [thread:$0]  (%p20607_p3), %s25380_s15, 256, %s2400_s7, [#allocation81], %s25342_s26, %s25342_s26, %s25349_s28  }
 0x32e   : > { %p22235_p6 = pnand %p22234_p5, %p22228_p0 }
 0x330   : > { %22238 = shalt.err (!%p22235_p6)
}
 0x331   : > { %s25381_s2 = sld [smem:[#allocation170_spill]]  ;;  %s22549_s18 = smov [#allocation88]  }
 0x332   : > { %s2445_s16 = sshll.u32 %s22549_s18, 4  ;;  %s22550_s11 = smov [#allocation91]   ;;  %s2446_s16 = int_to_ptr.vmem [resolvable:$true] %s2445_s16 }
 0x333   : > { %s2484_s7 = sshll.u32 %s22550_s11, 4  ;;  %s22249_s23 = scalar_lea.vmem %s2446_s16, 1536  ;;  %s2485_s7 = int_to_ptr.vmem [resolvable:$true] %s2484_s7 }
 0x334   : > { %p22250_p7 = scmp.ne.s32.totalorder %s2446_s16, %s22249_s23  ;;  %p22256_p10 = scmp.lt.s32.totalorder %s2446_s16, %s2446_s16 }
 0x335   : > { %p22257_p11 = scmp.lt.s32.totalorder %s22249_s23, %s22249_s23 }
 0x336   : > { %p22251_p8 = pnand %p22250_p7, %p20607_p3 }
 0x337   : > { %20480 = dma.hbm_to_vmem [thread:$0]  (%p20607_p3), %s25381_s2, 16, %s2425_s6, [#allocation84]  }
 0x338   : > { %p22252_p9 = pneg %p22251_p8  ;;  %p22258_p12 = por %p22257_p11, %p22256_p10 }
 0x33a   : > { %p22259_p13 = pnand %p22258_p12, %p22252_p9 }
 0x33c   : > { %22262 = shalt.err (!%p22259_p13)
}
 0x33d   : > { %s25382_s6 = sld [smem:[#allocation172_spill]]  ;;  %s22273_s8 = scalar_lea.vmem %s2485_s7, 16 }
 0x33e   : > { %p22274_p0 = scmp.ne.s32.totalorder %s2485_s7, %s22273_s8  ;;  %s22279_s15 = scalar_lea.vmem %s2485_s7, 32 }
 0x33f   : > { %p22280_p5 = scmp.lt.s32.totalorder %s2485_s7, %s2485_s7  ;;  %p22281_p6 = scmp.lt.s32.totalorder %s22279_s15, %s22273_s8 }
 0x340   : > { %p22275_p1 = pnand %p22274_p0, %p20607_p3 }
 0x341   : > { %p22282_p7 = por %p22281_p6, %p22280_p5 }
 0x342   : > { %p22276_p4 = pneg %p22275_p1 }
 0x343   : > { %20484 = dma.hbm_to_vmem [thread:$0]  (%p20607_p3), %s25382_s6, 1536, %s2446_s16, [#allocation87], %s25342_s26, %s25342_s26, %s25349_s28  }
 0x344   : > { %p22283_p8 = pnand %p22282_p7, %p22276_p4 }
 0x346   : > { %22286 = shalt.err (!%p22283_p8)
}
 0x347   : > { %s25383_s5 = sld [smem:[#allocation177_spill]] }
 0x34d   : > { %20488 = dma.hbm_to_vmem [thread:$0]  (%p20607_p3), %s25383_s5, 16, %s2485_s7, [#allocation90]  }
 0x34e PF: > { %2523 = sbr.rel (%p22936_p2) target bundleno = 11190 (0x2bb6), region = 312 }
 0x353   : > { %p20666_p9 = scmp.eq.s32.totalorder %s22932_s17, 0 }
 0x355   : > { %22292 = dma.done.wait (%p20666_p9), [#allocation4], 16  }
 0x356   : > { %22294 = vsyncadd (%p20666_p9), [#allocation4], 4294967280 }
 0x357   : > { %22296 = dma.done.wait (%p20666_p9), [#allocation6], 32  }
 0x358   : > { %22298 = vsyncadd (%p20666_p9), [#allocation6], 4294967264 }
 0x359   : > { %22300 = dma.done.wait (%p20666_p9), [#allocation9], 1040  }
 0x35a   : > { %22302 = vsyncadd (%p20666_p9), [#allocation9], 4294966256 }
 0x35b   : > { %22304 = dma.done.wait (%p20666_p9), [#allocation12], 32  }
 0x35c   : > { %22306 = vsyncadd (%p20666_p9), [#allocation12], 4294967264 }
 0x35d   : > { %22308 = dma.done.wait (%p20666_p9), [#allocation15], 768  }
 0x35e   : > { %22310 = vsyncadd (%p20666_p9), [#allocation15], 4294966528 }
 0x35f   : > { %22312 = dma.done.wait (%p20666_p9), [#allocation18], 512  }
 0x360   : > { %22314 = vsyncadd (%p20666_p9), [#allocation18], 4294966784 }
 0x361   : > { %22316 = dma.done.wait (%p20666_p9), [#allocation21], 144  }
 0x362   : > { %22318 = vsyncadd (%p20666_p9), [#allocation21], 4294967152 }
 0x363   : > { %22320 = dma.done.wait (%p20666_p9), [#allocation24], 32  }
 0x364   : > { %22322 = vsyncadd (%p20666_p9), [#allocation24], 4294967264 }
 0x365   : > { %22324 = dma.done.wait (%p20666_p9), [#allocation27], 1536  }
 0x366   : > { %22326 = vsyncadd (%p20666_p9), [#allocation27], 4294965760 }
 0x367   : > { %22328 = dma.done.wait (%p20666_p9), [#allocation30], 1024  }
 0x368   : > { %22330 = vsyncadd (%p20666_p9), [#allocation30], 4294966272 }
 0x369   : > { %22332 = dma.done.wait (%p20666_p9), [#allocation33], 272  }
 0x36a   : > { %22334 = vsyncadd (%p20666_p9), [#allocation33], 4294967024 }
 0x36b   : > { %22336 = dma.done.wait (%p20666_p9), [#allocation36], 32  }
 0x36c   : > { %22338 = vsyncadd (%p20666_p9), [#allocation36], 4294967264 }
 0x36d   : > { %22340 = dma.done.wait (%p20666_p9), [#allocation39], 3072  }
 0x36e   : > { %22342 = vsyncadd (%p20666_p9), [#allocation39], 4294964224 }
 0x36f   : > { %22344 = dma.done.wait (%p20666_p9), [#allocation42], 2048  }
 0x370   : > { %22346 = vsyncadd (%p20666_p9), [#allocation42], 4294965248 }
 0x371   : > { %22348 = dma.done.wait (%p20666_p9), [#allocation45], 528  }
 0x372   : > { %22350 = vsyncadd (%p20666_p9), [#allocation45], 4294966768 }
 0x373   : > { %22352 = dma.done.wait (%p20666_p9), [#allocation48], 32  }
 0x374   : > { %22354 = vsyncadd (%p20666_p9), [#allocation48], 4294967264 }
 0x375   : > { %22356 = dma.done.wait (%p20666_p9), [#allocation51], 6144  }
 0x376   : > { %22358 = vsyncadd (%p20666_p9), [#allocation51], 4294961152 }
 0x377   : > { %22360 = dma.done.wait (%p20666_p9), [#allocation54], 2048  }
 0x378   : > { %22362 = vsyncadd (%p20666_p9), [#allocation54], 4294965248 }
 0x379   : > { %22364 = dma.done.wait (%p20666_p9), [#allocation57], 32  }
 0x37a   : > { %22366 = vsyncadd (%p20666_p9), [#allocation57], 4294967264 }
 0x37b   : > { %22368 = dma.done.wait (%p20666_p9), [#allocation60], 64  }
 0x37c   : > { %22370 = vsyncadd (%p20666_p9), [#allocation60], 4294967232 }
 0x37d   : > { %22372 = dma.done.wait (%p20666_p9), [#allocation63], 400  }
 0x37e   : > { %22374 = vsyncadd (%p20666_p9), [#allocation63], 4294966896 }
 0x37f   : > { %22376 = dma.done.wait (%p20666_p9), [#allocation66], 32  }
 0x380   : > { %22378 = vsyncadd (%p20666_p9), [#allocation66], 4294967264 }
 0x381   : > { %22380 = dma.done.wait (%p20666_p9), [#allocation69], 400  }
 0x382   : > { %22382 = vsyncadd (%p20666_p9), [#allocation69], 4294966896 }
 0x383   : > { %22384 = dma.done.wait (%p20666_p9), [#allocation72], 896  }
 0x384   : > { %22386 = vsyncadd (%p20666_p9), [#allocation72], 4294966400 }
 0x385   : > { %22388 = dma.done.wait (%p20666_p9), [#allocation75], 32  }
 0x386   : > { %22390 = vsyncadd (%p20666_p9), [#allocation75], 4294967264 }
 0x387   : > { %22392 = dma.done.wait (%p20666_p9), [#allocation78], 784  }
 0x388   : > { %22394 = vsyncadd (%p20666_p9), [#allocation78], 4294966512 }
 0x389   : > { %22396 = dma.done.wait (%p20666_p9), [#allocation81], 1792  }
 0x38a   : > { %22398 = vsyncadd (%p20666_p9), [#allocation81], 4294965504 }
 0x38b   : > { %22400 = dma.done.wait (%p20666_p9), [#allocation84], 32  }
 0x38c   : > { %22402 = vsyncadd (%p20666_p9), [#allocation84], 4294967264 }
 0x38d   : > { %22404 = dma.done.wait (%p20666_p9), [#allocation87], 1552  }
 0x38e   : > { %22406 = vsyncadd (%p20666_p9), [#allocation87], 4294965744 }
 0x38f   : > { %22408 = dma.done.wait (%p20666_p9), [#allocation90], 528  }
 0x390   : > { %22410 = vsyncadd (%p20666_p9), [#allocation90], 4294966768  ;;  %s25384_s21 = sld [smem:[#allocation122_spill]]  ;;  %p2919_p2 = scmp.lt.s32.totalorder %s22932_s17, 1  ;;  %vm3127_vm0 = vcmask 1040384   ;;  %vm3102_vm1 = vcmask 7168   ;;  %v2929_v13 = vlaneseq }
 0x391   : > { %v3094_v1 = vld [vmem:[#allocation64] sm:$0x1]  ;;  %v3236_v4 = vld [vmem:[#allocation61] sm:$0x1]  ;;  %v3456_v6 = vld [vmem:[#allocation61 + $0x2] sm:$0x1] }
 0x392   : > { %s25431_s17 = smov (!%p2919_p2, %s22932_s17), 1  ;;  %20369 = vmatprep.subr.msk.mxu1 %vm3127_vm0, %v3094_v1  ;;  %18486 = vmatprep.subr.msk.mxu0 %vm3127_vm0, %v3094_v1  ;;  %v3346_v12 = vld [vmem:[#allocation61 + $0x1] sm:$0x1]  ;;  %v23497_v14 = vshrl.u32 %v2929_v13, 7  ;;  %v23500_v15 = vand.u32 127, %v2929_v13  ;;  %v25248_v17 = vmov 0.0  }
 0x393   : > { %s17460_s26 = sshll.u32 %s25431_s17, 6  ;;  %20370 = vmatpush3.msk.msra.mxu1 %vm3127_vm0, %v3094_v1  ;;  %18487 = vmatpush3.msk.msra.mxu0 %vm3127_vm0, %v3094_v1  ;;  %vm3565_vm3 = vcmask 523264   ;;  %s25398_s3 = sld [smem:[#allocation173_spill]] }
 0x394   : > { %18500 = vmatprep.subr.msk.mxu1 %vm3127_vm0, %v3236_v4  ;;  %18514 = vmatprep.subr.msk.mxu0 %vm3127_vm0, %v3346_v12  ;;  %v16792_v16 = vadd.s32 4294967295, %v23497_v14  ;;  %v2972_v19 = vadd.s32 1, %v23497_v14  ;;  %v23522_v31 = vadd.s32 8, %v23497_v14  ;;  %v23527_v33 = vadd.s32 16, %v23497_v14  ;;  %s25399_s2 = sld [smem:[#allocation125_spill]]  ;;  %s2928_s8 = scalar_lea.vmem %s22924_s10, %s17460_s26 }
 0x395   : > { %v23533_v36 = vadd.s32 24, %v23497_v14  ;;  %v23537_v39 = vadd.s32 32, %v23497_v14  ;;  %v23542_v42 = vadd.s32 40, %v23497_v14  ;;  %v23547_v45 = vadd.s32 48, %v23497_v14  ;;  %s25400_s18 = sld [smem:[#allocation126_spill]] }
 0x396   : > { %s23447_s28 = scalar_lea.vmem %s25384_s21, %s17460_s26  ;;  %vm2948_vm2 = vcmp.eq.s32.totalorder %v23500_v15, %v16792_v16  ;;  %vm2980_vm4 = vcmp.eq.s32.totalorder %v23500_v15, %v2972_v19  ;;  %v16793_v35 = vadd.s32 4294967295, %v23522_v31  ;;  %v16794_v38 = vadd.s32 4294967295, %v23527_v33  ;;  %s25401_s16 = sld [smem:[#allocation146_spill]] }
 0x397   : > { %v3092_v2 = vld [vmem:[%s23447_s28 + $0x30] sm:$0xff]  ;;  %v3093_v3 = vld [vmem:[%s23447_s28 + $0x38] sm:$0xff]  ;;  %v3086_v5 = vld [vmem:[%s23447_s28] sm:$0xff]  ;;  %v23506_v18 = vsel %vm2948_vm2, 1.0, %v25248_v17  ;;  %v23513_v20 = vsel %vm2980_vm4, 1.0, %v25248_v17  ;;  %v16795_v41 = vadd.s32 4294967295, %v23533_v36 }
 0x398   : > { %18497 = vmatprep.mubr.msk.f32.mxu1 %vm3102_vm1, %v3092_v2  ;;  %v3087_v7 = vld [vmem:[%s23447_s28 + $0x8] sm:$0xff]  ;;  %v3088_v8 = vld [vmem:[%s23447_s28 + $0x10] sm:$0xff]  ;;  %18488 = vmatprep.mubr.msk.f32.mxu0 %vm3102_vm1, %v3086_v5  ;;  %v3089_v9 = vld [vmem:[%s23447_s28 + $0x18] sm:$0xff]  ;;  %vm2949_vm5 = vcmp.eq.s32.totalorder %v23500_v15, %v16793_v35  ;;  %25385 = vst [vmem:[#allocation180_spill] sm:$0xff] %v23542_v42  ;;  %vm2950_vm6 = vcmp.eq.s32.totalorder %v23500_v15, %v16794_v38  ;;  %v16796_v44 = vadd.s32 4294967295, %v23537_v39  ;;  %v16797_v49 = vadd.s32 4294967295, %v23542_v42 }
 0x399   : > { %18498 = vmatmul.mubr.msk.f32.vlgmr.msra.gmra.mxu1 %vm3102_vm1, %v3093_v3  ;;  %18489 = vmatmul.mubr.msk.f32.vlgmr.msra.gmra.mxu0 %vm3102_vm1, %v3087_v7  ;;  %v3090_v10 = vld [vmem:[%s23447_s28 + $0x20] sm:$0xff]  ;;  %v3091_v11 = vld [vmem:[%s23447_s28 + $0x28] sm:$0xff]  ;;  %25386 = vst [vmem:[#allocation181_spill] sm:$0xff] %v23547_v45  ;;  %v23550_v47 = vsel %vm2949_vm5, 1.0, %v25248_v17  ;;  %v23553_v48 = vsel %vm2950_vm6, 1.0, %v25248_v17  ;;  %vm2951_vm7 = vcmp.eq.s32.totalorder %v23500_v15, %v16795_v41  ;;  %v23558_v50 = vadd.s32 56, %v23497_v14 }
 0x39a   : > { %18501 = vmatpush3.msk.msra.mxu1 %vm3127_vm0, %v3236_v4  ;;  %18502 = vmatprep.mubr.msk.f32.mxu1 %vm3102_vm1, %v3086_v5  ;;  %vm2952_vm8 = vcmp.eq.s32.totalorder %v23500_v15, %v16796_v44  ;;  %v16798_v52 = vadd.s32 4294967295, %v23547_v45  ;;  %v23567_v54 = vsel %vm2951_vm7, 1.0, %v25248_v17  ;;  %vm2953_vm9 = vcmp.eq.s32.totalorder %v23500_v15, %v16797_v49  ;;  %s25402_s11 = sld [smem:[#allocation178_spill]] }
 0x39b   : > { %18528 = vmatprep.subr.msk.mxu1 %vm3127_vm0, %v3456_v6  ;;  %18491 = vmatprep.mubr.msk.f32.mxu0 %vm3102_vm1, %v3088_v8  ;;  %25387 = vst [vmem:[#allocation182_spill] sm:$0xff] %v23558_v50  ;;  %v23570_v55 = vsel %vm2952_vm8, 1.0, %v25248_v17  ;;  %v16799_v56 = vadd.s32 4294967295, %v23558_v50  ;;  %v23580_v57 = vsel %vm2953_vm9, 1.0, %v25248_v17  ;;  %v2973_v59 = vadd.s32 1, %v23522_v31  ;;  %s25403_s7 = sld [smem:[#allocation179_spill]] }
 0x39c   : > { %18515 = vmatpush3.msk.msra.mxu0 %vm3127_vm0, %v3346_v12  ;;  %25388 = vst [vmem:[#allocation183_spill] sm:$0xff] %v23570_v55  ;;  %vm2954_vm10 = vcmp.eq.s32.totalorder %v23500_v15, %v16798_v52  ;;  %25389 = vst [vmem:[#allocation184_spill] sm:$0xff] %v23580_v57  ;;  %v2974_v60 = vadd.s32 1, %v23527_v33  ;;  %v2975_v62 = vadd.s32 1, %v23533_v36  ;;  %v2976_v63 = vadd.s32 1, %v23537_v39  ;;  %v4094_v12 = vld [vmem:[#allocation62 + $0x10] sm:$0xff] }
 0x39d   : > { %18503 = vmatmul.mubr.msk.f32.vlgmr.msra.gmra.mxu1 %vm3102_vm1, %v3087_v7  ;;  %18492 = vmatmul.mubr.msk.f32.gmra.mxu0 %vm3102_vm1, %v3089_v9  ;;  %v23583_v58 = vsel %vm2954_vm10, 1.0, %v25248_v17  ;;  %vm2955_vm11 = vcmp.eq.s32.totalorder %v23500_v15, %v16799_v56  ;;  %vm2981_vm12 = vcmp.eq.s32.totalorder %v23500_v15, %v2973_v59  ;;  %v16893_v52 = vld [vmem:[#allocation56] ss:$0 sm:$0xff]  ;;  %vm3856_vm5 = vcmask 64512   ;;  %s25404_s23 = sld [smem:[#allocation176_spill]] }
 0x39e   : > { %18505 = vmatprep.mubr.msk.f32.mxu1 %vm3102_vm1, %v3088_v8  ;;  %18529 = vmatpush3.msk.msra.mxu1 %vm3127_vm0, %v3456_v6  ;;  %25390 = vst [vmem:[#allocation185_spill] sm:$0xff] %v23583_v58  ;;  %v23593_v61 = vsel %vm2955_vm11, 1.0, %v25248_v17  ;;  %vm2982_vm13 = vcmp.eq.s32.totalorder %v23500_v15, %v2974_v60  ;;  %v23604_v0 = vsel %vm2981_vm12, 1.0, %v25248_v17  ;;  %vm2983_vm14 = vcmp.eq.s32.totalorder %v23500_v15, %v2975_v62  ;;  %s25423_s6 = sld [smem:[#allocation175_spill]] }
 0x39f   : > { %18494 = vmatprep.mubr.msk.f32.mxu0 %vm3102_vm1, %v3090_v10  ;;  %25391 = vst [vmem:[#allocation186_spill] sm:$0xff] %v23593_v61  ;;  %v23608_v1 = vsel %vm2982_vm13, 1.0, %v25248_v17  ;;  %vm2984_vm15 = vcmp.eq.s32.totalorder %v23500_v15, %v2976_v63  ;;  %v23620_v4 = vsel %vm2983_vm14, 1.0, %v25248_v17  ;;  %v2979_v6 = vadd.s32 1, %v23558_v50 }
 0x3a0   : > { %vm5012_vm14 = vcmask 261120  }
 0x3a1   : > { %18506 = vmatmul.mubr.msk.f32.gmra.mxu1 %vm3102_vm1, %v3089_v9  ;;  %18495 = vmatmul.mubr.msk.f32.gmra.mxu0 %vm3102_vm1, %v3091_v11  ;;  %vm2987_vm4 = vcmp.eq.s32.totalorder %v23500_v15, %v2979_v6 }
 0x3a2   : > { %18508 = vmatprep.mubr.msk.f32.mxu1 %vm3102_vm1, %v3090_v10  ;;  %18516 = vmatprep.mubr.msk.f32.mxu0 %vm3102_vm1, %v3086_v5 }
 0x3a5   : > { %18509 = vmatmul.mubr.msk.f32.gmra.mxu1 %vm3102_vm1, %v3091_v11  ;;  %18517 = vmatmul.mubr.msk.f32.vlgmr.msra.gmra.mxu0 %vm3102_vm1, %v3087_v7 }
 0x3a6   : > { %18511 = vmatprep.mubr.msk.f32.mxu1 %vm3102_vm1, %v3092_v2  ;;  %18519 = vmatprep.mubr.msk.f32.mxu0 %vm3102_vm1, %v3088_v8 }
 0x3a9   : > { %18512 = vmatmul.mubr.msk.f32.gmra.mxu1 %vm3102_vm1, %v3093_v3  ;;  %18520 = vmatmul.mubr.msk.f32.gmra.mxu0 %vm3102_vm1, %v3089_v9 }
 0x3aa   : > { %18530 = vmatprep.mubr.msk.f32.mxu1 %vm3102_vm1, %v3086_v5  ;;  %18522 = vmatprep.mubr.msk.f32.mxu0 %vm3102_vm1, %v3090_v10  ;;  %v23623_v5 = vsel %vm2984_vm15, 1.0, %v25248_v17  ;;  %vm5220_vm15 = vcmask 130048  }
 0x3ab   : > { %25392 = vst [vmem:[#allocation187_spill] sm:$0xff] %v23623_v5 }
 0x3ad   : > { %18531 = vmatmul.mubr.msk.f32.vlgmr.msra.gmra.mxu1 %vm3102_vm1, %v3087_v7  ;;  %18523 = vmatmul.mubr.msk.f32.gmra.mxu0 %vm3102_vm1, %v3091_v11 }
 0x3ae   : > { %18533 = vmatprep.mubr.msk.f32.mxu1 %vm3102_vm1, %v3088_v8  ;;  %18525 = vmatprep.mubr.msk.f32.mxu0 %vm3102_vm1, %v3092_v2 }
 0x3b1   : > { %18534 = vmatmul.mubr.msk.f32.gmra.mxu1 %vm3102_vm1, %v3089_v9  ;;  %18526 = vmatmul.mubr.msk.f32.gmra.mxu0 %vm3102_vm1, %v3093_v3  ;;  %v23644_v9 = vsel %vm2987_vm4, 1.0, %v25248_v17  ;;  %vm8217_vm4 = vcmask 31744  }
 0x3b2   : > { %18536 = vmatprep.mubr.msk.f32.mxu1 %vm3102_vm1, %v3090_v10  ;;  %18558 = vmatprep.mubr.msk.f32.mxu0 %vm3565_vm3, %v23506_v18  ;;  %25395 = vst [vmem:[#allocation190_spill] sm:$0xff] %v23644_v9  ;;  %v3855_v10 = vld [vmem:[#allocation62] sm:$0xff] }
 0x3b5   : > { %18537 = vmatmul.mubr.msk.f32.gmra.mxu1 %vm3102_vm1, %v3091_v11  ;;  %v3987_v11 = vld [vmem:[#allocation62 + $0x8] sm:$0xff] }
 0x3b6   : > { %18539 = vmatprep.mubr.msk.f32.mxu1 %vm3102_vm1, %v3092_v2  ;;  %v2977_v2 = vadd.s32 1, %v23542_v42 }
 0x3b8   : > { %vm2985_vm0 = vcmp.eq.s32.totalorder %v23500_v15, %v2977_v2 }
 0x3b9   : > { %18540 = vmatmul.mubr.msk.f32.gmra.mxu1 %vm3102_vm1, %v3093_v3  ;;  %v2978_v3 = vadd.s32 1, %v23547_v45  ;;  %v23633_v7 = vsel %vm2985_vm0, 1.0, %v25248_v17  ;;  %vm22552_vm0 = vmmov 0  }
 0x3ba   : > { %18586 = vmatprep.mubr.msk.f32.mxu1 %vm3565_vm3, %v23513_v20  ;;  %25393 = vst [vmem:[#allocation188_spill] sm:$0xff] %v23633_v7 }
 0x3bb   : > { %vm2986_vm2 = vcmp.eq.s32.totalorder %v23500_v15, %v2978_v3 }
 0x3bc   : > { %v23636_v8 = vsel %vm2986_vm2, 1.0, %v25248_v17  ;;  %vm8220_vm2 = vcmask 1043456  }
 0x3bd   : > { %25394 = vst [vmem:[#allocation189_spill] sm:$0xff] %v23636_v8 }
 0x459   : > { %v23517_v21 = vpop.f32.mrf.mxu1  ;;  %v23648_v13 = vpop.f32.mrf.mxu0 }
 0x45b   : > { %v23519_v22 = vpop.f32.mrf.mxu1  ;;  %v23650_v16 = vpop.f32.mrf.mxu0 }
 0x45d   : > { %v18504_v23 = vpop.f32.mrf.mxu1  ;;  %v23652_v19 = vpop.f32.mrf.mxu0 }
 0x45f   : > { %v3306_v24 = vpop.f32.mrf.mxu1 }
 0x461   : > { %v18507_v25 = vpop.f32.mrf.mxu1 }
 0x463   : > { %v3316_v26 = vpop.f32.mrf.mxu1 }
 0x465   : > { %v18510_v27 = vpop.f32.mrf.mxu1 }
 0x467   : > { %v3326_v28 = vpop.f32.mrf.mxu1 }
 0x469   : > { %v18513_v29 = vpop.f32.mrf.mxu1 }
 0x46a   : > { %18542 = vmatprep.subr.mxu0 %v18513_v29 }
 0x46b   : > { %v3336_v30 = vpop.f32.mrf.mxu1  ;;  %18543 = vmatpush3.msra.mxu0 %v18513_v29 }
 0x46c   : > { %18544 = vmatprep.subr.mxu0 %v3336_v30 }
 0x46d   : > { %v23524_v32 = vpop.f32.mrf.mxu1  ;;  %18545 = vmatpush3.msra.mxu0 %v3336_v30 }
 0x46e   : > { %18546 = vmatprep.subr.mxu0 %v18510_v27 }
 0x46f   : > { %v23529_v34 = vpop.f32.mrf.mxu1  ;;  %18547 = vmatpush3.msra.mxu0 %v18510_v27 }
 0x470   : > { %18548 = vmatprep.subr.mxu0 %v3326_v28 }
 0x471   : > { %v18535_v37 = vpop.f32.mrf.mxu1  ;;  %18549 = vmatpush3.msra.mxu0 %v3326_v28 }
 0x472   : > { %18550 = vmatprep.subr.mxu0 %v18507_v25 }
 0x473   : > { %v3536_v40 = vpop.f32.mrf.mxu1  ;;  %18551 = vmatpush3.msra.mxu0 %v18507_v25 }
 0x474   : > { %18552 = vmatprep.subr.mxu0 %v3316_v26 }
 0x475   : > { %v18538_v43 = vpop.f32.mrf.mxu1  ;;  %18553 = vmatpush3.msra.mxu0 %v3316_v26 }
 0x476   : > { %18554 = vmatprep.subr.mxu0 %v18504_v23 }
 0x477   : > { %v3546_v46 = vpop.f32.mrf.mxu1  ;;  %18555 = vmatpush3.msra.mxu0 %v18504_v23  ;;  %v23654_v23 = vpop.f32.mrf.mxu0 }
 0x478   : > { %18556 = vmatprep.subr.mxu0 %v3306_v24 }
 0x479   : > { %v18541_v51 = vpop.f32.mrf.mxu1  ;;  %18557 = vmatpush3.msra.mxu0 %v3306_v24  ;;  %v23656_v24 = vpop.f32.mrf.mxu0 }
 0x47a   : > { %18559 = vmatmul.mubr.msk.f32.vlgmr.msra.gmra.mxu0 %vm3565_vm3, %v23550_v47  ;;  %18570 = vmatprep.subr.mxu1 %v18541_v51 }
 0x47b   : > { %v3556_v53 = vpop.f32.mrf.mxu1  ;;  %18571 = vmatpush3.msra.mxu1 %v18541_v51  ;;  %18561 = vmatprep.mubr.msk.f32.mxu0 %vm3565_vm3, %v23553_v48  ;;  %v23658_v25 = vpop.f32.mrf.mxu0 }
 0x47c   : > { %18572 = vmatprep.subr.mxu1 %v3556_v53  ;;  %18598 = vmatprep.subr.mxu0 %v3855_v10 }
 0x47d   : > { %18573 = vmatpush3.msra.mxu1 %v3556_v53  ;;  %18599 = vmatpush3.msra.mxu0 %v3855_v10  ;;  %v18518_v26 = vpop.f32.mrf.mxu0 }
 0x47e   : > { %18562 = vmatmul.mubr.msk.f32.gmra.mxu0 %vm3565_vm3, %v23567_v54  ;;  %18574 = vmatprep.subr.mxu1 %v18538_v43 }
 0x47f   : > { %18575 = vmatpush3.msra.mxu1 %v18538_v43  ;;  %18564 = vmatprep.mubr.msk.f32.mxu0 %vm3565_vm3, %v23570_v55  ;;  %v3416_v27 = vpop.f32.mrf.mxu0 }
 0x480   : > { %18576 = vmatprep.subr.mxu1 %v3546_v46  ;;  %18626 = vmatprep.subr.mxu0 %v4094_v12 }
 0x481   : > { %18577 = vmatpush3.msra.mxu1 %v3546_v46  ;;  %v18521_v28 = vpop.f32.mrf.mxu0 }
 0x482   : > { %18565 = vmatmul.mubr.msk.f32.gmra.mxu0 %vm3565_vm3, %v23580_v57  ;;  %18578 = vmatprep.subr.mxu1 %v18535_v37 }
 0x483   : > { %18579 = vmatpush3.msra.mxu1 %v18535_v37  ;;  %18567 = vmatprep.mubr.msk.f32.mxu0 %vm3565_vm3, %v23583_v58  ;;  %v3426_v29 = vpop.f32.mrf.mxu0 }
 0x484   : > { %18580 = vmatprep.subr.mxu1 %v3536_v40 }
 0x485   : > { %18581 = vmatpush3.msra.mxu1 %v3536_v40  ;;  %v18524_v30 = vpop.f32.mrf.mxu0 }
 0x486   : > { %18568 = vmatmul.mubr.msk.f32.gmra.mxu0 %vm3565_vm3, %v23593_v61  ;;  %18582 = vmatprep.subr.mxu1 %v23524_v32 }
 0x487   : > { %18583 = vmatpush3.msra.mxu1 %v23524_v32  ;;  %v3436_v32 = vpop.f32.mrf.mxu0 }
 0x488   : > { %18584 = vmatprep.subr.mxu1 %v23529_v34 }
 0x489   : > { %18585 = vmatpush3.msra.mxu1 %v23529_v34  ;;  %v18527_v34 = vpop.f32.mrf.mxu0 }
 0x48a   : > { %18587 = vmatmul.mubr.msk.f32.vlgmr.msra.gmra.mxu1 %vm3565_vm3, %v23604_v0  ;;  %18612 = vmatprep.subr.mxu1 %v3987_v11 }
 0x48b   : > { %18589 = vmatprep.mubr.msk.f32.mxu1 %vm3565_vm3, %v23608_v1  ;;  %18613 = vmatpush3.msra.mxu1 %v3987_v11  ;;  %v3446_v35 = vpop.f32.mrf.mxu0 }
 0x48e   : > { %18590 = vmatmul.mubr.msk.f32.gmra.mxu1 %vm3565_vm3, %v23620_v4 }
 0x48f   : > { %18592 = vmatprep.mubr.msk.f32.mxu1 %vm3565_vm3, %v23623_v5 }
 0x492   : > { %18593 = vmatmul.mubr.msk.f32.gmra.mxu1 %vm3565_vm3, %v23633_v7 }
 0x493   : > { %18595 = vmatprep.mubr.msk.f32.mxu1 %vm3565_vm3, %v23636_v8 }
 0x496   : > { %18596 = vmatmul.mubr.msk.f32.gmra.mxu1 %vm3565_vm3, %v23644_v9 }
 0x53a   : > { %v18560_v37 = vpop.f32.mrf.mxu0 }
 0x53b   : > { %v3662_v44 = vadd.f32 %v18560_v37, %v18518_v26 }
 0x53c   : > { %v3656_v38 = vpop.f32.mrf.mxu0 }
 0x53d   : > { %v3657_v49 = vadd.f32 %v3656_v38, %v3416_v27 }
 0x53e   : > { %v18563_v40 = vpop.f32.mrf.mxu0 }
 0x53f   : > { %v3672_v59 = vadd.f32 %v18563_v40, %v18521_v28 }
 0x540   : > { %v3666_v41 = vpop.f32.mrf.mxu0 }
 0x541   : > { %v3667_v2 = vadd.f32 %v3666_v41, %v3426_v29 }
 0x542   : > { %v18566_v43 = vpop.f32.mrf.mxu0 }
 0x543   : > { %v3682_v17 = vadd.f32 %v18566_v43, %v18524_v30 }
 0x544   : > { %v3676_v53 = vpop.f32.mrf.mxu0 }
 0x545   : > { %v3677_v38 = vadd.f32 %v3676_v53, %v3436_v32 }
 0x546   : > { %v18569_v10 = vpop.f32.mrf.mxu0 }
 0x547   : > { %v3692_v40 = vadd.f32 %v18569_v10, %v18527_v34 }
 0x548   : > { %v3686_v28 = vpop.f32.mrf.mxu0 }
 0x549   : > { %v3687_v32 = vadd.f32 %v3686_v28, %v3446_v35 }
 0x54a   : > { %v18588_v46 = vpop.f32.mrf.mxu1 }
 0x54b   : > { %v3825_v51 = vadd.f32 %v18588_v46, %v3662_v44 }
 0x54c   : > { %v3785_v56 = vpop.f32.mrf.mxu1 }
 0x54d   : > { %v3824_v60 = vadd.f32 %v3785_v56, %v3657_v49  ;;  %v3840_v62 = vadd.f32 %v16893_v52, %v3825_v51 }
 0x54e   : > { %v18591_v63 = vpop.f32.mrf.mxu1 }
 0x54f   : > { %v3839_v3 = vadd.f32 %v16893_v52, %v3824_v60  ;;  %v3827_v6 = vadd.f32 %v18591_v63, %v3672_v59  ;;  %v3848_v26 = vmax.f32 %v3840_v62, 0.0 }
 0x550   : > { %v3795_v11 = vpop.f32.mrf.mxu1 }
 0x551   : > { %v3847_v50 = vmax.f32 %v3839_v3, 0.0  ;;  %v3826_v45 = vadd.f32 %v3795_v11, %v3667_v2  ;;  %v3842_v37 = vadd.f32 %v16893_v52, %v3827_v6 }
 0x552   : > { %v18594_v27 = vpop.f32.mrf.mxu1 }
 0x553   : > { %v3841_v44 = vadd.f32 %v16893_v52, %v3826_v45  ;;  %v3829_v46 = vadd.f32 %v18594_v27, %v3682_v17  ;;  %18600 = vmatprep.mubr.msk.f32.mxu0 %vm3856_vm5, %v3847_v50  ;;  %18614 = vmatprep.mubr.msk.f32.mxu1 %vm3856_vm5, %v3847_v50  ;;  %v3850_v43 = vmax.f32 %v3842_v37, 0.0 }
 0x554   : > { %v3805_v29 = vpop.f32.mrf.mxu1  ;;  %18601 = vmatmul.mubr.msk.f32.vlgmr.msra.gmra.mxu0 %vm3856_vm5, %v3848_v26  ;;  %18615 = vmatmul.mubr.msk.f32.vlgmr.msra.gmra.mxu1 %vm3856_vm5, %v3848_v26 }
 0x555   : > { %v3849_v30 = vmax.f32 %v3841_v44, 0.0  ;;  %v3828_v41 = vadd.f32 %v3805_v29, %v3677_v38  ;;  %18627 = vmatpush3.msra.mxu0 %v4094_v12  ;;  %v3844_v49 = vadd.f32 %v16893_v52, %v3829_v46 }
 0x556   : > { %v18597_v51 = vpop.f32.mrf.mxu1 }
 0x557   : > { %v3843_v45 = vadd.f32 %v16893_v52, %v3828_v41  ;;  %v3831_v17 = vadd.f32 %v18597_v51, %v3692_v40  ;;  %18603 = vmatprep.mubr.msk.f32.mxu0 %vm3856_vm5, %v3849_v30  ;;  %18617 = vmatprep.mubr.msk.f32.mxu1 %vm3856_vm5, %v3849_v30  ;;  %v3852_v59 = vmax.f32 %v3844_v49, 0.0  ;;  %v3004_v40 = vmul.u32 2, %v23497_v14 }
 0x558   : > { %v3815_v53 = vpop.f32.mrf.mxu1  ;;  %18604 = vmatmul.mubr.msk.f32.gmra.mxu0 %vm3856_vm5, %v3850_v43  ;;  %18618 = vmatmul.mubr.msk.f32.gmra.mxu1 %vm3856_vm5, %v3850_v43  ;;  %v25396_v41 = vmov 0.0  }
 0x559   : > { %v3851_v56 = vmax.f32 %v3843_v45, 0.0  ;;  %v3830_v34 = vadd.f32 %v3815_v53, %v3687_v32  ;;  %v3846_v60 = vadd.f32 %v16893_v52, %v3831_v17  ;;  %vm3008_vm6 = vcmp.eq.s32.totalorder %v23500_v15, %v3004_v40 }
 0x55b   : > { %v3845_v12 = vadd.f32 %v16893_v52, %v3830_v34  ;;  %18606 = vmatprep.mubr.msk.f32.mxu0 %vm3856_vm5, %v3851_v56  ;;  %18620 = vmatprep.mubr.msk.f32.mxu1 %vm3856_vm5, %v3851_v56  ;;  %v3854_v62 = vmax.f32 %v3846_v60, 0.0 }
 0x55c   : > { %18607 = vmatmul.mubr.msk.f32.gmra.mxu0 %vm3856_vm5, %v3852_v59  ;;  %18621 = vmatmul.mubr.msk.f32.gmra.mxu1 %vm3856_vm5, %v3852_v59 }
 0x55d   : > { %v3853_v35 = vmax.f32 %v3845_v12, 0.0 }
 0x55f   : > { %18609 = vmatprep.mubr.msk.f32.mxu0 %vm3856_vm5, %v3853_v35  ;;  %18623 = vmatprep.mubr.msk.f32.mxu1 %vm3856_vm5, %v3853_v35 }
 0x560   : > { %18610 = vmatmul.mubr.msk.f32.gmra.mxu0 %vm3856_vm5, %v3854_v62  ;;  %18624 = vmatmul.mubr.msk.f32.gmra.mxu1 %vm3856_vm5, %v3854_v62 }
 0x561   : > { %18628 = vmatprep.mubr.msk.f32.mxu0 %vm3856_vm5, %v3847_v50  ;;  %18656 = vmatprep.mubr.msk.f32.mxu1 %vm3565_vm3, %v23506_v18 }
 0x564   : > { %18629 = vmatmul.mubr.msk.f32.vlgmr.msra.gmra.mxu0 %vm3856_vm5, %v3848_v26 }
 0x565   : > { %18631 = vmatprep.mubr.msk.f32.mxu0 %vm3856_vm5, %v3849_v30  ;;  %v3020_v30 = vadd.s32 1, %v3004_v40 }
 0x567   : > { %vm3024_vm7 = vcmp.eq.s32.totalorder %v23500_v15, %v3020_v30 }
 0x568   : > { %18632 = vmatmul.mubr.msk.f32.gmra.mxu0 %vm3856_vm5, %v3850_v43  ;;  %v23720_v43 = vsel %vm3008_vm6, 1.0, %v25396_v41  ;;  %v23723_v49 = vsel %vm3024_vm7, 1.0, %v25396_v41 }
 0x569   : > { %18634 = vmatprep.mubr.msk.f32.mxu0 %vm3856_vm5, %v3851_v56 }
 0x56c   : > { %18635 = vmatmul.mubr.msk.f32.gmra.mxu0 %vm3856_vm5, %v3852_v59 }
 0x56d   : > { %18637 = vmatprep.mubr.msk.f32.mxu0 %vm3856_vm5, %v3853_v35 }
 0x570   : > { %18638 = vmatmul.mubr.msk.f32.gmra.mxu0 %vm3856_vm5, %v3854_v62 }
 0x571   : > { %18684 = vmatprep.mubr.msk.f32.mxu0 %vm3565_vm3, %v23513_v20 }
 0x614   : > { %v18602_v50 = vpop.f32.mrf.mxu0  ;;  %v18616_v51 = vpop.f32.mrf.mxu1 }
 0x616   : > { %v3947_v52 = vpop.f32.mrf.mxu0  ;;  %v4054_v32 = vpop.f32.mrf.mxu1 }
 0x618   : > { %v18605_v63 = vpop.f32.mrf.mxu0  ;;  %v18619_v45 = vpop.f32.mrf.mxu1 }
 0x61a   : > { %v3957_v2 = vpop.f32.mrf.mxu0  ;;  %v4064_v17 = vpop.f32.mrf.mxu1 }
 0x61c   : > { %v18608_v3 = vpop.f32.mrf.mxu0  ;;  %v18622_v53 = vpop.f32.mrf.mxu1 }
 0x61e   : > { %v3967_v6 = vpop.f32.mrf.mxu0  ;;  %v4074_v56 = vpop.f32.mrf.mxu1 }
 0x620   : > { %v18611_v10 = vpop.f32.mrf.mxu0  ;;  %v18625_v34 = vpop.f32.mrf.mxu1 }
 0x621   : > { %18640 = vmatprep.subr.mxu1 %v18611_v10 }
 0x622   : > { %v3977_v11 = vpop.f32.mrf.mxu0  ;;  %18641 = vmatpush3.msra.mxu1 %v18611_v10  ;;  %v4084_v59 = vpop.f32.mrf.mxu1 }
 0x623   : > { %18642 = vmatprep.subr.mxu1 %v3977_v11 }
 0x624   : > { %v18630_v26 = vpop.f32.mrf.mxu0  ;;  %18643 = vmatpush3.msra.mxu1 %v3977_v11 }
 0x625   : > { %18644 = vmatprep.subr.mxu1 %v18608_v3 }
 0x626   : > { %v4161_v37 = vpop.f32.mrf.mxu0  ;;  %18645 = vmatpush3.msra.mxu1 %v18608_v3 }
 0x627   : > { %18646 = vmatprep.subr.mxu1 %v3967_v6 }
 0x628   : > { %v18633_v27 = vpop.f32.mrf.mxu0  ;;  %18647 = vmatpush3.msra.mxu1 %v3967_v6 }
 0x629   : > { %18648 = vmatprep.subr.mxu1 %v18605_v63 }
 0x62a   : > { %v4171_v38 = vpop.f32.mrf.mxu0  ;;  %18649 = vmatpush3.msra.mxu1 %v18605_v63 }
 0x62b   : > { %18650 = vmatprep.subr.mxu1 %v3957_v2 }
 0x62c   : > { %v18636_v44 = vpop.f32.mrf.mxu0  ;;  %18651 = vmatpush3.msra.mxu1 %v3957_v2 }
 0x62d   : > { %18652 = vmatprep.subr.mxu1 %v18602_v50 }
 0x62e   : > { %v4181_v46 = vpop.f32.mrf.mxu0  ;;  %18653 = vmatpush3.msra.mxu1 %v18602_v50 }
 0x62f   : > { %18654 = vmatprep.subr.mxu1 %v3947_v52 }
 0x630   : > { %v18639_v28 = vpop.f32.mrf.mxu0  ;;  %18655 = vmatpush3.msra.mxu1 %v3947_v52 }
 0x631   : > { %18657 = vmatmul.mubr.msk.f32.vlgmr.msra.gmra.mxu1 %vm3565_vm3, %v23550_v47  ;;  %18668 = vmatprep.subr.mxu0 %v18639_v28 }
 0x632   : > { %v4191_v29 = vpop.f32.mrf.mxu0  ;;  %18669 = vmatpush3.msra.mxu0 %v18639_v28  ;;  %18659 = vmatprep.mubr.msk.f32.mxu1 %vm3565_vm3, %v23553_v48 }
 0x633   : > { %18670 = vmatprep.subr.mxu0 %v4191_v29 }
 0x634   : > { %18671 = vmatpush3.msra.mxu0 %v4191_v29 }
 0x635   : > { %18660 = vmatmul.mubr.msk.f32.gmra.mxu1 %vm3565_vm3, %v23567_v54  ;;  %18672 = vmatprep.subr.mxu0 %v18636_v44 }
 0x636   : > { %18673 = vmatpush3.msra.mxu0 %v18636_v44  ;;  %18662 = vmatprep.mubr.msk.f32.mxu1 %vm3565_vm3, %v23570_v55 }
 0x637   : > { %18674 = vmatprep.subr.mxu0 %v4181_v46 }
 0x638   : > { %18675 = vmatpush3.msra.mxu0 %v4181_v46 }
 0x639   : > { %18663 = vmatmul.mubr.msk.f32.gmra.mxu1 %vm3565_vm3, %v23580_v57  ;;  %18676 = vmatprep.subr.mxu0 %v18633_v27 }
 0x63a   : > { %18677 = vmatpush3.msra.mxu0 %v18633_v27  ;;  %18665 = vmatprep.mubr.msk.f32.mxu1 %vm3565_vm3, %v23583_v58 }
 0x63b   : > { %18678 = vmatprep.subr.mxu0 %v4171_v38 }
 0x63c   : > { %18679 = vmatpush3.msra.mxu0 %v4171_v38  ;;  %v16840_v38 = vld [vmem:[#allocation59] ss:$0 sm:$0xff] }
 0x63d   : > { %18666 = vmatmul.mubr.msk.f32.gmra.mxu1 %vm3565_vm3, %v23593_v61  ;;  %18680 = vmatprep.subr.mxu0 %v18630_v26  ;;  %v16934_v61 = vld [vmem:[#allocation58] ss:$0 sm:$0xff] }
 0x63e   : > { %18681 = vmatpush3.msra.mxu0 %v18630_v26  ;;  %18712 = vmatprep.mubr.msk.f32.mxu1 %vm3565_vm3, %v23720_v43 }
 0x63f   : > { %18682 = vmatprep.subr.mxu0 %v4161_v37 }
 0x640   : > { %18683 = vmatpush3.msra.mxu0 %v4161_v37 }
 0x641   : > { %18685 = vmatmul.mubr.msk.f32.vlgmr.msra.gmra.mxu0 %vm3565_vm3, %v23604_v0 }
 0x642   : > { %18687 = vmatprep.mubr.msk.f32.mxu0 %vm3565_vm3, %v23608_v1 }
 0x645   : > { %18688 = vmatmul.mubr.msk.f32.gmra.mxu0 %vm3565_vm3, %v23620_v4 }
 0x646   : > { %18690 = vmatprep.mubr.msk.f32.mxu0 %vm3565_vm3, %v23623_v5 }
 0x649   : > { %18691 = vmatmul.mubr.msk.f32.gmra.mxu0 %vm3565_vm3, %v23633_v7  ;;  %v3233_v7 = vadd.f32 %v23517_v21, %v16840_v38 }
 0x64a   : > { %18693 = vmatprep.mubr.msk.f32.mxu0 %vm3565_vm3, %v23636_v8 }
 0x64d   : > { %18694 = vmatmul.mubr.msk.f32.gmra.mxu0 %vm3565_vm3, %v23644_v9 }
 0x64e   : > { %18734 = vmatprep.mubr.msk.f32.mxu0 %vm3565_vm3, %v23723_v49 }
 0x6f1   : > { %v18658_v60 = vpop.f32.mrf.mxu1 }
 0x6f3   : > { %v4266_v12 = vpop.f32.mrf.mxu1 }
 0x6f5   : > { %v18661_v35 = vpop.f32.mrf.mxu1 }
 0x6f6   : > { %v4282_v40 = vadd.f32 %v18661_v35, %v18619_v45  ;;  %v3218_v35 = vadd.f32 %v16840_v38, %v23658_v25 }
 0x6f7   : > { %v4276_v62 = vpop.f32.mrf.mxu1 }
 0x6f8   : > { %v4277_v5 = vadd.f32 %v4276_v62, %v4064_v17 }
 0x6f9   : > { %v18664_v50 = vpop.f32.mrf.mxu1 }
 0x6fa   : > { %v4292_v26 = vadd.f32 %v18664_v50, %v18622_v53  ;;  %v3228_v50 = vadd.f32 %v16840_v38, %v23519_v22 }
 0x6fb   : > { %v4286_v63 = vpop.f32.mrf.mxu1 }
 0x6fc   : > { %v4287_v44 = vadd.f32 %v4286_v63, %v4074_v56  ;;  %v3223_v56 = vadd.f32 %v23656_v24, %v16840_v38 }
 0x6fd   : > { %v18667_v6 = vpop.f32.mrf.mxu1 }
 0x6fe   : > { %v4302_v46 = vadd.f32 %v18667_v6, %v18625_v34  ;;  %v4272_v34 = vadd.f32 %v18658_v60, %v18616_v51 }
 0x6ff   : > { %v4296_v37 = vpop.f32.mrf.mxu1 }
 0x700   : > { %v4297_v30 = vadd.f32 %v4296_v37, %v4084_v59 }
 0x701   : > { %v18686_v52 = vpop.f32.mrf.mxu0 }
 0x702   : > { %v4411_v21 = vadd.f32 %v18686_v52, %v4272_v34 }
 0x703   : > { %v4371_v2 = vpop.f32.mrf.mxu0 }
 0x705   : > { %v18689_v3 = vpop.f32.mrf.mxu0 }
 0x706   : > { %v4413_v57 = vadd.f32 %v18689_v3, %v4282_v40 }
 0x707   : > { %v4381_v10 = vpop.f32.mrf.mxu0 }
 0x708   : > { %v4412_v63 = vadd.f32 %v4381_v10, %v4277_v5  ;;  %v4428_v17 = vadd.f32 %v16934_v61, %v4413_v57 }
 0x709   : > { %v18692_v11 = vpop.f32.mrf.mxu0 }
 0x70a   : > { %v4415_v28 = vadd.f32 %v18692_v11, %v4292_v26  ;;  %v4267_v11 = vadd.f32 %v4266_v12, %v4054_v32  ;;  %v4427_v22 = vadd.f32 %v16934_v61, %v4412_v63  ;;  %v3198_v32 = vadd.f32 %v16840_v38, %v23650_v16 }
 0x70b   : > { %v4391_v27 = vpop.f32.mrf.mxu0 }
 0x70c   : > { %v4414_v9 = vadd.f32 %v4391_v27, %v4287_v44  ;;  %v4430_v55 = vadd.f32 %v16934_v61, %v4415_v28 }
 0x70d   : > { %v18695_v29 = vpop.f32.mrf.mxu0 }
 0x70e   : > { %v4417_v8 = vadd.f32 %v18695_v29, %v4302_v46  ;;  %v4429_v6 = vadd.f32 %v16934_v61, %v4414_v9  ;;  %v4438_v62 = vadd.f32 %v4430_v55, %v3223_v56  ;;  %v4426_v55 = vadd.f32 %v16934_v61, %v4411_v21  ;;  %v4752_v56 = vld [vmem:[#allocation70] sm:$0xff] }
 0x70f   : > { %v4401_v58 = vpop.f32.mrf.mxu0  ;;  %v3006_v9 = vmul.u32 2, %v23527_v33 }
 0x710   : > { %v4432_v42 = vadd.f32 %v16934_v61, %v4417_v8  ;;  %v4416_v53 = vadd.f32 %v4401_v58, %v4297_v30  ;;  %v3213_v58 = vadd.f32 %v23652_v19, %v16840_v38  ;;  %v4410_v8 = vadd.f32 %v4371_v2, %v4267_v11 }
 0x711   : > { %v4437_v37 = vadd.f32 %v4429_v6, %v3218_v35  ;;  %v23743_v5 = vmax.f32 %v4438_v62, 0.0  ;;  %v3203_v19 = vadd.f32 %v23648_v13, %v16840_v38  ;;  %v3007_v13 = vmul.u32 2, %v23533_v36 }
 0x712   : > { %v4440_v45 = vadd.f32 %v4432_v42, %v3233_v7  ;;  %v4431_v59 = vadd.f32 %v16934_v61, %v4416_v53  ;;  %v3208_v42 = vadd.f32 %v16840_v38, %v23654_v23  ;;  %v4436_v57 = vadd.f32 %v4428_v17, %v3213_v58  ;;  %v4647_v53 = vld [vmem:[#allocation73] sm:$0xff]  ;;  %v4926_v17 = vld [vmem:[#allocation70 + $0x10] sm:$0xff] }
 0x713   : > { %v3005_v7 = vmul.u32 2, %v23522_v31  ;;  %v4425_v23 = vadd.f32 %v16934_v61, %v4410_v8  ;;  %v23752_v51 = vmax.f32 %v4437_v37, 0.0  ;;  %v4434_v60 = vadd.f32 %v4426_v55, %v3203_v19 }
 0x714   : > { %v23733_v26 = vmax.f32 %v4440_v45, 0.0  ;;  %v4439_v3 = vadd.f32 %v4431_v59, %v3228_v50  ;;  %v4435_v25 = vadd.f32 %v4427_v22, %v3208_v42  ;;  %v23759_v12 = vmax.f32 %v4436_v57, 0.0  ;;  %v4839_v50 = vld [vmem:[#allocation70 + $0x8] sm:$0xff] }
 0x715   : > { %v3021_v61 = vadd.s32 1, %v3005_v7  ;;  %v3022_v52 = vadd.s32 1, %v3006_v9  ;;  %v4433_v16 = vadd.f32 %v4425_v23, %v3198_v32  ;;  %v23772_v10 = vmax.f32 %v4434_v60, 0.0 }
 0x716   : > { %25397 = vst [vmem:[#allocation191_spill] sm:$0xff] %v23733_v26  ;;  %v23736_v24 = vmax.f32 %v4439_v3, 0.0  ;;  %18696 = vmatprep.subr.mxu1 %v23733_v26  ;;  %18718 = vmatprep.subr.mxu0 %v23733_v26  ;;  %v23766_v2 = vmax.f32 %v4435_v25, 0.0  ;;  %vm3009_vm8 = vcmp.eq.s32.totalorder %v23500_v15, %v3005_v7  ;;  %v3023_v27 = vadd.s32 1, %v3007_v13 }
 0x717   : > { %18697 = vmatpush3.msra.mxu1 %v23733_v26  ;;  %18719 = vmatpush3.msra.mxu0 %v23733_v26  ;;  %vm3025_vm9 = vcmp.eq.s32.totalorder %v23500_v15, %v3021_v61  ;;  %vm3010_vm10 = vcmp.eq.s32.totalorder %v23500_v15, %v3006_v9  ;;  %vm3026_vm11 = vcmp.eq.s32.totalorder %v23500_v15, %v3022_v52  ;;  %v23782_v38 = vmax.f32 %v4433_v16, 0.0  ;;  %v5219_v61 = vld [vmem:[#allocation71 + $0x8] sm:$0xff]  ;;  %v5218_v52 = vld [vmem:[#allocation71] sm:$0xff]  ;;  %v5319_v16 = vld [vmem:[#allocation71 + $0x10] sm:$0xff] }
 0x718   : > { %18698 = vmatprep.subr.mxu1 %v23736_v24  ;;  %18720 = vmatprep.subr.mxu0 %v23736_v24  ;;  %v23789_v44 = vsel %vm3009_vm8, 1.0, %v25396_v41  ;;  %v23792_v46 = vsel %vm3025_vm9, 1.0, %v25396_v41  ;;  %v16818_v28 = vsel %vm3010_vm10, 1.0, %v25396_v41  ;;  %v16822_v29 = vsel %vm3026_vm11, 1.0, %v25396_v41 }
 0x719   : > { %18699 = vmatpush3.msra.mxu1 %v23736_v24  ;;  %18721 = vmatpush3.msra.mxu0 %v23736_v24  ;;  %vm3011_vm12 = vcmp.eq.s32.totalorder %v23500_v15, %v3007_v13  ;;  %vm3027_vm13 = vcmp.eq.s32.totalorder %v23500_v15, %v3023_v27  ;;  %v5320_v13 = vld [vmem:[#allocation71 + $0x18] sm:$0xff]  ;;  %v5408_v27 = vld [vmem:[#allocation71 + $0x28] sm:$0xff] }
 0x71a   : > { %18700 = vmatprep.subr.mxu1 %v23743_v5  ;;  %18722 = vmatprep.subr.mxu0 %v23743_v5  ;;  %v16819_v40 = vsel %vm3011_vm12, 1.0, %v25396_v41  ;;  %v16823_v30 = vsel %vm3027_vm13, 1.0, %v25396_v41 }
 0x71b   : > { %18701 = vmatpush3.msra.mxu1 %v23743_v5  ;;  %18723 = vmatpush3.msra.mxu0 %v23743_v5 }
 0x71c   : > { %18702 = vmatprep.subr.mxu1 %v23752_v51  ;;  %18724 = vmatprep.subr.mxu0 %v23752_v51 }
 0x71d   : > { %18703 = vmatpush3.msra.mxu1 %v23752_v51  ;;  %18725 = vmatpush3.msra.mxu0 %v23752_v51 }
 0x71e   : > { %18704 = vmatprep.subr.mxu1 %v23759_v12  ;;  %18726 = vmatprep.subr.mxu0 %v23759_v12 }
 0x71f   : > { %18705 = vmatpush3.msra.mxu1 %v23759_v12  ;;  %18727 = vmatpush3.msra.mxu0 %v23759_v12 }
 0x720   : > { %18706 = vmatprep.subr.mxu1 %v23766_v2  ;;  %18728 = vmatprep.subr.mxu0 %v23766_v2 }
 0x721   : > { %18707 = vmatpush3.msra.mxu1 %v23766_v2  ;;  %18729 = vmatpush3.msra.mxu0 %v23766_v2 }
 0x722   : > { %18708 = vmatprep.subr.mxu1 %v23772_v10  ;;  %18730 = vmatprep.subr.mxu0 %v23772_v10 }
 0x723   : > { %18709 = vmatpush3.msra.mxu1 %v23772_v10  ;;  %18731 = vmatpush3.msra.mxu0 %v23772_v10 }
 0x724   : > { %18710 = vmatprep.subr.mxu1 %v23782_v38  ;;  %18732 = vmatprep.subr.mxu0 %v23782_v38 }
 0x725   : > { %18711 = vmatpush3.msra.mxu1 %v23782_v38  ;;  %18733 = vmatpush3.msra.mxu0 %v23782_v38 }
 0x726   : > { %18713 = vmatmul.mubr.msk.f32.vlgmr.msra.gmra.mxu1 %vm3565_vm3, %v23789_v44  ;;  %18735 = vmatmul.mubr.msk.f32.vlgmr.msra.gmra.mxu0 %vm3565_vm3, %v23792_v46 }
 0x727   : > { %18715 = vmatprep.mubr.msk.f32.mxu1 %vm3565_vm3, %v16818_v28  ;;  %18737 = vmatprep.mubr.msk.f32.mxu0 %vm3565_vm3, %v16822_v29 }
 0x728   : > { %18740 = vmatprep.subr.mxu1 %v4647_v53  ;;  %18756 = vmatprep.subr.mxu0 %v4839_v50 }
 0x729   : > { %18741 = vmatpush3.msra.mxu1 %v4647_v53  ;;  %18757 = vmatpush3.msra.mxu0 %v4839_v50 }
 0x72a   : > { %18716 = vmatmul.mubr.msk.f32.gmra.mxu1 %vm3565_vm3, %v16819_v40  ;;  %18738 = vmatmul.mubr.msk.f32.gmra.mxu0 %vm3565_vm3, %v16823_v30 }
 0x72b   : > { %18748 = vmatprep.subr.mxu1 %v4752_v56 }
 0x7e6   : > { %v18714_v34 = vpop.f32.mrf.mxu1  ;;  %v18736_v63 = vpop.f32.mrf.mxu0 }
 0x7e7   : > { %v4644_v35 = vmax.f32 %v18714_v34, %v18736_v63 }
 0x7e8   : > { %v4527_v6 = vpop.f32.mrf.mxu1  ;;  %v4624_v45 = vpop.f32.mrf.mxu0 }
 0x7e9   : > { %v4643_v59 = vmax.f32 %v4527_v6, %v4624_v45 }
 0x7ea   : > { %v18717_v11 = vpop.f32.mrf.mxu1  ;;  %v18739_v21 = vpop.f32.mrf.mxu0 }
 0x7eb   : > { %18742 = vmatprep.mubr.msk.f32.mxu1 %vm3856_vm5, %v4643_v59  ;;  %18758 = vmatprep.mubr.msk.f32.mxu0 %vm3856_vm5, %v4643_v59  ;;  %v4646_v8 = vmax.f32 %v18717_v11, %v18739_v21 }
 0x7ec   : > { %v4537_v62 = vpop.f32.mrf.mxu1  ;;  %v4634_v3 = vpop.f32.mrf.mxu0  ;;  %18743 = vmatmul.mubr.msk.f32.vlgmr.msra.gmra.mxu1 %vm3856_vm5, %v4644_v35  ;;  %18759 = vmatmul.mubr.msk.f32.vlgmr.msra.gmra.mxu0 %vm3856_vm5, %v4644_v35 }
 0x7ed   : > { %v4645_v58 = vmax.f32 %v4537_v62, %v4634_v3  ;;  %18749 = vmatpush3.msra.mxu1 %v4752_v56 }
 0x7ee   : > { %18764 = vmatprep.subr.mxu1 %v4926_v17 }
 0x7ef   : > { %18745 = vmatprep.mubr.msk.f32.mxu1 %vm3856_vm5, %v4645_v58  ;;  %18761 = vmatprep.mubr.msk.f32.mxu0 %vm3856_vm5, %v4645_v58 }
 0x7f0   : > { %18746 = vmatmul.mubr.msk.f32.gmra.mxu1 %vm3856_vm5, %v4646_v8  ;;  %18762 = vmatmul.mubr.msk.f32.gmra.mxu0 %vm3856_vm5, %v4646_v8 }
 0x7f1   : > { %18750 = vmatprep.mubr.msk.f32.mxu1 %vm3856_vm5, %v4643_v59  ;;  %18780 = vmatprep.mubr.msk.f32.mxu0 %vm5012_vm14, %v23506_v18 }
 0x7f4   : > { %18751 = vmatmul.mubr.msk.f32.vlgmr.msra.gmra.mxu1 %vm3856_vm5, %v4644_v35 }
 0x7f5   : > { %18753 = vmatprep.mubr.msk.f32.mxu1 %vm3856_vm5, %v4645_v58  ;;  %18765 = vmatpush3.msra.mxu1 %v4926_v17 }
 0x7f8   : > { %18754 = vmatmul.mubr.msk.f32.gmra.mxu1 %vm3856_vm5, %v4646_v8 }
 0x7f9   : > { %18766 = vmatprep.mubr.msk.f32.mxu1 %vm3856_vm5, %v4643_v59  ;;  %v16968_v59 = vld [vmem:[#allocation65] ss:$0 sm:$0xff] }
 0x7fc   : > { %18767 = vmatmul.mubr.msk.f32.vlgmr.msra.gmra.mxu1 %vm3856_vm5, %v4644_v35 }
 0x7fd   : > { %18769 = vmatprep.mubr.msk.f32.mxu1 %vm3856_vm5, %v4645_v58 }
 0x800   : > { %18770 = vmatmul.mubr.msk.f32.gmra.mxu1 %vm3856_vm5, %v4646_v8 }
 0x801   : > { %18794 = vmatprep.mubr.msk.f32.mxu1 %vm5012_vm14, %v23513_v20 }
 0x8ac   : > { %v23832_v22 = vpop.f32.mrf.mxu1  ;;  %v18760_v28 = vpop.f32.mrf.mxu0 }
 0x8ae   : > { %v23834_v37 = vpop.f32.mrf.mxu1  ;;  %v4906_v29 = vpop.f32.mrf.mxu0 }
 0x8b0   : > { %v23836_v42 = vpop.f32.mrf.mxu1  ;;  %v18763_v40 = vpop.f32.mrf.mxu0 }
 0x8b2   : > { %v23838_v55 = vpop.f32.mrf.mxu1  ;;  %v4916_v30 = vpop.f32.mrf.mxu0 }
 0x8b4   : > { %v18752_v57 = vpop.f32.mrf.mxu1 }
 0x8b6   : > { %v4819_v7 = vpop.f32.mrf.mxu1 }
 0x8b8   : > { %v18755_v9 = vpop.f32.mrf.mxu1 }
 0x8b9   : > { %18772 = vmatprep.subr.mxu0 %v18755_v9 }
 0x8ba   : > { %v4829_v19 = vpop.f32.mrf.mxu1  ;;  %18773 = vmatpush3.msra.mxu0 %v18755_v9 }
 0x8bb   : > { %18774 = vmatprep.subr.mxu0 %v4829_v19 }
 0x8bc   : > { %v18768_v23 = vpop.f32.mrf.mxu1  ;;  %18775 = vmatpush3.msra.mxu0 %v4829_v19 }
 0x8bd   : > { %18776 = vmatprep.subr.mxu0 %v18752_v57 }
 0x8be   : > { %v4993_v25 = vpop.f32.mrf.mxu1  ;;  %18777 = vmatpush3.msra.mxu0 %v18752_v57 }
 0x8bf   : > { %18778 = vmatprep.subr.mxu0 %v4819_v7 }
 0x8c0   : > { %v18771_v32 = vpop.f32.mrf.mxu1  ;;  %18779 = vmatpush3.msra.mxu0 %v4819_v7 }
 0x8c1   : > { %18781 = vmatmul.mubr.msk.f32.vlgmr.msra.gmra.mxu0 %vm5012_vm14, %v23550_v47  ;;  %18786 = vmatprep.subr.mxu1 %v18771_v32 }
 0x8c2   : > { %v5003_v60 = vpop.f32.mrf.mxu1  ;;  %18787 = vmatpush3.msra.mxu1 %v18771_v32  ;;  %18783 = vmatprep.mubr.msk.f32.mxu0 %vm5012_vm14, %v23553_v48 }
 0x8c3   : > { %18788 = vmatprep.subr.mxu1 %v5003_v60  ;;  %18800 = vmatprep.subr.mxu0 %v5219_v61 }
 0x8c4   : > { %18789 = vmatpush3.msra.mxu1 %v5003_v60  ;;  %18801 = vmatpush3.msra.mxu0 %v5219_v61  ;;  %v5407_v60 = vld [vmem:[#allocation71 + $0x20] sm:$0xff] }
 0x8c5   : > { %18784 = vmatmul.mubr.msk.f32.gmra.mxu0 %vm5012_vm14, %v23567_v54  ;;  %18790 = vmatprep.subr.mxu1 %v18768_v23 }
 0x8c6   : > { %18791 = vmatpush3.msra.mxu1 %v18768_v23  ;;  %18802 = vmatprep.subr.mxu0 %v5218_v52 }
 0x8c7   : > { %18792 = vmatprep.subr.mxu1 %v4993_v25  ;;  %18803 = vmatpush3.msra.mxu0 %v5218_v52 }
 0x8c8   : > { %18793 = vmatpush3.msra.mxu1 %v4993_v25  ;;  %18820 = vmatprep.subr.mxu0 %v5408_v27 }
 0x8c9   : > { %18795 = vmatmul.mubr.msk.f32.vlgmr.msra.gmra.mxu1 %vm5012_vm14, %v23604_v0  ;;  %18810 = vmatprep.subr.mxu1 %v5320_v13 }
 0x8ca   : > { %18797 = vmatprep.mubr.msk.f32.mxu1 %vm5012_vm14, %v23608_v1  ;;  %18811 = vmatpush3.msra.mxu1 %v5320_v13 }
 0x8cb   : > { %18812 = vmatprep.subr.mxu1 %v5319_v16 }
 0x8cc   : > { %18813 = vmatpush3.msra.mxu1 %v5319_v16 }
 0x8cd   : > { %18798 = vmatmul.mubr.msk.f32.gmra.mxu1 %vm5012_vm14, %v23620_v4 }
 0x981   : > { %v18782_v53 = vpop.f32.mrf.mxu0 }
 0x982   : > { %v5093_v34 = vadd.f32 %v18782_v53, %v18760_v28 }
 0x983   : > { %v5087_v50 = vpop.f32.mrf.mxu0 }
 0x984   : > { %v5088_v6 = vadd.f32 %v5087_v50, %v4906_v29 }
 0x985   : > { %v18785_v56 = vpop.f32.mrf.mxu0 }
 0x986   : > { %v5103_v21 = vadd.f32 %v18785_v56, %v18763_v40 }
 0x987   : > { %v5097_v35 = vpop.f32.mrf.mxu0 }
 0x988   : > { %v5098_v58 = vadd.f32 %v5097_v35, %v4916_v30 }
 0x989   : > { %v18796_v63 = vpop.f32.mrf.mxu1 }
 0x98a   : > { %v5200_v45 = vadd.f32 %v18796_v63, %v5093_v34 }
 0x98b   : > { %v5180_v11 = vpop.f32.mrf.mxu1 }
 0x98c   : > { %v5199_v17 = vadd.f32 %v5180_v11, %v5088_v6  ;;  %v5211_v62 = vadd.f32 %v16968_v59, %v5200_v45 }
 0x98d   : > { %v18799_v3 = vpop.f32.mrf.mxu1 }
 0x98e   : > { %v5210_v8 = vadd.f32 %v16968_v59, %v5199_v17  ;;  %v5202_v57 = vadd.f32 %v18799_v3, %v5103_v21  ;;  %v5215_v23 = vmax.f32 %v5211_v62, 0.0 }
 0x98f   : > { %v5190_v7 = vpop.f32.mrf.mxu1 }
 0x990   : > { %v5214_v9 = vmax.f32 %v5210_v8, 0.0  ;;  %v5201_v19 = vadd.f32 %v5190_v7, %v5098_v58  ;;  %v5213_v25 = vadd.f32 %v16968_v59, %v5202_v57  ;;  %v16989_v8 = vld [vmem:[#allocation67] ss:$0 sm:$0xff]  ;;  %v16943_v7 = vld [vmem:[#allocation68] ss:$0 sm:$0xff] }
 0x992   : > { %v5212_v32 = vadd.f32 %v16968_v59, %v5201_v19  ;;  %18804 = vmatprep.mubr.msk.f32.mxu0 %vm5220_vm15, %v5214_v9  ;;  %18814 = vmatprep.mubr.msk.f32.mxu1 %vm5220_vm15, %v5214_v9  ;;  %v5217_v13 = vmax.f32 %v5213_v25, 0.0 }
 0x993   : > { %18805 = vmatmul.mubr.msk.f32.vlgmr.msra.gmra.mxu0 %vm5220_vm15, %v5215_v23  ;;  %18815 = vmatmul.mubr.msk.f32.vlgmr.msra.gmra.mxu1 %vm5220_vm15, %v5215_v23 }
 0x994   : > { %v5216_v61 = vmax.f32 %v5212_v32, 0.0  ;;  %18821 = vmatpush3.msra.mxu0 %v5408_v27  ;;  %v4749_v32 = vadd.f32 %v23836_v42, %v16943_v7  ;;  %v5848_v42 = vld [vmem:[#allocation82 + $0x8] sm:$0xff] }
 0x995   : > { %18822 = vmatprep.subr.mxu0 %v5407_v60 }
 0x996   : > { %18807 = vmatprep.mubr.msk.f32.mxu0 %vm5220_vm15, %v5216_v61  ;;  %18817 = vmatprep.mubr.msk.f32.mxu1 %vm5220_vm15, %v5216_v61 }
 0x997   : > { %18808 = vmatmul.mubr.msk.f32.gmra.mxu0 %vm5220_vm15, %v5217_v13  ;;  %18818 = vmatmul.mubr.msk.f32.gmra.mxu1 %vm5220_vm15, %v5217_v13 }
 0x998   : > { %18824 = vmatprep.mubr.msk.f32.mxu0 %vm5220_vm15, %v5214_v9  ;;  %18823 = vmatpush3.msra.mxu0 %v5407_v60 }
 0x999   : > { %18838 = vmatprep.mubr.msk.f32.mxu1 %vm5012_vm14, %v23506_v18 }
 0x99b   : > { %18825 = vmatmul.mubr.msk.f32.vlgmr.msra.gmra.mxu0 %vm5220_vm15, %v5215_v23 }
 0x99c   : > { %18827 = vmatprep.mubr.msk.f32.mxu0 %vm5220_vm15, %v5216_v61 }
 0x99f   : > { %18828 = vmatmul.mubr.msk.f32.gmra.mxu0 %vm5220_vm15, %v5217_v13 }
 0x9a0   : > { %18852 = vmatprep.mubr.msk.f32.mxu0 %vm5012_vm14, %v23513_v20 }
 0xa53   : > { %v18806_v52 = vpop.f32.mrf.mxu0  ;;  %v18816_v50 = vpop.f32.mrf.mxu1 }
 0xa55   : > { %v5299_v16 = vpop.f32.mrf.mxu0  ;;  %v5387_v56 = vpop.f32.mrf.mxu1 }
 0xa57   : > { %v18809_v27 = vpop.f32.mrf.mxu0  ;;  %v18819_v34 = vpop.f32.mrf.mxu1 }
 0xa58   : > { %18830 = vmatprep.subr.mxu1 %v18809_v27 }
 0xa59   : > { %v5309_v28 = vpop.f32.mrf.mxu0  ;;  %18831 = vmatpush3.msra.mxu1 %v18809_v27  ;;  %v5397_v63 = vpop.f32.mrf.mxu1 }
 0xa5a   : > { %18832 = vmatprep.subr.mxu1 %v5309_v28 }
 0xa5b   : > { %v18826_v29 = vpop.f32.mrf.mxu0  ;;  %18833 = vmatpush3.msra.mxu1 %v5309_v28 }
 0xa5c   : > { %18834 = vmatprep.subr.mxu1 %v18806_v52 }
 0xa5d   : > { %v5475_v40 = vpop.f32.mrf.mxu0  ;;  %18835 = vmatpush3.msra.mxu1 %v18806_v52  ;;  %v4739_v52 = vadd.f32 %v23832_v22, %v16943_v7 }
 0xa5e   : > { %18836 = vmatprep.subr.mxu1 %v5299_v16 }
 0xa5f   : > { %v18829_v30 = vpop.f32.mrf.mxu0  ;;  %18837 = vmatpush3.msra.mxu1 %v5299_v16  ;;  %v4744_v16 = vadd.f32 %v16943_v7, %v23838_v55  ;;  %v6016_v55 = vld [vmem:[#allocation79 + $0x18] sm:$0xff] }
 0xa60   : > { %18839 = vmatmul.mubr.msk.f32.vlgmr.msra.gmra.mxu1 %vm5012_vm14, %v23550_v47  ;;  %18844 = vmatprep.subr.mxu0 %v18829_v30 }
 0xa61   : > { %v5485_v53 = vpop.f32.mrf.mxu0  ;;  %18845 = vmatpush3.msra.mxu0 %v18829_v30  ;;  %18841 = vmatprep.mubr.msk.f32.mxu1 %vm5012_vm14, %v23553_v48 }
 0xa62   : > { %18846 = vmatprep.subr.mxu0 %v5485_v53 }
 0xa63   : > { %18847 = vmatpush3.msra.mxu0 %v5485_v53 }
 0xa64   : > { %18842 = vmatmul.mubr.msk.f32.gmra.mxu1 %vm5012_vm14, %v23567_v54  ;;  %18848 = vmatprep.subr.mxu0 %v18826_v29 }
 0xa65   : > { %18849 = vmatpush3.msra.mxu0 %v18826_v29  ;;  %18866 = vmatprep.mubr.msk.f32.mxu1 %vm5012_vm14, %v23720_v43 }
 0xa66   : > { %18850 = vmatprep.subr.mxu0 %v5475_v40 }
 0xa67   : > { %18851 = vmatpush3.msra.mxu0 %v5475_v40  ;;  %v4734_v40 = vadd.f32 %v16943_v7, %v23834_v37 }
 0xa68   : > { %18853 = vmatmul.mubr.msk.f32.vlgmr.msra.gmra.mxu0 %vm5012_vm14, %v23604_v0 }
 0xa69   : > { %18855 = vmatprep.mubr.msk.f32.mxu0 %vm5012_vm14, %v23608_v1 }
 0xa6c   : > { %18856 = vmatmul.mubr.msk.f32.gmra.mxu0 %vm5012_vm14, %v23620_v4 }
 0xa6d   : > { %18877 = vmatprep.mubr.msk.f32.mxu0 %vm5012_vm14, %v23723_v49 }
 0xb20   : > { %v18840_v6 = vpop.f32.mrf.mxu1 }
 0xb21   : > { %v5566_v11 = vadd.f32 %v18840_v6, %v18816_v50  ;;  %v6015_v6 = vld [vmem:[#allocation79 + $0x10] sm:$0xff] }
 0xb22   : > { %v5560_v45 = vpop.f32.mrf.mxu1 }
 0xb23   : > { %v5561_v62 = vadd.f32 %v5560_v45, %v5387_v56  ;;  %v5938_v45 = vld [vmem:[#allocation79 + $0x8] sm:$0xff] }
 0xb24   : > { %v18843_v59 = vpop.f32.mrf.mxu1 }
 0xb25   : > { %v5576_v3 = vadd.f32 %v18843_v59, %v18819_v34 }
 0xb26   : > { %v5570_v21 = vpop.f32.mrf.mxu1 }
 0xb27   : > { %v5571_v9 = vadd.f32 %v5570_v21, %v5397_v63  ;;  %v5847_v63 = vld [vmem:[#allocation82] sm:$0xff] }
 0xb28   : > { %v18854_v35 = vpop.f32.mrf.mxu0 }
 0xb29   : > { %v5665_v58 = vadd.f32 %v18854_v35, %v5566_v11 }
 0xb2a   : > { %v5645_v17 = vpop.f32.mrf.mxu0 }
 0xb2b   : > { %v5664_v19 = vadd.f32 %v5645_v17, %v5561_v62  ;;  %v5676_v60 = vadd.f32 %v16989_v8, %v5665_v58  ;;  %v5937_v17 = vld [vmem:[#allocation79] sm:$0xff]  ;;  %v6094_v62 = vld [vmem:[#allocation79 + $0x28] sm:$0xff] }
 0xb2c   : > { %v18857_v57 = vpop.f32.mrf.mxu0 }
 0xb2d   : > { %v5667_v23 = vadd.f32 %v18857_v57, %v5576_v3  ;;  %v5675_v27 = vadd.f32 %v16989_v8, %v5664_v19  ;;  %v5680_v30 = vadd.f32 %v5676_v60, %v4739_v52  ;;  %v6093_v3 = vld [vmem:[#allocation79 + $0x20] sm:$0xff]  ;;  %v6341_v52 = vld [vmem:[#allocation80] sm:$0xff] }
 0xb2e   : > { %v5655_v25 = vpop.f32.mrf.mxu0  ;;  %v6429_v60 = vld [vmem:[#allocation80 + $0x30] sm:$0xff] }
 0xb2f   : > { %v5678_v61 = vadd.f32 %v16989_v8, %v5667_v23  ;;  %v5666_v13 = vadd.f32 %v5655_v25, %v5571_v9  ;;  %v5679_v56 = vadd.f32 %v5675_v27, %v4734_v40  ;;  %v23896_v22 = vmax.f32 %v5680_v30, 0.0  ;;  %v6344_v23 = vld [vmem:[#allocation80 + $0x18] sm:$0xff] }
 0xb30   : > { %v6430_v25 = vld [vmem:[#allocation80 + $0x38] sm:$0xff] }
 0xb31   : > { %v5682_v28 = vadd.f32 %v5678_v61, %v4749_v32  ;;  %v5677_v29 = vadd.f32 %v16989_v8, %v5666_v13  ;;  %v23902_v37 = vmax.f32 %v5679_v56, 0.0  ;;  %v6343_v32 = vld [vmem:[#allocation80 + $0x10] sm:$0xff]  ;;  %v6342_v61 = vld [vmem:[#allocation80 + $0x8] sm:$0xff]  ;;  %v6510_v27 = vld [vmem:[#allocation80 + $0x58] sm:$0xff] }
 0xb32   : > { %v6428_v13 = vld [vmem:[#allocation80 + $0x28] sm:$0xff] }
 0xb33   : > { %v23888_v53 = vmax.f32 %v5682_v28, 0.0  ;;  %v5681_v50 = vadd.f32 %v5677_v29, %v4744_v16  ;;  %v6427_v16 = vld [vmem:[#allocation80 + $0x20] sm:$0xff] }
 0xb35   : > { %v23890_v34 = vmax.f32 %v5681_v50, 0.0  ;;  %18858 = vmatprep.subr.mxu1 %v23888_v53  ;;  %18869 = vmatprep.subr.mxu0 %v23888_v53 }
 0xb36   : > { %18859 = vmatpush3.msra.mxu1 %v23888_v53  ;;  %18870 = vmatpush3.msra.mxu0 %v23888_v53 }
 0xb37   : > { %18860 = vmatprep.subr.mxu1 %v23890_v34  ;;  %18871 = vmatprep.subr.mxu0 %v23890_v34 }
 0xb38   : > { %18861 = vmatpush3.msra.mxu1 %v23890_v34  ;;  %18872 = vmatpush3.msra.mxu0 %v23890_v34 }
 0xb39   : > { %18862 = vmatprep.subr.mxu1 %v23896_v22  ;;  %18873 = vmatprep.subr.mxu0 %v23896_v22 }
 0xb3a   : > { %18863 = vmatpush3.msra.mxu1 %v23896_v22  ;;  %18874 = vmatpush3.msra.mxu0 %v23896_v22 }
 0xb3b   : > { %18864 = vmatprep.subr.mxu1 %v23902_v37  ;;  %18875 = vmatprep.subr.mxu0 %v23902_v37 }
 0xb3c   : > { %18865 = vmatpush3.msra.mxu1 %v23902_v37  ;;  %18876 = vmatpush3.msra.mxu0 %v23902_v37 }
 0xb3d   : > { %18867 = vmatmul.mubr.msk.f32.vlgmr.msra.gmra.mxu1 %vm5012_vm14, %v23789_v44  ;;  %18878 = vmatmul.mubr.msk.f32.vlgmr.msra.gmra.mxu0 %vm5012_vm14, %v23792_v46 }
 0xb3e   : > { %18880 = vmatprep.subr.mxu1 %v5848_v42  ;;  %18894 = vmatprep.subr.mxu0 %v6016_v55 }
 0xb3f   : > { %18881 = vmatpush3.msra.mxu1 %v5848_v42  ;;  %18895 = vmatpush3.msra.mxu0 %v6016_v55 }
 0xb40   : > { %18882 = vmatprep.subr.mxu1 %v5847_v63  ;;  %18896 = vmatprep.subr.mxu0 %v6015_v6 }
 0xb41   : > { %18883 = vmatpush3.msra.mxu1 %v5847_v63  ;;  %18897 = vmatpush3.msra.mxu0 %v6015_v6  ;;  %v17007_v63 = vld [vmem:[#allocation74] ss:$0 sm:$0xff] }
 0xb42   : > { %18887 = vmatprep.subr.mxu1 %v5938_v45 }
 0xbfd   : > { %v18868_v59 = vpop.f32.mrf.mxu1  ;;  %v18879_v35 = vpop.f32.mrf.mxu0 }
 0xbfe   : > { %v5846_v46 = vmax.f32 %v18868_v59, %v18879_v35 }
 0xbff   : > { %v5757_v44 = vpop.f32.mrf.mxu1  ;;  %v5836_v11 = vpop.f32.mrf.mxu0 }
 0xc00   : > { %v5845_v21 = vmax.f32 %v5757_v44, %v5836_v11 }
 0xc02   : > { %18884 = vmatprep.mubr.msk.f32.mxu1 %vm5220_vm15, %v5845_v21  ;;  %18898 = vmatprep.mubr.msk.f32.mxu0 %vm5220_vm15, %v5845_v21 }
 0xc03   : > { %18885 = vmatmul.mubr.msk.f32.vlgmr.msra.gmra.mxu1 %vm5220_vm15, %v5846_v46  ;;  %18899 = vmatmul.mubr.msk.f32.vlgmr.msra.gmra.mxu0 %vm5220_vm15, %v5846_v46 }
 0xc04   : > { %18888 = vmatpush3.msra.mxu1 %v5938_v45  ;;  %18891 = vmatprep.mubr.msk.f32.mxu1 %vm5220_vm15, %v5845_v21 }
 0xc05   : > { %18889 = vmatprep.subr.mxu1 %v5937_v17  ;;  %18912 = vmatprep.mubr.msk.f32.mxu0 %vm5220_vm15, %v23506_v18 }
 0xc06   : > { %18890 = vmatpush3.msra.mxu1 %v5937_v17  ;;  %v6507_v17 = vld [vmem:[#allocation80 + $0x40] sm:$0xff] }
 0xc07   : > { %18892 = vmatmul.mubr.msk.f32.vlgmr.msra.gmra.mxu1 %vm5220_vm15, %v5846_v46  ;;  %18901 = vmatprep.subr.mxu1 %v6094_v62 }
 0xc08   : > { %18902 = vmatpush3.msra.mxu1 %v6094_v62  ;;  %18905 = vmatprep.mubr.msk.f32.mxu1 %vm5220_vm15, %v5845_v21  ;;  %v6509_v21 = vld [vmem:[#allocation80 + $0x50] sm:$0xff] }
 0xc09   : > { %18903 = vmatprep.subr.mxu1 %v6093_v3 }
 0xc0a   : > { %18904 = vmatpush3.msra.mxu1 %v6093_v3 }
 0xc0b   : > { %18906 = vmatmul.mubr.msk.f32.vlgmr.msra.gmra.mxu1 %vm5220_vm15, %v5846_v46  ;;  %v6508_v46 = vld [vmem:[#allocation80 + $0x48] sm:$0xff] }
 0xc0c   : > { %18919 = vmatprep.mubr.msk.f32.mxu1 %vm5220_vm15, %v23513_v20 }
 0xcc3   : > { %v23928_v58 = vpop.f32.mrf.mxu1  ;;  %v18900_v28 = vpop.f32.mrf.mxu0 }
 0xcc5   : > { %v23930_v8 = vpop.f32.mrf.mxu1  ;;  %v6083_v29 = vpop.f32.mrf.mxu0 }
 0xcc7   : > { %v18893_v57 = vpop.f32.mrf.mxu1 }
 0xcc8   : > { %18908 = vmatprep.subr.mxu0 %v18893_v57 }
 0xcc9   : > { %v6005_v7 = vpop.f32.mrf.mxu1  ;;  %18909 = vmatpush3.msra.mxu0 %v18893_v57 }
 0xcca   : > { %18910 = vmatprep.subr.mxu0 %v6005_v7 }
 0xccb   : > { %v18907_v9 = vpop.f32.mrf.mxu1  ;;  %18911 = vmatpush3.msra.mxu0 %v6005_v7 }
 0xccc   : > { %18913 = vmatmul.mubr.msk.f32.vlgmr.msra.gmra.mxu0 %vm5220_vm15, %v23550_v47  ;;  %18915 = vmatprep.subr.mxu1 %v18907_v9 }
 0xccd   : > { %v6161_v19 = vpop.f32.mrf.mxu1  ;;  %18916 = vmatpush3.msra.mxu1 %v18907_v9  ;;  %18922 = vmatprep.subr.mxu0 %v6344_v23 }
 0xcce   : > { %18917 = vmatprep.subr.mxu1 %v6161_v19  ;;  %18923 = vmatpush3.msra.mxu0 %v6344_v23 }
 0xccf   : > { %18918 = vmatpush3.msra.mxu1 %v6161_v19  ;;  %18924 = vmatprep.subr.mxu0 %v6343_v32 }
 0xcd0   : > { %18920 = vmatmul.mubr.msk.f32.vlgmr.msra.gmra.mxu1 %vm5220_vm15, %v23604_v0  ;;  %18933 = vmatprep.subr.mxu1 %v6430_v25 }
 0xcd1   : > { %18934 = vmatpush3.msra.mxu1 %v6430_v25  ;;  %18925 = vmatpush3.msra.mxu0 %v6343_v32 }
 0xcd2   : > { %18935 = vmatprep.subr.mxu1 %v6429_v60  ;;  %18926 = vmatprep.subr.mxu0 %v6342_v61 }
 0xcd3   : > { %18936 = vmatpush3.msra.mxu1 %v6429_v60  ;;  %18927 = vmatpush3.msra.mxu0 %v6342_v61  ;;  %v16994_v60 = vld [vmem:[#allocation77] ss:$0 sm:$0xff] }
 0xcd4   : > { %18937 = vmatprep.subr.mxu1 %v6428_v13  ;;  %18928 = vmatprep.subr.mxu0 %v6341_v52 }
 0xcd5   : > { %18938 = vmatpush3.msra.mxu1 %v6428_v13  ;;  %18929 = vmatpush3.msra.mxu0 %v6341_v52  ;;  %v17018_v13 = vld [vmem:[#allocation76] ss:$0 sm:$0xff] }
 0xcd6   : > { %18939 = vmatprep.subr.mxu1 %v6427_v16  ;;  %18944 = vmatprep.subr.mxu0 %v6510_v27 }
 0xcd7   : > { %18940 = vmatpush3.msra.mxu1 %v6427_v16 }
 0xd8c   : > { %v18914_v40 = vpop.f32.mrf.mxu0 }
 0xd8d   : > { %v6246_v50 = vadd.f32 %v18914_v40, %v18900_v28  ;;  %v5934_v28 = vadd.f32 %v23928_v58, %v16994_v60  ;;  %v6899_v58 = vld [vmem:[#allocation89 + $0x18] sm:$0xff] }
 0xd8e   : > { %v6240_v30 = vpop.f32.mrf.mxu0 }
 0xd8f   : > { %v6241_v42 = vadd.f32 %v6240_v30, %v6083_v29  ;;  %v5929_v30 = vadd.f32 %v16994_v60, %v23930_v8  ;;  %v6983_v8 = vld [vmem:[#allocation88 + $0x18] sm:$0xff]  ;;  %v7130_v60 = vld [vmem:[#allocation88 + $0x40] sm:$0xff] }
 0xd90   : > { %v18921_v56 = vpop.f32.mrf.mxu1 }
 0xd91   : > { %v6329_v55 = vadd.f32 %v18921_v56, %v6246_v50 }
 0xd92   : > { %v6319_v6 = vpop.f32.mrf.mxu1 }
 0xd93   : > { %v6328_v45 = vadd.f32 %v6319_v6, %v6241_v42  ;;  %v6338_v59 = vadd.f32 %v17007_v63, %v6329_v55  ;;  %v6898_v6 = vld [vmem:[#allocation89 + $0x10] sm:$0xff] }
 0xd95   : > { %v6337_v35 = vadd.f32 %v17007_v63, %v6328_v45  ;;  %v6340_v11 = vmax.f32 %v6338_v59, 0.0  ;;  %v6982_v45 = vld [vmem:[#allocation88 + $0x10] sm:$0xff]  ;;  %v6897_v59 = vld [vmem:[#allocation89 + $0x8] sm:$0xff] }
 0xd97   : > { %v6339_v44 = vmax.f32 %v6337_v35, 0.0  ;;  %v6981_v35 = vld [vmem:[#allocation88 + $0x8] sm:$0xff] }
 0xd99   : > { %18930 = vmatprep.mubr.msk.f32.mxu0 %vm5012_vm14, %v6339_v44  ;;  %18941 = vmatprep.mubr.msk.f32.mxu1 %vm5012_vm14, %v6339_v44 }
 0xd9a   : > { %18931 = vmatmul.mubr.msk.f32.vlgmr.msra.gmra.mxu0 %vm5012_vm14, %v6340_v11  ;;  %18942 = vmatmul.mubr.msk.f32.vlgmr.msra.gmra.mxu1 %vm5012_vm14, %v6340_v11 }
 0xd9b   : > { %18945 = vmatpush3.msra.mxu0 %v6510_v27  ;;  %18952 = vmatprep.mubr.msk.f32.mxu0 %vm5012_vm14, %v6339_v44  ;;  %v6896_v44 = vld [vmem:[#allocation89] sm:$0xff] }
 0xd9c   : > { %18946 = vmatprep.subr.mxu0 %v6509_v21  ;;  %18959 = vmatprep.mubr.msk.f32.mxu1 %vm5220_vm15, %v23506_v18 }
 0xd9d   : > { %18947 = vmatpush3.msra.mxu0 %v6509_v21 }
 0xd9e   : > { %18948 = vmatprep.subr.mxu0 %v6508_v46 }
 0xd9f   : > { %18949 = vmatpush3.msra.mxu0 %v6508_v46 }
 0xda0   : > { %18950 = vmatprep.subr.mxu0 %v6507_v17 }
 0xda1   : > { %18951 = vmatpush3.msra.mxu0 %v6507_v17 }
 0xda2   : > { %18953 = vmatmul.mubr.msk.f32.vlgmr.msra.gmra.mxu0 %vm5012_vm14, %v6340_v11  ;;  %18969 = vmatprep.subr.mxu0 %v25396_v41  ;;  %v6980_v11 = vld [vmem:[#allocation88] sm:$0xff] }
 0xda3   : > { %18973 = vmatprep.mubr.msk.f32.mxu0 %vm22552_vm0, %v25396_v41 }
 0xe5a   : > { %v18932_v62 = vpop.f32.mrf.mxu0  ;;  %v18943_v9 = vpop.f32.mrf.mxu1 }
 0xe5b   : > { %18955 = vmatprep.subr.mxu1 %v18932_v62 }
 0xe5c   : > { %v6417_v3 = vpop.f32.mrf.mxu0  ;;  %18956 = vmatpush3.msra.mxu1 %v18932_v62  ;;  %v6497_v19 = vpop.f32.mrf.mxu1  ;;  %v7058_v62 = vld [vmem:[#allocation88 + $0x38] sm:$0xff] }
 0xe5d   : > { %18957 = vmatprep.subr.mxu1 %v6417_v3 }
 0xe5e   : > { %18958 = vmatpush3.msra.mxu1 %v6417_v3  ;;  %v7133_v3 = vld [vmem:[#allocation88 + $0x58] sm:$0xff] }
 0xe5f   : > { %18960 = vmatmul.mubr.msk.f32.vlgmr.msra.gmra.mxu1 %vm5220_vm15, %v23550_v47 }
 0xe60   : > { %18966 = vmatprep.mubr.msk.f32.mxu1 %vm5220_vm15, %v23513_v20 }
 0xe62   : > { %v18954_v57 = vpop.f32.mrf.mxu0 }
 0xe63   : > { %18962 = vmatprep.subr.mxu1 %v18954_v57 }
 0xe64   : > { %v6577_v7 = vpop.f32.mrf.mxu0  ;;  %18963 = vmatpush3.msra.mxu1 %v18954_v57 }
 0xe65   : > { %18964 = vmatprep.subr.mxu1 %v6577_v7 }
 0xe66   : > { %18965 = vmatpush3.msra.mxu1 %v6577_v7 }
 0xe67   : > { %18967 = vmatmul.mubr.msk.f32.vlgmr.msra.gmra.mxu1 %vm5220_vm15, %v23604_v0  ;;  %18976 = vmatprep.subr.mxu1 %v25396_v41 }
 0xe68   : > { %18980 = vmatprep.mubr.msk.f32.mxu1 %vm22552_vm0, %v25396_v41 }
 0xf1f   : > { %v18961_v23 = vpop.f32.mrf.mxu1 }
 0xf20   : > { %v6658_v32 = vadd.f32 %v18961_v23, %v18943_v9  ;;  %v7057_v9 = vld [vmem:[#allocation88 + $0x30] sm:$0xff]  ;;  %v7056_v23 = vld [vmem:[#allocation88 + $0x28] sm:$0xff] }
 0xf21   : > { %v6652_v25 = vpop.f32.mrf.mxu1 }
 0xf22   : > { %v6653_v52 = vadd.f32 %v6652_v25, %v6497_v19  ;;  %v7132_v19 = vld [vmem:[#allocation88 + $0x50] sm:$0xff]  ;;  %v7131_v25 = vld [vmem:[#allocation88 + $0x48] sm:$0xff] }
 0xf27   : > { %v18968_v61 = vpop.f32.mrf.mxu1 }
 0xf28   : > { %v6737_v16 = vadd.f32 %v18968_v61, %v6658_v32  ;;  %v7055_v32 = vld [vmem:[#allocation88 + $0x20] sm:$0xff] }
 0xf29   : > { %v6727_v27 = vpop.f32.mrf.mxu1 }
 0xf2a   : > { %v6746_v29 = vadd.f32 %v17018_v13, %v6737_v16  ;;  %v6736_v40 = vadd.f32 %v6727_v27, %v6653_v52  ;;  %v7365_v52 = vld [vmem:[%s25398_s3 + $0x38] sm:$0xff] }
 0xf2c   : > { %v6748_v50 = vadd.f32 %v6746_v29, %v5934_v28  ;;  %v6745_v56 = vadd.f32 %v17018_v13, %v6736_v40  ;;  %v17037_v40 = vld [vmem:[%s25398_s3 + $0x78] sm:$0xff] }
 0xf2e   : > { %v23958_v42 = vmax.f32 %v6748_v50, 0.0  ;;  %v6747_v55 = vadd.f32 %v6745_v56, %v5929_v30  ;;  %v7364_v56 = vld [vmem:[%s25398_s3 + $0x30] sm:$0xff] }
 0xf30   : > { %v23960_v63 = vmax.f32 %v6747_v55, 0.0  ;;  %18970 = vmatpush3.msra.mxu0 %v23958_v42  ;;  %18977 = vmatpush3.msra.mxu1 %v23958_v42  ;;  %v17036_v55 = vld [vmem:[%s25398_s3 + $0x70] sm:$0xff] }
 0xf31   : > { %18971 = vmatprep.subr.mxu0 %v25396_v41  ;;  %18978 = vmatprep.subr.mxu1 %v25396_v41 }
 0xf32   : > { %18972 = vmatpush3.msra.mxu0 %v23960_v63  ;;  %18979 = vmatpush3.msra.mxu1 %v23960_v63 }
 0xf33   : > { %18974 = vmatmul.mubr.msk.f32.vlgmr.msra.gmra.mxu0 %vm5220_vm15, %v23720_v43  ;;  %18981 = vmatmul.mubr.msk.f32.vlgmr.msra.gmra.mxu1 %vm5220_vm15, %v23723_v49 }
 0xf34   : > { %18983 = vmatprep.subr.mxu0 %v25396_v41  ;;  %18994 = vmatprep.subr.mxu1 %v25396_v41 }
 0xf35   : > { %18984 = vmatpush3.msra.mxu0 %v6899_v58  ;;  %18995 = vmatpush3.msra.mxu1 %v6983_v8  ;;  %v7363_v58 = vld [vmem:[%s25398_s3 + $0x28] sm:$0xff] }
 0xf36   : > { %18985 = vmatprep.subr.mxu0 %v25396_v41  ;;  %18996 = vmatprep.subr.mxu1 %v25396_v41  ;;  %v17035_v8 = vld [vmem:[%s25398_s3 + $0x68] sm:$0xff] }
 0xf37   : > { %18986 = vmatpush3.msra.mxu0 %v6898_v6  ;;  %18997 = vmatpush3.msra.mxu1 %v6982_v45  ;;  %v7362_v6 = vld [vmem:[%s25398_s3 + $0x20] sm:$0xff] }
 0xf38   : > { %18987 = vmatprep.subr.mxu0 %v25396_v41  ;;  %18998 = vmatprep.subr.mxu1 %v25396_v41  ;;  %v17034_v45 = vld [vmem:[%s25398_s3 + $0x60] sm:$0xff] }
 0xf39   : > { %18988 = vmatpush3.msra.mxu0 %v6897_v59  ;;  %18999 = vmatpush3.msra.mxu1 %v6981_v35  ;;  %v7361_v59 = vld [vmem:[%s25398_s3 + $0x18] sm:$0xff] }
 0xf3a   : > { %18989 = vmatprep.subr.mxu0 %v25396_v41  ;;  %19000 = vmatprep.subr.mxu1 %v25396_v41  ;;  %v17033_v35 = vld [vmem:[%s25398_s3 + $0x58] sm:$0xff] }
 0xf3b   : > { %18991 = vmatprep.mubr.msk.f32.mxu0 %vm22552_vm0, %v25396_v41  ;;  %19002 = vmatprep.mubr.msk.f32.mxu1 %vm22552_vm0, %v25396_v41 }
 0xf3c   : > { %18990 = vmatpush3.msra.mxu0 %v6896_v44  ;;  %19001 = vmatpush3.msra.mxu1 %v6980_v11  ;;  %v7360_v44 = vld [vmem:[%s25398_s3 + $0x10] sm:$0xff] }
 0xf3d   : > { %19005 = vmatprep.subr.mxu0 %v25396_v41  ;;  %19016 = vmatprep.subr.mxu1 %v25396_v41  ;;  %v17032_v11 = vld [vmem:[%s25398_s3 + $0x50] sm:$0xff] }
 0xff3   : > { %v6819_v21 = vpop.f32.mrf.mxu0  ;;  %v6891_v46 = vpop.f32.mrf.mxu1 }
 0xff4   : > { %v6895_v17 = vmax.f32 %v6819_v21, %v6891_v46  ;;  %v7359_v21 = vld [vmem:[%s25398_s3 + $0x8] sm:$0xff] }
 0xff5   : > { %v18975_v57 = vpop.f32.mrf.mxu0  ;;  %v18982_v7 = vpop.f32.mrf.mxu1  ;;  %v17031_v46 = vld [vmem:[%s25398_s3 + $0x48] sm:$0xff] }
 0xff6   : > { %18992 = vmatmul.mubr.msk.f32.vlgmr.msra.gmra.mxu0 %vm5012_vm14, %v6895_v17  ;;  %19003 = vmatmul.mubr.msk.f32.vlgmr.msra.gmra.mxu1 %vm5012_vm14, %v6895_v17 }
 0xff7   : > { %19006 = vmatpush3.msra.mxu0 %v7058_v62  ;;  %19017 = vmatpush3.msra.mxu1 %v7133_v3  ;;  %v17030_v62 = vld [vmem:[%s25398_s3 + $0x40] sm:$0xff] }
 0xff8   : > { %19007 = vmatprep.subr.mxu0 %v25396_v41  ;;  %19018 = vmatprep.subr.mxu1 %v25396_v41 }
 0xff9   : > { %19008 = vmatpush3.msra.mxu0 %v7057_v9  ;;  %19019 = vmatpush3.msra.mxu1 %v7132_v19  ;;  %v17028_v19 = vld [vmem:[#allocation83] ss:$0 sm:$0xff] }
 0xffa   : > { %19009 = vmatprep.subr.mxu0 %v25396_v41  ;;  %19020 = vmatprep.subr.mxu1 %v25396_v41 }
 0xffb   : > { %19010 = vmatpush3.msra.mxu0 %v7056_v23  ;;  %19021 = vmatpush3.msra.mxu1 %v7131_v25 }
 0xffc   : > { %19011 = vmatprep.subr.mxu0 %v25396_v41  ;;  %19022 = vmatprep.subr.mxu1 %v25396_v41 }
 0xffd   : > { %19012 = vmatpush3.msra.mxu0 %v7055_v32  ;;  %19013 = vmatprep.mubr.msk.f32.mxu0 %vm22552_vm0, %v25396_v41 }
 0xffe   : > { %19023 = vmatpush3.msra.mxu1 %v7130_v60  ;;  %19024 = vmatprep.mubr.msk.f32.mxu1 %vm22552_vm0, %v25396_v41 }
 0xfff   : > { %19014 = vmatmul.mubr.msk.f32.vlgmr.msra.gmra.mxu0 %vm5012_vm14, %v6895_v17  ;;  %19025 = vmatmul.mubr.msk.f32.vlgmr.msra.gmra.mxu1 %vm5012_vm14, %v6895_v17  ;;  %v7358_v17 = vld [vmem:[%s25398_s3] sm:$0xff] }
0x1000   : > { %19027 = vmatprep.subr.mxu0 %v25396_v41  ;;  %19029 = vmatprep.mubr.msk.f32.mxu0 %vm22552_vm0, %v25396_v41 }
0x1001   : > { %19032 = vmatprep.subr.mxu1 %v25396_v41  ;;  %19034 = vmatprep.mubr.msk.f32.mxu1 %vm22552_vm0, %v25396_v41 }
0x10b6   : > { %v24006_v61 = vpop.f32.mrf.mxu0  ;;  %v7050_v13 = vpop.f32.mrf.mxu1 }
0x10b7   : > { %19028 = vmatpush3.msra.mxu0 %v7050_v13  ;;  %v17046_v13 = vld [vmem:[%s25398_s3 + $0xb8] sm:$0xff] }
0x10b8   : > { %v18993_v16 = vpop.f32.mrf.mxu0  ;;  %v19004_v27 = vpop.f32.mrf.mxu1  ;;  %19030 = vmatmul.mubr.msk.f32.vlgmr.msra.gmra.mxu0 %vm3856_vm5, %v23506_v18  ;;  %19037 = vmatprep.subr.mxu0 %v25396_v41 }
0x10b9   : > { %19038 = vmatpush3.msra.mxu0 %v7365_v52  ;;  %19053 = vmatprep.mubr.msk.f32.mxu0 %vm22552_vm0, %v25396_v41  ;;  %v17045_v52 = vld [vmem:[%s25398_s3 + $0xb0] sm:$0xff]  ;;  %v17044_v16 = vld [vmem:[%s25398_s3 + $0xa8] sm:$0xff]  ;;  %v17043_v27 = vld [vmem:[%s25398_s3 + $0xa0] sm:$0xff] }
0x10ba   : > { %19039 = vmatprep.subr.mxu0 %v25396_v41 }
0x10bb   : > { %19040 = vmatpush3.msra.mxu0 %v7364_v56 }
0x10bc   : > { %19041 = vmatprep.subr.mxu0 %v25396_v41 }
0x10bd   : > { %19042 = vmatpush3.msra.mxu0 %v7363_v58 }
0x10be   : > { %19043 = vmatprep.subr.mxu0 %v25396_v41 }
0x10bf   : > { %v7125_v28 = vpop.f32.mrf.mxu0  ;;  %v7200_v29 = vpop.f32.mrf.mxu1  ;;  %19044 = vmatpush3.msra.mxu0 %v7362_v6 }
0x10c0   : > { %19033 = vmatpush3.msra.mxu1 %v7200_v29  ;;  %19045 = vmatprep.subr.mxu0 %v25396_v41  ;;  %v17041_v29 = vld [vmem:[%s25398_s3 + $0x90] sm:$0xff] }
0x10c1   : > { %v19015_v30 = vpop.f32.mrf.mxu0  ;;  %v19026_v50 = vpop.f32.mrf.mxu1  ;;  %19035 = vmatmul.mubr.msk.f32.vlgmr.msra.gmra.mxu1 %vm3856_vm5, %v23513_v20  ;;  %19056 = vmatprep.subr.mxu1 %v25396_v41 }
0x10c2   : > { %19057 = vmatpush3.msra.mxu1 %v17037_v40  ;;  %19072 = vmatprep.mubr.msk.f32.mxu1 %vm22552_vm0, %v25396_v41  ;;  %v17040_v40 = vld [vmem:[%s25398_s3 + $0x88] sm:$0xff]  ;;  %v17039_v30 = vld [vmem:[%s25398_s3 + $0x80] sm:$0xff] }
0x10c3   : > { %19058 = vmatprep.subr.mxu1 %v25396_v41  ;;  %19046 = vmatpush3.msra.mxu0 %v7361_v59  ;;  %v7899_v59 = vld [vmem:[#allocation8 + $0x30] sm:$0xff] }
0x10c4   : > { %19059 = vmatpush3.msra.mxu1 %v17036_v55  ;;  %19047 = vmatprep.subr.mxu0 %v25396_v41 }
0x10c5   : > { %19060 = vmatprep.subr.mxu1 %v25396_v41  ;;  %19048 = vmatpush3.msra.mxu0 %v7360_v44  ;;  %v7897_v44 = vld [vmem:[#allocation8 + $0x20] sm:$0xff] }
0x10c6   : > { %19061 = vmatpush3.msra.mxu1 %v17035_v8  ;;  %19049 = vmatprep.subr.mxu0 %v25396_v41 }
0x10c7   : > { %19062 = vmatprep.subr.mxu1 %v25396_v41  ;;  %19050 = vmatpush3.msra.mxu0 %v7359_v21 }
0x10c8   : > { %19063 = vmatpush3.msra.mxu1 %v17034_v45  ;;  %19051 = vmatprep.subr.mxu0 %v25396_v41  ;;  %v7900_v45 = vld [vmem:[#allocation8 + $0x38] sm:$0xff] }
0x10c9   : > { %19064 = vmatprep.subr.mxu1 %v25396_v41  ;;  %19052 = vmatpush3.msra.mxu0 %v7358_v17 }
0x10ca   : > { %19065 = vmatpush3.msra.mxu1 %v17033_v35  ;;  %19075 = vmatprep.subr.mxu0 %v25396_v41  ;;  %v7898_v35 = vld [vmem:[#allocation8 + $0x28] sm:$0xff] }
0x10cb   : > { %19066 = vmatprep.subr.mxu1 %v25396_v41 }
0x10cc   : > { %19067 = vmatpush3.msra.mxu1 %v17032_v11  ;;  %v7896_v11 = vld [vmem:[#allocation8 + $0x18] sm:$0xff] }
0x10cd   : > { %19068 = vmatprep.subr.mxu1 %v25396_v41 }
0x10ce   : > { %19069 = vmatpush3.msra.mxu1 %v17031_v46 }
0x10cf   : > { %19070 = vmatprep.subr.mxu1 %v25396_v41 }
0x10d0   : > { %19071 = vmatpush3.msra.mxu1 %v17030_v62  ;;  %v17021_v62 = vld [vmem:[#allocation86] ss:$0 sm:$0xff] }
0x10d1   : > { %19094 = vmatprep.subr.mxu1 %v25396_v41 }
0x1178   : > { %v7272_v3 = vpop.f32.mrf.mxu0 }
0x1179   : > { %v7273_v7 = vadd.f32 %v7272_v3, %v7125_v28  ;;  %v17042_v28 = vld [vmem:[%s25398_s3 + $0x98] sm:$0xff] }
0x117a   : > { %v19031_v57 = vpop.f32.mrf.mxu0 }
0x117b   : > { %v17050_v57 = vld [vmem:[#allocation85] ss:$0 sm:$0xff] }
0x1181   : > { %v7344_v9 = vpop.f32.mrf.mxu1 }
0x1182   : > { %v7348_v23 = vadd.f32 %v7344_v9, %v7273_v7 }
0x1183   : > { %v19036_v25 = vpop.f32.mrf.mxu1 }
0x1184   : > { %v7356_v32 = vadd.f32 %v17028_v19, %v7348_v23  ;;  %v6977_v19 = vadd.f32 %v17021_v62, %v24006_v61  ;;  %v7988_v61 = vld [vmem:[%s25399_s2 + $0x38] sm:$0xff]  ;;  %v17058_v62 = vld [vmem:[%s25399_s2 + $0x50] sm:$0xff] }
0x1186   : > { %v7357_v60 = vmax.f32 %v7356_v32, 0.0 }
0x1188   : > { %19054 = vmatmul.mubr.msk.f32.vlgmr.msra.gmra.mxu0 %vm3565_vm3, %v7357_v60  ;;  %19073 = vmatmul.mubr.msk.f32.vlgmr.msra.gmra.mxu1 %vm3565_vm3, %v7357_v60 }
0x1189   : > { %19076 = vmatpush3.msra.mxu0 %v17046_v13  ;;  %19091 = vmatprep.mubr.msk.f32.mxu0 %vm22552_vm0, %v25396_v41  ;;  %v7985_v13 = vld [vmem:[%s25399_s2 + $0x20] sm:$0xff] }
0x118a   : > { %19077 = vmatprep.subr.mxu0 %v25396_v41  ;;  %19096 = vmatprep.mubr.msk.f32.mxu1 %vm22552_vm0, %v25396_v41 }
0x118b   : > { %19078 = vmatpush3.msra.mxu0 %v17045_v52  ;;  %v7984_v52 = vld [vmem:[%s25399_s2 + $0x18] sm:$0xff] }
0x118c   : > { %19079 = vmatprep.subr.mxu0 %v25396_v41 }
0x118d   : > { %19080 = vmatpush3.msra.mxu0 %v17044_v16  ;;  %v7983_v16 = vld [vmem:[%s25399_s2 + $0x10] sm:$0xff] }
0x118e   : > { %19081 = vmatprep.subr.mxu0 %v25396_v41 }
0x118f   : > { %19082 = vmatpush3.msra.mxu0 %v17043_v27  ;;  %v7894_v27 = vld [vmem:[#allocation8 + $0x8] sm:$0xff] }
0x1190   : > { %19083 = vmatprep.subr.mxu0 %v25396_v41 }
0x1191   : > { %19084 = vmatpush3.msra.mxu0 %v17042_v28  ;;  %v7982_v28 = vld [vmem:[%s25399_s2 + $0x8] sm:$0xff] }
0x1192   : > { %19085 = vmatprep.subr.mxu0 %v25396_v41 }
0x1193   : > { %19086 = vmatpush3.msra.mxu0 %v17041_v29  ;;  %v7893_v29 = vld [vmem:[#allocation8] sm:$0xff] }
0x1194   : > { %19087 = vmatprep.subr.mxu0 %v25396_v41 }
0x1195   : > { %19088 = vmatpush3.msra.mxu0 %v17040_v40  ;;  %v7981_v40 = vld [vmem:[%s25399_s2] sm:$0xff] }
0x1196   : > { %19089 = vmatprep.subr.mxu0 %v25396_v41 }
0x1197   : > { %19090 = vmatpush3.msra.mxu0 %v17039_v30 }
0x1198   : > { %19092 = vmatmul.mubr.msk.f32.vlgmr.msra.gmra.mxu0 %vm3565_vm3, %v7357_v60  ;;  %19114 = vmatprep.subr.mxu0 %v25396_v41  ;;  %v7987_v60 = vld [vmem:[%s25399_s2 + $0x30] sm:$0xff] }
0x1199   : > { %19130 = vmatprep.mubr.msk.f32.mxu0 %vm22552_vm0, %v25396_v41  ;;  %19115 = vmatpush3.msra.mxu0 %v7900_v45  ;;  %v17062_v45 = vld [vmem:[%s25399_s2 + $0x70] sm:$0xff] }
0x119a   : > { %19116 = vmatprep.subr.mxu0 %v25396_v41 }
0x119b   : > { %19117 = vmatpush3.msra.mxu0 %v7899_v59  ;;  %v17071_v59 = vld [vmem:[%s25399_s2 + $0xb0] sm:$0xff] }
0x119c   : > { %19118 = vmatprep.subr.mxu0 %v25396_v41 }
0x119d   : > { %19119 = vmatpush3.msra.mxu0 %v7898_v35  ;;  %v17061_v35 = vld [vmem:[%s25399_s2 + $0x68] sm:$0xff] }
0x119e   : > { %19120 = vmatprep.subr.mxu0 %v25396_v41 }
0x119f   : > { %19121 = vmatpush3.msra.mxu0 %v7897_v44  ;;  %v17070_v44 = vld [vmem:[%s25399_s2 + $0xa8] sm:$0xff] }
0x11a0   : > { %19122 = vmatprep.subr.mxu0 %v25396_v41 }
0x11a1   : > { %19123 = vmatpush3.msra.mxu0 %v7896_v11  ;;  %v17060_v11 = vld [vmem:[%s25399_s2 + $0x60] sm:$0xff] }
0x11a2   : > { %19124 = vmatprep.subr.mxu0 %v25396_v41 }
0x1248   : > { %v7435_v50 = vpop.f32.mrf.mxu0  ;;  %v7514_v56 = vpop.f32.mrf.mxu1 }
0x1249   : > { %19095 = vmatpush3.msra.mxu1 %v7435_v50 }
0x124a   : > { %v19055_v55 = vpop.f32.mrf.mxu0  ;;  %v19074_v58 = vpop.f32.mrf.mxu1  ;;  %19097 = vmatmul.mubr.msk.f32.vlgmr.msra.gmra.mxu1 %vm3856_vm5, %v23506_v18  ;;  %19099 = vmatprep.subr.mxu1 %v25396_v41 }
0x124b   : > { %19101 = vmatprep.mubr.msk.f32.mxu1 %vm22552_vm0, %v25396_v41  ;;  %v17063_v58 = vld [vmem:[%s25399_s2 + $0x78] sm:$0xff] }
0x1258   : > { %v7593_v8 = vpop.f32.mrf.mxu0 }
0x1259   : > { %19100 = vmatpush3.msra.mxu1 %v7593_v8  ;;  %v17072_v8 = vld [vmem:[%s25399_s2 + $0xb8] sm:$0xff] }
0x125a   : > { %v19093_v6 = vpop.f32.mrf.mxu0  ;;  %19102 = vmatmul.mubr.msk.f32.vlgmr.msra.gmra.mxu1 %vm3856_vm5, %v23513_v20  ;;  %19104 = vmatprep.subr.mxu1 %v25396_v41 }
0x125b   : > { %19106 = vmatprep.mubr.msk.f32.mxu1 %vm22552_vm0, %v25396_v41 }
0x130a   : > { %v7663_v21 = vpop.f32.mrf.mxu1 }
0x130b   : > { %v7664_v17 = vadd.f32 %v7663_v21, %v7514_v56  ;;  %v17069_v21 = vld [vmem:[%s25399_s2 + $0xa0] sm:$0xff] }
0x130c   : > { %v19098_v46 = vpop.f32.mrf.mxu1 }
0x130d   : > { %v17059_v46 = vld [vmem:[%s25399_s2 + $0x58] sm:$0xff] }
0x131a   : > { %v7733_v3 = vpop.f32.mrf.mxu1 }
0x131b   : > { %v7737_v7 = vadd.f32 %v7733_v3, %v7664_v17  ;;  %v17068_v17 = vld [vmem:[%s25399_s2 + $0x98] sm:$0xff]  ;;  %v17067_v3 = vld [vmem:[%s25399_s2 + $0x90] sm:$0xff] }
0x131c   : > { %v19103_v9 = vpop.f32.mrf.mxu1 }
0x131d   : > { %v7745_v23 = vadd.f32 %v17050_v57, %v7737_v7  ;;  %v17057_v57 = vld [vmem:[%s25399_s2 + $0x48] sm:$0xff]  ;;  %v17056_v9 = vld [vmem:[%s25399_s2 + $0x40] sm:$0xff] }
0x131e   : > { %v17066_v7 = vld [vmem:[%s25399_s2 + $0x88] sm:$0xff] }
0x131f   : > { %v7746_v25 = vadd.f32 %v7745_v23, %v6977_v19  ;;  %v17065_v19 = vld [vmem:[%s25399_s2 + $0x80] sm:$0xff] }
0x1321   : > { %v24091_v32 = vmax.f32 %v7746_v25, 0.0 }
0x1323   : > { %19105 = vmatpush3.msra.mxu1 %v24091_v32 }
0x1324   : > { %19107 = vmatmul.mubr.msk.f32.vlgmr.msra.gmra.mxu1 %vm3856_vm5, %v23720_v43  ;;  %19109 = vmatprep.subr.mxu1 %v25396_v41  ;;  %v7986_v43 = vld [vmem:[%s25399_s2 + $0x28] sm:$0xff] }
0x1325   : > { %19110 = vmatpush3.msra.mxu1 %v24091_v32  ;;  %19111 = vmatprep.mubr.msk.f32.mxu1 %vm22552_vm0, %v25396_v41 }
0x1326   : > { %19133 = vmatprep.subr.mxu1 %v25396_v41 }
0x1328   : > { %19112 = vmatmul.mubr.msk.f32.vlgmr.msra.gmra.mxu1 %vm3856_vm5, %v23723_v49  ;;  %v7895_v49 = vld [vmem:[#allocation8 + $0x10] sm:$0xff] }
0x1329   : > { %19134 = vmatpush3.msra.mxu1 %v7988_v61  ;;  %19149 = vmatprep.mubr.msk.f32.mxu1 %vm22552_vm0, %v25396_v41  ;;  %v8394_v61 = vld [vmem:[%s25400_s18 + $0x78] sm:$0xff] }
0x132a   : > { %19135 = vmatprep.subr.mxu1 %v25396_v41  ;;  %19125 = vmatpush3.msra.mxu0 %v7895_v49  ;;  %v8391_v49 = vld [vmem:[%s25400_s18 + $0x60] sm:$0xff] }
0x132b   : > { %19136 = vmatpush3.msra.mxu1 %v7987_v60  ;;  %19126 = vmatprep.subr.mxu0 %v25396_v41 }
0x132c   : > { %19137 = vmatprep.subr.mxu1 %v25396_v41  ;;  %19127 = vmatpush3.msra.mxu0 %v7894_v27 }
0x132d   : > { %19138 = vmatpush3.msra.mxu1 %v7986_v43  ;;  %19128 = vmatprep.subr.mxu0 %v25396_v41 }
0x132e   : > { %19139 = vmatprep.subr.mxu1 %v25396_v41  ;;  %19129 = vmatpush3.msra.mxu0 %v7893_v29  ;;  %v17094_v29 = vld [vmem:[%s25400_s18 + $0xf8] sm:$0xff] }
0x132f   : > { %19140 = vmatpush3.msra.mxu1 %v7985_v13  ;;  %19152 = vmatprep.subr.mxu0 %v25396_v41  ;;  %v8393_v13 = vld [vmem:[%s25400_s18 + $0x70] sm:$0xff] }
0x1330   : > { %19141 = vmatprep.subr.mxu1 %v25396_v41 }
0x1331   : > { %19142 = vmatpush3.msra.mxu1 %v7984_v52  ;;  %v8392_v52 = vld [vmem:[%s25400_s18 + $0x68] sm:$0xff] }
0x1332   : > { %19143 = vmatprep.subr.mxu1 %v25396_v41 }
0x1333   : > { %19144 = vmatpush3.msra.mxu1 %v7983_v16  ;;  %v8390_v16 = vld [vmem:[%s25400_s18 + $0x58] sm:$0xff] }
0x1334   : > { %19145 = vmatprep.subr.mxu1 %v25396_v41 }
0x1335   : > { %19146 = vmatpush3.msra.mxu1 %v7982_v28 }
0x1336   : > { %19147 = vmatprep.subr.mxu1 %v25396_v41 }
0x1337   : > { %19148 = vmatpush3.msra.mxu1 %v7981_v40 }
0x1338   : > { %19171 = vmatprep.subr.mxu1 %v25396_v41 }
0x13e4   : > { %v7816_v30 = vpop.f32.mrf.mxu1 }
0x13e6   : > { %v19108_v50 = vpop.f32.mrf.mxu1 }
0x13e7   : > { %v17093_v50 = vld [vmem:[%s25400_s18 + $0xf0] sm:$0xff] }
0x13e8   : > { %v7888_v56 = vpop.f32.mrf.mxu1 }
0x13e9   : > { %v7892_v55 = vmax.f32 %v7816_v30, %v7888_v56  ;;  %v17092_v56 = vld [vmem:[%s25400_s18 + $0xe8] sm:$0xff] }
0x13ea   : > { %v19113_v6 = vpop.f32.mrf.mxu1 }
0x13eb   : > { %19131 = vmatmul.mubr.msk.f32.vlgmr.msra.gmra.mxu0 %vm3565_vm3, %v7892_v55  ;;  %19150 = vmatmul.mubr.msk.f32.vlgmr.msra.gmra.mxu1 %vm3565_vm3, %v7892_v55  ;;  %v17089_v6 = vld [vmem:[%s25400_s18 + $0xd0] sm:$0xff] }
0x13ec   : > { %19153 = vmatpush3.msra.mxu0 %v17063_v58  ;;  %19172 = vmatpush3.msra.mxu1 %v17072_v8  ;;  %v17090_v58 = vld [vmem:[%s25400_s18 + $0xd8] sm:$0xff]  ;;  %v8389_v8 = vld [vmem:[%s25400_s18 + $0x50] sm:$0xff] }
0x13ed   : > { %19154 = vmatprep.subr.mxu0 %v25396_v41  ;;  %19173 = vmatprep.subr.mxu1 %v25396_v41 }
0x13ee   : > { %19155 = vmatpush3.msra.mxu0 %v17062_v45  ;;  %19174 = vmatpush3.msra.mxu1 %v17071_v59  ;;  %v8388_v45 = vld [vmem:[%s25400_s18 + $0x48] sm:$0xff] }
0x13ef   : > { %19156 = vmatprep.subr.mxu0 %v25396_v41  ;;  %19175 = vmatprep.subr.mxu1 %v25396_v41  ;;  %v17088_v59 = vld [vmem:[%s25400_s18 + $0xc8] sm:$0xff] }
0x13f0   : > { %19157 = vmatpush3.msra.mxu0 %v17061_v35  ;;  %19176 = vmatpush3.msra.mxu1 %v17070_v44  ;;  %v8387_v35 = vld [vmem:[%s25400_s18 + $0x40] sm:$0xff] }
0x13f1   : > { %19158 = vmatprep.subr.mxu0 %v25396_v41  ;;  %19177 = vmatprep.subr.mxu1 %v25396_v41  ;;  %v17087_v44 = vld [vmem:[%s25400_s18 + $0xc0] sm:$0xff] }
0x13f2   : > { %19159 = vmatpush3.msra.mxu0 %v17060_v11  ;;  %19178 = vmatpush3.msra.mxu1 %v17069_v21  ;;  %v8386_v11 = vld [vmem:[%s25400_s18 + $0x38] sm:$0xff] }
0x13f3   : > { %19160 = vmatprep.subr.mxu0 %v25396_v41  ;;  %19179 = vmatprep.subr.mxu1 %v25396_v41  ;;  %v17086_v21 = vld [vmem:[%s25400_s18 + $0xb8] sm:$0xff] }
0x13f4   : > { %19161 = vmatpush3.msra.mxu0 %v17059_v46  ;;  %19180 = vmatpush3.msra.mxu1 %v17068_v17  ;;  %v8385_v46 = vld [vmem:[%s25400_s18 + $0x30] sm:$0xff] }
0x13f5   : > { %19162 = vmatprep.subr.mxu0 %v25396_v41  ;;  %19181 = vmatprep.subr.mxu1 %v25396_v41  ;;  %v17085_v17 = vld [vmem:[%s25400_s18 + $0xb0] sm:$0xff] }
0x13f6   : > { %19163 = vmatpush3.msra.mxu0 %v17058_v62  ;;  %19182 = vmatpush3.msra.mxu1 %v17067_v3  ;;  %v8384_v62 = vld [vmem:[%s25400_s18 + $0x28] sm:$0xff] }
0x13f7   : > { %19164 = vmatprep.subr.mxu0 %v25396_v41  ;;  %19183 = vmatprep.subr.mxu1 %v25396_v41  ;;  %v17084_v3 = vld [vmem:[%s25400_s18 + $0xa8] sm:$0xff] }
0x13f8   : > { %19165 = vmatpush3.msra.mxu0 %v17057_v57  ;;  %19184 = vmatpush3.msra.mxu1 %v17066_v7  ;;  %v8383_v57 = vld [vmem:[%s25400_s18 + $0x20] sm:$0xff] }
0x13f9   : > { %19166 = vmatprep.subr.mxu0 %v25396_v41  ;;  %19185 = vmatprep.subr.mxu1 %v25396_v41  ;;  %v17083_v7 = vld [vmem:[%s25400_s18 + $0xa0] sm:$0xff] }
0x13fa   : > { %19167 = vmatpush3.msra.mxu0 %v17056_v9  ;;  %19168 = vmatprep.mubr.msk.f32.mxu0 %vm22552_vm0, %v25396_v41  ;;  %v8382_v9 = vld [vmem:[%s25400_s18 + $0x18] sm:$0xff] }
0x13fb   : > { %19186 = vmatpush3.msra.mxu1 %v17065_v19  ;;  %19187 = vmatprep.mubr.msk.f32.mxu1 %vm22552_vm0, %v25396_v41  ;;  %v17082_v19 = vld [vmem:[%s25400_s18 + $0x98] sm:$0xff] }
0x13fc   : > { %19169 = vmatmul.mubr.msk.f32.vlgmr.msra.gmra.mxu0 %vm3565_vm3, %v7892_v55  ;;  %19188 = vmatmul.mubr.msk.f32.vlgmr.msra.gmra.mxu1 %vm3565_vm3, %v7892_v55  ;;  %v17091_v55 = vld [vmem:[%s25400_s18 + $0xe0] sm:$0xff] }
0x13fd   : > { %19190 = vmatprep.subr.mxu0 %v25396_v41  ;;  %19192 = vmatprep.mubr.msk.f32.mxu0 %vm22552_vm0, %v25396_v41 }
0x13fe   : > { %19195 = vmatprep.subr.mxu1 %v25396_v41  ;;  %19197 = vmatprep.mubr.msk.f32.mxu1 %vm22552_vm0, %v25396_v41 }
0x14ab   : > { %v24168_v23 = vpop.f32.mrf.mxu0  ;;  %v8055_v25 = vpop.f32.mrf.mxu1 }
0x14ac   : > { %19191 = vmatpush3.msk.msra.mxu0 %vm8220_vm2, %v8055_v25  ;;  %v8381_v25 = vld [vmem:[%s25400_s18 + $0x10] sm:$0xff] }
0x14ad   : > { %v19132_v60 = vpop.f32.mrf.mxu0  ;;  %v19151_v43 = vpop.f32.mrf.mxu1  ;;  %19193 = vmatmul.mubr.msk.f32.vlgmr.msra.gmra.mxu0 %vm8217_vm4, %v23506_v18  ;;  %19200 = vmatprep.subr.mxu0 %v25396_v41 }
0x14ae   : > { %19201 = vmatpush3.msra.mxu0 %v8394_v61  ;;  %19232 = vmatprep.mubr.msk.f32.mxu0 %vm22552_vm0, %v25396_v41  ;;  %v17081_v61 = vld [vmem:[%s25400_s18 + $0x90] sm:$0xff]  ;;  %v8380_v60 = vld [vmem:[%s25400_s18 + $0x8] sm:$0xff] }
0x14af   : > { %19202 = vmatprep.subr.mxu0 %v25396_v41  ;;  %v17080_v43 = vld [vmem:[%s25400_s18 + $0x88] sm:$0xff] }
0x14b0   : > { %19203 = vmatpush3.msra.mxu0 %v8393_v13  ;;  %v8379_v13 = vld [vmem:[%s25400_s18] sm:$0xff] }
0x14b1   : > { %19204 = vmatprep.subr.mxu0 %v25396_v41 }
0x14b2   : > { %19205 = vmatpush3.msra.mxu0 %v8392_v52  ;;  %v17079_v52 = vld [vmem:[%s25400_s18 + $0x80] sm:$0xff] }
0x14b3   : > { %19206 = vmatprep.subr.mxu0 %v25396_v41 }
0x14b4   : > { %19207 = vmatpush3.msra.mxu0 %v8391_v49 }
0x14b5   : > { %19208 = vmatprep.subr.mxu0 %v25396_v41 }
0x14b6   : > { %19209 = vmatpush3.msra.mxu0 %v8390_v16 }
0x14b7   : > { %19210 = vmatprep.subr.mxu0 %v25396_v41 }
0x14b8   : > { %19211 = vmatpush3.msra.mxu0 %v8389_v8  ;;  %v17109_v8 = vld [vmem:[%s25400_s18 + $0x170] sm:$0xff] }
0x14b9   : > { %19212 = vmatprep.subr.mxu0 %v25396_v41 }
0x14ba   : > { %19213 = vmatpush3.msra.mxu0 %v8388_v45  ;;  %v17106_v45 = vld [vmem:[%s25400_s18 + $0x158] sm:$0xff] }
0x14bb   : > { %19214 = vmatprep.subr.mxu0 %v25396_v41 }
0x14bc   : > { %v24186_v27 = vpop.f32.mrf.mxu0  ;;  %v8213_v28 = vpop.f32.mrf.mxu1  ;;  %19215 = vmatpush3.msra.mxu0 %v8387_v35  ;;  %v17104_v35 = vld [vmem:[%s25400_s18 + $0x148] sm:$0xff] }
0x14bd   : > { %19196 = vmatpush3.msk.msra.mxu1 %vm8220_vm2, %v8213_v28  ;;  %19216 = vmatprep.subr.mxu0 %v25396_v41 }
0x14be   : > { %v19170_v40 = vpop.f32.mrf.mxu0  ;;  %v19189_v30 = vpop.f32.mrf.mxu1  ;;  %19198 = vmatmul.mubr.msk.f32.vlgmr.msra.gmra.mxu1 %vm8217_vm4, %v23513_v20  ;;  %19235 = vmatprep.subr.mxu1 %v25396_v41 }
0x14bf   : > { %19236 = vmatpush3.msra.mxu1 %v17094_v29  ;;  %19267 = vmatprep.mubr.msk.f32.mxu1 %vm22552_vm0, %v25396_v41  ;;  %v17078_v40 = vld [vmem:[#allocation3] ss:$0 sm:$0xff] }
0x14c0   : > { %19237 = vmatprep.subr.mxu1 %v25396_v41  ;;  %19217 = vmatpush3.msra.mxu0 %v8386_v11  ;;  %v17102_v11 = vld [vmem:[%s25400_s18 + $0x138] sm:$0xff] }
0x14c1   : > { %19238 = vmatpush3.msra.mxu1 %v17093_v50  ;;  %19218 = vmatprep.subr.mxu0 %v25396_v41 }
0x14c2   : > { %19239 = vmatprep.subr.mxu1 %v25396_v41  ;;  %19219 = vmatpush3.msra.mxu0 %v8385_v46  ;;  %v17100_v46 = vld [vmem:[%s25400_s18 + $0x128] sm:$0xff] }
0x14c3   : > { %19240 = vmatpush3.msra.mxu1 %v17092_v56  ;;  %19220 = vmatprep.subr.mxu0 %v25396_v41 }
0x14c4   : > { %19241 = vmatprep.subr.mxu1 %v25396_v41  ;;  %19221 = vmatpush3.msra.mxu0 %v8384_v62  ;;  %v17098_v62 = vld [vmem:[%s25400_s18 + $0x118] sm:$0xff] }
0x14c5   : > { %19242 = vmatpush3.msra.mxu1 %v17091_v55  ;;  %19222 = vmatprep.subr.mxu0 %v25396_v41 }
0x14c6   : > { %19243 = vmatprep.subr.mxu1 %v25396_v41  ;;  %19223 = vmatpush3.msra.mxu0 %v8383_v57  ;;  %v17096_v57 = vld [vmem:[%s25400_s18 + $0x108] sm:$0xff] }
0x14c7   : > { %19244 = vmatpush3.msra.mxu1 %v17090_v58  ;;  %19224 = vmatprep.subr.mxu0 %v25396_v41  ;;  %v17110_v58 = vld [vmem:[%s25400_s18 + $0x178] sm:$0xff] }
0x14c8   : > { %19245 = vmatprep.subr.mxu1 %v25396_v41  ;;  %19225 = vmatpush3.msra.mxu0 %v8382_v9 }
0x14c9   : > { %19246 = vmatpush3.msra.mxu1 %v17089_v6  ;;  %19226 = vmatprep.subr.mxu0 %v25396_v41  ;;  %v17107_v6 = vld [vmem:[%s25400_s18 + $0x160] sm:$0xff] }
0x14ca   : > { %19247 = vmatprep.subr.mxu1 %v25396_v41  ;;  %19227 = vmatpush3.msra.mxu0 %v8381_v25 }
0x14cb   : > { %19248 = vmatpush3.msra.mxu1 %v17088_v59  ;;  %19228 = vmatprep.subr.mxu0 %v25396_v41  ;;  %v17105_v59 = vld [vmem:[%s25400_s18 + $0x150] sm:$0xff] }
0x14cc   : > { %19249 = vmatprep.subr.mxu1 %v25396_v41  ;;  %19229 = vmatpush3.msra.mxu0 %v8380_v60 }
0x14cd   : > { %19250 = vmatpush3.msra.mxu1 %v17087_v44  ;;  %19230 = vmatprep.subr.mxu0 %v25396_v41  ;;  %v17103_v44 = vld [vmem:[%s25400_s18 + $0x140] sm:$0xff] }
0x14ce   : > { %19251 = vmatprep.subr.mxu1 %v25396_v41  ;;  %19231 = vmatpush3.msra.mxu0 %v8379_v13  ;;  %v8811_v13 = vld [vmem:[%s22914_s22 + $0x78] sm:$0xff] }
0x14cf   : > { %19252 = vmatpush3.msra.mxu1 %v17086_v21  ;;  %19270 = vmatprep.subr.mxu0 %v25396_v41  ;;  %v17101_v21 = vld [vmem:[%s25400_s18 + $0x130] sm:$0xff] }
0x14d0   : > { %19253 = vmatprep.subr.mxu1 %v25396_v41 }
0x14d1   : > { %19254 = vmatpush3.msra.mxu1 %v17085_v17  ;;  %v17099_v17 = vld [vmem:[%s25400_s18 + $0x120] sm:$0xff] }
0x14d2   : > { %19255 = vmatprep.subr.mxu1 %v25396_v41 }
0x14d3   : > { %19256 = vmatpush3.msra.mxu1 %v17084_v3  ;;  %v17097_v3 = vld [vmem:[%s25400_s18 + $0x110] sm:$0xff] }
0x14d4   : > { %19257 = vmatprep.subr.mxu1 %v25396_v41 }
0x14d5   : > { %19258 = vmatpush3.msra.mxu1 %v17083_v7  ;;  %v17095_v7 = vld [vmem:[%s25400_s18 + $0x100] sm:$0xff] }
0x14d6   : > { %19259 = vmatprep.subr.mxu1 %v25396_v41 }
0x14d7   : > { %19260 = vmatpush3.msra.mxu1 %v17082_v19 }
0x14d8   : > { %19261 = vmatprep.subr.mxu1 %v25396_v41 }
0x14d9   : > { %19262 = vmatpush3.msra.mxu1 %v17081_v61 }
0x14da   : > { %19263 = vmatprep.subr.mxu1 %v25396_v41 }
0x14db   : > { %19264 = vmatpush3.msra.mxu1 %v17080_v43 }
0x14dc   : > { %19265 = vmatprep.subr.mxu1 %v25396_v41 }
0x14dd   : > { %19266 = vmatpush3.msra.mxu1 %v17079_v52  ;;  %v17131_v52 = vld [vmem:[%s22914_s22 + $0xf8] sm:$0xff] }
0x14de   : > { %19305 = vmatprep.subr.mxu1 %v25396_v41 }
0x156d   : > { %v8290_v49 = vpop.f32.mrf.mxu0 }
0x156e   : > { %v8291_v28 = vadd.f32 %v8290_v49, %v24186_v27  ;;  %v17108_v27 = vld [vmem:[%s25400_s18 + $0x168] sm:$0xff]  ;;  %v8810_v49 = vld [vmem:[%s22914_s22 + $0x70] sm:$0xff] }
0x156f   : > { %v19194_v16 = vpop.f32.mrf.mxu0 }
0x1570   : > { %v17130_v16 = vld [vmem:[%s22914_s22 + $0xf0] sm:$0xff] }
0x157e   : > { %v8365_v29 = vpop.f32.mrf.mxu1 }
0x157f   : > { %v8369_v30 = vadd.f32 %v8365_v29, %v8291_v28  ;;  %v8809_v28 = vld [vmem:[%s22914_s22 + $0x68] sm:$0xff] }
0x1580   : > { %v19199_v50 = vpop.f32.mrf.mxu1  ;;  %v17129_v29 = vld [vmem:[%s22914_s22 + $0xe8] sm:$0xff] }
0x1581   : > { %v8377_v56 = vadd.f32 %v17078_v40, %v8369_v30  ;;  %v8808_v40 = vld [vmem:[%s22914_s22 + $0x60] sm:$0xff]  ;;  %v8807_v50 = vld [vmem:[%s22914_s22 + $0x58] sm:$0xff] }
0x1582   : > { %v17128_v30 = vld [vmem:[%s22914_s22 + $0xe0] sm:$0xff] }
0x1583   : > { %v8378_v55 = vmax.f32 %v8377_v56, 0.0  ;;  %v17127_v56 = vld [vmem:[%s22914_s22 + $0xd8] sm:$0xff] }
0x1585   : > { %19233 = vmatmul.mubr.f32.vlgmr.msra.gmra.mxu0 %v8378_v55  ;;  %19268 = vmatmul.mubr.f32.vlgmr.msra.gmra.mxu1 %v8378_v55 }
0x1586   : > { %19271 = vmatpush3.msra.mxu0 %v17110_v58  ;;  %19302 = vmatprep.mubr.msk.f32.mxu0 %vm22552_vm0, %v25396_v41  ;;  %v17126_v58 = vld [vmem:[%s22914_s22 + $0xd0] sm:$0xff] }
0x1587   : > { %19272 = vmatprep.subr.mxu0 %v25396_v41  ;;  %19307 = vmatprep.mubr.msk.f32.mxu1 %vm22552_vm0, %v25396_v41 }
0x1588   : > { %19273 = vmatpush3.msra.mxu0 %v17109_v8  ;;  %v8805_v8 = vld [vmem:[%s22914_s22 + $0x48] sm:$0xff] }
0x1589   : > { %19274 = vmatprep.subr.mxu0 %v25396_v41 }
0x158a   : > { %19275 = vmatpush3.msra.mxu0 %v17108_v27  ;;  %v17125_v27 = vld [vmem:[%s22914_s22 + $0xc8] sm:$0xff] }
0x158b   : > { %19276 = vmatprep.subr.mxu0 %v25396_v41 }
0x158c   : > { %19277 = vmatpush3.msra.mxu0 %v17107_v6  ;;  %v8804_v6 = vld [vmem:[%s22914_s22 + $0x40] sm:$0xff] }
0x158d   : > { %19278 = vmatprep.subr.mxu0 %v25396_v41 }
0x158e   : > { %19279 = vmatpush3.msra.mxu0 %v17106_v45  ;;  %v17124_v45 = vld [vmem:[%s22914_s22 + $0xc0] sm:$0xff] }
0x158f   : > { %19280 = vmatprep.subr.mxu0 %v25396_v41 }
0x1590   : > { %19281 = vmatpush3.msra.mxu0 %v17105_v59  ;;  %v8803_v59 = vld [vmem:[%s22914_s22 + $0x38] sm:$0xff] }
0x1591   : > { %19282 = vmatprep.subr.mxu0 %v25396_v41 }
0x1592   : > { %19283 = vmatpush3.msra.mxu0 %v17104_v35  ;;  %v17123_v35 = vld [vmem:[%s22914_s22 + $0xb8] sm:$0xff] }
0x1593   : > { %19284 = vmatprep.subr.mxu0 %v25396_v41 }
0x1594   : > { %19285 = vmatpush3.msra.mxu0 %v17103_v44  ;;  %v8802_v44 = vld [vmem:[%s22914_s22 + $0x30] sm:$0xff] }
0x1595   : > { %19286 = vmatprep.subr.mxu0 %v25396_v41 }
0x1596   : > { %19287 = vmatpush3.msra.mxu0 %v17102_v11  ;;  %v17122_v11 = vld [vmem:[%s22914_s22 + $0xb0] sm:$0xff] }
0x1597   : > { %19288 = vmatprep.subr.mxu0 %v25396_v41 }
0x1598   : > { %19289 = vmatpush3.msra.mxu0 %v17101_v21  ;;  %v8801_v21 = vld [vmem:[%s22914_s22 + $0x28] sm:$0xff] }
0x1599   : > { %19290 = vmatprep.subr.mxu0 %v25396_v41 }
0x159a   : > { %19291 = vmatpush3.msra.mxu0 %v17100_v46  ;;  %v17121_v46 = vld [vmem:[%s22914_s22 + $0xa8] sm:$0xff] }
0x159b   : > { %19292 = vmatprep.subr.mxu0 %v25396_v41 }
0x159c   : > { %19293 = vmatpush3.msra.mxu0 %v17099_v17  ;;  %v8800_v17 = vld [vmem:[%s22914_s22 + $0x20] sm:$0xff] }
0x159d   : > { %19294 = vmatprep.subr.mxu0 %v25396_v41 }
0x159e   : > { %19295 = vmatpush3.msra.mxu0 %v17098_v62  ;;  %v17120_v62 = vld [vmem:[%s22914_s22 + $0xa0] sm:$0xff] }
0x159f   : > { %19296 = vmatprep.subr.mxu0 %v25396_v41 }
0x15a0   : > { %19297 = vmatpush3.msra.mxu0 %v17097_v3  ;;  %v8799_v3 = vld [vmem:[%s22914_s22 + $0x18] sm:$0xff] }
0x15a1   : > { %19298 = vmatprep.subr.mxu0 %v25396_v41 }
0x15a2   : > { %19299 = vmatpush3.msra.mxu0 %v17096_v57  ;;  %v17119_v57 = vld [vmem:[%s22914_s22 + $0x98] sm:$0xff] }
0x15a3   : > { %19300 = vmatprep.subr.mxu0 %v25396_v41 }
0x15a4   : > { %19301 = vmatpush3.msra.mxu0 %v17095_v7  ;;  %v8798_v7 = vld [vmem:[%s22914_s22 + $0x10] sm:$0xff] }
0x15a5   : > { %19303 = vmatmul.mubr.f32.vlgmr.msra.gmra.mxu0 %v8378_v55  ;;  %19350 = vmatprep.subr.mxu0 %v25396_v41  ;;  %v8806_v55 = vld [vmem:[%s22914_s22 + $0x50] sm:$0xff] }
0x15a6   : > { %19382 = vmatprep.mubr.msk.f32.mxu0 %vm22552_vm0, %v25396_v41  ;;  %19351 = vmatpush3.msra.mxu0 %v17131_v52 }
0x15a7   : > { %19352 = vmatprep.subr.mxu0 %v25396_v41 }
0x15a8   : > { %19353 = vmatpush3.msra.mxu0 %v17130_v16  ;;  %v17053_v16 = vld [vmem:[#allocation7] ss:$0 sm:$0xff] }
0x15a9   : > { %19354 = vmatprep.subr.mxu0 %v25396_v41 }
0x15aa   : > { %19355 = vmatpush3.msra.mxu0 %v17129_v29  ;;  %v17115_v29 = vld [vmem:[#allocation5] ss:$0 sm:$0xff] }
0x15ab   : > { %19356 = vmatprep.subr.mxu0 %v25396_v41 }
0x15ac   : > { %19357 = vmatpush3.msra.mxu0 %v17128_v30 }
0x15ad   : > { %19358 = vmatprep.subr.mxu0 %v25396_v41 }
0x15ae   : > { %19359 = vmatpush3.msra.mxu0 %v17127_v56 }
0x15af   : > { %19360 = vmatprep.subr.mxu0 %v25396_v41 }
0x15b0   : > { %19361 = vmatpush3.msra.mxu0 %v17126_v58 }
0x15b1   : > { %19362 = vmatprep.subr.mxu0 %v25396_v41 }
0x15b2   : > { %19363 = vmatpush3.msra.mxu0 %v17125_v27  ;;  %v9134_v27 = vld [vmem:[#allocation53 + $0x28] sm:$0xff] }
0x15b3   : > { %19364 = vmatprep.subr.mxu0 %v25396_v41 }
0x15b4   : > { %19365 = vmatpush3.msra.mxu0 %v17124_v45 }
0x15b5   : > { %19366 = vmatprep.subr.mxu0 %v25396_v41 }
0x15b6   : > { %19367 = vmatpush3.msra.mxu0 %v17123_v35 }
0x15b7   : > { %19368 = vmatprep.subr.mxu0 %v25396_v41 }
0x15b8   : > { %19369 = vmatpush3.msra.mxu0 %v17122_v11 }
0x15b9   : > { %19370 = vmatprep.subr.mxu0 %v25396_v41 }
0x15ba   : > { %19371 = vmatpush3.msra.mxu0 %v17121_v46  ;;  %v9143_v46 = vld [vmem:[#allocation55 + $0x30] sm:$0xff] }
0x15bb   : > { %19372 = vmatprep.subr.mxu0 %v25396_v41 }
0x15bc   : > { %19373 = vmatpush3.msra.mxu0 %v17120_v62  ;;  %v9141_v62 = vld [vmem:[#allocation55 + $0x20] sm:$0xff] }
0x15bd   : > { %19374 = vmatprep.subr.mxu0 %v25396_v41 }
0x15be   : > { %19375 = vmatpush3.msra.mxu0 %v17119_v57  ;;  %v9139_v57 = vld [vmem:[#allocation55 + $0x10] sm:$0xff] }
0x15bf   : > { %19376 = vmatprep.subr.mxu0 %v25396_v41 }
0x1645   : > { %v8461_v9 = vpop.f32.mrf.mxu0  ;;  %v24287_v19 = vpop.f32.mrf.mxu1 }
0x1646   : > { %19306 = vmatpush3.msk.msra.mxu1 %vm8220_vm2, %v8461_v9  ;;  %v17118_v9 = vld [vmem:[%s22914_s22 + $0x90] sm:$0xff] }
0x1647   : > { %v19234_v25 = vpop.f32.mrf.mxu0  ;;  %v19269_v61 = vpop.f32.mrf.mxu1  ;;  %19308 = vmatmul.mubr.msk.f32.vlgmr.msra.gmra.mxu1 %vm8217_vm4, %v23506_v18  ;;  %19310 = vmatprep.subr.mxu1 %v25396_v41 }
0x1648   : > { %19312 = vmatprep.mubr.msk.f32.mxu1 %vm22552_vm0, %v25396_v41  ;;  %19377 = vmatpush3.msra.mxu0 %v17118_v9  ;;  %v8797_v25 = vld [vmem:[%s22914_s22 + $0x8] sm:$0xff] }
0x1649   : > { %19378 = vmatprep.subr.mxu0 %v25396_v41  ;;  %v17117_v61 = vld [vmem:[%s22914_s22 + $0x88] sm:$0xff] }
0x164a   : > { %19379 = vmatpush3.msra.mxu0 %v17117_v61  ;;  %v9137_v9 = vld [vmem:[#allocation55] sm:$0xff]  ;;  %v9331_v61 = vld [vmem:[#allocation50 + $0x30] sm:$0xff] }
0x164b   : > { %19380 = vmatprep.subr.mxu0 %v25396_v41 }
0x1665   : > { %v8635_v60 = vpop.f32.mrf.mxu0 }
0x1666   : > { %19311 = vmatpush3.msk.msra.mxu1 %vm8220_vm2, %v8635_v60  ;;  %v8796_v60 = vld [vmem:[%s22914_s22] sm:$0xff] }
0x1667   : > { %v19304_v43 = vpop.f32.mrf.mxu0  ;;  %19313 = vmatmul.mubr.msk.f32.vlgmr.msra.gmra.mxu1 %vm8217_vm4, %v23513_v20  ;;  %19315 = vmatprep.subr.mxu1 %v25396_v41 }
0x1668   : > { %19347 = vmatprep.mubr.msk.f32.mxu1 %vm22552_vm0, %v25396_v41  ;;  %19316 = vmatpush3.msra.mxu1 %v8811_v13  ;;  %v17116_v43 = vld [vmem:[%s22914_s22 + $0x80] sm:$0xff] }
0x1669   : > { %19317 = vmatprep.subr.mxu1 %v25396_v41  ;;  %19381 = vmatpush3.msra.mxu0 %v17116_v43  ;;  %v9329_v43 = vld [vmem:[#allocation50 + $0x20] sm:$0xff] }
0x166a   : > { %19318 = vmatpush3.msra.mxu1 %v8810_v49  ;;  %19414 = vmatprep.subr.mxu0 %v25396_v41 }
0x166b   : > { %19319 = vmatprep.subr.mxu1 %v25396_v41 }
0x166c   : > { %19320 = vmatpush3.msra.mxu1 %v8809_v28 }
0x166d   : > { %19321 = vmatprep.subr.mxu1 %v25396_v41 }
0x166e   : > { %19322 = vmatpush3.msra.mxu1 %v8808_v40 }
0x166f   : > { %19323 = vmatprep.subr.mxu1 %v25396_v41 }
0x1670   : > { %19324 = vmatpush3.msra.mxu1 %v8807_v50  ;;  %v7978_v50 = vadd.f32 %v17053_v16, %v24168_v23  ;;  %v9133_v23 = vld [vmem:[#allocation53 + $0x20] sm:$0xff] }
0x1671   : > { %19325 = vmatprep.subr.mxu1 %v25396_v41  ;;  %v9325_v16 = vld [vmem:[#allocation50] sm:$0xff] }
0x1672   : > { %19326 = vmatpush3.msra.mxu1 %v8806_v55 }
0x1673   : > { %19327 = vmatprep.subr.mxu1 %v25396_v41 }
0x1674   : > { %19328 = vmatpush3.msra.mxu1 %v8805_v8  ;;  %v9136_v8 = vld [vmem:[#allocation53 + $0x38] sm:$0xff] }
0x1675   : > { %19329 = vmatprep.subr.mxu1 %v25396_v41 }
0x1676   : > { %19330 = vmatpush3.msra.mxu1 %v8804_v6  ;;  %v24376_v6 = vmul.u32 2, %v23500_v15 }
0x1677   : > { %19331 = vmatprep.subr.mxu1 %v25396_v41 }
0x1678   : > { %19332 = vmatpush3.msra.mxu1 %v8803_v59  ;;  %v24379_v45 = vadd.s32 1, %v24376_v6  ;;  %vm3037_vm7 = vcmp.eq.s32.totalorder %v23497_v14, %v24376_v6  ;;  %vm3044_vm9 = vcmp.eq.s32.totalorder %v23522_v31, %v24376_v6  ;;  %vm3050_vm11 = vcmp.eq.s32.totalorder %v23527_v33, %v24376_v6 }
0x1679   : > { %19333 = vmatprep.subr.mxu1 %v25396_v41  ;;  %v24396_v15 = vsel %vm3037_vm7, 1.0, %v25396_v41  ;;  %vm3051_vm13 = vcmp.eq.s32.totalorder %v23533_v36, %v24376_v6 }
0x167a   : > { %19334 = vmatpush3.msra.mxu1 %v8802_v44  ;;  %vm3041_vm6 = vcmp.eq.s32.totalorder %v23497_v14, %v24379_v45  ;;  %v9144_v14 = vld [vmem:[#allocation55 + $0x38] sm:$0xff]  ;;  %vm3047_vm8 = vcmp.eq.s32.totalorder %v23522_v31, %v24379_v45  ;;  %v10646_v31 = vld [vmem:[#allocation44 + $0x10] sm:$0xff]  ;;  %vm3056_vm10 = vcmp.eq.s32.totalorder %v23527_v33, %v24379_v45  ;;  %vm3057_vm12 = vcmp.eq.s32.totalorder %v23533_v36, %v24379_v45 }
0x167b   : > { %19335 = vmatprep.subr.mxu1 %v25396_v41  ;;  %v24384_v59 = vsel %vm3041_vm6, 1.0, %v25396_v41  ;;  %v12239_v33 = vld [vmem:[#allocation32 + $0x8] sm:$0xff]  ;;  %v24735_v36 = vsel %vm3051_vm13, 1.0, %v25396_v41 }
0x167c   : > { %19336 = vmatpush3.msra.mxu1 %v8801_v21 }
0x167d   : > { %19337 = vmatprep.subr.mxu1 %v25396_v41 }
0x167e   : > { %19338 = vmatpush3.msra.mxu1 %v8800_v17  ;;  %v9142_v17 = vld [vmem:[#allocation55 + $0x28] sm:$0xff] }
0x167f   : > { %19339 = vmatprep.subr.mxu1 %v25396_v41 }
0x1680   : > { %19340 = vmatpush3.msra.mxu1 %v8799_v3  ;;  %v9140_v3 = vld [vmem:[#allocation55 + $0x18] sm:$0xff] }
0x1681   : > { %19341 = vmatprep.subr.mxu1 %v25396_v41 }
0x1682   : > { %19342 = vmatpush3.msra.mxu1 %v8798_v7  ;;  %v9138_v7 = vld [vmem:[#allocation55 + $0x8] sm:$0xff] }
0x1683   : > { %19343 = vmatprep.subr.mxu1 %v25396_v41 }
0x1684   : > { %19344 = vmatpush3.msra.mxu1 %v8797_v25  ;;  %v9332_v25 = vld [vmem:[#allocation50 + $0x38] sm:$0xff] }
0x1685   : > { %19345 = vmatprep.subr.mxu1 %v25396_v41 }
0x1686   : > { %19346 = vmatpush3.msra.mxu1 %v8796_v60  ;;  %v9330_v60 = vld [vmem:[#allocation50 + $0x28] sm:$0xff] }
0x1687   : > { %19385 = vmatprep.subr.mxu1 %v25396_v41 }
0x1707   : > { %v8708_v13 = vpop.f32.mrf.mxu1 }
0x1708   : > { %v8709_v49 = vadd.f32 %v8708_v13, %v24287_v19  ;;  %v9135_v19 = vld [vmem:[#allocation53 + $0x30] sm:$0xff]  ;;  %v9328_v13 = vld [vmem:[#allocation50 + $0x18] sm:$0xff] }
0x1709   : > { %v19309_v52 = vpop.f32.mrf.mxu1 }
0x170a   : > { %v9327_v52 = vld [vmem:[#allocation50 + $0x10] sm:$0xff] }
0x1727   : > { %v8781_v28 = vpop.f32.mrf.mxu1 }
0x1728   : > { %v8785_v40 = vadd.f32 %v8781_v28, %v8709_v49  ;;  %v9326_v49 = vld [vmem:[#allocation50 + $0x8] sm:$0xff]  ;;  %v9490_v28 = vld [vmem:[#allocation50 + $0xb8] sm:$0xff] }
0x1729   : > { %v19314_v30 = vpop.f32.mrf.mxu1 }
0x172a   : > { %v8793_v56 = vadd.f32 %v17115_v29, %v8785_v40  ;;  %v9489_v29 = vld [vmem:[#allocation50 + $0xb0] sm:$0xff]  ;;  %v9488_v40 = vld [vmem:[#allocation50 + $0xa8] sm:$0xff]  ;;  %v9487_v30 = vld [vmem:[#allocation50 + $0xa0] sm:$0xff] }
0x172c   : > { %v8794_v55 = vadd.f32 %v8793_v56, %v7978_v50  ;;  %v9486_v50 = vld [vmem:[#allocation50 + $0x98] sm:$0xff]  ;;  %v9485_v56 = vld [vmem:[#allocation50 + $0x90] sm:$0xff] }
0x172e   : > { %v8795_v58 = vmax.f32 %v8794_v55, 0.0  ;;  %v9484_v55 = vld [vmem:[#allocation50 + $0x88] sm:$0xff] }
0x1730   : > { %19348 = vmatmul.mubr.f32.vlgmr.msra.gmra.mxu1 %v8795_v58  ;;  %19383 = vmatmul.mubr.f32.vlgmr.msra.gmra.mxu0 %v8795_v58  ;;  %v9483_v58 = vld [vmem:[#allocation50 + $0x80] sm:$0xff] }
0x1731   : > { %19387 = vmatprep.mubr.msk.f32.mxu1 %vm22552_vm0, %v25396_v41  ;;  %19430 = vmatprep.mubr.msk.f32.mxu0 %vm22552_vm0, %v25396_v41 }
0x1732   : > { %19415 = vmatpush3.msra.mxu0 %v9136_v8  ;;  %v17147_v8 = vld [vmem:[%s25401_s16 + $0x78] sm:$0xff] }
0x1733   : > { %19416 = vmatprep.subr.mxu0 %v25396_v41 }
0x1734   : > { %19417 = vmatpush3.msra.mxu0 %v9135_v19  ;;  %v17146_v19 = vld [vmem:[%s25401_s16 + $0x70] sm:$0xff] }
0x1735   : > { %19418 = vmatprep.subr.mxu0 %v25396_v41 }
0x1736   : > { %19419 = vmatpush3.msra.mxu0 %v9134_v27  ;;  %v17145_v27 = vld [vmem:[%s25401_s16 + $0x68] sm:$0xff] }
0x1737   : > { %19420 = vmatprep.subr.mxu0 %v25396_v41 }
0x1738   : > { %19421 = vmatpush3.msra.mxu0 %v9133_v23  ;;  %v17144_v23 = vld [vmem:[%s25401_s16 + $0x60] sm:$0xff] }
0x1739   : > { %19422 = vmatprep.subr.mxu0 %v25396_v41 }
0x17f0   : > { %v8878_v35 = vpop.f32.mrf.mxu1  ;;  %v8965_v44 = vpop.f32.mrf.mxu0 }
0x17f1   : > { %19386 = vmatpush3.msk.msra.mxu1 %vm8220_vm2, %v8965_v44  ;;  %v17143_v44 = vld [vmem:[%s25401_s16 + $0x58] sm:$0xff] }
0x17f2   : > { %v19349_v11 = vpop.f32.mrf.mxu1  ;;  %v19384_v21 = vpop.f32.mrf.mxu0  ;;  %19388 = vmatmul.mubr.msk.f32.vlgmr.msra.gmra.mxu1 %vm8217_vm4, %v24384_v59  ;;  %19390 = vmatprep.subr.mxu1 %v25396_v41 }
0x17f3   : > { %19391 = vmatpush3.msk.msra.mxu1 %vm8220_vm2, %v8878_v35  ;;  %19392 = vmatprep.mubr.msk.f32.mxu1 %vm22552_vm0, %v25396_v41  ;;  %v9132_v35 = vld [vmem:[#allocation53 + $0x18] sm:$0xff]  ;;  %v9131_v11 = vld [vmem:[#allocation53 + $0x10] sm:$0xff] }
0x17f4   : > { %19395 = vmatprep.subr.mxu1 %v25396_v41  ;;  %19423 = vmatpush3.msra.mxu0 %v9132_v35  ;;  %v17142_v21 = vld [vmem:[%s25401_s16 + $0x50] sm:$0xff]  ;;  %v9299_v35 = vld [vmem:[%s25401_s16] sm:$0xff] }
0x17f5   : > { %19424 = vmatprep.subr.mxu0 %v25396_v41 }
0x17f6   : > { %19393 = vmatmul.mubr.msk.f32.vlgmr.msra.gmra.mxu1 %vm8217_vm4, %v24396_v15  ;;  %19425 = vmatpush3.msra.mxu0 %v9131_v11  ;;  %v17155_v11 = vld [vmem:[%s25401_s16 + $0xb8] sm:$0xff] }
0x17f7   : > { %19396 = vmatpush3.msra.mxu1 %v9144_v14  ;;  %19411 = vmatprep.mubr.msk.f32.mxu1 %vm22552_vm0, %v25396_v41  ;;  %v9130_v14 = vld [vmem:[#allocation53 + $0x8] sm:$0xff] }
0x17f8   : > { %19397 = vmatprep.subr.mxu1 %v25396_v41  ;;  %19426 = vmatprep.subr.mxu0 %v25396_v41 }
0x17f9   : > { %19398 = vmatpush3.msra.mxu1 %v9143_v46  ;;  %19427 = vmatpush3.msra.mxu0 %v9130_v14  ;;  %v17141_v46 = vld [vmem:[%s25401_s16 + $0x48] sm:$0xff] }
0x17fa   : > { %19399 = vmatprep.subr.mxu1 %v25396_v41  ;;  %19428 = vmatprep.subr.mxu0 %v25396_v41  ;;  %v17153_v14 = vld [vmem:[%s25401_s16 + $0xa8] sm:$0xff] }
0x17fb   : > { %19400 = vmatpush3.msra.mxu1 %v9142_v17  ;;  %v9129_v17 = vld [vmem:[#allocation53] sm:$0xff] }
0x17fc   : > { %19401 = vmatprep.subr.mxu1 %v25396_v41  ;;  %19429 = vmatpush3.msra.mxu0 %v9129_v17  ;;  %v17151_v17 = vld [vmem:[%s25401_s16 + $0x98] sm:$0xff] }
0x17fd   : > { %19402 = vmatpush3.msra.mxu1 %v9141_v62  ;;  %v17140_v62 = vld [vmem:[%s25401_s16 + $0x40] sm:$0xff]  ;;  %19452 = vmatprep.subr.mxu0 %v25396_v41 }
0x17fe   : > { %19403 = vmatprep.subr.mxu1 %v25396_v41 }
0x17ff   : > { %19404 = vmatpush3.msra.mxu1 %v9140_v3 }
0x1800   : > { %19405 = vmatprep.subr.mxu1 %v25396_v41 }
0x1801   : > { %19406 = vmatpush3.msra.mxu1 %v9139_v57 }
0x1802   : > { %19407 = vmatprep.subr.mxu1 %v25396_v41 }
0x1803   : > { %19408 = vmatpush3.msra.mxu1 %v9138_v7 }
0x1804   : > { %19409 = vmatprep.subr.mxu1 %v25396_v41 }
0x1805   : > { %19410 = vmatpush3.msra.mxu1 %v9137_v9  ;;  %v17136_v9 = vld [vmem:[%s22919_s1] ss:$0 sm:$0xff] }
0x1806   : > { %19412 = vmatmul.mubr.msk.f32.vlgmr.msra.gmra.mxu1 %vm3565_vm3, %v24091_v32  ;;  %19433 = vmatprep.subr.mxu1 %v25396_v41 }
0x1807   : > { %19434 = vmatpush3.msra.mxu1 %v9332_v25  ;;  %19449 = vmatprep.mubr.msk.f32.mxu1 %vm22552_vm0, %v25396_v41 }
0x1808   : > { %19435 = vmatprep.subr.mxu1 %v25396_v41 }
0x1809   : > { %19436 = vmatpush3.msra.mxu1 %v9331_v61 }
0x180a   : > { %19437 = vmatprep.subr.mxu1 %v25396_v41 }
0x180b   : > { %19438 = vmatpush3.msra.mxu1 %v9330_v60 }
0x180c   : > { %19439 = vmatprep.subr.mxu1 %v25396_v41 }
0x180d   : > { %19440 = vmatpush3.msra.mxu1 %v9329_v43  ;;  %v9411_v43 = vld [vmem:[#allocation50 + $0x78] sm:$0xff] }
0x180e   : > { %19441 = vmatprep.subr.mxu1 %v25396_v41 }
0x180f   : > { %19442 = vmatpush3.msra.mxu1 %v9328_v13  ;;  %v9410_v13 = vld [vmem:[#allocation50 + $0x70] sm:$0xff] }
0x1810   : > { %19443 = vmatprep.subr.mxu1 %v25396_v41 }
0x1811   : > { %19444 = vmatpush3.msra.mxu1 %v9327_v52  ;;  %v9409_v52 = vld [vmem:[#allocation50 + $0x68] sm:$0xff] }
0x1812   : > { %19445 = vmatprep.subr.mxu1 %v25396_v41 }
0x1813   : > { %19446 = vmatpush3.msra.mxu1 %v9326_v49  ;;  %v9408_v49 = vld [vmem:[#allocation50 + $0x60] sm:$0xff] }
0x1814   : > { %19447 = vmatprep.subr.mxu1 %v25396_v41 }
0x1815   : > { %19448 = vmatpush3.msra.mxu1 %v9325_v16  ;;  %v9407_v16 = vld [vmem:[#allocation50 + $0x58] sm:$0xff] }
0x1816   : > { %19450 = vmatmul.mubr.msk.f32.vlgmr.msra.gmra.mxu1 %vm3565_vm3, %v24091_v32  ;;  %19471 = vmatprep.subr.mxu1 %v25396_v41 }
0x1817   : > { %19472 = vmatpush3.msra.mxu1 %v9490_v28  ;;  %19487 = vmatprep.mubr.msk.f32.mxu1 %vm22552_vm0, %v25396_v41  ;;  %v9406_v28 = vld [vmem:[#allocation50 + $0x50] sm:$0xff] }
0x1818   : > { %19473 = vmatprep.subr.mxu1 %v25396_v41 }
0x1819   : > { %19474 = vmatpush3.msra.mxu1 %v9489_v29  ;;  %v9405_v29 = vld [vmem:[#allocation50 + $0x48] sm:$0xff] }
0x181a   : > { %19475 = vmatprep.subr.mxu1 %v25396_v41 }
0x181b   : > { %19476 = vmatpush3.msra.mxu1 %v9488_v40 }
0x181c   : > { %19477 = vmatprep.subr.mxu1 %v25396_v41 }
0x181d   : > { %19478 = vmatpush3.msra.mxu1 %v9487_v30  ;;  %v9404_v30 = vld [vmem:[#allocation50 + $0x40] sm:$0xff] }
0x181e   : > { %19479 = vmatprep.subr.mxu1 %v25396_v41 }
0x181f   : > { %19480 = vmatpush3.msra.mxu1 %v9486_v50 }
0x1820   : > { %19481 = vmatprep.subr.mxu1 %v25396_v41 }
0x1821   : > { %19482 = vmatpush3.msra.mxu1 %v9485_v56  ;;  %v9306_v56 = vld [vmem:[%s25401_s16 + $0x38] sm:$0xff] }
0x1822   : > { %19483 = vmatprep.subr.mxu1 %v25396_v41 }
0x1823   : > { %19484 = vmatpush3.msra.mxu1 %v9484_v55  ;;  %v9305_v55 = vld [vmem:[%s25401_s16 + $0x30] sm:$0xff] }
0x1824   : > { %19485 = vmatprep.subr.mxu1 %v25396_v41 }
0x1825   : > { %19486 = vmatpush3.msra.mxu1 %v9483_v58  ;;  %v9304_v58 = vld [vmem:[%s25401_s16 + $0x28] sm:$0xff] }
0x1826   : > { %19488 = vmatmul.mubr.msk.f32.vlgmr.msra.gmra.mxu1 %vm3565_vm3, %v24091_v32  ;;  %19509 = vmatprep.subr.mxu1 %v25396_v41 }
0x1827   : > { %19510 = vmatpush3.msra.mxu1 %v17147_v8  ;;  %19525 = vmatprep.mubr.msk.f32.mxu1 %vm22552_vm0, %v25396_v41  ;;  %v9303_v8 = vld [vmem:[%s25401_s16 + $0x20] sm:$0xff] }
0x1828   : > { %19511 = vmatprep.subr.mxu1 %v25396_v41 }
0x1829   : > { %19512 = vmatpush3.msra.mxu1 %v17146_v19  ;;  %v9301_v19 = vld [vmem:[%s25401_s16 + $0x10] sm:$0xff] }
0x182a   : > { %19513 = vmatprep.subr.mxu1 %v25396_v41 }
0x182b   : > { %19514 = vmatpush3.msra.mxu1 %v17145_v27  ;;  %v9300_v27 = vld [vmem:[%s25401_s16 + $0x8] sm:$0xff] }
0x182c   : > { %19515 = vmatprep.subr.mxu1 %v25396_v41 }
0x182d   : > { %19516 = vmatpush3.msra.mxu1 %v17144_v23 }
0x182e   : > { %19517 = vmatprep.subr.mxu1 %v25396_v41 }
0x182f   : > { %19518 = vmatpush3.msra.mxu1 %v17143_v44 }
0x1830   : > { %19519 = vmatprep.subr.mxu1 %v25396_v41 }
0x1831   : > { %19520 = vmatpush3.msra.mxu1 %v17142_v21  ;;  %v17154_v21 = vld [vmem:[%s25401_s16 + $0xb0] sm:$0xff] }
0x1832   : > { %19521 = vmatprep.subr.mxu1 %v25396_v41 }
0x1833   : > { %19522 = vmatpush3.msra.mxu1 %v17141_v46  ;;  %v17152_v46 = vld [vmem:[%s25401_s16 + $0xa0] sm:$0xff] }
0x1834   : > { %19523 = vmatprep.subr.mxu1 %v25396_v41 }
0x1835   : > { %19524 = vmatpush3.msra.mxu1 %v17140_v62  ;;  %v17150_v62 = vld [vmem:[%s25401_s16 + $0x90] sm:$0xff] }
0x1836   : > { %19547 = vmatprep.subr.mxu1 %v25396_v41 }
0x18b2   : > { %v9041_v3 = vpop.f32.mrf.mxu1 }
0x18b4   : > { %v19389_v57 = vpop.f32.mrf.mxu1 }
0x18b6   : > { %v9117_v7 = vpop.f32.mrf.mxu1 }
0x18b7   : > { %v9118_v25 = vadd.f32 %v9117_v7, %v9041_v3  ;;  %v17149_v3 = vld [vmem:[%s25401_s16 + $0x88] sm:$0xff]  ;;  %v17148_v7 = vld [vmem:[%s25401_s16 + $0x80] sm:$0xff] }
0x18b8   : > { %v19394_v61 = vpop.f32.mrf.mxu1 }
0x18b9   : > { %v24460_v60 = vadd.f32 %v17136_v9, %v9118_v25 }
0x18bb   : > { %19431 = vmatmul.mubr.msk.f32.vlgmr.msra.gmra.mxu0 %vm3565_vm3, %v24460_v60  ;;  %19526 = vmatmul.mubr.msk.f32.vlgmr.msra.gmra.mxu1 %vm3565_vm3, %v24460_v60 }
0x18bc   : > { %19453 = vmatpush3.msra.mxu0 %v9411_v43  ;;  %19468 = vmatprep.mubr.msk.f32.mxu0 %vm22552_vm0, %v25396_v41 }
0x18bd   : > { %19454 = vmatprep.subr.mxu0 %v25396_v41  ;;  %19549 = vmatprep.mubr.msk.f32.mxu1 %vm22552_vm0, %v25396_v41 }
0x18be   : > { %19455 = vmatpush3.msra.mxu0 %v9410_v13 }
0x18bf   : > { %19456 = vmatprep.subr.mxu0 %v25396_v41 }
0x18c0   : > { %19457 = vmatpush3.msra.mxu0 %v9409_v52 }
0x18c1   : > { %19458 = vmatprep.subr.mxu0 %v25396_v41 }
0x18c2   : > { %19459 = vmatpush3.msra.mxu0 %v9408_v49 }
0x18c3   : > { %19460 = vmatprep.subr.mxu0 %v25396_v41 }
0x18c4   : > { %19461 = vmatpush3.msra.mxu0 %v9407_v16 }
0x18c5   : > { %19462 = vmatprep.subr.mxu0 %v25396_v41 }
0x18c6   : > { %v24475_v40 = vpop.f32.mrf.mxu1  ;;  %19463 = vmatpush3.msra.mxu0 %v9406_v28 }
0x18c7   : > { %19464 = vmatprep.subr.mxu0 %v25396_v41 }
0x18c8   : > { %v19413_v50 = vpop.f32.mrf.mxu1  ;;  %19465 = vmatpush3.msra.mxu0 %v9405_v29 }
0x18c9   : > { %19466 = vmatprep.subr.mxu0 %v25396_v41 }
0x18ca   : > { %19467 = vmatpush3.msra.mxu0 %v9404_v30 }
0x18cb   : > { %19469 = vmatmul.mubr.msk.f32.vlgmr.msra.gmra.mxu0 %vm3565_vm3, %v24091_v32  ;;  %19490 = vmatprep.subr.mxu0 %v25396_v41  ;;  %v9302_v32 = vld [vmem:[%s25401_s16 + $0x18] sm:$0xff] }
0x18cc   : > { %19491 = vmatpush3.msra.mxu0 %v9306_v56  ;;  %19506 = vmatprep.mubr.msk.f32.mxu0 %vm22552_vm0, %v25396_v41 }
0x18cd   : > { %19492 = vmatprep.subr.mxu0 %v25396_v41 }
0x18ce   : > { %19493 = vmatpush3.msra.mxu0 %v9305_v55  ;;  %v9928_v55 = vld [vmem:[#allocation52 + $0x38] sm:$0xff] }
0x18cf   : > { %19494 = vmatprep.subr.mxu0 %v25396_v41 }
0x18d0   : > { %19495 = vmatpush3.msra.mxu0 %v9304_v58  ;;  %v10010_v58 = vld [vmem:[#allocation52 + $0x78] sm:$0xff] }
0x18d1   : > { %19496 = vmatprep.subr.mxu0 %v25396_v41 }
0x18d2   : > { %19497 = vmatpush3.msra.mxu0 %v9303_v8  ;;  %v9927_v8 = vld [vmem:[#allocation52 + $0x30] sm:$0xff] }
0x18d3   : > { %19498 = vmatprep.subr.mxu0 %v25396_v41 }
0x18d4   : > { %19499 = vmatpush3.msra.mxu0 %v9302_v32  ;;  %v10009_v32 = vld [vmem:[#allocation52 + $0x70] sm:$0xff] }
0x18d5   : > { %19500 = vmatprep.subr.mxu0 %v25396_v41 }
0x18d6   : > { %v9399_v23 = vpop.f32.mrf.mxu1  ;;  %19501 = vmatpush3.msra.mxu0 %v9301_v19  ;;  %v9926_v19 = vld [vmem:[#allocation52 + $0x28] sm:$0xff] }
0x18d7   : > { %19502 = vmatprep.subr.mxu0 %v25396_v41 }
0x18d8   : > { %v19451_v44 = vpop.f32.mrf.mxu1  ;;  %19503 = vmatpush3.msra.mxu0 %v9300_v27  ;;  %v10008_v27 = vld [vmem:[#allocation52 + $0x68] sm:$0xff] }
0x18d9   : > { %19504 = vmatprep.subr.mxu0 %v25396_v41  ;;  %v9924_v44 = vld [vmem:[#allocation52 + $0x18] sm:$0xff] }
0x18da   : > { %19505 = vmatpush3.msra.mxu0 %v9299_v35  ;;  %v10007_v35 = vld [vmem:[#allocation52 + $0x60] sm:$0xff] }
0x18db   : > { %19507 = vmatmul.mubr.msk.f32.vlgmr.msra.gmra.mxu0 %vm3565_vm3, %v24460_v60  ;;  %19528 = vmatprep.subr.mxu0 %v25396_v41 }
0x18dc   : > { %19529 = vmatpush3.msra.mxu0 %v17155_v11  ;;  %19544 = vmatprep.mubr.msk.f32.mxu0 %vm22552_vm0, %v25396_v41  ;;  %v10006_v11 = vld [vmem:[#allocation52 + $0x58] sm:$0xff] }
0x18dd   : > { %19530 = vmatprep.subr.mxu0 %v25396_v41 }
0x18de   : > { %19531 = vmatpush3.msra.mxu0 %v17154_v21  ;;  %v9923_v21 = vld [vmem:[#allocation52 + $0x10] sm:$0xff] }
0x18df   : > { %19532 = vmatprep.subr.mxu0 %v25396_v41 }
0x18e0   : > { %19533 = vmatpush3.msra.mxu0 %v17153_v14  ;;  %v10005_v14 = vld [vmem:[#allocation52 + $0x50] sm:$0xff] }
0x18e1   : > { %19534 = vmatprep.subr.mxu0 %v25396_v41 }
0x18e2   : > { %19535 = vmatpush3.msra.mxu0 %v17152_v46  ;;  %v9922_v46 = vld [vmem:[#allocation52 + $0x8] sm:$0xff] }
0x18e3   : > { %19536 = vmatprep.subr.mxu0 %v25396_v41 }
0x18e4   : > { %19537 = vmatpush3.msra.mxu0 %v17151_v17  ;;  %v10004_v17 = vld [vmem:[#allocation52 + $0x48] sm:$0xff] }
0x18e5   : > { %19538 = vmatprep.subr.mxu0 %v25396_v41 }
0x18e6   : > { %v9557_v57 = vpop.f32.mrf.mxu1  ;;  %19539 = vmatpush3.msra.mxu0 %v17150_v62  ;;  %v9921_v62 = vld [vmem:[#allocation52] sm:$0xff] }
0x18e7   : > { %19540 = vmatprep.subr.mxu0 %v25396_v41 }
0x18e8   : > { %v19489_v9 = vpop.f32.mrf.mxu1  ;;  %19541 = vmatpush3.msra.mxu0 %v17149_v3  ;;  %v10003_v3 = vld [vmem:[#allocation52 + $0x40] sm:$0xff] }
0x18e9   : > { %19542 = vmatprep.subr.mxu0 %v25396_v41 }
0x18ea   : > { %19543 = vmatpush3.msra.mxu0 %v17148_v7 }
0x18eb   : > { %19545 = vmatmul.mubr.msk.f32.vlgmr.msra.gmra.mxu0 %vm3565_vm3, %v24460_v60  ;;  %19576 = vmatprep.subr.mxu0 %v25396_v41 }
0x18ec   : > { %19592 = vmatprep.mubr.msk.f32.mxu0 %vm22552_vm0, %v25396_v41  ;;  %19577 = vmatpush3.msra.mxu0 %v10010_v58  ;;  %v10082_v58 = vld [vmem:[#allocation52 + $0x80] sm:$0xff] }
0x18ed   : > { %19578 = vmatprep.subr.mxu0 %v25396_v41 }
0x18ee   : > { %19579 = vmatpush3.msra.mxu0 %v10009_v32 }
0x18ef   : > { %19580 = vmatprep.subr.mxu0 %v25396_v41 }
0x18f0   : > { %19581 = vmatpush3.msra.mxu0 %v10008_v27 }
0x18f1   : > { %19582 = vmatprep.subr.mxu0 %v25396_v41 }
0x18f2   : > { %19583 = vmatpush3.msra.mxu0 %v10007_v35 }
0x18f3   : > { %19584 = vmatprep.subr.mxu0 %v25396_v41 }
0x18f4   : > { %19585 = vmatpush3.msra.mxu0 %v10006_v11  ;;  %v17179_v11 = vld [vmem:[%s22904_s4 + $0x78] sm:$0xff] }
0x18f5   : > { %19586 = vmatprep.subr.mxu0 %v25396_v41 }
0x18f6   : > { %19587 = vmatpush3.msra.mxu0 %v10005_v14  ;;  %v17178_v14 = vld [vmem:[%s22904_s4 + $0x70] sm:$0xff] }
0x18f7   : > { %19588 = vmatprep.subr.mxu0 %v25396_v41 }
0x18f8   : > { %19589 = vmatpush3.msra.mxu0 %v10004_v17  ;;  %v17177_v17 = vld [vmem:[%s22904_s4 + $0x68] sm:$0xff] }
0x18f9   : > { %19590 = vmatprep.subr.mxu0 %v25396_v41 }
0x18fa   : > { %19591 = vmatpush3.msra.mxu0 %v10003_v3  ;;  %v17176_v3 = vld [vmem:[%s22904_s4 + $0x60] sm:$0xff] }
0x18fb   : > { %19614 = vmatprep.subr.mxu0 %v25396_v41 }
0x197b   : > { %v24524_v25 = vpop.f32.mrf.mxu0  ;;  %v9697_v61 = vpop.f32.mrf.mxu1 }
0x197d   : > { %v19432_v43 = vpop.f32.mrf.mxu0  ;;  %v19527_v13 = vpop.f32.mrf.mxu1 }
0x197e   : > { %v17164_v43 = vld [vmem:[#allocation46] ss:$0 sm:$0xff] }
0x198b   : > { %v9478_v52 = vpop.f32.mrf.mxu0 }
0x198c   : > { %v24526_v49 = vadd.f32 %v9697_v61, %v9478_v52 }
0x198d   : > { %v19470_v16 = vpop.f32.mrf.mxu0 }
0x199b   : > { %v9627_v28 = vpop.f32.mrf.mxu0 }
0x199c   : > { %v9628_v29 = vadd.f32 %v9627_v28, %v9399_v23  ;;  %v9925_v23 = vld [vmem:[#allocation52 + $0x20] sm:$0xff] }
0x199d   : > { %v19508_v30 = vpop.f32.mrf.mxu0 }
0x199e   : > { %19548 = vmatpush3.msra.mxu1 %v9628_v29  ;;  %v10089_v29 = vld [vmem:[#allocation52 + $0xb8] sm:$0xff]  ;;  %v10088_v30 = vld [vmem:[#allocation52 + $0xb0] sm:$0xff] }
0x199f   : > { %19550 = vmatmul.mubr.msk.f32.vlgmr.msra.gmra.mxu1 %vm3856_vm5, %v23506_v18  ;;  %19552 = vmatprep.subr.mxu1 %v25396_v41 }
0x19a0   : > { %19554 = vmatprep.mubr.msk.f32.mxu1 %vm22552_vm0, %v25396_v41 }
0x19ab   : > { %v9767_v60 = vpop.f32.mrf.mxu0 }
0x19ac   : > { %v9768_v50 = vadd.f32 %v9767_v60, %v9557_v57  ;;  %v10087_v60 = vld [vmem:[#allocation52 + $0xa8] sm:$0xff] }
0x19ad   : > { %v19546_v56 = vpop.f32.mrf.mxu0 }
0x19ae   : > { %19553 = vmatpush3.msra.mxu1 %v9768_v50  ;;  %v10085_v50 = vld [vmem:[#allocation52 + $0x98] sm:$0xff]  ;;  %v10084_v56 = vld [vmem:[#allocation52 + $0x90] sm:$0xff] }
0x19af   : > { %19555 = vmatmul.mubr.msk.f32.vlgmr.msra.gmra.mxu1 %vm3856_vm5, %v23513_v20  ;;  %19557 = vmatprep.subr.mxu1 %v25396_v41 }
0x19b0   : > { %19573 = vmatprep.mubr.msk.f32.mxu1 %vm22552_vm0, %v25396_v41  ;;  %19558 = vmatpush3.msra.mxu1 %v9928_v55  ;;  %v10083_v55 = vld [vmem:[#allocation52 + $0x88] sm:$0xff] }
0x19b1   : > { %19559 = vmatprep.subr.mxu1 %v25396_v41 }
0x19b2   : > { %19560 = vmatpush3.msra.mxu1 %v9927_v8 }
0x19b3   : > { %19561 = vmatprep.subr.mxu1 %v25396_v41 }
0x19b4   : > { %19562 = vmatpush3.msra.mxu1 %v9926_v19 }
0x19b5   : > { %19563 = vmatprep.subr.mxu1 %v25396_v41 }
0x19b6   : > { %19564 = vmatpush3.msra.mxu1 %v9925_v23 }
0x19b7   : > { %19565 = vmatprep.subr.mxu1 %v25396_v41 }
0x19b8   : > { %19566 = vmatpush3.msra.mxu1 %v9924_v44  ;;  %v10318_v44 = vld [vmem:[%s22904_s4 + $0x38] sm:$0xff] }
0x19b9   : > { %19567 = vmatprep.subr.mxu1 %v25396_v41 }
0x19ba   : > { %19568 = vmatpush3.msra.mxu1 %v9923_v21  ;;  %v10317_v21 = vld [vmem:[%s22904_s4 + $0x30] sm:$0xff] }
0x19bb   : > { %19569 = vmatprep.subr.mxu1 %v25396_v41 }
0x19bc   : > { %19570 = vmatpush3.msra.mxu1 %v9922_v46  ;;  %v10316_v46 = vld [vmem:[%s22904_s4 + $0x28] sm:$0xff] }
0x19bd   : > { %19571 = vmatprep.subr.mxu1 %v25396_v41 }
0x19be   : > { %19572 = vmatpush3.msra.mxu1 %v9921_v62  ;;  %v10315_v62 = vld [vmem:[%s22904_s4 + $0x20] sm:$0xff] }
0x19bf   : > { %19595 = vmatprep.subr.mxu1 %v25396_v41 }
0x1a5f   : > { %v9837_v57 = vpop.f32.mrf.mxu1 }
0x1a60   : > { %v9838_v9 = vadd.f32 %v9837_v57, %v24526_v49  ;;  %v10086_v49 = vld [vmem:[#allocation52 + $0xa0] sm:$0xff]  ;;  %v10314_v57 = vld [vmem:[%s22904_s4 + $0x18] sm:$0xff] }
0x1a61   : > { %v19551_v7 = vpop.f32.mrf.mxu1 }
0x1a62   : > { %v17175_v7 = vld [vmem:[%s22904_s4 + $0x58] sm:$0xff] }
0x1a6f   : > { %v9907_v61 = vpop.f32.mrf.mxu1 }
0x1a70   : > { %v9911_v13 = vadd.f32 %v9907_v61, %v9838_v9  ;;  %v10313_v9 = vld [vmem:[%s22904_s4 + $0x10] sm:$0xff] }
0x1a71   : > { %v19556_v52 = vpop.f32.mrf.mxu1  ;;  %v17174_v61 = vld [vmem:[%s22904_s4 + $0x50] sm:$0xff] }
0x1a72   : > { %v9919_v16 = vadd.f32 %v17164_v43, %v9911_v13  ;;  %v10312_v43 = vld [vmem:[%s22904_s4 + $0x8] sm:$0xff]  ;;  %v10311_v52 = vld [vmem:[%s22904_s4] sm:$0xff] }
0x1a73   : > { %v17173_v13 = vld [vmem:[%s22904_s4 + $0x48] sm:$0xff] }
0x1a74   : > { %v9920_v28 = vmax.f32 %v9919_v16, 0.0  ;;  %v17172_v16 = vld [vmem:[%s22904_s4 + $0x40] sm:$0xff] }
0x1a76   : > { %19574 = vmatmul.mubr.msk.f32.vlgmr.msra.gmra.mxu1 %vm3565_vm3, %v9920_v28  ;;  %19593 = vmatmul.mubr.msk.f32.vlgmr.msra.gmra.mxu0 %vm3565_vm3, %v9920_v28 }
0x1a77   : > { %19596 = vmatpush3.msra.mxu1 %v10089_v29  ;;  %19611 = vmatprep.mubr.msk.f32.mxu1 %vm22552_vm0, %v25396_v41 }
0x1a78   : > { %19597 = vmatprep.subr.mxu1 %v25396_v41  ;;  %19616 = vmatprep.mubr.msk.f32.mxu0 %vm22552_vm0, %v25396_v41 }
0x1a79   : > { %19598 = vmatpush3.msra.mxu1 %v10088_v30  ;;  %v9288_v30 = vadd.f32 %v24524_v25, %v24475_v40 }
0x1a7a   : > { %19599 = vmatprep.subr.mxu1 %v25396_v41 }
0x1a7b   : > { %19600 = vmatpush3.msra.mxu1 %v10087_v60 }
0x1a7c   : > { %19601 = vmatprep.subr.mxu1 %v25396_v41 }
0x1a7d   : > { %19602 = vmatpush3.msra.mxu1 %v10086_v49  ;;  %v17139_v49 = vld [vmem:[#allocation49] ss:$0 sm:$0xff] }
0x1a7e   : > { %19603 = vmatprep.subr.mxu1 %v25396_v41 }
0x1a7f   : > { %19604 = vmatpush3.msra.mxu1 %v10085_v50 }
0x1a80   : > { %19605 = vmatprep.subr.mxu1 %v25396_v41 }
0x1a81   : > { %19606 = vmatpush3.msra.mxu1 %v10084_v56  ;;  %v17170_v56 = vld [vmem:[#allocation47] ss:$0 sm:$0xff] }
0x1a82   : > { %19607 = vmatprep.subr.mxu1 %v25396_v41 }
0x1a83   : > { %19608 = vmatpush3.msra.mxu1 %v10083_v55 }
0x1a84   : > { %19609 = vmatprep.subr.mxu1 %v25396_v41 }
0x1a85   : > { %19610 = vmatpush3.msra.mxu1 %v10082_v58 }
0x1a86   : > { %19612 = vmatmul.mubr.msk.f32.vlgmr.msra.gmra.mxu1 %vm3565_vm3, %v9920_v28  ;;  %19643 = vmatprep.subr.mxu1 %v25396_v41 }
0x1a87   : > { %19659 = vmatprep.mubr.msk.f32.mxu1 %vm22552_vm0, %v25396_v41  ;;  %19644 = vmatpush3.msra.mxu1 %v17179_v11 }
0x1a88   : > { %19645 = vmatprep.subr.mxu1 %v25396_v41 }
0x1a89   : > { %19646 = vmatpush3.msra.mxu1 %v17178_v14  ;;  %v10643_v14 = vld [vmem:[#allocation43 + $0x18] sm:$0xff] }
0x1a8a   : > { %19647 = vmatprep.subr.mxu1 %v25396_v41 }
0x1a8b   : > { %19648 = vmatpush3.msra.mxu1 %v17177_v17  ;;  %v10644_v17 = vld [vmem:[#allocation44] sm:$0xff] }
0x1a8c   : > { %19649 = vmatprep.subr.mxu1 %v25396_v41 }
0x1a8d   : > { %19650 = vmatpush3.msra.mxu1 %v17176_v3  ;;  %v10835_v3 = vld [vmem:[#allocation40 + $0x10] sm:$0xff] }
0x1a8e   : > { %19651 = vmatprep.subr.mxu1 %v25396_v41 }
0x1a8f   : > { %19652 = vmatpush3.msra.mxu1 %v17175_v7  ;;  %v10833_v7 = vld [vmem:[#allocation40] sm:$0xff] }
0x1a90   : > { %19653 = vmatprep.subr.mxu1 %v25396_v41 }
0x1a91   : > { %19654 = vmatpush3.msra.mxu1 %v17174_v61  ;;  %v10995_v61 = vld [vmem:[#allocation40 + $0x50] sm:$0xff] }
0x1a92   : > { %19655 = vmatprep.subr.mxu1 %v25396_v41 }
0x1a93   : > { %19656 = vmatpush3.msra.mxu1 %v17173_v13  ;;  %v10993_v13 = vld [vmem:[#allocation40 + $0x40] sm:$0xff] }
0x1a94   : > { %19657 = vmatprep.subr.mxu1 %v25396_v41 }
0x1a95   : > { %19658 = vmatpush3.msra.mxu1 %v17172_v16  ;;  %v10642_v16 = vld [vmem:[#allocation43 + $0x10] sm:$0xff] }
0x1b36   : > { %v9998_v8 = vpop.f32.mrf.mxu1  ;;  %v10077_v32 = vpop.f32.mrf.mxu0 }
0x1b37   : > { %19615 = vmatpush3.msra.mxu0 %v9998_v8  ;;  %v9298_v8 = vadd.f32 %v17139_v49, %v9288_v30  ;;  %v10825_v30 = vld [vmem:[#allocation38 + $0x28] sm:$0xff]  ;;  %v10824_v49 = vld [vmem:[#allocation38 + $0x20] sm:$0xff] }
0x1b38   : > { %v19575_v19 = vpop.f32.mrf.mxu1  ;;  %v19594_v27 = vpop.f32.mrf.mxu0  ;;  %19617 = vmatmul.mubr.msk.f32.vlgmr.msra.gmra.mxu0 %vm3856_vm5, %v23506_v18  ;;  %19619 = vmatprep.subr.mxu0 %v25396_v41 }
0x1b39   : > { %19621 = vmatprep.mubr.msk.f32.mxu0 %vm22552_vm0, %v25396_v41 }
0x1b46   : > { %v10156_v23 = vpop.f32.mrf.mxu1 }
0x1b47   : > { %19620 = vmatpush3.msra.mxu0 %v10156_v23 }
0x1b48   : > { %v19613_v35 = vpop.f32.mrf.mxu1  ;;  %19622 = vmatmul.mubr.msk.f32.vlgmr.msra.gmra.mxu0 %vm3856_vm5, %v23513_v20  ;;  %19624 = vmatprep.subr.mxu0 %v25396_v41 }
0x1b49   : > { %19640 = vmatprep.mubr.msk.f32.mxu0 %vm22552_vm0, %v25396_v41  ;;  %19625 = vmatpush3.msra.mxu0 %v10318_v44  ;;  %v24628_v35 = vsel %vm3044_vm9, 1.0, %v25396_v41  ;;  %v10647_v44 = vld [vmem:[#allocation44 + $0x18] sm:$0xff]  ;;  %vm3062_vm0 = vcmp.eq.s32.totalorder %v23537_v39, %v24376_v6 }
0x1b4a   : > { %19626 = vmatprep.subr.mxu0 %v25396_v41 }
0x1b4b   : > { %19627 = vmatpush3.msra.mxu0 %v10317_v21 }
0x1b4c   : > { %19628 = vmatprep.subr.mxu0 %v25396_v41 }
0x1b4d   : > { %19629 = vmatpush3.msra.mxu0 %v10316_v46  ;;  %v10645_v46 = vld [vmem:[#allocation44 + $0x8] sm:$0xff] }
0x1b4e   : > { %19630 = vmatprep.subr.mxu0 %v25396_v41 }
0x1b4f   : > { %19631 = vmatpush3.msra.mxu0 %v10315_v62  ;;  %v10836_v62 = vld [vmem:[#allocation40 + $0x18] sm:$0xff] }
0x1b50   : > { %19632 = vmatprep.subr.mxu0 %v25396_v41 }
0x1b51   : > { %19633 = vmatpush3.msra.mxu0 %v10314_v57  ;;  %v10834_v57 = vld [vmem:[#allocation40 + $0x8] sm:$0xff] }
0x1b52   : > { %19634 = vmatprep.subr.mxu0 %v25396_v41 }
0x1b53   : > { %19635 = vmatpush3.msra.mxu0 %v10313_v9  ;;  %v10996_v9 = vld [vmem:[#allocation40 + $0x58] sm:$0xff] }
0x1b54   : > { %19636 = vmatprep.subr.mxu0 %v25396_v41 }
0x1b55   : > { %19637 = vmatpush3.msra.mxu0 %v10312_v43  ;;  %v10994_v43 = vld [vmem:[#allocation40 + $0x48] sm:$0xff] }
0x1b56   : > { %19638 = vmatprep.subr.mxu0 %v25396_v41 }
0x1b57   : > { %19639 = vmatpush3.msra.mxu0 %v10311_v52  ;;  %v10827_v52 = vld [vmem:[#allocation38 + $0x38] sm:$0xff] }
0x1bf8   : > { %v10226_v28 = vpop.f32.mrf.mxu0 }
0x1bf9   : > { %v10227_v60 = vadd.f32 %v10226_v28, %v10077_v32  ;;  %v24625_v32 = vsel %vm3047_vm8, 1.0, %v25396_v41  ;;  %v10826_v28 = vld [vmem:[#allocation38 + $0x30] sm:$0xff] }
0x1bfa   : > { %v19618_v29 = vpop.f32.mrf.mxu0 }
0x1bfb   : > { %v10641_v29 = vld [vmem:[#allocation43 + $0x8] sm:$0xff] }
0x1c08   : > { %v10296_v50 = vpop.f32.mrf.mxu0 }
0x1c09   : > { %v10300_v55 = vadd.f32 %v10296_v50, %v10227_v60  ;;  %v10640_v60 = vld [vmem:[#allocation43] sm:$0xff]  ;;  %v10916_v50 = vld [vmem:[#allocation40 + $0x38] sm:$0xff] }
0x1c0a   : > { %v19623_v58 = vpop.f32.mrf.mxu0 }
0x1c0b   : > { %v10308_v19 = vadd.f32 %v17170_v56, %v10300_v55 }
0x1c0d   : > { %v10309_v27 = vadd.f32 %v10308_v19, %v9298_v8 }
0x1c0f   : > { %v10310_v23 = vmax.f32 %v10309_v27, 0.0  ;;  %v17185_v27 = vld [vmem:[%s22909_s9] ss:$0 sm:$0xff] }
0x1c11   : > { %19641 = vmatmul.mubr.msk.f32.vlgmr.msra.gmra.mxu0 %vm3565_vm3, %v10310_v23  ;;  %19660 = vmatmul.mubr.msk.f32.vlgmr.msra.gmra.mxu1 %vm3565_vm3, %v10310_v23 }
0x1c12   : > { %19664 = vmatprep.mubr.msk.f32.mxu0 %vm3856_vm5, %v24384_v59  ;;  %19669 = vmatprep.mubr.msk.f32.mxu1 %vm3856_vm5, %v24396_v15 }
0x1cd1   : > { %v10388_v40 = vpop.f32.mrf.mxu0  ;;  %v10467_v25 = vpop.f32.mrf.mxu1 }
0x1cd2   : > { %19662 = vmatprep.subr.mxu0 %v10467_v25  ;;  %19667 = vmatprep.subr.mxu1 %v10388_v40 }
0x1cd3   : > { %v19642_v11 = vpop.f32.mrf.mxu0  ;;  %v19661_v21 = vpop.f32.mrf.mxu1  ;;  %19663 = vmatpush3.msra.mxu0 %v10467_v25  ;;  %19668 = vmatpush3.msra.mxu1 %v10388_v40 }
0x1cd4   : > { %19665 = vmatmul.mubr.msk.f32.vlgmr.msra.gmra.mxu0 %vm3856_vm5, %v24625_v32  ;;  %19670 = vmatmul.mubr.msk.f32.vlgmr.msra.gmra.mxu1 %vm3856_vm5, %v24628_v35  ;;  %v10914_v11 = vld [vmem:[#allocation40 + $0x28] sm:$0xff]  ;;  %v10913_v21 = vld [vmem:[#allocation40 + $0x20] sm:$0xff] }
0x1cd5   : > { %19672 = vmatprep.subr.mxu0 %v10647_v44  ;;  %19680 = vmatprep.mubr.msk.f32.mxu0 %vm5012_vm14, %v23960_v63 }
0x1cd6   : > { %19673 = vmatpush3.msra.mxu0 %v10647_v44  ;;  %19683 = vmatprep.subr.mxu1 %v10643_v14  ;;  %v10915_v44 = vld [vmem:[#allocation40 + $0x30] sm:$0xff] }
0x1cd7   : > { %19674 = vmatprep.subr.mxu0 %v10646_v31  ;;  %19684 = vmatpush3.msra.mxu1 %v10643_v14  ;;  %v10822_v14 = vld [vmem:[#allocation38 + $0x18] sm:$0xff] }
0x1cd8   : > { %19675 = vmatpush3.msra.mxu0 %v10646_v31  ;;  %19685 = vmatprep.subr.mxu1 %v10642_v16  ;;  %v10821_v31 = vld [vmem:[#allocation38 + $0x10] sm:$0xff] }
0x1cd9   : > { %19676 = vmatprep.subr.mxu0 %v10645_v46  ;;  %19686 = vmatpush3.msra.mxu1 %v10642_v16 }
0x1cda   : > { %19677 = vmatpush3.msra.mxu0 %v10645_v46  ;;  %19687 = vmatprep.subr.mxu1 %v10641_v29  ;;  %v10819_v46 = vld [vmem:[#allocation38] sm:$0xff] }
0x1cdb   : > { %19678 = vmatprep.subr.mxu0 %v10644_v17  ;;  %19688 = vmatpush3.msra.mxu1 %v10641_v29 }
0x1cdc   : > { %19679 = vmatpush3.msra.mxu0 %v10644_v17  ;;  %19689 = vmatprep.subr.mxu1 %v10640_v60  ;;  %v10832_v17 = vld [vmem:[#allocation38 + $0x58] sm:$0xff] }
0x1cdd   : > { %19681 = vmatmul.mubr.msk.f32.vlgmr.msra.gmra.mxu0 %vm5012_vm14, %v23958_v42  ;;  %19694 = vmatprep.subr.mxu0 %v10836_v62 }
0x1cde   : > { %19695 = vmatpush3.msra.mxu0 %v10836_v62  ;;  %19702 = vmatprep.mubr.msk.f32.mxu0 %vm5012_vm14, %v23960_v63  ;;  %v10831_v62 = vld [vmem:[#allocation38 + $0x50] sm:$0xff] }
0x1cdf   : > { %19696 = vmatprep.subr.mxu0 %v10835_v3  ;;  %19690 = vmatpush3.msra.mxu1 %v10640_v60 }
0x1ce0   : > { %19697 = vmatpush3.msra.mxu0 %v10835_v3  ;;  %19705 = vmatprep.subr.mxu1 %v10916_v50  ;;  %v10829_v3 = vld [vmem:[#allocation38 + $0x40] sm:$0xff] }
0x1ce1   : > { %19698 = vmatprep.subr.mxu0 %v10834_v57 }
0x1ce2   : > { %19699 = vmatpush3.msra.mxu0 %v10834_v57 }
0x1ce3   : > { %19700 = vmatprep.subr.mxu0 %v10833_v7 }
0x1ce4   : > { %19701 = vmatpush3.msra.mxu0 %v10833_v7 }
0x1ce5   : > { %19703 = vmatmul.mubr.msk.f32.vlgmr.msra.gmra.mxu0 %vm5012_vm14, %v23958_v42  ;;  %19716 = vmatprep.subr.mxu0 %v10996_v9 }
0x1ce6   : > { %19717 = vmatpush3.msra.mxu0 %v10996_v9  ;;  %19724 = vmatprep.mubr.msk.f32.mxu0 %vm5012_vm14, %v23960_v63 }
0x1ce7   : > { %19718 = vmatprep.subr.mxu0 %v10995_v61 }
0x1ce8   : > { %19719 = vmatpush3.msra.mxu0 %v10995_v61 }
0x1ce9   : > { %19720 = vmatprep.subr.mxu0 %v10994_v43 }
0x1cea   : > { %19721 = vmatpush3.msra.mxu0 %v10994_v43 }
0x1ceb   : > { %19722 = vmatprep.subr.mxu0 %v10993_v13 }
0x1cec   : > { %19723 = vmatpush3.msra.mxu0 %v10993_v13 }
0x1ced   : > { %19725 = vmatmul.mubr.msk.f32.vlgmr.msra.gmra.mxu0 %vm5012_vm14, %v23958_v42  ;;  %19738 = vmatprep.subr.mxu0 %v10827_v52 }
0x1cee   : > { %19739 = vmatpush3.msra.mxu0 %v10827_v52 }
0x1cef   : > { %19740 = vmatprep.subr.mxu0 %v10826_v28 }
0x1cf0   : > { %19741 = vmatpush3.msra.mxu0 %v10826_v28 }
0x1cf1   : > { %19742 = vmatprep.subr.mxu0 %v10825_v30 }
0x1cf2   : > { %19743 = vmatpush3.msra.mxu0 %v10825_v30 }
0x1cf3   : > { %19744 = vmatprep.subr.mxu0 %v10824_v49 }
0x1cf4   : > { %19745 = vmatpush3.msra.mxu0 %v10824_v49 }
0x1d94   : > { %v19666_v56 = vpop.f32.mrf.mxu0  ;;  %v19671_v55 = vpop.f32.mrf.mxu1 }
0x1d95   : > { %v10628_v58 = vadd.f32 %v19671_v55, %v19666_v56 }
0x1d96   : > { %v10542_v8 = vpop.f32.mrf.mxu0  ;;  %v10622_v19 = vpop.f32.mrf.mxu1 }
0x1d97   : > { %v10623_v23 = vadd.f32 %v10622_v19, %v10542_v8  ;;  %v10639_v25 = vadd.f32 %v17185_v27, %v10628_v58  ;;  %v11463_v19 = vld [vmem:[#allocation41 + $0x18] sm:$0xff] }
0x1d99   : > { %v10638_v40 = vadd.f32 %v17185_v27, %v10623_v23  ;;  %v11549_v27 = vld [vmem:[#allocation41 + $0x38] sm:$0xff]  ;;  %v11462_v23 = vld [vmem:[#allocation41 + $0x10] sm:$0xff] }
0x1d9b   : > { %19691 = vmatprep.mubr.msk.f32.mxu1 %vm5012_vm14, %v10638_v40  ;;  %19746 = vmatprep.mubr.msk.f32.mxu0 %vm5012_vm14, %v10638_v40 }
0x1d9c   : > { %19692 = vmatmul.mubr.msk.f32.vlgmr.msra.gmra.mxu1 %vm5012_vm14, %v10639_v25  ;;  %19747 = vmatmul.mubr.msk.f32.vlgmr.msra.gmra.mxu0 %vm5012_vm14, %v10639_v25 }
0x1d9d   : > { %19706 = vmatpush3.msra.mxu1 %v10916_v50  ;;  %19713 = vmatprep.mubr.msk.f32.mxu1 %vm5012_vm14, %v23960_v63  ;;  %v10820_v63 = vld [vmem:[#allocation38 + $0x8] sm:$0xff]  ;;  %v24665_v7 = vpop.f32.mrf.mxu0 }
0x1d9e   : > { %19707 = vmatprep.subr.mxu1 %v10915_v44  ;;  %19764 = vmatprep.mubr.msk.f32.mxu0 %vm5220_vm15, %v23506_v18 }
0x1d9f   : > { %19708 = vmatpush3.msra.mxu1 %v10915_v44  ;;  %v24669_v43 = vpop.f32.mrf.mxu0  ;;  %v11547_v44 = vld [vmem:[#allocation41 + $0x28] sm:$0xff] }
0x1da0   : > { %19709 = vmatprep.subr.mxu1 %v10914_v11 }
0x1da1   : > { %19710 = vmatpush3.msra.mxu1 %v10914_v11  ;;  %v11460_v11 = vld [vmem:[#allocation41] sm:$0xff] }
0x1da2   : > { %19711 = vmatprep.subr.mxu1 %v10913_v21 }
0x1da3   : > { %19712 = vmatpush3.msra.mxu1 %v10913_v21  ;;  %v11546_v21 = vld [vmem:[#allocation41 + $0x20] sm:$0xff] }
0x1da4   : > { %19714 = vmatmul.mubr.msk.f32.vlgmr.msra.gmra.mxu1 %vm5012_vm14, %v23958_v42  ;;  %19727 = vmatprep.subr.mxu1 %v10822_v14  ;;  %v10830_v42 = vld [vmem:[#allocation38 + $0x48] sm:$0xff] }
0x1da5   : > { %19728 = vmatpush3.msra.mxu1 %v10822_v14  ;;  %19735 = vmatprep.mubr.msk.f32.mxu1 %vm5012_vm14, %v10638_v40  ;;  %v19704_v13 = vpop.f32.mrf.mxu0  ;;  %v11629_v14 = vld [vmem:[#allocation41 + $0x58] sm:$0xff] }
0x1da6   : > { %19729 = vmatprep.subr.mxu1 %v10821_v31 }
0x1da7   : > { %19730 = vmatpush3.msra.mxu1 %v10821_v31  ;;  %v10903_v29 = vpop.f32.mrf.mxu0 }
0x1da8   : > { %19731 = vmatprep.subr.mxu1 %v10820_v63 }
0x1da9   : > { %19732 = vmatpush3.msra.mxu1 %v10820_v63 }
0x1daa   : > { %19733 = vmatprep.subr.mxu1 %v10819_v46 }
0x1dab   : > { %19734 = vmatpush3.msra.mxu1 %v10819_v46 }
0x1dac   : > { %19736 = vmatmul.mubr.msk.f32.vlgmr.msra.gmra.mxu1 %vm5012_vm14, %v10639_v25  ;;  %19749 = vmatprep.subr.mxu1 %v10832_v17 }
0x1dad   : > { %19750 = vmatpush3.msra.mxu1 %v10832_v17  ;;  %19757 = vmatprep.mubr.msk.f32.mxu1 %vm5012_vm14, %v10638_v40  ;;  %v19726_v49 = vpop.f32.mrf.mxu0  ;;  %v11548_v40 = vld [vmem:[#allocation41 + $0x30] sm:$0xff] }
0x1dae   : > { %19751 = vmatprep.subr.mxu1 %v10831_v62 }
0x1daf   : > { %19752 = vmatpush3.msra.mxu1 %v10831_v62  ;;  %v11063_v55 = vpop.f32.mrf.mxu0 }
0x1db0   : > { %19753 = vmatprep.subr.mxu1 %v10830_v42 }
0x1db1   : > { %19754 = vmatpush3.msra.mxu1 %v10830_v42 }
0x1db2   : > { %19755 = vmatprep.subr.mxu1 %v10829_v3 }
0x1db3   : > { %19756 = vmatpush3.msra.mxu1 %v10829_v3 }
0x1db4   : > { %19758 = vmatmul.mubr.msk.f32.vlgmr.msra.gmra.mxu1 %vm5012_vm14, %v10639_v25  ;;  %v11461_v25 = vld [vmem:[#allocation41 + $0x8] sm:$0xff] }
0x1db5   : > { %19771 = vmatprep.mubr.msk.f32.mxu1 %vm5220_vm15, %v23513_v20 }
0x1e5c   : > { %v24663_v57 = vpop.f32.mrf.mxu1  ;;  %v19748_v31 = vpop.f32.mrf.mxu0 }
0x1e5e   : > { %v24667_v9 = vpop.f32.mrf.mxu1  ;;  %v11213_v63 = vpop.f32.mrf.mxu0 }
0x1e64   : > { %v19715_v61 = vpop.f32.mrf.mxu1 }
0x1e65   : > { %v11219_v17 = vadd.f32 %v19748_v31, %v19715_v61  ;;  %v11627_v61 = vld [vmem:[#allocation41 + $0x48] sm:$0xff]  ;;  %v11870_v31 = vld [vmem:[%s25402_s11] sm:$0xff] }
0x1e66   : > { %v10983_v52 = vpop.f32.mrf.mxu1 }
0x1e67   : > { %v11214_v42 = vadd.f32 %v11213_v63, %v10983_v52  ;;  %v11626_v52 = vld [vmem:[#allocation41 + $0x40] sm:$0xff] }
0x1e68   : > { %v17221_v63 = vld [vmem:[%s25402_s11 + $0x20] sm:$0xff] }
0x1e6c   : > { %v19737_v16 = vpop.f32.mrf.mxu1 }
0x1e6d   : > { %v11144_v28 = vadd.f32 %v19737_v16, %v19704_v13 }
0x1e6e   : > { %v11138_v30 = vpop.f32.mrf.mxu1 }
0x1e6f   : > { %v11139_v60 = vadd.f32 %v11138_v30, %v10903_v29  ;;  %19760 = vmatprep.subr.mxu0 %v11144_v28  ;;  %v17207_v29 = vld [vmem:[#allocation34] ss:$0 sm:$0xff] }
0x1e70   : > { %19761 = vmatpush3.msra.mxu0 %v11144_v28 }
0x1e71   : > { %19762 = vmatprep.subr.mxu0 %v11139_v60 }
0x1e72   : > { %19763 = vmatpush3.msra.mxu0 %v11139_v60 }
0x1e73   : > { %19765 = vmatmul.mubr.msk.f32.vlgmr.msra.gmra.mxu0 %vm5220_vm15, %v23550_v47  ;;  %19774 = vmatprep.subr.mxu0 %v11463_v19 }
0x1e74   : > { %v19759_v50 = vpop.f32.mrf.mxu1  ;;  %19775 = vmatpush3.msra.mxu0 %v11463_v19 }
0x1e75   : > { %v11294_v56 = vadd.f32 %v19759_v50, %v19726_v49  ;;  %19776 = vmatprep.subr.mxu0 %v11462_v23 }
0x1e76   : > { %v11288_v58 = vpop.f32.mrf.mxu1  ;;  %19777 = vmatpush3.msra.mxu0 %v11462_v23 }
0x1e77   : > { %v11289_v8 = vadd.f32 %v11288_v58, %v11063_v55  ;;  %19767 = vmatprep.subr.mxu1 %v11294_v56  ;;  %19778 = vmatprep.subr.mxu0 %v11461_v25  ;;  %v11628_v58 = vld [vmem:[#allocation41 + $0x50] sm:$0xff] }
0x1e78   : > { %19768 = vmatpush3.msra.mxu1 %v11294_v56  ;;  %19779 = vmatpush3.msra.mxu0 %v11461_v25  ;;  %v17224_v25 = vld [vmem:[%s25402_s11 + $0x38] sm:$0xff] }
0x1e79   : > { %19769 = vmatprep.subr.mxu1 %v11289_v8  ;;  %19780 = vmatprep.subr.mxu0 %v11460_v11 }
0x1e7a   : > { %19770 = vmatpush3.msra.mxu1 %v11289_v8  ;;  %19781 = vmatpush3.msra.mxu0 %v11460_v11  ;;  %v17223_v11 = vld [vmem:[%s25402_s11 + $0x30] sm:$0xff] }
0x1e7b   : > { %19772 = vmatmul.mubr.msk.f32.vlgmr.msra.gmra.mxu1 %vm5220_vm15, %v23604_v0  ;;  %19785 = vmatprep.subr.mxu1 %v11549_v27 }
0x1e7c   : > { %19786 = vmatpush3.msra.mxu1 %v11549_v27  ;;  %19796 = vmatprep.subr.mxu0 %v11629_v14 }
0x1e7d   : > { %19787 = vmatprep.subr.mxu1 %v11548_v40 }
0x1e7e   : > { %19788 = vmatpush3.msra.mxu1 %v11548_v40  ;;  %v11873_v40 = vld [vmem:[%s25402_s11 + $0x18] sm:$0xff] }
0x1e7f   : > { %19789 = vmatprep.subr.mxu1 %v11547_v44 }
0x1e80   : > { %19790 = vmatpush3.msra.mxu1 %v11547_v44  ;;  %v11872_v44 = vld [vmem:[%s25402_s11 + $0x10] sm:$0xff] }
0x1e81   : > { %19791 = vmatprep.subr.mxu1 %v11546_v21 }
0x1e82   : > { %19792 = vmatpush3.msra.mxu1 %v11546_v21  ;;  %v11871_v21 = vld [vmem:[%s25402_s11 + $0x8] sm:$0xff] }
0x1f33   : > { %v19766_v46 = vpop.f32.mrf.mxu0 }
0x1f34   : > { %v11369_v3 = vadd.f32 %v19766_v46, %v11219_v17 }
0x1f35   : > { %v11363_v62 = vpop.f32.mrf.mxu0 }
0x1f36   : > { %v11364_v16 = vadd.f32 %v11363_v62, %v11214_v42 }
0x1f3b   : > { %v19773_v13 = vpop.f32.mrf.mxu1 }
0x1f3c   : > { %v11448_v28 = vadd.f32 %v19773_v13, %v11369_v3  ;;  %v10807_v13 = vadd.f32 %v24663_v57, %v24665_v7 }
0x1f3d   : > { %v11438_v30 = vpop.f32.mrf.mxu1 }
0x1f3e   : > { %v11447_v60 = vadd.f32 %v11438_v30, %v11364_v16  ;;  %v11457_v49 = vadd.f32 %v17207_v29, %v11448_v28  ;;  %v17218_v28 = vld [vmem:[#allocation35] ss:$0 sm:$0xff]  ;;  %v10802_v30 = vadd.f32 %v24667_v9, %v24669_v43 }
0x1f40   : > { %v11456_v50 = vadd.f32 %v17207_v29, %v11447_v60  ;;  %v11459_v55 = vmax.f32 %v11457_v49, 0.0  ;;  %v17190_v29 = vld [vmem:[#allocation37] ss:$0 sm:$0xff] }
0x1f42   : > { %v11458_v56 = vmax.f32 %v11456_v50, 0.0 }
0x1f44   : > { %19782 = vmatprep.mubr.msk.f32.mxu0 %vm5012_vm14, %v11458_v56  ;;  %19793 = vmatprep.mubr.msk.f32.mxu1 %vm5012_vm14, %v11458_v56 }
0x1f45   : > { %19783 = vmatmul.mubr.msk.f32.vlgmr.msra.gmra.mxu0 %vm5012_vm14, %v11459_v55  ;;  %19794 = vmatmul.mubr.msk.f32.vlgmr.msra.gmra.mxu1 %vm5012_vm14, %v11459_v55 }
0x1f46   : > { %19797 = vmatpush3.msra.mxu0 %v11629_v14  ;;  %19804 = vmatprep.mubr.msk.f32.mxu0 %vm5012_vm14, %v11458_v56  ;;  %v17222_v14 = vld [vmem:[%s25402_s11 + $0x28] sm:$0xff] }
0x1f47   : > { %19798 = vmatprep.subr.mxu0 %v11628_v58  ;;  %19811 = vmatprep.mubr.msk.f32.mxu1 %vm5220_vm15, %v23506_v18 }
0x1f48   : > { %19799 = vmatpush3.msra.mxu0 %v11628_v58  ;;  %v10818_v58 = vadd.f32 %v17190_v29, %v10807_v13 }
0x1f49   : > { %19800 = vmatprep.subr.mxu0 %v11627_v61 }
0x1f4a   : > { %19801 = vmatpush3.msra.mxu0 %v11627_v61  ;;  %v10817_v61 = vadd.f32 %v17190_v29, %v10802_v30 }
0x1f4b   : > { %19802 = vmatprep.subr.mxu0 %v11626_v52 }
0x1f4c   : > { %19803 = vmatpush3.msra.mxu0 %v11626_v52 }
0x1f4d   : > { %19805 = vmatmul.mubr.msk.f32.vlgmr.msra.gmra.mxu0 %vm5012_vm14, %v11459_v55  ;;  %19821 = vmatprep.subr.mxu0 %v11873_v40 }
0x1f4e   : > { %19822 = vmatpush3.msra.mxu0 %v11873_v40  ;;  %v24714_v40 = vsel %vm3056_vm10, 1.0, %v25396_v41 }
0x1f4f   : > { %19823 = vmatprep.subr.mxu0 %v11872_v44 }
0x1f50   : > { %19824 = vmatpush3.msra.mxu0 %v11872_v44  ;;  %v24732_v44 = vsel %vm3057_vm12, 1.0, %v25396_v41 }
0x1f51   : > { %19825 = vmatprep.subr.mxu0 %v11871_v21 }
0x1f52   : > { %19826 = vmatpush3.msra.mxu0 %v11871_v21  ;;  %v12454_v21 = vld [vmem:[#allocation28 + $0x8] sm:$0xff] }
0x1f53   : > { %19827 = vmatprep.subr.mxu0 %v11870_v31 }
0x1f54   : > { %19828 = vmatpush3.msra.mxu0 %v11870_v31  ;;  %v12630_v31 = vld [vmem:[#allocation28 + $0x28] sm:$0xff] }
0x2005   : > { %v19784_v8 = vpop.f32.mrf.mxu0  ;;  %v19795_v46 = vpop.f32.mrf.mxu1 }
0x2006   : > { %19807 = vmatprep.subr.mxu1 %v19784_v8 }
0x2007   : > { %v11536_v19 = vpop.f32.mrf.mxu0  ;;  %19808 = vmatpush3.msra.mxu1 %v19784_v8  ;;  %v11616_v17 = vpop.f32.mrf.mxu1 }
0x2008   : > { %19809 = vmatprep.subr.mxu1 %v11536_v19 }
0x2009   : > { %19810 = vmatpush3.msra.mxu1 %v11536_v19 }
0x200a   : > { %19812 = vmatmul.mubr.msk.f32.vlgmr.msra.gmra.mxu1 %vm5220_vm15, %v23550_v47 }
0x200b   : > { %19818 = vmatprep.mubr.msk.f32.mxu1 %vm5220_vm15, %v23513_v20 }
0x200d   : > { %v19806_v27 = vpop.f32.mrf.mxu0 }
0x200e   : > { %19814 = vmatprep.subr.mxu1 %v19806_v27 }
0x200f   : > { %v11696_v23 = vpop.f32.mrf.mxu0  ;;  %19815 = vmatpush3.msra.mxu1 %v19806_v27 }
0x2010   : > { %19816 = vmatprep.subr.mxu1 %v11696_v23 }
0x2011   : > { %19817 = vmatpush3.msra.mxu1 %v11696_v23 }
0x2012   : > { %19819 = vmatmul.mubr.msk.f32.vlgmr.msra.gmra.mxu1 %vm5220_vm15, %v23604_v0  ;;  %19832 = vmatprep.subr.mxu1 %v17224_v25 }
0x2013   : > { %19833 = vmatpush3.msra.mxu1 %v17224_v25  ;;  %v24717_v25 = vsel %vm3050_vm11, 1.0, %v25396_v41 }
0x2014   : > { %19834 = vmatprep.subr.mxu1 %v17223_v11 }
0x2015   : > { %19835 = vmatpush3.msra.mxu1 %v17223_v11  ;;  %v12238_v11 = vld [vmem:[#allocation32] sm:$0xff] }
0x2016   : > { %19836 = vmatprep.subr.mxu1 %v17222_v14 }
0x2017   : > { %19837 = vmatpush3.msra.mxu1 %v17222_v14  ;;  %v12453_v14 = vld [vmem:[#allocation28] sm:$0xff] }
0x2018   : > { %19838 = vmatprep.subr.mxu1 %v17221_v63 }
0x2019   : > { %19839 = vmatpush3.msra.mxu1 %v17221_v63  ;;  %v12629_v63 = vld [vmem:[#allocation28 + $0x20] sm:$0xff] }
0x20ca   : > { %v19813_v62 = vpop.f32.mrf.mxu1 }
0x20cb   : > { %v11777_v3 = vadd.f32 %v19813_v62, %v19795_v46  ;;  %v12237_v46 = vld [vmem:[#allocation31 + $0x8] sm:$0xff]  ;;  %v12236_v62 = vld [vmem:[#allocation31] sm:$0xff] }
0x20cc   : > { %v11771_v42 = vpop.f32.mrf.mxu1 }
0x20cd   : > { %v11772_v60 = vadd.f32 %v11771_v42, %v11616_v17  ;;  %v12449_v17 = vld [vmem:[#allocation26 + $0x18] sm:$0xff]  ;;  %v12448_v42 = vld [vmem:[#allocation26 + $0x10] sm:$0xff] }
0x20d2   : > { %v19820_v16 = vpop.f32.mrf.mxu1 }
0x20d3   : > { %v11856_v49 = vadd.f32 %v19820_v16, %v11777_v3  ;;  %v12542_v3 = vld [vmem:[#allocation28 + $0x18] sm:$0xff] }
0x20d4   : > { %v11846_v50 = vpop.f32.mrf.mxu1 }
0x20d5   : > { %v11865_v56 = vadd.f32 %v17218_v28, %v11856_v49  ;;  %v11855_v55 = vadd.f32 %v11846_v50, %v11772_v60  ;;  %v17235_v60 = vld [vmem:[%s25403_s7] ss:$0 sm:$0xff] }
0x20d7   : > { %v11864_v52 = vadd.f32 %v17218_v28, %v11855_v55  ;;  %v11867_v8 = vadd.f32 %v11865_v56, %v10818_v58 }
0x20d9   : > { %v11866_v19 = vadd.f32 %v11864_v52, %v10817_v61  ;;  %v11869_v23 = vmax.f32 %v11867_v8, 0.0 }
0x20db   : > { %v11868_v27 = vmax.f32 %v11866_v19, 0.0 }
0x20dd   : > { %19829 = vmatprep.mubr.msk.f32.mxu0 %vm5012_vm14, %v11868_v27  ;;  %19840 = vmatprep.mubr.msk.f32.mxu1 %vm5012_vm14, %v11868_v27  ;;  %v12541_v27 = vld [vmem:[#allocation28 + $0x10] sm:$0xff] }
0x20de   : > { %19830 = vmatmul.mubr.msk.f32.vlgmr.msra.gmra.mxu0 %vm5012_vm14, %v11869_v23  ;;  %19841 = vmatmul.mubr.msk.f32.vlgmr.msra.gmra.mxu1 %vm5012_vm14, %v11869_v23 }
0x20df   : > { %19847 = vmatprep.mubr.msk.f32.mxu0 %vm5220_vm15, %v24384_v59  ;;  %19857 = vmatprep.mubr.msk.f32.mxu1 %vm5220_vm15, %v24396_v15 }
0x219e   : > { %v19831_v57 = vpop.f32.mrf.mxu0  ;;  %v19842_v7 = vpop.f32.mrf.mxu1 }
0x219f   : > { %19843 = vmatprep.subr.mxu0 %v19842_v7  ;;  %19853 = vmatprep.subr.mxu1 %v19831_v57 }
0x21a0   : > { %v11946_v9 = vpop.f32.mrf.mxu0  ;;  %v12026_v43 = vpop.f32.mrf.mxu1  ;;  %19844 = vmatpush3.msra.mxu0 %v19842_v7  ;;  %19854 = vmatpush3.msra.mxu1 %v19831_v57  ;;  %v12446_v7 = vld [vmem:[#allocation26 + $0x8] sm:$0xff] }
0x21a1   : > { %19845 = vmatprep.subr.mxu0 %v12026_v43  ;;  %19855 = vmatprep.subr.mxu1 %v11946_v9 }
0x21a2   : > { %19846 = vmatpush3.msra.mxu0 %v12026_v43  ;;  %19856 = vmatpush3.msra.mxu1 %v11946_v9  ;;  %v12445_v9 = vld [vmem:[#allocation26] sm:$0xff]  ;;  %v12452_v43 = vld [vmem:[#allocation26 + $0x28] sm:$0xff] }
0x21a3   : > { %19848 = vmatmul.mubr.msk.f32.vlgmr.msra.gmra.mxu0 %vm5220_vm15, %v24625_v32  ;;  %19858 = vmatmul.mubr.msk.f32.vlgmr.msra.gmra.mxu1 %vm5220_vm15, %v24628_v35 }
0x21a4   : > { %19850 = vmatprep.mubr.msk.f32.mxu0 %vm5220_vm15, %v24714_v40  ;;  %19860 = vmatprep.mubr.msk.f32.mxu1 %vm5220_vm15, %v24717_v25 }
0x21a5   : > { %19863 = vmatprep.subr.mxu0 %v12239_v33  ;;  %19873 = vmatprep.subr.mxu1 %v12237_v46 }
0x21a6   : > { %19864 = vmatpush3.msra.mxu0 %v12239_v33  ;;  %19874 = vmatpush3.msra.mxu1 %v12237_v46 }
0x21a7   : > { %19851 = vmatmul.mubr.msk.f32.gmra.mxu0 %vm5220_vm15, %v24732_v44  ;;  %19861 = vmatmul.mubr.msk.f32.gmra.mxu1 %vm5220_vm15, %v24735_v36 }
0x21a8   : > { %19867 = vmatprep.mubr.msk.f32.mxu0 %vm5220_vm15, %v23902_v37  ;;  %19865 = vmatprep.subr.mxu0 %v12238_v11 }
0x21a9   : > { %19866 = vmatpush3.msra.mxu0 %v12238_v11  ;;  %19875 = vmatprep.subr.mxu1 %v12236_v62 }
0x21aa   : > { %19883 = vmatprep.subr.mxu0 %v12454_v21  ;;  %19876 = vmatpush3.msra.mxu1 %v12236_v62 }
0x21ab   : > { %19868 = vmatmul.mubr.msk.f32.vlgmr.msra.gmra.mxu0 %vm5220_vm15, %v23896_v22  ;;  %19893 = vmatprep.subr.mxu1 %v12542_v3 }
0x21ac   : > { %19870 = vmatprep.mubr.msk.f32.mxu0 %vm5220_vm15, %v23890_v34  ;;  %19884 = vmatpush3.msra.mxu0 %v12454_v21 }
0x21ad   : > { %19885 = vmatprep.subr.mxu0 %v12453_v14 }
0x21ae   : > { %19886 = vmatpush3.msra.mxu0 %v12453_v14 }
0x21af   : > { %19871 = vmatmul.mubr.msk.f32.gmra.mxu0 %vm5220_vm15, %v23888_v53  ;;  %19903 = vmatprep.subr.mxu0 %v12630_v31 }
0x21b0   : > { %19887 = vmatprep.mubr.msk.f32.mxu0 %vm5220_vm15, %v23902_v37 }
0x21b3   : > { %19888 = vmatmul.mubr.msk.f32.vlgmr.msra.gmra.mxu0 %vm5220_vm15, %v23896_v22 }
0x21b4   : > { %19890 = vmatprep.mubr.msk.f32.mxu0 %vm5220_vm15, %v23890_v34  ;;  %19904 = vmatpush3.msra.mxu0 %v12630_v31 }
0x21b5   : > { %19905 = vmatprep.subr.mxu0 %v12629_v63 }
0x21b6   : > { %19906 = vmatpush3.msra.mxu0 %v12629_v63 }
0x21b7   : > { %19891 = vmatmul.mubr.msk.f32.gmra.mxu0 %vm5220_vm15, %v23888_v53  ;;  %19923 = vmatprep.subr.mxu0 %v12449_v17 }
0x21b8   : > { %19907 = vmatprep.mubr.msk.f32.mxu0 %vm5220_vm15, %v23902_v37 }
0x21bb   : > { %19908 = vmatmul.mubr.msk.f32.vlgmr.msra.gmra.mxu0 %vm5220_vm15, %v23896_v22 }
0x21bc   : > { %19910 = vmatprep.mubr.msk.f32.mxu0 %vm5220_vm15, %v23890_v34  ;;  %19924 = vmatpush3.msra.mxu0 %v12449_v17 }
0x21bd   : > { %19925 = vmatprep.subr.mxu0 %v12448_v42 }
0x21be   : > { %19926 = vmatpush3.msra.mxu0 %v12448_v42 }
0x21bf   : > { %19911 = vmatmul.mubr.msk.f32.gmra.mxu0 %vm5220_vm15, %v23888_v53 }
0x2263   : > { %v19849_v13 = vpop.f32.mrf.mxu0  ;;  %v19859_v16 = vpop.f32.mrf.mxu1 }
0x2264   : > { %v12212_v28 = vadd.f32 %v19859_v16, %v19849_v13 }
0x2265   : > { %v12111_v29 = vpop.f32.mrf.mxu0  ;;  %v12206_v30 = vpop.f32.mrf.mxu1 }
0x2266   : > { %v12207_v49 = vadd.f32 %v12206_v30, %v12111_v29  ;;  %v12233_v58 = vadd.f32 %v17235_v60, %v12212_v28 }
0x2267   : > { %v19852_v50 = vpop.f32.mrf.mxu0  ;;  %v19862_v56 = vpop.f32.mrf.mxu1 }
0x2268   : > { %v12232_v55 = vadd.f32 %v17235_v60, %v12207_v49  ;;  %v12222_v61 = vadd.f32 %v19862_v56, %v19852_v50 }
0x2269   : > { %v12121_v52 = vpop.f32.mrf.mxu0  ;;  %v12216_v8 = vpop.f32.mrf.mxu1 }
0x226a   : > { %v12217_v19 = vadd.f32 %v12216_v8, %v12121_v52  ;;  %19877 = vmatprep.mubr.msk.f32.mxu1 %vm5220_vm15, %v12232_v55  ;;  %19927 = vmatprep.mubr.msk.f32.mxu0 %vm5220_vm15, %v12232_v55  ;;  %v12235_v57 = vadd.f32 %v17235_v60, %v12222_v61 }
0x226b   : > { %19878 = vmatmul.mubr.msk.f32.vlgmr.msra.gmra.mxu1 %vm5220_vm15, %v12233_v58  ;;  %19928 = vmatmul.mubr.msk.f32.vlgmr.msra.gmra.mxu0 %vm5220_vm15, %v12233_v58 }
0x226c   : > { %v12234_v23 = vadd.f32 %v17235_v60, %v12217_v19  ;;  %19894 = vmatpush3.msra.mxu1 %v12542_v3 }
0x226d   : > { %19895 = vmatprep.subr.mxu1 %v12541_v27 }
0x226e   : > { %19880 = vmatprep.mubr.msk.f32.mxu1 %vm5220_vm15, %v12234_v23  ;;  %19930 = vmatprep.mubr.msk.f32.mxu0 %vm5220_vm15, %v12234_v23 }
0x226f   : > { %19881 = vmatmul.mubr.msk.f32.gmra.mxu1 %vm5220_vm15, %v12235_v57  ;;  %19931 = vmatmul.mubr.msk.f32.gmra.mxu0 %vm5220_vm15, %v12235_v57 }
0x2270   : > { %19897 = vmatprep.mubr.msk.f32.mxu1 %vm5220_vm15, %v23902_v37  ;;  %19896 = vmatpush3.msra.mxu1 %v12541_v27  ;;  %v12451_v37 = vld [vmem:[#allocation26 + $0x20] sm:$0xff] }
0x2271   : > { %19913 = vmatprep.subr.mxu1 %v12446_v7  ;;  %19951 = vmatprep.mubr.msk.f32.mxu0 %vm5012_vm14, %v23506_v18 }
0x2273   : > { %19898 = vmatmul.mubr.msk.f32.vlgmr.msra.gmra.mxu1 %vm5220_vm15, %v23896_v22 }
0x2274   : > { %19900 = vmatprep.mubr.msk.f32.mxu1 %vm5220_vm15, %v23890_v34  ;;  %19914 = vmatpush3.msra.mxu1 %v12446_v7 }
0x2275   : > { %19915 = vmatprep.subr.mxu1 %v12445_v9 }
0x2276   : > { %19916 = vmatpush3.msra.mxu1 %v12445_v9 }
0x2277   : > { %19901 = vmatmul.mubr.msk.f32.gmra.mxu1 %vm5220_vm15, %v23888_v53  ;;  %19933 = vmatprep.subr.mxu1 %v12452_v43  ;;  %v24794_v53 = vpop.f32.mrf.mxu0 }
0x2278   : > { %19917 = vmatprep.mubr.msk.f32.mxu1 %vm5220_vm15, %v12232_v55 }
0x2279   : > { %v24796_v34 = vpop.f32.mrf.mxu0 }
0x227b   : > { %19918 = vmatmul.mubr.msk.f32.vlgmr.msra.gmra.mxu1 %vm5220_vm15, %v12233_v58  ;;  %v24798_v22 = vpop.f32.mrf.mxu0 }
0x227c   : > { %19920 = vmatprep.mubr.msk.f32.mxu1 %vm5220_vm15, %v12234_v23  ;;  %19934 = vmatpush3.msra.mxu1 %v12452_v43 }
0x227d   : > { %19935 = vmatprep.subr.mxu1 %v12451_v37  ;;  %v24800_v33 = vpop.f32.mrf.mxu0 }
0x227e   : > { %19936 = vmatpush3.msra.mxu1 %v12451_v37 }
0x227f   : > { %19921 = vmatmul.mubr.msk.f32.gmra.mxu1 %vm5220_vm15, %v12235_v57  ;;  %v19889_v21 = vpop.f32.mrf.mxu0 }
0x2280   : > { %19937 = vmatprep.mubr.msk.f32.mxu1 %vm5220_vm15, %v12232_v55 }
0x2281   : > { %v12521_v63 = vpop.f32.mrf.mxu0 }
0x2283   : > { %19938 = vmatmul.mubr.msk.f32.vlgmr.msra.gmra.mxu1 %vm5220_vm15, %v12233_v58  ;;  %v19892_v62 = vpop.f32.mrf.mxu0 }
0x2284   : > { %19940 = vmatprep.mubr.msk.f32.mxu1 %vm5220_vm15, %v12234_v23 }
0x2285   : > { %v12531_v13 = vpop.f32.mrf.mxu0 }
0x2287   : > { %19941 = vmatmul.mubr.msk.f32.gmra.mxu1 %vm5220_vm15, %v12235_v57  ;;  %v19909_v29 = vpop.f32.mrf.mxu0 }
0x2288   : > { %19965 = vmatprep.mubr.msk.f32.mxu1 %vm5012_vm14, %v23513_v20 }
0x2289   : > { %v12697_v50 = vpop.f32.mrf.mxu0 }
0x228b   : > { %v19912_v52 = vpop.f32.mrf.mxu0 }
0x228d   : > { %v12707_v57 = vpop.f32.mrf.mxu0 }
0x232b   : > { %v24802_v11 = vpop.f32.mrf.mxu1 }
0x232d   : > { %v24804_v14 = vpop.f32.mrf.mxu1 }
0x232f   : > { %v24806_v31 = vpop.f32.mrf.mxu1 }
0x2331   : > { %v24808_v46 = vpop.f32.mrf.mxu1 }
0x2333   : > { %v24810_v17 = vpop.f32.mrf.mxu1 }
0x2335   : > { %v24812_v42 = vpop.f32.mrf.mxu1 }
0x2337   : > { %v24814_v3 = vpop.f32.mrf.mxu1 }
0x2339   : > { %v24816_v16 = vpop.f32.mrf.mxu1 }
0x233b   : > { %v19919_v28 = vpop.f32.mrf.mxu1 }
0x233c   : > { %v12788_v61 = vadd.f32 %v19919_v28, %v19889_v21  ;;  %v13161_v21 = vld [vmem:[#allocation29 + $0x8] sm:$0xff] }
0x233d   : > { %v12782_v30 = vpop.f32.mrf.mxu1  ;;  %v13349_v28 = vld [vmem:[#allocation29 + $0x28] sm:$0xff] }
0x233e   : > { %v12783_v19 = vadd.f32 %v12782_v30, %v12521_v63  ;;  %v13261_v63 = vld [vmem:[#allocation29 + $0x18] sm:$0xff] }
0x233f   : > { %v19922_v60 = vpop.f32.mrf.mxu1 }
0x2340   : > { %v12798_v49 = vadd.f32 %v19922_v60, %v19892_v62  ;;  %v13160_v62 = vld [vmem:[#allocation29] sm:$0xff] }
0x2341   : > { %v12792_v56 = vpop.f32.mrf.mxu1 }
0x2342   : > { %v12793_v55 = vadd.f32 %v12792_v56, %v12531_v13  ;;  %19943 = vmatprep.subr.mxu0 %v12798_v49  ;;  %v13260_v13 = vld [vmem:[#allocation29 + $0x10] sm:$0xff] }
0x2343   : > { %v19939_v58 = vpop.f32.mrf.mxu1  ;;  %19944 = vmatpush3.msra.mxu0 %v12798_v49 }
0x2344   : > { %19945 = vmatprep.subr.mxu0 %v12793_v55  ;;  %v12958_v43 = vadd.f32 %v19939_v58, %v19909_v29  ;;  %v19929_v29 = vpop.f32.mrf.mxu0 }
0x2345   : > { %v12952_v8 = vpop.f32.mrf.mxu1  ;;  %19946 = vmatpush3.msra.mxu0 %v12793_v55  ;;  %v12873_v55 = vadd.f32 %v19929_v29, %v24810_v17 }
0x2346   : > { %19947 = vmatprep.subr.mxu0 %v12788_v61  ;;  %v12953_v37 = vadd.f32 %v12952_v8, %v12697_v50  ;;  %v12867_v30 = vpop.f32.mrf.mxu0 }
0x2347   : > { %v19942_v27 = vpop.f32.mrf.mxu1  ;;  %19948 = vmatpush3.msra.mxu0 %v12788_v61  ;;  %v12868_v61 = vadd.f32 %v12867_v30, %v24812_v42 }
0x2348   : > { %v12968_v23 = vadd.f32 %v19942_v27, %v19912_v52  ;;  %19949 = vmatprep.subr.mxu0 %v12783_v19  ;;  %v19932_v60 = vpop.f32.mrf.mxu0 }
0x2349   : > { %v12962_v7 = vpop.f32.mrf.mxu1  ;;  %19950 = vmatpush3.msra.mxu0 %v12783_v19  ;;  %v12883_v19 = vadd.f32 %v19932_v60, %v24814_v3  ;;  %v13348_v60 = vld [vmem:[#allocation29 + $0x20] sm:$0xff] }
0x234a   : > { %v12963_v9 = vadd.f32 %v12962_v7, %v12707_v57  ;;  %19952 = vmatmul.mubr.msk.f32.vlgmr.msra.gmra.mxu0 %vm5012_vm14, %v23550_v47  ;;  %19957 = vmatprep.subr.mxu1 %v12968_v23  ;;  %v12877_v49 = vpop.f32.mrf.mxu0  ;;  %v17277_v57 = vld [vmem:[#allocation22] ss:$0 sm:$0xff] }
0x234b   : > { %19958 = vmatpush3.msra.mxu1 %v12968_v23  ;;  %19954 = vmatprep.mubr.msk.f32.mxu0 %vm5012_vm14, %v23553_v48 }
0x234c   : > { %19959 = vmatprep.subr.mxu1 %v12963_v9  ;;  %19971 = vmatprep.subr.mxu0 %v13161_v21 }
0x234d   : > { %19960 = vmatpush3.msra.mxu1 %v12963_v9  ;;  %19972 = vmatpush3.msra.mxu0 %v13161_v21 }
0x234e   : > { %19955 = vmatmul.mubr.msk.f32.gmra.mxu0 %vm5012_vm14, %v23567_v54  ;;  %19961 = vmatprep.subr.mxu1 %v12958_v43 }
0x234f   : > { %19962 = vmatpush3.msra.mxu1 %v12958_v43  ;;  %19973 = vmatprep.subr.mxu0 %v13160_v62  ;;  %v12878_v43 = vadd.f32 %v12877_v49, %v24816_v16 }
0x2350   : > { %19963 = vmatprep.subr.mxu1 %v12953_v37  ;;  %19974 = vmatpush3.msra.mxu0 %v13160_v62 }
0x2351   : > { %19964 = vmatpush3.msra.mxu1 %v12953_v37  ;;  %19991 = vmatprep.subr.mxu0 %v13349_v28 }
0x2352   : > { %19966 = vmatmul.mubr.msk.f32.vlgmr.msra.gmra.mxu1 %vm5012_vm14, %v23604_v0  ;;  %19981 = vmatprep.subr.mxu1 %v13261_v63 }
0x2353   : > { %19968 = vmatprep.mubr.msk.f32.mxu1 %vm5012_vm14, %v23608_v1  ;;  %19982 = vmatpush3.msra.mxu1 %v13261_v63 }
0x2354   : > { %19983 = vmatprep.subr.mxu1 %v13260_v13 }
0x2355   : > { %19984 = vmatpush3.msra.mxu1 %v13260_v13 }
0x2356   : > { %19969 = vmatmul.mubr.msk.f32.gmra.mxu1 %vm5012_vm14, %v23620_v4 }
0x240a   : > { %v19953_v50 = vpop.f32.mrf.mxu0 }
0x240b   : > { %v13043_v52 = vadd.f32 %v19953_v50, %v12873_v55 }
0x240c   : > { %v13037_v56 = vpop.f32.mrf.mxu0 }
0x240d   : > { %v13038_v27 = vadd.f32 %v13037_v56, %v12868_v61 }
0x240e   : > { %v19956_v58 = vpop.f32.mrf.mxu0 }
0x240f   : > { %v13053_v37 = vadd.f32 %v19956_v58, %v12883_v19 }
0x2410   : > { %v13047_v7 = vpop.f32.mrf.mxu0 }
0x2411   : > { %v13048_v13 = vadd.f32 %v13047_v7, %v12878_v43  ;;  %v17303_v7 = vld [vmem:[%s25404_s23 + $0x10] sm:$0xff] }
0x2412   : > { %v19967_v8 = vpop.f32.mrf.mxu1 }
0x2413   : > { %v13142_v23 = vadd.f32 %v19967_v8, %v13043_v52 }
0x2414   : > { %v13122_v9 = vpop.f32.mrf.mxu1 }
0x2415   : > { %v13141_v21 = vadd.f32 %v13122_v9, %v13038_v27  ;;  %v13153_v63 = vadd.f32 %v17277_v57, %v13142_v23  ;;  %v13629_v27 = vld [vmem:[%s25404_s23 + $0x8] sm:$0xff]  ;;  %v17304_v23 = vld [vmem:[%s25404_s23 + $0x18] sm:$0xff] }
0x2416   : > { %v19970_v62 = vpop.f32.mrf.mxu1 }
0x2417   : > { %v13152_v17 = vadd.f32 %v17277_v57, %v13141_v21  ;;  %v13144_v29 = vadd.f32 %v19970_v62, %v13053_v37  ;;  %v13157_v50 = vmax.f32 %v13153_v63, 0.0 }
0x2418   : > { %v13132_v26 = vpop.f32.mrf.mxu1 }
0x2419   : > { %v13156_v42 = vmax.f32 %v13152_v17, 0.0  ;;  %v13143_v30 = vadd.f32 %v13132_v26, %v13048_v13  ;;  %v13155_v55 = vadd.f32 %v17277_v57, %v13144_v29  ;;  %v12421_v29 = vadd.f32 %v24802_v11, %v24794_v53 }
0x241a   : > { %v12426_v53 = vadd.f32 %v24808_v46, %v24800_v33 }
0x241b   : > { %v13154_v3 = vadd.f32 %v17277_v57, %v13143_v30  ;;  %19975 = vmatprep.mubr.msk.f32.mxu0 %vm5220_vm15, %v13156_v42  ;;  %19985 = vmatprep.mubr.msk.f32.mxu1 %vm5220_vm15, %v13156_v42  ;;  %v13159_v49 = vmax.f32 %v13155_v55, 0.0  ;;  %v13628_v57 = vld [vmem:[%s25404_s23] sm:$0xff]  ;;  %v17244_v55 = vld [vmem:[#allocation25] ss:$0 sm:$0xff] }
0x241c   : > { %19976 = vmatmul.mubr.msk.f32.vlgmr.msra.gmra.mxu0 %vm5220_vm15, %v13157_v50  ;;  %19986 = vmatmul.mubr.msk.f32.vlgmr.msra.gmra.mxu1 %vm5220_vm15, %v13157_v50 }
0x241d   : > { %v13158_v16 = vmax.f32 %v13154_v3, 0.0  ;;  %19992 = vmatpush3.msra.mxu0 %v13349_v28 }
0x241e   : > { %19993 = vmatprep.subr.mxu0 %v13348_v60 }
0x241f   : > { %19978 = vmatprep.mubr.msk.f32.mxu0 %vm5220_vm15, %v13158_v16  ;;  %19988 = vmatprep.mubr.msk.f32.mxu1 %vm5220_vm15, %v13158_v16 }
0x2420   : > { %19979 = vmatmul.mubr.msk.f32.gmra.mxu0 %vm5220_vm15, %v13159_v49  ;;  %19989 = vmatmul.mubr.msk.f32.gmra.mxu1 %vm5220_vm15, %v13159_v49 }
0x2421   : > { %19995 = vmatprep.mubr.msk.f32.mxu0 %vm5220_vm15, %v13156_v42  ;;  %19994 = vmatpush3.msra.mxu0 %v13348_v60  ;;  %v12416_v42 = vadd.f32 %v24804_v14, %v24796_v34 }
0x2422   : > { %20009 = vmatprep.mubr.msk.f32.mxu1 %vm5012_vm14, %v23506_v18 }
0x2424   : > { %19996 = vmatmul.mubr.msk.f32.vlgmr.msra.gmra.mxu0 %vm5220_vm15, %v13157_v50  ;;  %v17298_v50 = vld [vmem:[#allocation23] ss:$0 sm:$0xff] }
0x2425   : > { %19998 = vmatprep.mubr.msk.f32.mxu0 %vm5220_vm15, %v13158_v16 }
0x2428   : > { %19999 = vmatmul.mubr.msk.f32.gmra.mxu0 %vm5220_vm15, %v13159_v49 }
0x2429   : > { %20023 = vmatprep.mubr.msk.f32.mxu0 %vm5012_vm14, %v23513_v20 }
0x24dc   : > { %v19977_v26 = vpop.f32.mrf.mxu0  ;;  %v19987_v9 = vpop.f32.mrf.mxu1 }
0x24de   : > { %v13240_v28 = vpop.f32.mrf.mxu0  ;;  %v13328_v43 = vpop.f32.mrf.mxu1 }
0x24e0   : > { %v19980_v56 = vpop.f32.mrf.mxu0  ;;  %v19990_v37 = vpop.f32.mrf.mxu1 }
0x24e1   : > { %20001 = vmatprep.subr.mxu1 %v19980_v56 }
0x24e2   : > { %v13250_v58 = vpop.f32.mrf.mxu0  ;;  %20002 = vmatpush3.msra.mxu1 %v19980_v56  ;;  %v13338_v21 = vpop.f32.mrf.mxu1 }
0x24e3   : > { %20003 = vmatprep.subr.mxu1 %v13250_v58 }
0x24e4   : > { %v19997_v61 = vpop.f32.mrf.mxu0  ;;  %20004 = vmatpush3.msra.mxu1 %v13250_v58  ;;  %v12442_v58 = vadd.f32 %v17244_v55, %v12421_v29 }
0x24e5   : > { %20005 = vmatprep.subr.mxu1 %v19977_v26 }
0x24e6   : > { %v13416_v52 = vpop.f32.mrf.mxu0  ;;  %20006 = vmatpush3.msra.mxu1 %v19977_v26 }
0x24e7   : > { %20007 = vmatprep.subr.mxu1 %v13240_v28 }
0x24e8   : > { %v20000_v8 = vpop.f32.mrf.mxu0  ;;  %20008 = vmatpush3.msra.mxu1 %v13240_v28 }
0x24e9   : > { %20010 = vmatmul.mubr.msk.f32.vlgmr.msra.gmra.mxu1 %vm5012_vm14, %v23550_v47  ;;  %20015 = vmatprep.subr.mxu0 %v20000_v8 }
0x24ea   : > { %v13426_v19 = vpop.f32.mrf.mxu0  ;;  %20016 = vmatpush3.msra.mxu0 %v20000_v8  ;;  %20012 = vmatprep.mubr.msk.f32.mxu1 %vm5012_vm14, %v23553_v48 }
0x24eb   : > { %20017 = vmatprep.subr.mxu0 %v13426_v19  ;;  %20029 = vmatprep.subr.mxu1 %v13629_v27 }
0x24ec   : > { %20018 = vmatpush3.msra.mxu0 %v13426_v19  ;;  %20030 = vmatpush3.msra.mxu1 %v13629_v27 }
0x24ed   : > { %20013 = vmatmul.mubr.msk.f32.gmra.mxu1 %vm5012_vm14, %v23567_v54  ;;  %20019 = vmatprep.subr.mxu0 %v19997_v61 }
0x24ee   : > { %20020 = vmatpush3.msra.mxu0 %v19997_v61  ;;  %20031 = vmatprep.subr.mxu1 %v13628_v57  ;;  %v12441_v61 = vadd.f32 %v17244_v55, %v12416_v42 }
0x24ef   : > { %20021 = vmatprep.subr.mxu0 %v13416_v52  ;;  %20032 = vmatpush3.msra.mxu1 %v13628_v57 }
0x24f0   : > { %20022 = vmatpush3.msra.mxu0 %v13416_v52  ;;  %v12431_v52 = vadd.f32 %v24806_v31, %v24798_v22 }
0x24f1   : > { %20024 = vmatmul.mubr.msk.f32.vlgmr.msra.gmra.mxu0 %vm5012_vm14, %v23604_v0  ;;  %20039 = vmatprep.subr.mxu0 %v17304_v23 }
0x24f2   : > { %20026 = vmatprep.mubr.msk.f32.mxu0 %vm5012_vm14, %v23608_v1  ;;  %20040 = vmatpush3.msra.mxu0 %v17304_v23 }
0x24f3   : > { %20041 = vmatprep.subr.mxu0 %v17303_v7 }
0x24f4   : > { %20042 = vmatpush3.msra.mxu0 %v17303_v7 }
0x24f5   : > { %20027 = vmatmul.mubr.msk.f32.gmra.mxu0 %vm5012_vm14, %v23620_v4 }
0x25a9   : > { %v20011_v63 = vpop.f32.mrf.mxu1 }
0x25aa   : > { %v13507_v17 = vadd.f32 %v20011_v63, %v19987_v9  ;;  %v12444_v9 = vadd.f32 %v17244_v55, %v12431_v52 }
0x25ab   : > { %v13501_v62 = vpop.f32.mrf.mxu1 }
0x25ac   : > { %v13502_v3 = vadd.f32 %v13501_v62, %v13328_v43  ;;  %v12443_v43 = vadd.f32 %v17244_v55, %v12426_v53  ;;  %v17325_v53 = vld [vmem:[#allocation91] ss:$0 sm:$0xff] }
0x25ad   : > { %v20014_v13 = vpop.f32.mrf.mxu1 }
0x25ae   : > { %v13517_v26 = vadd.f32 %v20014_v13, %v19990_v37 }
0x25af   : > { %v13511_v16 = vpop.f32.mrf.mxu1 }
0x25b0   : > { %v13512_v34 = vadd.f32 %v13511_v16, %v13338_v21 }
0x25b1   : > { %v20025_v30 = vpop.f32.mrf.mxu0 }
0x25b2   : > { %v13606_v60 = vadd.f32 %v20025_v30, %v13507_v17 }
0x25b3   : > { %v13586_v49 = vpop.f32.mrf.mxu0 }
0x25b4   : > { %v13617_v28 = vadd.f32 %v17298_v50, %v13606_v60  ;;  %v13605_v56 = vadd.f32 %v13586_v49, %v13502_v3  ;;  %v16832_v60 = vsel %vm3062_vm0, 1.0, %v25396_v41 }
0x25b5   : > { %v20028_v8 = vpop.f32.mrf.mxu0 }
0x25b6   : > { %v13616_v11 = vadd.f32 %v17298_v50, %v13605_v56  ;;  %v13608_v14 = vadd.f32 %v20028_v8, %v13517_v26  ;;  %v13621_v19 = vadd.f32 %v13617_v28, %v12442_v58  ;;  %v25407_v26 = vld [vmem:[#allocation182_spill] sm:$0xff]  ;;  %v14467_v28 = vld [vmem:[#allocation16 + $0x8] sm:$0xff] }
0x25b7   : > { %v13596_v27 = vpop.f32.mrf.mxu0  ;;  %vm3077_vm8 = vcmp.eq.s32.totalorder %v25407_v26, %v24379_v45  ;;  %vm3065_vm9 = vcmp.eq.s32.totalorder %v25407_v26, %v24376_v6 }
0x25b8   : > { %v13620_v23 = vadd.f32 %v13616_v11, %v12441_v61  ;;  %v13619_v57 = vadd.f32 %v17298_v50, %v13608_v14  ;;  %v13607_v7 = vadd.f32 %v13596_v27, %v13512_v34  ;;  %v13625_v62 = vmax.f32 %v13621_v19, 0.0 }
0x25ba   : > { %v13624_v37 = vmax.f32 %v13620_v23, 0.0  ;;  %v13618_v63 = vadd.f32 %v17298_v50, %v13607_v7  ;;  %v13623_v13 = vadd.f32 %v13619_v57, %v12444_v9 }
0x25bc   : > { %v13622_v17 = vadd.f32 %v13618_v63, %v12443_v43  ;;  %20033 = vmatprep.mubr.msk.f32.mxu1 %vm5220_vm15, %v13624_v37  ;;  %20043 = vmatprep.mubr.msk.f32.mxu0 %vm5220_vm15, %v13624_v37  ;;  %v13627_v33 = vmax.f32 %v13623_v13, 0.0  ;;  %v14355_v43 = vld [vmem:[#allocation14] sm:$0xff] }
0x25bd   : > { %20034 = vmatmul.mubr.msk.f32.vlgmr.msra.gmra.mxu1 %vm5220_vm15, %v13625_v62  ;;  %20044 = vmatmul.mubr.msk.f32.vlgmr.msra.gmra.mxu0 %vm5220_vm15, %v13625_v62 }
0x25be   : > { %v13626_v22 = vmax.f32 %v13622_v17, 0.0 }
0x25c0   : > { %20036 = vmatprep.mubr.msk.f32.mxu1 %vm5220_vm15, %v13626_v22  ;;  %20046 = vmatprep.mubr.msk.f32.mxu0 %vm5220_vm15, %v13626_v22 }
0x25c1   : > { %20037 = vmatmul.mubr.msk.f32.gmra.mxu1 %vm5220_vm15, %v13627_v33  ;;  %20047 = vmatmul.mubr.msk.f32.gmra.mxu0 %vm5220_vm15, %v13627_v33  ;;  %vm3074_vm15 = vcmp.eq.s32.totalorder %v23537_v39, %v24379_v45  ;;  %v25405_v39 = vld [vmem:[#allocation180_spill] sm:$0xff] }
0x25c2   : > { %20057 = vmatprep.mubr.msk.f32.mxu1 %vm5012_vm14, %v24384_v59  ;;  %20077 = vmatprep.mubr.msk.f32.mxu0 %vm5012_vm14, %v24396_v15  ;;  %v14081_v59 = vld [vmem:[#allocation20] sm:$0xff]  ;;  %v14080_v15 = vld [vmem:[#allocation19] sm:$0xff]  ;;  %v16836_v3 = vsel %vm3074_vm15, 1.0, %v25396_v41  ;;  %vm3075_vm2 = vcmp.eq.s32.totalorder %v25405_v39, %v24379_v45  ;;  %vm3063_vm4 = vcmp.eq.s32.totalorder %v25405_v39, %v24376_v6 }
0x267d   : > { %v20035_v31 = vpop.f32.mrf.mxu1  ;;  %v20045_v46 = vpop.f32.mrf.mxu0 }
0x267f   : > { %v13708_v21 = vpop.f32.mrf.mxu1  ;;  %v13796_v29 = vpop.f32.mrf.mxu0 }
0x2681   : > { %v20038_v42 = vpop.f32.mrf.mxu1  ;;  %v20048_v30 = vpop.f32.mrf.mxu0 }
0x2682   : > { %20049 = vmatprep.subr.mxu1 %v20048_v30  ;;  %20069 = vmatprep.subr.mxu0 %v20038_v42 }
0x2683   : > { %v13718_v50 = vpop.f32.mrf.mxu1  ;;  %v13806_v55 = vpop.f32.mrf.mxu0  ;;  %20050 = vmatpush3.msra.mxu1 %v20048_v30  ;;  %20070 = vmatpush3.msra.mxu0 %v20038_v42 }
0x2684   : > { %20051 = vmatprep.subr.mxu1 %v13806_v55  ;;  %20071 = vmatprep.subr.mxu0 %v13718_v50 }
0x2685   : > { %20052 = vmatpush3.msra.mxu1 %v13806_v55  ;;  %20072 = vmatpush3.msra.mxu0 %v13718_v50 }
0x2686   : > { %20053 = vmatprep.subr.mxu1 %v20045_v46  ;;  %20073 = vmatprep.subr.mxu0 %v20035_v31 }
0x2687   : > { %20054 = vmatpush3.msra.mxu1 %v20045_v46  ;;  %20074 = vmatpush3.msra.mxu0 %v20035_v31 }
0x2688   : > { %20055 = vmatprep.subr.mxu1 %v13796_v29  ;;  %20075 = vmatprep.subr.mxu0 %v13708_v21 }
0x2689   : > { %20056 = vmatpush3.msra.mxu1 %v13796_v29  ;;  %20076 = vmatpush3.msra.mxu0 %v13708_v21 }
0x268a   : > { %20058 = vmatmul.mubr.msk.f32.vlgmr.msra.gmra.mxu1 %vm5012_vm14, %v24625_v32  ;;  %20078 = vmatmul.mubr.msk.f32.vlgmr.msra.gmra.mxu0 %vm5012_vm14, %v24628_v35  ;;  %v25406_v32 = vld [vmem:[#allocation181_spill] sm:$0xff]  ;;  %v14360_v35 = vld [vmem:[#allocation16] sm:$0xff] }
0x268b   : > { %20060 = vmatprep.mubr.msk.f32.mxu1 %vm5012_vm14, %v24714_v40  ;;  %20080 = vmatprep.mubr.msk.f32.mxu0 %vm5012_vm14, %v24717_v25  ;;  %vm3076_vm6 = vcmp.eq.s32.totalorder %v25406_v32, %v24379_v45  ;;  %vm3064_vm7 = vcmp.eq.s32.totalorder %v25406_v32, %v24376_v6  ;;  %v16837_v40 = vsel %vm3075_vm2, 1.0, %v25396_v41  ;;  %v16833_v25 = vsel %vm3063_vm4, 1.0, %v25396_v41  ;;  %v14574_v6 = vld [vmem:[#allocation16 + $0x10] sm:$0xff] }
0x268c   : > { %20089 = vmatprep.subr.mxu1 %v14081_v59  ;;  %20103 = vmatprep.subr.mxu0 %v14080_v15  ;;  %v16838_v16 = vsel %vm3076_vm6, 1.0, %v25396_v41  ;;  %v16834_v49 = vsel %vm3064_vm7, 1.0, %v25396_v41  ;;  %v14357_v45 = vld [vmem:[#allocation14 + $0x8] sm:$0xff] }
0x268d   : > { %20090 = vmatpush3.msra.mxu1 %v14081_v59  ;;  %20104 = vmatpush3.msra.mxu0 %v14080_v15 }
0x268e   : > { %20061 = vmatmul.mubr.msk.f32.gmra.mxu1 %vm5012_vm14, %v24732_v44  ;;  %20081 = vmatmul.mubr.msk.f32.gmra.mxu0 %vm5012_vm14, %v24735_v36  ;;  %v16839_v44 = vsel %vm3077_vm8, 1.0, %v25396_v41  ;;  %v16835_v36 = vsel %vm3065_vm9, 1.0, %v25396_v41  ;;  %v25408_v41 = vld [vmem:[#allocation191_spill] sm:$0xff] }
0x268f   : > { %20063 = vmatprep.mubr.msk.f32.mxu1 %vm5012_vm14, %v16836_v3  ;;  %20083 = vmatprep.mubr.msk.f32.mxu0 %vm5012_vm14, %v16832_v60  ;;  %v14359_v60 = vld [vmem:[#allocation14 + $0x10] sm:$0xff] }
0x2690   : > { %20117 = vmatprep.subr.mxu1 %v14360_v35  ;;  %20131 = vmatprep.subr.mxu0 %v14467_v28 }
0x2692   : > { %20064 = vmatmul.mubr.msk.f32.gmra.mxu1 %vm5012_vm14, %v16837_v40  ;;  %20084 = vmatmul.mubr.msk.f32.gmra.mxu0 %vm5012_vm14, %v16833_v25 }
0x2693   : > { %20066 = vmatprep.mubr.msk.f32.mxu1 %vm5012_vm14, %v16838_v16  ;;  %20086 = vmatprep.mubr.msk.f32.mxu0 %vm5012_vm14, %v16834_v49 }
0x2696   : > { %20067 = vmatmul.mubr.msk.f32.gmra.mxu1 %vm5012_vm14, %v16839_v44  ;;  %20087 = vmatmul.mubr.msk.f32.gmra.mxu0 %vm5012_vm14, %v16835_v36 }
0x2697   : > { %20091 = vmatprep.mubr.msk.f32.mxu1 %vm3856_vm5, %v23782_v38 }
0x269a   : > { %20092 = vmatmul.mubr.msk.f32.vlgmr.msra.gmra.mxu1 %vm3856_vm5, %v23772_v10 }
0x269b   : > { %20094 = vmatprep.mubr.msk.f32.mxu1 %vm3856_vm5, %v23766_v2  ;;  %20118 = vmatpush3.msra.mxu1 %v14360_v35 }
0x269c   : > { %20145 = vmatprep.subr.mxu1 %v14574_v6 }
0x269e   : > { %20095 = vmatmul.mubr.msk.f32.gmra.mxu1 %vm3856_vm5, %v23759_v12 }
0x269f   : > { %20097 = vmatprep.mubr.msk.f32.mxu1 %vm3856_vm5, %v23752_v51 }
0x26a2   : > { %20098 = vmatmul.mubr.msk.f32.gmra.mxu1 %vm3856_vm5, %v23743_v5 }
0x26a3   : > { %20100 = vmatprep.mubr.msk.f32.mxu1 %vm3856_vm5, %v23736_v24 }
0x26a6   : > { %20101 = vmatmul.mubr.msk.f32.gmra.mxu1 %vm3856_vm5, %v25408_v41 }
0x26a7   : > { %20119 = vmatprep.mubr.msk.f32.mxu1 %vm3856_vm5, %v23782_v38 }
0x26aa   : > { %20120 = vmatmul.mubr.msk.f32.vlgmr.msra.gmra.mxu1 %vm3856_vm5, %v23772_v10 }
0x26ab   : > { %20122 = vmatprep.mubr.msk.f32.mxu1 %vm3856_vm5, %v23766_v2  ;;  %20146 = vmatpush3.msra.mxu1 %v14574_v6 }
0x26ac   : > { %20173 = vmatprep.subr.mxu1 %v14357_v45 }
0x26ae   : > { %20123 = vmatmul.mubr.msk.f32.gmra.mxu1 %vm3856_vm5, %v23759_v12 }
0x26af   : > { %20125 = vmatprep.mubr.msk.f32.mxu1 %vm3856_vm5, %v23752_v51 }
0x26b2   : > { %20126 = vmatmul.mubr.msk.f32.gmra.mxu1 %vm3856_vm5, %v23743_v5 }
0x26b3   : > { %20128 = vmatprep.mubr.msk.f32.mxu1 %vm3856_vm5, %v23736_v24 }
0x26b6   : > { %20129 = vmatmul.mubr.msk.f32.gmra.mxu1 %vm3856_vm5, %v25408_v41 }
0x26b7   : > { %20147 = vmatprep.mubr.msk.f32.mxu1 %vm3856_vm5, %v23782_v38 }
0x26ba   : > { %20148 = vmatmul.mubr.msk.f32.vlgmr.msra.gmra.mxu1 %vm3856_vm5, %v23772_v10 }
0x26bb   : > { %20150 = vmatprep.mubr.msk.f32.mxu1 %vm3856_vm5, %v23766_v2  ;;  %20174 = vmatpush3.msra.mxu1 %v14357_v45 }
0x26be   : > { %20151 = vmatmul.mubr.msk.f32.gmra.mxu1 %vm3856_vm5, %v23759_v12 }
0x26bf   : > { %20153 = vmatprep.mubr.msk.f32.mxu1 %vm3856_vm5, %v23752_v51 }
0x26c2   : > { %20154 = vmatmul.mubr.msk.f32.gmra.mxu1 %vm3856_vm5, %v23743_v5 }
0x26c3   : > { %20156 = vmatprep.mubr.msk.f32.mxu1 %vm3856_vm5, %v23736_v24 }
0x26c6   : > { %20157 = vmatmul.mubr.msk.f32.gmra.mxu1 %vm3856_vm5, %v25408_v41 }
0x274a   : > { %v20059_v56 = vpop.f32.mrf.mxu1  ;;  %v20079_v58 = vpop.f32.mrf.mxu0 }
0x274b   : > { %v14032_v61 = vadd.f32 %v20079_v58, %v20059_v56 }
0x274c   : > { %v13901_v52 = vpop.f32.mrf.mxu1  ;;  %v14026_v8 = vpop.f32.mrf.mxu0 }
0x274d   : > { %v14027_v34 = vadd.f32 %v14026_v8, %v13901_v52  ;;  %v24980_v27 = vadd.f32 %v17325_v53, %v14032_v61 }
0x274e   : > { %v20062_v11 = vpop.f32.mrf.mxu1  ;;  %v20082_v14 = vpop.f32.mrf.mxu0 }
0x274f   : > { %v24978_v19 = vadd.f32 %v17325_v53, %v14027_v34  ;;  %v14042_v23 = vadd.f32 %v20082_v14, %v20062_v11 }
0x2750   : > { %v13911_v57 = vpop.f32.mrf.mxu1  ;;  %v14036_v7 = vpop.f32.mrf.mxu0 }
0x2751   : > { %v14037_v9 = vadd.f32 %v14036_v7, %v13911_v57  ;;  %20105 = vmatprep.mubr.msk.f32.mxu0 %vm3856_vm5, %v24978_v19  ;;  %20175 = vmatprep.mubr.msk.f32.mxu1 %vm3856_vm5, %v24978_v19  ;;  %v14075_v13 = vadd.f32 %v17325_v53, %v14042_v23 }
0x2752   : > { %v20065_v37 = vpop.f32.mrf.mxu1  ;;  %v20085_v63 = vpop.f32.mrf.mxu0  ;;  %20106 = vmatmul.mubr.msk.f32.vlgmr.msra.gmra.mxu0 %vm3856_vm5, %v24980_v27  ;;  %20176 = vmatmul.mubr.msk.f32.vlgmr.msra.gmra.mxu1 %vm3856_vm5, %v24980_v27 }
0x2753   : > { %v14074_v62 = vadd.f32 %v17325_v53, %v14037_v9  ;;  %20132 = vmatpush3.msra.mxu0 %v14467_v28  ;;  %v14052_v17 = vadd.f32 %v20085_v63, %v20065_v37 }
0x2754   : > { %v13921_v22 = vpop.f32.mrf.mxu1  ;;  %v14046_v33 = vpop.f32.mrf.mxu0  ;;  %20159 = vmatprep.subr.mxu0 %v14355_v43 }
0x2755   : > { %v14047_v31 = vadd.f32 %v14046_v33, %v13921_v22  ;;  %20108 = vmatprep.mubr.msk.f32.mxu0 %vm3856_vm5, %v14074_v62  ;;  %20178 = vmatprep.mubr.msk.f32.mxu1 %vm3856_vm5, %v14074_v62  ;;  %v14077_v42 = vadd.f32 %v17325_v53, %v14052_v17 }
0x2756   : > { %v20068_v46 = vpop.f32.mrf.mxu1  ;;  %v20088_v21 = vpop.f32.mrf.mxu0  ;;  %20109 = vmatmul.mubr.msk.f32.gmra.mxu0 %vm3856_vm5, %v14075_v13  ;;  %20179 = vmatmul.mubr.msk.f32.gmra.mxu1 %vm3856_vm5, %v14075_v13 }
0x2757   : > { %v14076_v29 = vadd.f32 %v17325_v53, %v14047_v31  ;;  %v14062_v30 = vadd.f32 %v20088_v21, %v20068_v46 }
0x2758   : > { %v13931_v50 = vpop.f32.mrf.mxu1  ;;  %v14056_v55 = vpop.f32.mrf.mxu0 }
0x2759   : > { %v14057_v59 = vadd.f32 %v14056_v55, %v13931_v50  ;;  %20111 = vmatprep.mubr.msk.f32.mxu0 %vm3856_vm5, %v14076_v29  ;;  %20181 = vmatprep.mubr.msk.f32.mxu1 %vm3856_vm5, %v14076_v29  ;;  %v14079_v3 = vadd.f32 %v17325_v53, %v14062_v30 }
0x275a   : > { %20112 = vmatmul.mubr.msk.f32.gmra.mxu0 %vm3856_vm5, %v14077_v42  ;;  %20182 = vmatmul.mubr.msk.f32.gmra.mxu1 %vm3856_vm5, %v14077_v42 }
0x275b   : > { %v14078_v15 = vadd.f32 %v17325_v53, %v14057_v59 }
0x275d   : > { %20114 = vmatprep.mubr.msk.f32.mxu0 %vm3856_vm5, %v14078_v15  ;;  %20184 = vmatprep.mubr.msk.f32.mxu1 %vm3856_vm5, %v14078_v15 }
0x275e   : > { %20115 = vmatmul.mubr.msk.f32.gmra.mxu0 %vm3856_vm5, %v14079_v3  ;;  %20185 = vmatmul.mubr.msk.f32.gmra.mxu1 %vm3856_vm5, %v14079_v3 }
0x275f   : > { %20133 = vmatprep.mubr.msk.f32.mxu0 %vm3856_vm5, %v23782_v38  ;;  %20217 = vmatprep.mubr.msk.f32.mxu1 %vm3565_vm3, %v23506_v18 }
0x2762   : > { %20134 = vmatmul.mubr.msk.f32.vlgmr.msra.gmra.mxu0 %vm3856_vm5, %v23772_v10 }
0x2763   : > { %20136 = vmatprep.mubr.msk.f32.mxu0 %vm3856_vm5, %v23766_v2  ;;  %20160 = vmatpush3.msra.mxu0 %v14355_v43 }
0x2764   : > { %20187 = vmatprep.subr.mxu0 %v14359_v60 }
0x2766   : > { %20137 = vmatmul.mubr.msk.f32.gmra.mxu0 %vm3856_vm5, %v23759_v12 }
0x2767   : > { %20139 = vmatprep.mubr.msk.f32.mxu0 %vm3856_vm5, %v23752_v51 }
0x276a   : > { %20140 = vmatmul.mubr.msk.f32.gmra.mxu0 %vm3856_vm5, %v23743_v5 }
0x276b   : > { %20142 = vmatprep.mubr.msk.f32.mxu0 %vm3856_vm5, %v23736_v24  ;;  %v25042_v24 = vpop.f32.mrf.mxu1 }
0x276d   : > { %v25044_v5 = vpop.f32.mrf.mxu1 }
0x276e   : > { %20143 = vmatmul.mubr.msk.f32.gmra.mxu0 %vm3856_vm5, %v25408_v41 }
0x276f   : > { %20161 = vmatprep.mubr.msk.f32.mxu0 %vm3856_vm5, %v24978_v19  ;;  %v25046_v51 = vpop.f32.mrf.mxu1 }
0x2771   : > { %v25048_v12 = vpop.f32.mrf.mxu1 }
0x2772   : > { %20162 = vmatmul.mubr.msk.f32.vlgmr.msra.gmra.mxu0 %vm3856_vm5, %v24980_v27 }
0x2773   : > { %20164 = vmatprep.mubr.msk.f32.mxu0 %vm3856_vm5, %v14074_v62  ;;  %20188 = vmatpush3.msra.mxu0 %v14359_v60  ;;  %v25050_v2 = vpop.f32.mrf.mxu1 }
0x2775   : > { %v25052_v10 = vpop.f32.mrf.mxu1 }
0x2776   : > { %20165 = vmatmul.mubr.msk.f32.gmra.mxu0 %vm3856_vm5, %v14075_v13  ;;  %25409 = vst [vmem:[#allocation180_spill] sm:$0xff] %v25052_v10 }
0x2777   : > { %20167 = vmatprep.mubr.msk.f32.mxu0 %vm3856_vm5, %v14076_v29  ;;  %v25054_v38 = vpop.f32.mrf.mxu1 }
0x2778   : > { %25410 = vst [vmem:[#allocation181_spill] sm:$0xff] %v25054_v38 }
0x2779   : > { %v25056_v39 = vpop.f32.mrf.mxu1 }
0x277a   : > { %20168 = vmatmul.mubr.msk.f32.gmra.mxu0 %vm3856_vm5, %v14077_v42  ;;  %25411 = vst [vmem:[#allocation182_spill] sm:$0xff] %v25056_v39 }
0x277b   : > { %20170 = vmatprep.mubr.msk.f32.mxu0 %vm3856_vm5, %v14078_v15  ;;  %v20121_v35 = vpop.f32.mrf.mxu1 }
0x277d   : > { %v14427_v16 = vpop.f32.mrf.mxu1 }
0x277e   : > { %20171 = vmatmul.mubr.msk.f32.gmra.mxu0 %vm3856_vm5, %v14079_v3 }
0x277f   : > { %20189 = vmatprep.mubr.msk.f32.mxu0 %vm3856_vm5, %v24978_v19  ;;  %v20124_v44 = vpop.f32.mrf.mxu1 }
0x2781   : > { %v14437_v41 = vpop.f32.mrf.mxu1 }
0x2782   : > { %20190 = vmatmul.mubr.msk.f32.vlgmr.msra.gmra.mxu0 %vm3856_vm5, %v24980_v27 }
0x2783   : > { %20192 = vmatprep.mubr.msk.f32.mxu0 %vm3856_vm5, %v14074_v62  ;;  %v20127_v56 = vpop.f32.mrf.mxu1 }
0x2785   : > { %v14447_v52 = vpop.f32.mrf.mxu1 }
0x2786   : > { %20193 = vmatmul.mubr.msk.f32.gmra.mxu0 %vm3856_vm5, %v14075_v13 }
0x2787   : > { %20195 = vmatprep.mubr.msk.f32.mxu0 %vm3856_vm5, %v14076_v29  ;;  %v20130_v34 = vpop.f32.mrf.mxu1 }
0x2789   : > { %v14457_v19 = vpop.f32.mrf.mxu1 }
0x278a   : > { %20196 = vmatmul.mubr.msk.f32.gmra.mxu0 %vm3856_vm5, %v14077_v42 }
0x278b   : > { %20198 = vmatprep.mubr.msk.f32.mxu0 %vm3856_vm5, %v14078_v15  ;;  %v25090_v57 = vpop.f32.mrf.mxu1 }
0x278d   : > { %v25092_v43 = vpop.f32.mrf.mxu1 }
0x278e   : > { %20199 = vmatmul.mubr.msk.f32.gmra.mxu0 %vm3856_vm5, %v14079_v3 }
0x278f   : > { %20245 = vmatprep.mubr.msk.f32.mxu0 %vm3565_vm3, %v23513_v20  ;;  %v20152_v62 = vpop.f32.mrf.mxu1 }
0x2791   : > { %v14651_v33 = vpop.f32.mrf.mxu1 }
0x2793   : > { %v20155_v42 = vpop.f32.mrf.mxu1 }
0x2795   : > { %v14661_v15 = vpop.f32.mrf.mxu1 }
0x2812   : > { %v25058_v32 = vpop.f32.mrf.mxu0 }
0x2814   : > { %v25060_v40 = vpop.f32.mrf.mxu0 }
0x2816   : > { %v25062_v25 = vpop.f32.mrf.mxu0 }
0x2818   : > { %v25064_v49 = vpop.f32.mrf.mxu0 }
0x281a   : > { %v25066_v26 = vpop.f32.mrf.mxu0 }
0x281c   : > { %v25068_v36 = vpop.f32.mrf.mxu0 }
0x281d   : > { %25412 = vst [vmem:[#allocation191_spill] sm:$0xff] %v25068_v36 }
0x281e   : > { %v25070_v6 = vpop.f32.mrf.mxu0 }
0x281f   : > { %25413 = vst [vmem:[#allocation192_spill] sm:$0xff] %v25070_v6 }
0x2820   : > { %v25072_v45 = vpop.f32.mrf.mxu0 }
0x2821   : > { %25414 = vst [vmem:[#allocation193_spill] sm:$0xff] %v25072_v45 }
0x2822   : > { %v25074_v28 = vpop.f32.mrf.mxu0 }
0x2824   : > { %v25076_v58 = vpop.f32.mrf.mxu0 }
0x2826   : > { %v25078_v61 = vpop.f32.mrf.mxu0 }
0x2828   : > { %v25080_v8 = vpop.f32.mrf.mxu0 }
0x282a   : > { %v25082_v53 = vpop.f32.mrf.mxu0 }
0x282c   : > { %v25084_v11 = vpop.f32.mrf.mxu0 }
0x282e   : > { %v25086_v14 = vpop.f32.mrf.mxu0 }
0x2830   : > { %v25088_v27 = vpop.f32.mrf.mxu0 }
0x2832   : > { %v20163_v23 = vpop.f32.mrf.mxu0 }
0x2834   : > { %v14746_v7 = vpop.f32.mrf.mxu0 }
0x2836   : > { %v20166_v9 = vpop.f32.mrf.mxu0 }
0x2837   : > { %v14762_v59 = vadd.f32 %v20166_v9, %v20124_v44 }
0x2838   : > { %v14756_v37 = vpop.f32.mrf.mxu0 }
0x2839   : > { %v14757_v60 = vadd.f32 %v14756_v37, %v14437_v41  ;;  %v25415_v41 = vld [vmem:[#allocation183_spill] sm:$0xff]  ;;  %v25416_v37 = vld [vmem:[#allocation184_spill] sm:$0xff] }
0x283a   : > { %v20169_v63 = vpop.f32.mrf.mxu0 }
0x283b   : > { %v14772_v29 = vadd.f32 %v20169_v63, %v20127_v56  ;;  %v20158_v56 = vpop.f32.mrf.mxu1 }
0x283c   : > { %v14766_v13 = vpop.f32.mrf.mxu0 }
0x283d   : > { %v14767_v50 = vadd.f32 %v14766_v13, %v14447_v52  ;;  %v14671_v44 = vpop.f32.mrf.mxu1 }
0x283e   : > { %v20172_v17 = vpop.f32.mrf.mxu0 }
0x283f   : > { %v14782_v22 = vadd.f32 %v20172_v17, %v20130_v34  ;;  %v14747_v17 = vadd.f32 %v14746_v7, %v14427_v16 }
0x2840   : > { %v14776_v31 = vpop.f32.mrf.mxu0 }
0x2841   : > { %v14777_v46 = vadd.f32 %v14776_v31, %v14457_v19  ;;  %20201 = vmatprep.subr.mxu1 %v14782_v22  ;;  %v14752_v19 = vadd.f32 %v20163_v23, %v20121_v35  ;;  %v25417_v31 = vld [vmem:[#allocation185_spill] sm:$0xff] }
0x2842   : > { %v20191_v21 = vpop.f32.mrf.mxu0  ;;  %20202 = vmatpush3.msra.mxu1 %v14782_v22 }
0x2843   : > { %20203 = vmatprep.subr.mxu1 %v14777_v46 }
0x2844   : > { %v14956_v30 = vpop.f32.mrf.mxu0  ;;  %20204 = vmatpush3.msra.mxu1 %v14777_v46  ;;  %v14962_v46 = vadd.f32 %v20191_v21, %v25090_v57  ;;  %v25419_v57 = vld [vmem:[#allocation187_spill] sm:$0xff]  ;;  %v15236_v21 = vld [vmem:[#allocation17] sm:$0xff] }
0x2845   : > { %20205 = vmatprep.subr.mxu1 %v14772_v29 }
0x2846   : > { %v20194_v55 = vpop.f32.mrf.mxu0  ;;  %20206 = vmatpush3.msra.mxu1 %v14772_v29  ;;  %v14957_v29 = vadd.f32 %v14956_v30, %v25092_v43  ;;  %v25420_v43 = vld [vmem:[#allocation188_spill] sm:$0xff]  ;;  %v15367_v30 = vld [vmem:[#allocation17 + $0x8] sm:$0xff] }
0x2847   : > { %20207 = vmatprep.subr.mxu1 %v14767_v50  ;;  %v14972_v23 = vadd.f32 %v20194_v55, %v20152_v62  ;;  %v25421_v62 = vld [vmem:[#allocation189_spill] sm:$0xff]  ;;  %v20177_v55 = vpop.f32.mrf.mxu1 }
0x2848   : > { %v14966_v3 = vpop.f32.mrf.mxu0  ;;  %20208 = vmatpush3.msra.mxu1 %v14767_v50  ;;  %v15474_v50 = vld [vmem:[#allocation17 + $0x10] sm:$0xff] }
0x2849   : > { %20209 = vmatprep.subr.mxu1 %v14762_v59  ;;  %v14967_v7 = vadd.f32 %v14966_v3, %v14651_v33  ;;  %v25422_v33 = vld [vmem:[#allocation190_spill] sm:$0xff] }
0x284a   : > { %v20197_v34 = vpop.f32.mrf.mxu0  ;;  %20210 = vmatpush3.msra.mxu1 %v14762_v59  ;;  %v14851_v59 = vpop.f32.mrf.mxu1 }
0x284b   : > { %20211 = vmatprep.subr.mxu1 %v14757_v60  ;;  %v14982_v35 = vadd.f32 %v20197_v34, %v20155_v42  ;;  %v25418_v42 = vld [vmem:[#allocation186_spill] sm:$0xff] }
0x284c   : > { %v14976_v63 = vpop.f32.mrf.mxu0  ;;  %20212 = vmatpush3.msra.mxu1 %v14757_v60 }
0x284d   : > { %20213 = vmatprep.subr.mxu1 %v14752_v19  ;;  %v14977_v16 = vadd.f32 %v14976_v63, %v14661_v15  ;;  %v20180_v15 = vpop.f32.mrf.mxu1 }
0x284e   : > { %v20200_v52 = vpop.f32.mrf.mxu0  ;;  %20214 = vmatpush3.msra.mxu1 %v14752_v19 }
0x284f   : > { %v14992_v13 = vadd.f32 %v20200_v52, %v20158_v56  ;;  %20215 = vmatprep.subr.mxu1 %v14747_v17  ;;  %v14861_v3 = vpop.f32.mrf.mxu1 }
0x2850   : > { %v14986_v9 = vpop.f32.mrf.mxu0  ;;  %20216 = vmatpush3.msra.mxu1 %v14747_v17  ;;  %v14862_v45 = vadd.f32 %v14861_v3, %v25080_v8 }
0x2851   : > { %v14987_v22 = vadd.f32 %v14986_v9, %v14671_v44  ;;  %20218 = vmatmul.mubr.msk.f32.vlgmr.msra.gmra.mxu1 %vm3565_vm3, %v23550_v47  ;;  %20229 = vmatprep.subr.mxu0 %v14992_v13  ;;  %v20183_v60 = vpop.f32.mrf.mxu1  ;;  %v14857_v44 = vadd.f32 %v20177_v55, %v25074_v28 }
0x2852   : > { %20230 = vmatpush3.msra.mxu0 %v14992_v13  ;;  %20220 = vmatprep.mubr.msk.f32.mxu1 %vm3565_vm3, %v23553_v48  ;;  %v14877_v28 = vadd.f32 %v20183_v60, %v25082_v53 }
0x2853   : > { %20231 = vmatprep.subr.mxu0 %v14987_v22  ;;  %20257 = vmatprep.subr.mxu1 %v15236_v21  ;;  %v14871_v34 = vpop.f32.mrf.mxu1 }
0x2854   : > { %20232 = vmatpush3.msra.mxu0 %v14987_v22  ;;  %20258 = vmatpush3.msra.mxu1 %v15236_v21  ;;  %v14852_v22 = vadd.f32 %v14851_v59, %v25076_v58 }
0x2855   : > { %20221 = vmatmul.mubr.msk.f32.gmra.mxu1 %vm3565_vm3, %v23567_v54  ;;  %20233 = vmatprep.subr.mxu0 %v14982_v35  ;;  %v20186_v19 = vpop.f32.mrf.mxu1 }
0x2856   : > { %20234 = vmatpush3.msra.mxu0 %v14982_v35  ;;  %20223 = vmatprep.mubr.msk.f32.mxu1 %vm3565_vm3, %v25415_v41 }
0x2857   : > { %20235 = vmatprep.subr.mxu0 %v14977_v16  ;;  %20285 = vmatprep.subr.mxu1 %v15474_v50  ;;  %v14881_v56 = vpop.f32.mrf.mxu1 }
0x2858   : > { %20236 = vmatpush3.msra.mxu0 %v14977_v16 }
0x2859   : > { %20224 = vmatmul.mubr.msk.f32.gmra.mxu1 %vm3565_vm3, %v25416_v37  ;;  %20237 = vmatprep.subr.mxu0 %v14972_v23 }
0x285a   : > { %20238 = vmatpush3.msra.mxu0 %v14972_v23  ;;  %20226 = vmatprep.mubr.msk.f32.mxu1 %vm3565_vm3, %v25417_v31  ;;  %v14867_v23 = vadd.f32 %v20180_v15, %v25078_v61  ;;  %v14872_v61 = vadd.f32 %v14871_v34, %v25084_v11 }
0x285b   : > { %20239 = vmatprep.subr.mxu0 %v14967_v7 }
0x285c   : > { %20240 = vmatpush3.msra.mxu0 %v14967_v7 }
0x285d   : > { %20227 = vmatmul.mubr.msk.f32.gmra.mxu1 %vm3565_vm3, %v25418_v42  ;;  %20241 = vmatprep.subr.mxu0 %v14962_v46 }
0x285e   : > { %20242 = vmatpush3.msra.mxu0 %v14962_v46 }
0x285f   : > { %20243 = vmatprep.subr.mxu0 %v14957_v29 }
0x2860   : > { %20244 = vmatpush3.msra.mxu0 %v14957_v29  ;;  %v17407_v29 = vld [vmem:[#allocation10] ss:$0 sm:$0xff] }
0x2861   : > { %20246 = vmatmul.mubr.msk.f32.vlgmr.msra.gmra.mxu0 %vm3565_vm3, %v23604_v0  ;;  %20271 = vmatprep.subr.mxu0 %v15367_v30 }
0x2862   : > { %20248 = vmatprep.mubr.msk.f32.mxu0 %vm3565_vm3, %v23608_v1  ;;  %20272 = vmatpush3.msra.mxu0 %v15367_v30 }
0x2865   : > { %20249 = vmatmul.mubr.msk.f32.gmra.mxu0 %vm3565_vm3, %v23620_v4 }
0x2866   : > { %20251 = vmatprep.mubr.msk.f32.mxu0 %vm3565_vm3, %v25419_v57 }
0x2869   : > { %20252 = vmatmul.mubr.msk.f32.gmra.mxu0 %vm3565_vm3, %v25420_v43 }
0x286a   : > { %20254 = vmatprep.mubr.msk.f32.mxu0 %vm3565_vm3, %v25421_v62 }
0x286d   : > { %20255 = vmatmul.mubr.msk.f32.gmra.mxu0 %vm3565_vm3, %v25422_v33 }
0x2911   : > { %v20219_v63 = vpop.f32.mrf.mxu1 }
0x2912   : > { %v15067_v35 = vadd.f32 %v20219_v63, %v14857_v44 }
0x2913   : > { %v15061_v17 = vpop.f32.mrf.mxu1 }
0x2914   : > { %v15062_v7 = vadd.f32 %v15061_v17, %v14852_v22  ;;  %v14887_v22 = vadd.f32 %v20186_v19, %v25086_v14 }
0x2915   : > { %v20222_v52 = vpop.f32.mrf.mxu1 }
0x2916   : > { %v15077_v39 = vadd.f32 %v20222_v52, %v14867_v23 }
0x2917   : > { %v15071_v13 = vpop.f32.mrf.mxu1 }
0x2918   : > { %v15072_v55 = vadd.f32 %v15071_v13, %v14862_v45 }
0x2919   : > { %v20225_v9 = vpop.f32.mrf.mxu1 }
0x291a   : > { %v15087_v15 = vadd.f32 %v20225_v9, %v14877_v28 }
0x291b   : > { %v15081_v21 = vpop.f32.mrf.mxu1 }
0x291c   : > { %v15082_v52 = vadd.f32 %v15081_v21, %v14872_v61 }
0x291d   : > { %v20228_v59 = vpop.f32.mrf.mxu1 }
0x2921   : > { %v20247_v16 = vpop.f32.mrf.mxu0 }
0x2922   : > { %v15206_v46 = vadd.f32 %v20247_v16, %v15067_v35 }
0x2923   : > { %v15166_v30 = vpop.f32.mrf.mxu0 }
0x2924   : > { %v15205_v6 = vadd.f32 %v15166_v30, %v15062_v7  ;;  %v15221_v38 = vadd.f32 %v17407_v29, %v15206_v46 }
0x2925   : > { %v20250_v36 = vpop.f32.mrf.mxu0 }
0x2926   : > { %v15220_v10 = vadd.f32 %v17407_v29, %v15205_v6  ;;  %v15208_v58 = vadd.f32 %v20250_v36, %v15077_v39  ;;  %v15229_v35 = vmax.f32 %v15221_v38, 0.0  ;;  %v15091_v39 = vpop.f32.mrf.mxu1  ;;  %v15097_v6 = vadd.f32 %v20228_v59, %v14887_v22 }
0x2927   : > { %v15176_v63 = vpop.f32.mrf.mxu0 }
0x2928   : > { %v15228_v17 = vmax.f32 %v15220_v10, 0.0  ;;  %v15207_v44 = vadd.f32 %v15176_v63, %v15072_v55  ;;  %v15223_v8 = vadd.f32 %v17407_v29, %v15208_v58  ;;  %v14882_v10 = vadd.f32 %v14881_v56, %v25088_v27 }
0x2929   : > { %v20253_v3 = vpop.f32.mrf.mxu0 }
0x292a   : > { %v15222_v16 = vadd.f32 %v17407_v29, %v15207_v44  ;;  %v15210_v23 = vadd.f32 %v20253_v3, %v15087_v15  ;;  %20259 = vmatprep.mubr.msk.f32.mxu1 %vm3856_vm5, %v15228_v17  ;;  %20273 = vmatprep.mubr.msk.f32.mxu0 %vm3856_vm5, %v15228_v17  ;;  %v15231_v53 = vmax.f32 %v15223_v8, 0.0  ;;  %v15092_v60 = vadd.f32 %v15091_v39, %v14882_v10  ;;  %v17342_v39 = vld [vmem:[#allocation13] ss:$0 sm:$0xff] }
0x292b   : > { %v15186_v36 = vpop.f32.mrf.mxu0  ;;  %20260 = vmatmul.mubr.msk.f32.vlgmr.msra.gmra.mxu1 %vm3856_vm5, %v15229_v35  ;;  %20274 = vmatmul.mubr.msk.f32.vlgmr.msra.gmra.mxu0 %vm3856_vm5, %v15229_v35 }
0x292c   : > { %v15230_v45 = vmax.f32 %v15222_v16, 0.0  ;;  %v15209_v38 = vadd.f32 %v15186_v36, %v15082_v52  ;;  %20286 = vmatpush3.msra.mxu1 %v15474_v50  ;;  %v15225_v11 = vadd.f32 %v17407_v29, %v15210_v23  ;;  %v25191_v23 = vld [vmem:[#allocation11] ss:$0 sm:$0xff]  ;;  %v14302_v36 = vadd.f32 %v25060_v40, %v25044_v5 }
0x292d   : > { %v20256_v14 = vpop.f32.mrf.mxu0 }
0x292e   : > { %v15224_v34 = vadd.f32 %v17407_v29, %v15209_v38  ;;  %v15212_v19 = vadd.f32 %v20256_v14, %v15097_v6  ;;  %20262 = vmatprep.mubr.msk.f32.mxu1 %vm3856_vm5, %v15230_v45  ;;  %20276 = vmatprep.mubr.msk.f32.mxu0 %vm3856_vm5, %v15230_v45  ;;  %v15233_v9 = vmax.f32 %v15225_v11, 0.0 }
0x292f   : > { %v15196_v13 = vpop.f32.mrf.mxu0  ;;  %20263 = vmatmul.mubr.msk.f32.gmra.mxu1 %vm3856_vm5, %v15231_v53  ;;  %20277 = vmatmul.mubr.msk.f32.gmra.mxu0 %vm3856_vm5, %v15231_v53 }
0x2930   : > { %v15232_v27 = vmax.f32 %v15224_v34, 0.0  ;;  %v15211_v56 = vadd.f32 %v15196_v13, %v15092_v60  ;;  %v15227_v7 = vadd.f32 %v17407_v29, %v15212_v19  ;;  %v14317_v34 = vadd.f32 %v25062_v25, %v25046_v51  ;;  %v25425_v25 = vld [vmem:[#allocation191_spill] sm:$0xff] }
0x2931   : > { %v14347_v19 = vadd.f32 %v17342_v39, %v14302_v36  ;;  %v14327_v51 = vadd.f32 %v25066_v26, %v25050_v2 }
0x2932   : > { %v15226_v50 = vadd.f32 %v17407_v29, %v15211_v56  ;;  %20265 = vmatprep.mubr.msk.f32.mxu1 %vm3856_vm5, %v15232_v27  ;;  %20279 = vmatprep.mubr.msk.f32.mxu0 %vm3856_vm5, %v15232_v27  ;;  %v15235_v21 = vmax.f32 %v15227_v7, 0.0 }
0x2933   : > { %20266 = vmatmul.mubr.msk.f32.gmra.mxu1 %vm3856_vm5, %v15233_v9  ;;  %20280 = vmatmul.mubr.msk.f32.gmra.mxu0 %vm3856_vm5, %v15233_v9  ;;  %v14352_v2 = vadd.f32 %v17342_v39, %v14327_v51 }
0x2934   : > { %v15234_v46 = vmax.f32 %v15226_v50, 0.0 }
0x2936   : > { %20268 = vmatprep.mubr.msk.f32.mxu1 %vm3856_vm5, %v15234_v46  ;;  %20282 = vmatprep.mubr.msk.f32.mxu0 %vm3856_vm5, %v15234_v46 }
0x2937   : > { %20269 = vmatmul.mubr.msk.f32.gmra.mxu1 %vm3856_vm5, %v15235_v21  ;;  %20283 = vmatmul.mubr.msk.f32.gmra.mxu0 %vm3856_vm5, %v15235_v21 }
0x2938   : > { %20287 = vmatprep.mubr.msk.f32.mxu1 %vm3856_vm5, %v15228_v17  ;;  %20315 = vmatprep.mubr.msk.f32.mxu0 %vm3565_vm3, %v23506_v18 }
0x293b   : > { %20288 = vmatmul.mubr.msk.f32.vlgmr.msra.gmra.mxu1 %vm3856_vm5, %v15229_v35 }
0x293c   : > { %20290 = vmatprep.mubr.msk.f32.mxu1 %vm3856_vm5, %v15230_v45 }
0x293f   : > { %20291 = vmatmul.mubr.msk.f32.gmra.mxu1 %vm3856_vm5, %v15231_v53 }
0x2940   : > { %20293 = vmatprep.mubr.msk.f32.mxu1 %vm3856_vm5, %v15232_v27 }
0x2943   : > { %20294 = vmatmul.mubr.msk.f32.gmra.mxu1 %vm3856_vm5, %v15233_v9 }
0x2944   : > { %20296 = vmatprep.mubr.msk.f32.mxu1 %vm3856_vm5, %v15234_v46 }
0x2947   : > { %20297 = vmatmul.mubr.msk.f32.gmra.mxu1 %vm3856_vm5, %v15235_v21 }
0x2948   : > { %20343 = vmatprep.mubr.msk.f32.mxu1 %vm3565_vm3, %v23513_v20 }
0x29eb   : > { %v20261_v29 = vpop.f32.mrf.mxu1 }
0x29ed   : > { %v15327_v30 = vpop.f32.mrf.mxu1 }
0x29ef   : > { %v20264_v18 = vpop.f32.mrf.mxu1 }
0x29f1   : > { %v15337_v28 = vpop.f32.mrf.mxu1 }
0x29f3   : > { %v20267_v55 = vpop.f32.mrf.mxu1 }
0x29f5   : > { %v15347_v58 = vpop.f32.mrf.mxu1 }
0x29f7   : > { %v20270_v59 = vpop.f32.mrf.mxu1 }
0x29f8   : > { %20299 = vmatprep.subr.mxu0 %v20270_v59 }
0x29f9   : > { %v15357_v63 = vpop.f32.mrf.mxu1  ;;  %20300 = vmatpush3.msra.mxu0 %v20270_v59 }
0x29fa   : > { %20301 = vmatprep.subr.mxu0 %v15357_v63 }
0x29fb   : > { %v20289_v61 = vpop.f32.mrf.mxu1  ;;  %20302 = vmatpush3.msra.mxu0 %v15357_v63 }
0x29fc   : > { %20303 = vmatprep.subr.mxu0 %v20267_v55 }
0x29fd   : > { %v15541_v15 = vpop.f32.mrf.mxu1  ;;  %20304 = vmatpush3.msra.mxu0 %v20267_v55 }
0x29fe   : > { %20305 = vmatprep.subr.mxu0 %v15347_v58 }
0x29ff   : > { %v20292_v17 = vpop.f32.mrf.mxu1  ;;  %20306 = vmatpush3.msra.mxu0 %v15347_v58 }
0x2a00   : > { %20307 = vmatprep.subr.mxu0 %v20264_v18 }
0x2a01   : > { %v15551_v20 = vpop.f32.mrf.mxu1  ;;  %20308 = vmatpush3.msra.mxu0 %v20264_v18 }
0x2a02   : > { %20309 = vmatprep.subr.mxu0 %v15337_v28 }
0x2a03   : > { %v20295_v44 = vpop.f32.mrf.mxu1  ;;  %20310 = vmatpush3.msra.mxu0 %v15337_v28 }
0x2a04   : > { %20311 = vmatprep.subr.mxu0 %v20261_v29 }
0x2a05   : > { %v15561_v22 = vpop.f32.mrf.mxu1  ;;  %20312 = vmatpush3.msra.mxu0 %v20261_v29  ;;  %v14350_v29 = vadd.f32 %v17342_v39, %v14317_v34 }
0x2a06   : > { %20313 = vmatprep.subr.mxu0 %v15327_v30 }
0x2a07   : > { %v20298_v35 = vpop.f32.mrf.mxu1  ;;  %20314 = vmatpush3.msra.mxu0 %v15327_v30 }
0x2a08   : > { %20316 = vmatmul.mubr.msk.f32.vlgmr.msra.gmra.mxu0 %vm3565_vm3, %v23550_v47  ;;  %20327 = vmatprep.subr.mxu1 %v20298_v35  ;;  %v15829_v47 = vld [vmem:[%s25423_s6] sm:$0xff] }
0x2a09   : > { %v15571_v8 = vpop.f32.mrf.mxu1  ;;  %20328 = vmatpush3.msra.mxu1 %v20298_v35  ;;  %20318 = vmatprep.mubr.msk.f32.mxu0 %vm3565_vm3, %v23553_v48  ;;  %v20275_v48 = vpop.f32.mrf.mxu0 }
0x2a0a   : > { %20329 = vmatprep.subr.mxu1 %v15571_v8  ;;  %20355 = vmatprep.subr.mxu0 %v15829_v47 }
0x2a0b   : > { %20330 = vmatpush3.msra.mxu1 %v15571_v8  ;;  %20356 = vmatpush3.msra.mxu0 %v15829_v47  ;;  %v25426_v8 = vld [vmem:[#allocation181_spill] sm:$0xff]  ;;  %v25427_v47 = vld [vmem:[#allocation192_spill] sm:$0xff] }
0x2a0c   : > { %20319 = vmatmul.mubr.msk.f32.gmra.mxu0 %vm3565_vm3, %v23567_v54  ;;  %20331 = vmatprep.subr.mxu1 %v20295_v44  ;;  %v15434_v54 = vpop.f32.mrf.mxu0 }
0x2a0d   : > { %20332 = vmatpush3.msra.mxu1 %v20295_v44  ;;  %20321 = vmatprep.mubr.msk.f32.mxu0 %vm3565_vm3, %v25415_v41 }
0x2a0e   : > { %20333 = vmatprep.subr.mxu1 %v15561_v22 }
0x2a0f   : > { %20334 = vmatpush3.msra.mxu1 %v15561_v22 }
0x2a10   : > { %20322 = vmatmul.mubr.msk.f32.gmra.mxu0 %vm3565_vm3, %v25416_v37  ;;  %20335 = vmatprep.subr.mxu1 %v20292_v17 }
0x2a11   : > { %20336 = vmatpush3.msra.mxu1 %v20292_v17  ;;  %20324 = vmatprep.mubr.msk.f32.mxu0 %vm3565_vm3, %v25417_v31 }
0x2a12   : > { %20337 = vmatprep.subr.mxu1 %v15551_v20 }
0x2a13   : > { %20338 = vmatpush3.msra.mxu1 %v15551_v20 }
0x2a14   : > { %20325 = vmatmul.mubr.msk.f32.gmra.mxu0 %vm3565_vm3, %v25418_v42  ;;  %20339 = vmatprep.subr.mxu1 %v20289_v61 }
0x2a15   : > { %20340 = vmatpush3.msra.mxu1 %v20289_v61 }
0x2a16   : > { %20341 = vmatprep.subr.mxu1 %v15541_v15 }
0x2a17   : > { %20342 = vmatpush3.msra.mxu1 %v15541_v15 }
0x2a18   : > { %20344 = vmatmul.mubr.msk.f32.vlgmr.msra.gmra.mxu1 %vm3565_vm3, %v23604_v0  ;;  %v20278_v0 = vpop.f32.mrf.mxu0 }
0x2a19   : > { %20346 = vmatprep.mubr.msk.f32.mxu1 %vm3565_vm3, %v23608_v1 }
0x2a1a   : > { %v15444_v1 = vpop.f32.mrf.mxu0 }
0x2a1c   : > { %20347 = vmatmul.mubr.msk.f32.gmra.mxu1 %vm3565_vm3, %v23620_v4  ;;  %v20281_v4 = vpop.f32.mrf.mxu0 }
0x2a1d   : > { %20349 = vmatprep.mubr.msk.f32.mxu1 %vm3565_vm3, %v25419_v57 }
0x2a1e   : > { %v15454_v41 = vpop.f32.mrf.mxu0 }
0x2a20   : > { %20350 = vmatmul.mubr.msk.f32.gmra.mxu1 %vm3565_vm3, %v25420_v43  ;;  %v20284_v37 = vpop.f32.mrf.mxu0 }
0x2a21   : > { %20352 = vmatprep.mubr.msk.f32.mxu1 %vm3565_vm3, %v25421_v62 }
0x2a22   : > { %v15464_v31 = vpop.f32.mrf.mxu0 }
0x2a24   : > { %20353 = vmatmul.mubr.msk.f32.gmra.mxu1 %vm3565_vm3, %v25422_v33  ;;  %v14307_v33 = vadd.f32 %v25058_v32, %v25042_v24  ;;  %v14312_v24 = vadd.f32 %v25064_v49, %v25048_v12  ;;  %v25424_v12 = vld [vmem:[#allocation180_spill] sm:$0xff] }
0x2a25   : > { %v14322_v49 = vadd.f32 %v25425_v25, %v25424_v12 }
0x2a26   : > { %v14348_v60 = vadd.f32 %v17342_v39, %v14307_v33  ;;  %v14349_v30 = vadd.f32 %v17342_v39, %v14312_v24 }
0x2a27   : > { %v14351_v26 = vadd.f32 %v17342_v39, %v14322_v49 }
0x2ac8   : > { %v20317_v42 = vpop.f32.mrf.mxu0 }
0x2ac9   : > { %v15652_v62 = vadd.f32 %v20317_v42, %v20275_v48  ;;  %v14337_v48 = vadd.f32 %v25427_v47, %v25426_v8 }
0x2aca   : > { %v15646_v57 = vpop.f32.mrf.mxu0 }
0x2acb   : > { %v15647_v10 = vadd.f32 %v15646_v57, %v15434_v54  ;;  %v25428_v54 = vld [vmem:[#allocation182_spill] sm:$0xff]  ;;  %v14354_v36 = vadd.f32 %v17342_v39, %v14337_v48 }
0x2acc   : > { %v20320_v43 = vpop.f32.mrf.mxu0 }
0x2acd   : > { %v15662_v53 = vadd.f32 %v20320_v43, %v20278_v0  ;;  %v25429_v0 = vld [vmem:[#allocation193_spill] sm:$0xff] }
0x2ace   : > { %v15656_v3 = vpop.f32.mrf.mxu0 }
0x2acf   : > { %v15657_v13 = vadd.f32 %v15656_v3, %v15444_v1  ;;  %v14332_v1 = vadd.f32 %v25429_v0, %v25428_v54 }
0x2ad0   : > { %v20323_v52 = vpop.f32.mrf.mxu0 }
0x2ad1   : > { %v15672_v7 = vadd.f32 %v20323_v52, %v20281_v4 }
0x2ad2   : > { %v15666_v45 = vpop.f32.mrf.mxu0 }
0x2ad3   : > { %v15667_v28 = vadd.f32 %v15666_v45, %v15454_v41 }
0x2ad4   : > { %v20326_v27 = vpop.f32.mrf.mxu0 }
0x2ad5   : > { %v15682_v20 = vadd.f32 %v20326_v27, %v20284_v37 }
0x2ad6   : > { %v15676_v63 = vpop.f32.mrf.mxu0 }
0x2ad7   : > { %v15677_v41 = vadd.f32 %v15676_v63, %v15464_v31 }
0x2ad8   : > { %v20345_v16 = vpop.f32.mrf.mxu1 }
0x2ad9   : > { %v15791_v6 = vadd.f32 %v20345_v16, %v15652_v62 }
0x2ada   : > { %v15751_v38 = vpop.f32.mrf.mxu1 }
0x2adb   : > { %v15806_v11 = vadd.f32 %v25191_v23, %v15791_v6  ;;  %v15790_v14 = vadd.f32 %v15751_v38, %v15647_v10  ;;  %v14353_v10 = vadd.f32 %v17342_v39, %v14332_v1 }
0x2adc   : > { %v20348_v32 = vpop.f32.mrf.mxu1 }
0x2add   : > { %v15805_v5 = vadd.f32 %v25191_v23, %v15790_v14  ;;  %v15793_v40 = vadd.f32 %v20348_v32, %v15662_v53  ;;  %v15814_v56 = vadd.f32 %v15806_v11, %v14348_v60  ;;  %v17449_v60 = vld [vmem:[#allocation2] ss:$0 sm:$0xff] }
0x2ade   : > { %v15761_v9 = vpop.f32.mrf.mxu1 }
0x2adf   : > { %v15813_v50 = vadd.f32 %v15805_v5, %v14347_v19  ;;  %v15808_v46 = vadd.f32 %v25191_v23, %v15793_v40  ;;  %v15792_v21 = vadd.f32 %v15761_v9, %v15657_v13  ;;  %v15822_v61 = vmax.f32 %v15814_v56, 0.0 }
0x2ae0   : > { %v20351_v18 = vpop.f32.mrf.mxu1 }
0x2ae1   : > { %v15821_v55 = vmax.f32 %v15813_v50, 0.0  ;;  %v15807_v58 = vadd.f32 %v25191_v23, %v15792_v21  ;;  %v15795_v59 = vadd.f32 %v20351_v18, %v15672_v7  ;;  %v15816_v15 = vadd.f32 %v15808_v46, %v14350_v29 }
0x2ae2   : > { %v15771_v17 = vpop.f32.mrf.mxu1 }
0x2ae3   : > { %v15815_v44 = vadd.f32 %v15807_v58, %v14349_v30  ;;  %v15810_v22 = vadd.f32 %v25191_v23, %v15795_v59  ;;  %v15794_v35 = vadd.f32 %v15771_v17, %v15667_v28  ;;  %20357 = vmatprep.mubr.msk.f32.mxu0 %vm3856_vm5, %v15821_v55  ;;  %v15824_v43 = vmax.f32 %v15816_v15, 0.0 }
0x2ae4   : > { %v20354_v4 = vpop.f32.mrf.mxu1  ;;  %20358 = vmatmul.mubr.msk.f32.vlgmr.msra.gmra.mxu0 %vm3856_vm5, %v15822_v61 }
0x2ae5   : > { %v15823_v42 = vmax.f32 %v15815_v44, 0.0  ;;  %v15809_v37 = vadd.f32 %v25191_v23, %v15794_v35  ;;  %v15797_v57 = vadd.f32 %v20354_v4, %v15682_v20  ;;  %v15818_v3 = vadd.f32 %v15810_v22, %v14352_v2 }
0x2ae6   : > { %v15781_v52 = vpop.f32.mrf.mxu1 }
0x2ae7   : > { %v15817_v62 = vadd.f32 %v15809_v37, %v14351_v26  ;;  %v15812_v33 = vadd.f32 %v25191_v23, %v15797_v57  ;;  %v15796_v16 = vadd.f32 %v15781_v52, %v15677_v41  ;;  %20360 = vmatprep.mubr.msk.f32.mxu0 %vm3856_vm5, %v15823_v42  ;;  %v15826_v45 = vmax.f32 %v15818_v3, 0.0 }
0x2ae8   : > { %20361 = vmatmul.mubr.msk.f32.gmra.mxu0 %vm3856_vm5, %v15824_v43 }
0x2ae9   : > { %v15825_v31 = vmax.f32 %v15817_v62, 0.0  ;;  %v15811_v6 = vadd.f32 %v25191_v23, %v15796_v16  ;;  %v15820_v38 = vadd.f32 %v15812_v33, %v14354_v36 }
0x2aeb   : > { %v15819_v53 = vadd.f32 %v15811_v6, %v14353_v10  ;;  %20363 = vmatprep.mubr.msk.f32.mxu0 %vm3856_vm5, %v15825_v31  ;;  %v15828_v14 = vmax.f32 %v15820_v38, 0.0 }
0x2aec   : > { %20364 = vmatmul.mubr.msk.f32.gmra.mxu0 %vm3856_vm5, %v15826_v45 }
0x2aed   : > { %v15827_v11 = vmax.f32 %v15819_v53, 0.0 }
0x2aef   : > { %20366 = vmatprep.mubr.msk.f32.mxu0 %vm3856_vm5, %v15827_v11 }
0x2af0   : > { %20367 = vmatmul.mubr.msk.f32.gmra.mxu0 %vm3856_vm5, %v15828_v14 }
0x2ba4   : > { %v20359_v39 = vpop.f32.mrf.mxu0 }
0x2ba5   : > { %v15933_v34 = vadd.f32 %v20359_v39, %v17449_v60 }
0x2ba6   : > { %v15927_v24 = vpop.f32.mrf.mxu0 }
0x2ba7   : > { %15967 = vst.msk [vmem:[%s2928_s8 + $0x8] sm:$0xff] %vm3102_vm1, %v15933_v34  ;;  %v15928_v23 = vadd.f32 %v17449_v60, %v15927_v24 }
0x2ba8   : > { %v20362_v32 = vpop.f32.mrf.mxu0 }
0x2ba9   : > { %15966 = vst.msk [vmem:[%s2928_s8] sm:$0xff] %vm3102_vm1, %v15928_v23  ;;  %v15943_v19 = vadd.f32 %v20362_v32, %v17449_v60 }
0x2baa   : > { %v15937_v13 = vpop.f32.mrf.mxu0 }
0x2bab   : > { %15969 = vst.msk [vmem:[%s2928_s8 + $0x18] sm:$0xff] %vm3102_vm1, %v15943_v19  ;;  %v15938_v5 = vadd.f32 %v17449_v60, %v15937_v13 }
0x2bac   : > { %v20365_v40 = vpop.f32.mrf.mxu0 }
0x2bad   : > { %15968 = vst.msk [vmem:[%s2928_s8 + $0x10] sm:$0xff] %vm3102_vm1, %v15938_v5  ;;  %v15953_v27 = vadd.f32 %v20365_v40, %v17449_v60 }
0x2bae   : > { %v15947_v56 = vpop.f32.mrf.mxu0 }
0x2baf   : > { %15971 = vst.msk [vmem:[%s2928_s8 + $0x28] sm:$0xff] %vm3102_vm1, %v15953_v27  ;;  %v15948_v9 = vadd.f32 %v17449_v60, %v15947_v56 }
0x2bb0   : > { %v20368_v7 = vpop.f32.mrf.mxu0 }
0x2bb1   : > { %15970 = vst.msk [vmem:[%s2928_s8 + $0x20] sm:$0xff] %vm3102_vm1, %v15948_v9  ;;  %v15963_v50 = vadd.f32 %v20368_v7, %v17449_v60 }
0x2bb2   : > { %v15957_v46 = vpop.f32.mrf.mxu0 }
0x2bb3   : > { %15973 = vst.msk [vmem:[%s2928_s8 + $0x38] sm:$0xff] %vm3102_vm1, %v15963_v50  ;;  %v15958_v21 = vadd.f32 %v17449_v60, %v15957_v46 }
0x2bb5   : > { %15972 = vst.msk [vmem:[%s2928_s8 + $0x30] sm:$0xff] %vm3102_vm1, %v15958_v21 }
0x2bb6 PF: > { %s189_s0 = sadd.s32 1, %s22413_s0  }
0x2bb7   : > { %p186_p3 = scmp.ge.s32.totalorder %s189_s0, 4  }
0x2bb9   :  { %188 = sbr.rel (!%p186_p3) target bundleno = 168 (0xa8), region = 700 }
0x2bbe   :  { %15995 = vsyncpa [#allocation4], 1 }
0x2bbf   :  { %15997 = vsyncpa [#allocation4 + $0x1], 1 }
0x2bc0   :  { %15998 = vsyncpa [#allocation6], 1 }
0x2bc1   :  { %15999 = vsyncpa [#allocation9], 1 }
0x2bc2   :  { %16000 = vsyncpa [#allocation12], 1 }
0x2bc3   :  { %16001 = vsyncpa [#allocation15], 1 }
0x2bc4   :  { %16002 = vsyncpa [#allocation18], 1 }
0x2bc5   :  { %16003 = vsyncpa [#allocation21], 1 }
0x2bc6   :  { %16004 = vsyncpa [#allocation24], 1 }
0x2bc7   :  { %16005 = vsyncpa [#allocation27], 1 }
0x2bc8   :  { %16006 = vsyncpa [#allocation30], 1 }
0x2bc9   :  { %16007 = vsyncpa [#allocation33], 1 }
0x2bca   :  { %16008 = vsyncpa [#allocation36], 1 }
0x2bcb   :  { %16009 = vsyncpa [#allocation39], 1 }
0x2bcc   :  { %16010 = vsyncpa [#allocation42], 1 }
0x2bcd   :  { %16011 = vsyncpa [#allocation45], 1 }
0x2bce   :  { %16012 = vsyncpa [#allocation48], 1 }
0x2bcf   :  { %16013 = vsyncpa [#allocation51], 1 }
0x2bd0   :  { %16014 = vsyncpa [#allocation54], 1 }
0x2bd1   :  { %16015 = vsyncpa [#allocation57], 1 }
0x2bd2   :  { %16016 = vsyncpa [#allocation60], 1 }
0x2bd3   :  { %16017 = vsyncpa [#allocation63], 1 }
0x2bd4   :  { %16018 = vsyncpa [#allocation66], 1 }
0x2bd5   :  { %16019 = vsyncpa [#allocation69], 1 }
0x2bd6   :  { %16020 = vsyncpa [#allocation72], 1 }
0x2bd7   :  { %16021 = vsyncpa [#allocation75], 1 }
0x2bd8   :  { %16022 = vsyncpa [#allocation78], 1 }
0x2bd9   :  { %16023 = vsyncpa [#allocation81], 1 }
0x2bda   :  { %16024 = vsyncpa [#allocation84], 1 }
0x2bdb   :  { %16025 = vsyncpa [#allocation87], 1 }
0x2bdc   :  { %16026 = vsyncpa [#allocation90], 1 }

</bundles_post_ra>
